<compile_context>
chip_gen: v6e
topology: v6e:2x2x1
jax: 0.10.0
libtpu: 0.0.40
codegen_flags: <defaults>
</compile_context>

<pallas_src>
import functools
import math

import jax
import jax.numpy as jnp
from jax.experimental import pallas as pl
from jax.experimental.pallas import tpu as pltpu

# ---- static configuration (stand-ins for `op.*` / ctor args) ----------------
BS = 2            # batch size
T = 8             # op.all_topic_num
V = 256           # n_topic_vocab
U = 128           # user-id vocab for the id_encoder embedding
H = 128           # hidden_size
PROFILE_NUM = 4   # op.profile_num
BOS_IDX = 1       # trg_bos_idx
S_PAD = ((1 + T + 7) // 8) * 8   # source length 1+T padded to sublane multiple


def _posterior_profile_kernel(topics_ref, tlen_ref, id_ref,          # SMEM (int32)
                              w_topic_ref, w_id_ref, w_emb_ref,      # VMEM weights
                              w_proj_ref, b_proj_ref,                # VMEM weights
                              tok_ref,                               # VMEM output [B, P] int32
                              src_h_ref, emb_proj_ref,               # VMEM scratch
                              *, bos_idx):
    """Whole forward pass for a small batch in one kernel invocation."""
    f32 = jnp.float32

    bs, p_num = tok_ref.shape
    n_topics = topics_ref.shape[1]
    s_pad = src_h_ref.shape[1]
    vocab, hid = w_topic_ref.shape
    scale = 1.0 / math.sqrt(float(hid))

    # --- hoisted gen_proj over the token-embedding table ----------------------
    #     emb_proj[v, :] = w_emb[v, :] @ w_proj   (one well-shaped MXU matmul,
    #     outside the serial decode chain)
    emb_proj_ref[...] = jnp.dot(w_emb_ref[...], w_proj_ref[...],
                                preferred_element_type=f32)           # [V, V]

    lane_v = jax.lax.broadcasted_iota(jnp.int32, (1, vocab), 1)       # [1, V]
    sub_v = jax.lax.broadcasted_iota(jnp.int32, (vocab, 1), 0)        # [V, 1]
    lane_p = jax.lax.broadcasted_iota(jnp.int32, (1, p_num), 1)       # [1, P]
    pos_s = jax.lax.broadcasted_iota(jnp.int32, (s_pad, 1), 0)        # [S_pad, 1]

    b_proj = b_proj_ref[...]                                          # [1, V]

    out_rows = []
    for b in range(bs):                                               # B=2, unrolled
        # --- encoders as scalar-driven row gathers (== one_hot @ table) ------
        src_h_ref[b, :, :] = jnp.zeros((s_pad, hid), f32)             # zero padded rows
        uid = id_ref[b]                                               # SMEM scalar
        src_h_ref[b, 0:1, :] = w_id_ref[pl.ds(uid, 1), :]             # id_encoder row
        for t in range(n_topics):
            tid = topics_ref[b, t]                                    # SMEM scalar
            src_h_ref[b, 1 + t:2 + t, :] = w_topic_ref[pl.ds(tid, 1), :]

        src_h = src_h_ref[b]                                          # [S_pad, H]
        # hoist gen_proj over the source side (outside the decode loop)
        src_proj = jnp.dot(src_h, w_proj_ref[...],
                           preferred_element_type=f32)                # [S_pad, V]

        # --- Tools.get_mask_via_len: additive attention mask ------------------
        # row 0 = user id (always valid); rows 1..T valid iff (row-1) < topics_len;
        # padded rows (>T) always masked.
        tlen = tlen_ref[b]                                            # SMEM scalar
        valid = (pos_s == 0) | ((pos_s <= n_topics) & (pos_s <= tlen))
        neg_mask = jnp.where(valid, 0.0, -1e9).astype(f32)            # [S_pad, 1]

        # --- greedy autoregressive decode (inference branch) ------------------
        sel = jnp.full((1, 1), bos_idx, jnp.int32)                    # current token id
        tok_row = jnp.zeros((1, p_num), jnp.int32)
        for p in range(p_num):
            # token-embedding "gather" via sublane one-hot select+reduce (VPU/XLU)
            oh = (sub_v == sel).astype(f32)                           # [V, 1]
            q = jnp.sum(w_emb_ref[...] * oh, axis=0, keepdims=True)   # [1, H]  = w_emb[sel]
            proj_row = jnp.sum(emb_proj_ref[...] * oh,
                               axis=0, keepdims=True)                 # [1, V]  = emb_proj[sel]

            # masked single-head cross-attention — all VPU/XLU
            s = jnp.sum(src_h * q, axis=-1, keepdims=True) * scale + neg_mask   # [S_pad, 1]
            m = jnp.max(s, axis=0, keepdims=True)                     # [1, 1]
            e = jnp.exp(s - m)                                        # [S_pad, 1]
            attn = e * pl.reciprocal(jnp.sum(e, axis=0, keepdims=True),
                                     approx=True)                     # [S_pad, 1]

            # logits = (ctx + q) @ w_proj + b == attn @ src_proj + emb_proj[sel] + b
            logits = (jnp.sum(attn * src_proj, axis=0, keepdims=True)
                      + proj_row + b_proj)                            # [1, V]

            # argmax(softmax(logits)) == argmax(logits): softmax dropped.
            mx = jnp.max(logits, axis=-1, keepdims=True)
            sel = jnp.min(jnp.where(logits == mx, lane_v, vocab),
                          axis=-1, keepdims=True)                     # [1, 1] int32 (first max)
            tok_row = jnp.where(lane_p == p, sel, tok_row)            # place into slot p

        out_rows.append(tok_row)

    tok_ref[...] = jnp.concatenate(out_rows, axis=0)                  # [B, P] int32


def posterior_profile_forward(topics, topics_len, user_id, params):
    bs = topics.shape[0]
    kernel = functools.partial(_posterior_profile_kernel, bos_idx=BOS_IDX)
    smem = pl.BlockSpec(memory_space=pltpu.MemorySpace.SMEM)
    vmem = pl.BlockSpec(memory_space=pltpu.MemorySpace.VMEM)
    return pl.pallas_call(
        kernel,
        out_shape=jax.ShapeDtypeStruct((bs, PROFILE_NUM), jnp.int32),
        in_specs=[smem, smem, smem, vmem, vmem, vmem, vmem, vmem],
        out_specs=vmem,
        scratch_shapes=[
            pltpu.VMEM((bs, S_PAD, H), jnp.float32),   # padded src_hidden
            pltpu.VMEM((V, V), jnp.float32),           # emb_proj = w_emb @ w_proj
        ],
    )(topics.astype(jnp.int32),
      topics_len.astype(jnp.int32),
      user_id.astype(jnp.int32),
      params['w_topic'], params['w_id'], params['w_emb'],
      params['w_proj'], params['b_proj'])


def init_params(key):
    ks = jax.random.split(key, 5)
    s = 0.02
    return {
        'w_topic': s * jax.random.normal(ks[0], (V, H), jnp.float32),
        'w_id':    s * jax.random.normal(ks[1], (U, H), jnp.float32),
        'w_emb':   s * jax.random.normal(ks[2], (V, H), jnp.float32),
        'w_proj':  s * jax.random.normal(ks[3], (H, V), jnp.float32),
        'b_proj':  s * jax.random.normal(ks[4], (1, V), jnp.float32),
    }


if __name__ == "__main__":
    key = jax.random.PRNGKey(0)
    k_p, k_t, k_l, k_i = jax.random.split(key, 4)

    params = init_params(k_p)
    topics = jax.random.randint(k_t, (BS, T), 2, V)          # topic ids
    topics_len = jax.random.randint(k_l, (BS,), 1, T + 1)    # valid lengths
    user_id = jax.random.randint(k_i, (BS,), 0, U)           # user ids

    out = posterior_profile_forward(topics, topics_len, user_id, params)
    out = jax.block_until_ready(out)
    assert out.shape == (BS, PROFILE_NUM) and out.dtype == jnp.int32
    print("KERNEL_OK")
</pallas_src>

<mosaic_0001>
module attributes {stable_mosaic.version = 11 : i64} {
  func.func @_posterior_profile_kernel(%arg0: memref<2x8xi32, #tpu.memory_space<smem>>, %arg1: memref<2xi32, #tpu.memory_space<smem>>, %arg2: memref<2xi32, #tpu.memory_space<smem>>, %arg3: memref<256x128xf32, #tpu.memory_space<vmem>>, %arg4: memref<128x128xf32, #tpu.memory_space<vmem>>, %arg5: memref<256x128xf32, #tpu.memory_space<vmem>>, %arg6: memref<128x256xf32, #tpu.memory_space<vmem>>, %arg7: memref<1x256xf32, #tpu.memory_space<vmem>>, %arg8: memref<2x4xi32, #tpu.memory_space<vmem>>, %arg9: memref<2x16x128xf32, #tpu.memory_space<vmem>>, %arg10: memref<256x256xf32, #tpu.memory_space<vmem>>) attributes {dimension_semantics = [], scalar_prefetch = 0 : i64, scratch_operands = 2 : i64, tpu.core_type = #tpu.core_type<tc>} {
    %c0 = arith.constant 0 : index
    %c0_0 = arith.constant 0 : index
    %0 = vector.load %arg5[%c0, %c0_0] : memref<256x128xf32, #tpu.memory_space<vmem>>, vector<256x128xf32>
    %c0_1 = arith.constant 0 : index
    %c0_2 = arith.constant 0 : index
    %1 = vector.load %arg6[%c0_1, %c0_2] : memref<128x256xf32, #tpu.memory_space<vmem>>, vector<128x256xf32>
    %cst = arith.constant dense<0.000000e+00> : vector<256x256xf32>
    %2 = tpu.matmul %0, %1, %cst {dimension_numbers = #tpu.dot_dimension_numbers<[1], [0], [0], [1], [0, 0, 1, 1], [], []>} : vector<256x128xf32>, vector<128x256xf32>, vector<256x256xf32> -> vector<256x256xf32>
    %c0_3 = arith.constant 0 : index
    %c0_4 = arith.constant 0 : index
    %3 = vector.load %arg10[%c0_3, %c0_4] : memref<256x256xf32, #tpu.memory_space<vmem>>, vector<256x256xf32>
    tpu.vector_store %arg10[%c0_3, %c0_4], %2 {strides = array<i32>} : memref<256x256xf32, #tpu.memory_space<vmem>>, vector<256x256xf32>,
    %4 = tpu.iota {dimensions = array<i32: 1>} : vector<1x256xi32>
    %5 = tpu.iota {dimensions = array<i32: 0>} : vector<256x1xi32>
    %6 = tpu.iota {dimensions = array<i32: 1>} : vector<1x4xi32>
    %7 = tpu.iota {dimensions = array<i32: 0>} : vector<16x1xi32>
    %c0_5 = arith.constant 0 : index
    %c0_6 = arith.constant 0 : index
    %8 = vector.load %arg7[%c0_5, %c0_6] : memref<1x256xf32, #tpu.memory_space<vmem>>, vector<1x256xf32>
    %cst_7 = arith.constant 0.000000e+00 : f32
    %9 = vector.broadcast %cst_7 : f32 to vector<16x128xf32>
    %c0_8 = arith.constant 0 : index
    %c0_9 = arith.constant 0 : index
    %c0_10 = arith.constant 0 : index
    %10 = vector.load %arg9[%c0_8, %c0_9, %c0_10] : memref<2x16x128xf32, #tpu.memory_space<vmem>>, vector<1x16x128xf32>
    %11 = vector.shape_cast %10 : vector<1x16x128xf32> to vector<16x128xf32>
    %12 = vector.shape_cast %9 : vector<16x128xf32> to vector<1x16x128xf32>
    tpu.vector_store %arg9[%c0_8, %c0_9, %c0_10], %12 {strides = array<i32>} : memref<2x16x128xf32, #tpu.memory_space<vmem>>, vector<1x16x128xf32>,
    %c0_11 = arith.constant 0 : index
    %13 = memref.load %arg2[%c0_11] : memref<2xi32, #tpu.memory_space<smem>>
    %14 = arith.index_cast %13 : i32 to index
    %c0_12 = arith.constant 0 : index
    %15 = vector.load %arg4[%14, %c0_12] : memref<128x128xf32, #tpu.memory_space<vmem>>, vector<1x128xf32>
    %c0_13 = arith.constant 0 : index
    %c0_14 = arith.constant 0 : index
    %c0_15 = arith.constant 0 : index
    %16 = vector.load %arg9[%c0_13, %c0_14, %c0_15] : memref<2x16x128xf32, #tpu.memory_space<vmem>>, vector<1x1x128xf32>
    %17 = vector.shape_cast %16 : vector<1x1x128xf32> to vector<1x128xf32>
    %18 = vector.shape_cast %15 : vector<1x128xf32> to vector<1x1x128xf32>
    tpu.vector_store %arg9[%c0_13, %c0_14, %c0_15], %18 {strides = array<i32>} : memref<2x16x128xf32, #tpu.memory_space<vmem>>, vector<1x1x128xf32>,
    %c0_16 = arith.constant 0 : index
    %c0_17 = arith.constant 0 : index
    %19 = memref.load %arg0[%c0_16, %c0_17] : memref<2x8xi32, #tpu.memory_space<smem>>
    %20 = arith.index_cast %19 : i32 to index
    %c0_18 = arith.constant 0 : index
    %21 = vector.load %arg3[%20, %c0_18] : memref<256x128xf32, #tpu.memory_space<vmem>>, vector<1x128xf32>
    %c0_19 = arith.constant 0 : index
    %c1 = arith.constant 1 : index
    %c0_20 = arith.constant 0 : index
    %22 = vector.load %arg9[%c0_19, %c1, %c0_20] : memref<2x16x128xf32, #tpu.memory_space<vmem>>, vector<1x1x128xf32>
    %23 = vector.shape_cast %22 : vector<1x1x128xf32> to vector<1x128xf32>
    %24 = vector.shape_cast %21 : vector<1x128xf32> to vector<1x1x128xf32>
    tpu.vector_store %arg9[%c0_19, %c1, %c0_20], %24 {strides = array<i32>} : memref<2x16x128xf32, #tpu.memory_space<vmem>>, vector<1x1x128xf32>,
    %c0_21 = arith.constant 0 : index
    %c1_22 = arith.constant 1 : index
    %25 = memref.load %arg0[%c0_21, %c1_22] : memref<2x8xi32, #tpu.memory_space<smem>>
    %26 = arith.index_cast %25 : i32 to index
    %c0_23 = arith.constant 0 : index
    %27 = vector.load %arg3[%26, %c0_23] : memref<256x128xf32, #tpu.memory_space<vmem>>, vector<1x128xf32>
    %c0_24 = arith.constant 0 : index
    %c2 = arith.constant 2 : index
    %c0_25 = arith.constant 0 : index
    %28 = vector.load %arg9[%c0_24, %c2, %c0_25] : memref<2x16x128xf32, #tpu.memory_space<vmem>>, vector<1x1x128xf32>
    %29 = vector.shape_cast %28 : vector<1x1x128xf32> to vector<1x128xf32>
    %30 = vector.shape_cast %27 : vector<1x128xf32> to vector<1x1x128xf32>
    tpu.vector_store %arg9[%c0_24, %c2, %c0_25], %30 {strides = array<i32>} : memref<2x16x128xf32, #tpu.memory_space<vmem>>, vector<1x1x128xf32>,
    %c0_26 = arith.constant 0 : index
    %c2_27 = arith.constant 2 : index
    %31 = memref.load %arg0[%c0_26, %c2_27] : memref<2x8xi32, #tpu.memory_space<smem>>
    %32 = arith.index_cast %31 : i32 to index
    %c0_28 = arith.constant 0 : index
    %33 = vector.load %arg3[%32, %c0_28] : memref<256x128xf32, #tpu.memory_space<vmem>>, vector<1x128xf32>
    %c0_29 = arith.constant 0 : index
    %c3 = arith.constant 3 : index
    %c0_30 = arith.constant 0 : index
    %34 = vector.load %arg9[%c0_29, %c3, %c0_30] : memref<2x16x128xf32, #tpu.memory_space<vmem>>, vector<1x1x128xf32>
    %35 = vector.shape_cast %34 : vector<1x1x128xf32> to vector<1x128xf32>
    %36 = vector.shape_cast %33 : vector<1x128xf32> to vector<1x1x128xf32>
    tpu.vector_store %arg9[%c0_29, %c3, %c0_30], %36 {strides = array<i32>} : memref<2x16x128xf32, #tpu.memory_space<vmem>>, vector<1x1x128xf32>,
    %c0_31 = arith.constant 0 : index
    %c3_32 = arith.constant 3 : index
    %37 = memref.load %arg0[%c0_31, %c3_32] : memref<2x8xi32, #tpu.memory_space<smem>>
    %38 = arith.index_cast %37 : i32 to index
    %c0_33 = arith.constant 0 : index
    %39 = vector.load %arg3[%38, %c0_33] : memref<256x128xf32, #tpu.memory_space<vmem>>, vector<1x128xf32>
    %c0_34 = arith.constant 0 : index
    %c4 = arith.constant 4 : index
    %c0_35 = arith.constant 0 : index
    %40 = vector.load %arg9[%c0_34, %c4, %c0_35] : memref<2x16x128xf32, #tpu.memory_space<vmem>>, vector<1x1x128xf32>
    %41 = vector.shape_cast %40 : vector<1x1x128xf32> to vector<1x128xf32>
    %42 = vector.shape_cast %39 : vector<1x128xf32> to vector<1x1x128xf32>
    tpu.vector_store %arg9[%c0_34, %c4, %c0_35], %42 {strides = array<i32>} : memref<2x16x128xf32, #tpu.memory_space<vmem>>, vector<1x1x128xf32>,
    %c0_36 = arith.constant 0 : index
    %c4_37 = arith.constant 4 : index
    %43 = memref.load %arg0[%c0_36, %c4_37] : memref<2x8xi32, #tpu.memory_space<smem>>
    %44 = arith.index_cast %43 : i32 to index
    %c0_38 = arith.constant 0 : index
    %45 = vector.load %arg3[%44, %c0_38] : memref<256x128xf32, #tpu.memory_space<vmem>>, vector<1x128xf32>
    %c0_39 = arith.constant 0 : index
    %c5 = arith.constant 5 : index
    %c0_40 = arith.constant 0 : index
    %46 = vector.load %arg9[%c0_39, %c5, %c0_40] : memref<2x16x128xf32, #tpu.memory_space<vmem>>, vector<1x1x128xf32>
    %47 = vector.shape_cast %46 : vector<1x1x128xf32> to vector<1x128xf32>
    %48 = vector.shape_cast %45 : vector<1x128xf32> to vector<1x1x128xf32>
    tpu.vector_store %arg9[%c0_39, %c5, %c0_40], %48 {strides = array<i32>} : memref<2x16x128xf32, #tpu.memory_space<vmem>>, vector<1x1x128xf32>,
    %c0_41 = arith.constant 0 : index
    %c5_42 = arith.constant 5 : index
    %49 = memref.load %arg0[%c0_41, %c5_42] : memref<2x8xi32, #tpu.memory_space<smem>>
    %50 = arith.index_cast %49 : i32 to index
    %c0_43 = arith.constant 0 : index
    %51 = vector.load %arg3[%50, %c0_43] : memref<256x128xf32, #tpu.memory_space<vmem>>, vector<1x128xf32>
    %c0_44 = arith.constant 0 : index
    %c6 = arith.constant 6 : index
    %c0_45 = arith.constant 0 : index
    %52 = vector.load %arg9[%c0_44, %c6, %c0_45] : memref<2x16x128xf32, #tpu.memory_space<vmem>>, vector<1x1x128xf32>
    %53 = vector.shape_cast %52 : vector<1x1x128xf32> to vector<1x128xf32>
    %54 = vector.shape_cast %51 : vector<1x128xf32> to vector<1x1x128xf32>
    tpu.vector_store %arg9[%c0_44, %c6, %c0_45], %54 {strides = array<i32>} : memref<2x16x128xf32, #tpu.memory_space<vmem>>, vector<1x1x128xf32>,
    %c0_46 = arith.constant 0 : index
    %c6_47 = arith.constant 6 : index
    %55 = memref.load %arg0[%c0_46, %c6_47] : memref<2x8xi32, #tpu.memory_space<smem>>
    %56 = arith.index_cast %55 : i32 to index
    %c0_48 = arith.constant 0 : index
    %57 = vector.load %arg3[%56, %c0_48] : memref<256x128xf32, #tpu.memory_space<vmem>>, vector<1x128xf32>
    %c0_49 = arith.constant 0 : index
    %c7 = arith.constant 7 : index
    %c0_50 = arith.constant 0 : index
    %58 = vector.load %arg9[%c0_49, %c7, %c0_50] : memref<2x16x128xf32, #tpu.memory_space<vmem>>, vector<1x1x128xf32>
    %59 = vector.shape_cast %58 : vector<1x1x128xf32> to vector<1x128xf32>
    %60 = vector.shape_cast %57 : vector<1x128xf32> to vector<1x1x128xf32>
    tpu.vector_store %arg9[%c0_49, %c7, %c0_50], %60 {strides = array<i32>} : memref<2x16x128xf32, #tpu.memory_space<vmem>>, vector<1x1x128xf32>,
    %c0_51 = arith.constant 0 : index
    %c7_52 = arith.constant 7 : index
    %61 = memref.load %arg0[%c0_51, %c7_52] : memref<2x8xi32, #tpu.memory_space<smem>>
    %62 = arith.index_cast %61 : i32 to index
    %c0_53 = arith.constant 0 : index
    %63 = vector.load %arg3[%62, %c0_53] : memref<256x128xf32, #tpu.memory_space<vmem>>, vector<1x128xf32>
    %c0_54 = arith.constant 0 : index
    %c8 = arith.constant 8 : index
    %c0_55 = arith.constant 0 : index
    %64 = vector.load %arg9[%c0_54, %c8, %c0_55] : memref<2x16x128xf32, #tpu.memory_space<vmem>>, vector<1x1x128xf32>
    %65 = vector.shape_cast %64 : vector<1x1x128xf32> to vector<1x128xf32>
    %66 = vector.shape_cast %63 : vector<1x128xf32> to vector<1x1x128xf32>
    tpu.vector_store %arg9[%c0_54, %c8, %c0_55], %66 {strides = array<i32>} : memref<2x16x128xf32, #tpu.memory_space<vmem>>, vector<1x1x128xf32>,
    %c0_56 = arith.constant 0 : index
    %c0_57 = arith.constant 0 : index
    %c0_58 = arith.constant 0 : index
    %67 = vector.load %arg9[%c0_56, %c0_57, %c0_58] : memref<2x16x128xf32, #tpu.memory_space<vmem>>, vector<1x16x128xf32>
    %68 = vector.shape_cast %67 : vector<1x16x128xf32> to vector<16x128xf32>
    %c0_59 = arith.constant 0 : index
    %c0_60 = arith.constant 0 : index
    %69 = vector.load %arg6[%c0_59, %c0_60] : memref<128x256xf32, #tpu.memory_space<vmem>>, vector<128x256xf32>
    %cst_61 = arith.constant dense<0.000000e+00> : vector<16x256xf32>
    %70 = tpu.matmul %68, %69, %cst_61 {dimension_numbers = #tpu.dot_dimension_numbers<[1], [0], [0], [1], [0, 0, 1, 1], [], []>} : vector<16x128xf32>, vector<128x256xf32>, vector<16x256xf32> -> vector<16x256xf32>
    %c0_62 = arith.constant 0 : index
    %71 = memref.load %arg1[%c0_62] : memref<2xi32, #tpu.memory_space<smem>>
    %c0_i32 = arith.constant 0 : i32
    %72 = vector.broadcast %c0_i32 : i32 to vector<16x1xi32>
    %73 = arith.cmpi eq, %7, %72 : vector<16x1xi32>
    %c8_i32 = arith.constant 8 : i32
    %74 = vector.broadcast %c8_i32 : i32 to vector<16x1xi32>
    %75 = arith.cmpi sle, %7, %74 : vector<16x1xi32>
    %76 = vector.broadcast %71 : i32 to vector<16x1xi32>
    %77 = arith.cmpi sle, %7, %76 : vector<16x1xi32>
    %78 = arith.andi %75, %77 : vector<16x1xi1>
    %79 = arith.ori %73, %78 : vector<16x1xi1>
    %cst_63 = arith.constant 0.000000e+00 : f32
    %cst_64 = arith.constant -1.000000e+09 : f32
    %80 = vector.broadcast %cst_63 : f32 to vector<16x1xf32>
    %81 = vector.broadcast %cst_64 : f32 to vector<16x1xf32>
    %82 = arith.select %79, %80, %81 : vector<16x1xi1>, vector<16x1xf32>
    %c1_i32 = arith.constant 1 : i32
    %83 = vector.broadcast %c1_i32 : i32 to vector<1x1xi32>
    %c0_i32_65 = arith.constant 0 : i32
    %84 = vector.broadcast %c0_i32_65 : i32 to vector<1x4xi32>
    %85 = vector.broadcast %83 : vector<1x1xi32> to vector<256x1xi32>
    %86 = arith.cmpi eq, %5, %85 : vector<256x1xi32>
    %87 = arith.extui %86 : vector<256x1xi1> to vector<256x1xi32>
    %88 = arith.sitofp %87 : vector<256x1xi32> to vector<256x1xf32>
    %c0_66 = arith.constant 0 : index
    %c0_67 = arith.constant 0 : index
    %89 = vector.load %arg5[%c0_66, %c0_67] : memref<256x128xf32, #tpu.memory_space<vmem>>, vector<256x128xf32>
    %90 = vector.broadcast %88 : vector<256x1xf32> to vector<256x128xf32>
    %91 = arith.mulf %89, %90 : vector<256x128xf32>
    %cst_68 = arith.constant dense<0.000000e+00> : vector<128xf32>
    %92 = vector.multi_reduction <add>, %91, %cst_68 [0] : vector<256x128xf32> to vector<128xf32>
    %93 = vector.shape_cast %92 : vector<128xf32> to vector<1x128xf32>
    %c0_69 = arith.constant 0 : index
    %c0_70 = arith.constant 0 : index
    %94 = vector.load %arg10[%c0_69, %c0_70] : memref<256x256xf32, #tpu.memory_space<vmem>>, vector<256x256xf32>
    %95 = vector.broadcast %88 : vector<256x1xf32> to vector<256x256xf32>
    %96 = arith.mulf %94, %95 : vector<256x256xf32>
    %cst_71 = arith.constant dense<0.000000e+00> : vector<256xf32>
    %97 = vector.multi_reduction <add>, %96, %cst_71 [0] : vector<256x256xf32> to vector<256xf32>
    %98 = vector.shape_cast %97 : vector<256xf32> to vector<1x256xf32>
    %99 = vector.broadcast %93 : vector<1x128xf32> to vector<16x128xf32>
    %100 = arith.mulf %68, %99 : vector<16x128xf32>
    %cst_72 = arith.constant dense<0.000000e+00> : vector<16xf32>
    %101 = vector.multi_reduction <add>, %100, %cst_72 [1] : vector<16x128xf32> to vector<16xf32>
    %102 = vector.shape_cast %101 : vector<16xf32> to vector<16x1xf32>
    %cst_73 = arith.constant 0.0883883461 : f32
    %103 = vector.broadcast %cst_73 : f32 to vector<16x1xf32>
    %104 = arith.mulf %102, %103 : vector<16x1xf32>
    %105 = arith.addf %104, %82 : vector<16x1xf32>
    %cst_74 = arith.constant dense<0xFF800000> : vector<1xf32>
    %106 = vector.multi_reduction <maximumf>, %105, %cst_74 [0] : vector<16x1xf32> to vector<1xf32>
    %107 = vector.shape_cast %106 : vector<1xf32> to vector<1x1xf32>
    %108 = vector.broadcast %107 : vector<1x1xf32> to vector<16x1xf32>
    %109 = arith.subf %105, %108 : vector<16x1xf32>
    %110 = math.exp %109 : vector<16x1xf32>
    %cst_75 = arith.constant dense<0.000000e+00> : vector<1xf32>
    %111 = vector.multi_reduction <add>, %110, %cst_75 [0] : vector<16x1xf32> to vector<1xf32>
    %112 = vector.shape_cast %111 : vector<1xf32> to vector<1x1xf32>
    %113 = tpu.reciprocal %112 {approx = true} : vector<1x1xf32> -> vector<1x1xf32>
    %114 = vector.broadcast %113 : vector<1x1xf32> to vector<16x1xf32>
    %115 = arith.mulf %110, %114 : vector<16x1xf32>
    %116 = vector.broadcast %115 : vector<16x1xf32> to vector<16x256xf32>
    %117 = arith.mulf %116, %70 : vector<16x256xf32>
    %cst_76 = arith.constant dense<0.000000e+00> : vector<256xf32>
    %118 = vector.multi_reduction <add>, %117, %cst_76 [0] : vector<16x256xf32> to vector<256xf32>
    %119 = vector.shape_cast %118 : vector<256xf32> to vector<1x256xf32>
    %120 = arith.addf %119, %98 : vector<1x256xf32>
    %121 = arith.addf %120, %8 : vector<1x256xf32>
    %cst_77 = arith.constant dense<0xFF800000> : vector<1xf32>
    %122 = vector.multi_reduction <maximumf>, %121, %cst_77 [1] : vector<1x256xf32> to vector<1xf32>
    %123 = vector.shape_cast %122 : vector<1xf32> to vector<1x1xf32>
    %124 = vector.broadcast %123 : vector<1x1xf32> to vector<1x256xf32>
    %125 = arith.cmpf oeq, %121, %124 : vector<1x256xf32>
    %c256_i32 = arith.constant 256 : i32
    %126 = vector.broadcast %c256_i32 : i32 to vector<1x256xi32>
    %127 = arith.select %125, %4, %126 : vector<1x256xi1>, vector<1x256xi32>
    %cst_78 = arith.constant dense<2147483647> : vector<1xi32>
    %128 = vector.multi_reduction <minsi>, %127, %cst_78 [1] : vector<1x256xi32> to vector<1xi32>
    %129 = vector.shape_cast %128 : vector<1xi32> to vector<1x1xi32>
    %c0_i32_79 = arith.constant 0 : i32
    %130 = vector.broadcast %c0_i32_79 : i32 to vector<1x4xi32>
    %131 = arith.cmpi eq, %6, %130 : vector<1x4xi32>
    %132 = vector.shape_cast %129 : vector<1x1xi32> to vector<1x1xi32>
    %133 = vector.broadcast %132 : vector<1x1xi32> to vector<1x4xi32>
    %134 = arith.select %131, %133, %84 : vector<1x4xi1>, vector<1x4xi32>
    %135 = vector.broadcast %129 : vector<1x1xi32> to vector<256x1xi32>
    %136 = arith.cmpi eq, %5, %135 : vector<256x1xi32>
    %137 = arith.extui %136 : vector<256x1xi1> to vector<256x1xi32>
    %138 = arith.sitofp %137 : vector<256x1xi32> to vector<256x1xf32>
    %c0_80 = arith.constant 0 : index
    %c0_81 = arith.constant 0 : index
    %139 = vector.load %arg5[%c0_80, %c0_81] : memref<256x128xf32, #tpu.memory_space<vmem>>, vector<256x128xf32>
    %140 = vector.broadcast %138 : vector<256x1xf32> to vector<256x128xf32>
    %141 = arith.mulf %139, %140 : vector<256x128xf32>
    %cst_82 = arith.constant dense<0.000000e+00> : vector<128xf32>
    %142 = vector.multi_reduction <add>, %141, %cst_82 [0] : vector<256x128xf32> to vector<128xf32>
    %143 = vector.shape_cast %142 : vector<128xf32> to vector<1x128xf32>
    %c0_83 = arith.constant 0 : index
    %c0_84 = arith.constant 0 : index
    %144 = vector.load %arg10[%c0_83, %c0_84] : memref<256x256xf32, #tpu.memory_space<vmem>>, vector<256x256xf32>
    %145 = vector.broadcast %138 : vector<256x1xf32> to vector<256x256xf32>
    %146 = arith.mulf %144, %145 : vector<256x256xf32>
    %cst_85 = arith.constant dense<0.000000e+00> : vector<256xf32>
    %147 = vector.multi_reduction <add>, %146, %cst_85 [0] : vector<256x256xf32> to vector<256xf32>
    %148 = vector.shape_cast %147 : vector<256xf32> to vector<1x256xf32>
    %149 = vector.broadcast %143 : vector<1x128xf32> to vector<16x128xf32>
    %150 = arith.mulf %68, %149 : vector<16x128xf32>
    %cst_86 = arith.constant dense<0.000000e+00> : vector<16xf32>
    %151 = vector.multi_reduction <add>, %150, %cst_86 [1] : vector<16x128xf32> to vector<16xf32>
    %152 = vector.shape_cast %151 : vector<16xf32> to vector<16x1xf32>
    %cst_87 = arith.constant 0.0883883461 : f32
    %153 = vector.broadcast %cst_87 : f32 to vector<16x1xf32>
    %154 = arith.mulf %152, %153 : vector<16x1xf32>
    %155 = arith.addf %154, %82 : vector<16x1xf32>
    %cst_88 = arith.constant dense<0xFF800000> : vector<1xf32>
    %156 = vector.multi_reduction <maximumf>, %155, %cst_88 [0] : vector<16x1xf32> to vector<1xf32>
    %157 = vector.shape_cast %156 : vector<1xf32> to vector<1x1xf32>
    %158 = vector.broadcast %157 : vector<1x1xf32> to vector<16x1xf32>
    %159 = arith.subf %155, %158 : vector<16x1xf32>
    %160 = math.exp %159 : vector<16x1xf32>
    %cst_89 = arith.constant dense<0.000000e+00> : vector<1xf32>
    %161 = vector.multi_reduction <add>, %160, %cst_89 [0] : vector<16x1xf32> to vector<1xf32>
    %162 = vector.shape_cast %161 : vector<1xf32> to vector<1x1xf32>
    %163 = tpu.reciprocal %162 {approx = true} : vector<1x1xf32> -> vector<1x1xf32>
    %164 = vector.broadcast %163 : vector<1x1xf32> to vector<16x1xf32>
    %165 = arith.mulf %160, %164 : vector<16x1xf32>
    %166 = vector.broadcast %165 : vector<16x1xf32> to vector<16x256xf32>
    %167 = arith.mulf %166, %70 : vector<16x256xf32>
    %cst_90 = arith.constant dense<0.000000e+00> : vector<256xf32>
    %168 = vector.multi_reduction <add>, %167, %cst_90 [0] : vector<16x256xf32> to vector<256xf32>
    %169 = vector.shape_cast %168 : vector<256xf32> to vector<1x256xf32>
    %170 = arith.addf %169, %148 : vector<1x256xf32>
    %171 = arith.addf %170, %8 : vector<1x256xf32>
    %cst_91 = arith.constant dense<0xFF800000> : vector<1xf32>
    %172 = vector.multi_reduction <maximumf>, %171, %cst_91 [1] : vector<1x256xf32> to vector<1xf32>
    %173 = vector.shape_cast %172 : vector<1xf32> to vector<1x1xf32>
    %174 = vector.broadcast %173 : vector<1x1xf32> to vector<1x256xf32>
    %175 = arith.cmpf oeq, %171, %174 : vector<1x256xf32>
    %c256_i32_92 = arith.constant 256 : i32
    %176 = vector.broadcast %c256_i32_92 : i32 to vector<1x256xi32>
    %177 = arith.select %175, %4, %176 : vector<1x256xi1>, vector<1x256xi32>
    %cst_93 = arith.constant dense<2147483647> : vector<1xi32>
    %178 = vector.multi_reduction <minsi>, %177, %cst_93 [1] : vector<1x256xi32> to vector<1xi32>
    %179 = vector.shape_cast %178 : vector<1xi32> to vector<1x1xi32>
    %c1_i32_94 = arith.constant 1 : i32
    %180 = vector.broadcast %c1_i32_94 : i32 to vector<1x4xi32>
    %181 = arith.cmpi eq, %6, %180 : vector<1x4xi32>
    %182 = vector.shape_cast %179 : vector<1x1xi32> to vector<1x1xi32>
    %183 = vector.broadcast %182 : vector<1x1xi32> to vector<1x4xi32>
    %184 = arith.select %181, %183, %134 : vector<1x4xi1>, vector<1x4xi32>
    %185 = vector.broadcast %179 : vector<1x1xi32> to vector<256x1xi32>
    %186 = arith.cmpi eq, %5, %185 : vector<256x1xi32>
    %187 = arith.extui %186 : vector<256x1xi1> to vector<256x1xi32>
    %188 = arith.sitofp %187 : vector<256x1xi32> to vector<256x1xf32>
    %c0_95 = arith.constant 0 : index
    %c0_96 = arith.constant 0 : index
    %189 = vector.load %arg5[%c0_95, %c0_96] : memref<256x128xf32, #tpu.memory_space<vmem>>, vector<256x128xf32>
    %190 = vector.broadcast %188 : vector<256x1xf32> to vector<256x128xf32>
    %191 = arith.mulf %189, %190 : vector<256x128xf32>
    %cst_97 = arith.constant dense<0.000000e+00> : vector<128xf32>
    %192 = vector.multi_reduction <add>, %191, %cst_97 [0] : vector<256x128xf32> to vector<128xf32>
    %193 = vector.shape_cast %192 : vector<128xf32> to vector<1x128xf32>
    %c0_98 = arith.constant 0 : index
    %c0_99 = arith.constant 0 : index
    %194 = vector.load %arg10[%c0_98, %c0_99] : memref<256x256xf32, #tpu.memory_space<vmem>>, vector<256x256xf32>
    %195 = vector.broadcast %188 : vector<256x1xf32> to vector<256x256xf32>
    %196 = arith.mulf %194, %195 : vector<256x256xf32>
    %cst_100 = arith.constant dense<0.000000e+00> : vector<256xf32>
    %197 = vector.multi_reduction <add>, %196, %cst_100 [0] : vector<256x256xf32> to vector<256xf32>
    %198 = vector.shape_cast %197 : vector<256xf32> to vector<1x256xf32>
    %199 = vector.broadcast %193 : vector<1x128xf32> to vector<16x128xf32>
    %200 = arith.mulf %68, %199 : vector<16x128xf32>
    %cst_101 = arith.constant dense<0.000000e+00> : vector<16xf32>
    %201 = vector.multi_reduction <add>, %200, %cst_101 [1] : vector<16x128xf32> to vector<16xf32>
    %202 = vector.shape_cast %201 : vector<16xf32> to vector<16x1xf32>
    %cst_102 = arith.constant 0.0883883461 : f32
    %203 = vector.broadcast %cst_102 : f32 to vector<16x1xf32>
    %204 = arith.mulf %202, %203 : vector<16x1xf32>
    %205 = arith.addf %204, %82 : vector<16x1xf32>
    %cst_103 = arith.constant dense<0xFF800000> : vector<1xf32>
    %206 = vector.multi_reduction <maximumf>, %205, %cst_103 [0] : vector<16x1xf32> to vector<1xf32>
    %207 = vector.shape_cast %206 : vector<1xf32> to vector<1x1xf32>
    %208 = vector.broadcast %207 : vector<1x1xf32> to vector<16x1xf32>
    %209 = arith.subf %205, %208 : vector<16x1xf32>
    %210 = math.exp %209 : vector<16x1xf32>
    %cst_104 = arith.constant dense<0.000000e+00> : vector<1xf32>
    %211 = vector.multi_reduction <add>, %210, %cst_104 [0] : vector<16x1xf32> to vector<1xf32>
    %212 = vector.shape_cast %211 : vector<1xf32> to vector<1x1xf32>
    %213 = tpu.reciprocal %212 {approx = true} : vector<1x1xf32> -> vector<1x1xf32>
    %214 = vector.broadcast %213 : vector<1x1xf32> to vector<16x1xf32>
    %215 = arith.mulf %210, %214 : vector<16x1xf32>
    %216 = vector.broadcast %215 : vector<16x1xf32> to vector<16x256xf32>
    %217 = arith.mulf %216, %70 : vector<16x256xf32>
    %cst_105 = arith.constant dense<0.000000e+00> : vector<256xf32>
    %218 = vector.multi_reduction <add>, %217, %cst_105 [0] : vector<16x256xf32> to vector<256xf32>
    %219 = vector.shape_cast %218 : vector<256xf32> to vector<1x256xf32>
    %220 = arith.addf %219, %198 : vector<1x256xf32>
    %221 = arith.addf %220, %8 : vector<1x256xf32>
    %cst_106 = arith.constant dense<0xFF800000> : vector<1xf32>
    %222 = vector.multi_reduction <maximumf>, %221, %cst_106 [1] : vector<1x256xf32> to vector<1xf32>
    %223 = vector.shape_cast %222 : vector<1xf32> to vector<1x1xf32>
    %224 = vector.broadcast %223 : vector<1x1xf32> to vector<1x256xf32>
    %225 = arith.cmpf oeq, %221, %224 : vector<1x256xf32>
    %c256_i32_107 = arith.constant 256 : i32
    %226 = vector.broadcast %c256_i32_107 : i32 to vector<1x256xi32>
    %227 = arith.select %225, %4, %226 : vector<1x256xi1>, vector<1x256xi32>
    %cst_108 = arith.constant dense<2147483647> : vector<1xi32>
    %228 = vector.multi_reduction <minsi>, %227, %cst_108 [1] : vector<1x256xi32> to vector<1xi32>
    %229 = vector.shape_cast %228 : vector<1xi32> to vector<1x1xi32>
    %c2_i32 = arith.constant 2 : i32
    %230 = vector.broadcast %c2_i32 : i32 to vector<1x4xi32>
    %231 = arith.cmpi eq, %6, %230 : vector<1x4xi32>
    %232 = vector.shape_cast %229 : vector<1x1xi32> to vector<1x1xi32>
    %233 = vector.broadcast %232 : vector<1x1xi32> to vector<1x4xi32>
    %234 = arith.select %231, %233, %184 : vector<1x4xi1>, vector<1x4xi32>
    %235 = vector.broadcast %229 : vector<1x1xi32> to vector<256x1xi32>
    %236 = arith.cmpi eq, %5, %235 : vector<256x1xi32>
    %237 = arith.extui %236 : vector<256x1xi1> to vector<256x1xi32>
    %238 = arith.sitofp %237 : vector<256x1xi32> to vector<256x1xf32>
    %c0_109 = arith.constant 0 : index
    %c0_110 = arith.constant 0 : index
    %239 = vector.load %arg5[%c0_109, %c0_110] : memref<256x128xf32, #tpu.memory_space<vmem>>, vector<256x128xf32>
    %240 = vector.broadcast %238 : vector<256x1xf32> to vector<256x128xf32>
    %241 = arith.mulf %239, %240 : vector<256x128xf32>
    %cst_111 = arith.constant dense<0.000000e+00> : vector<128xf32>
    %242 = vector.multi_reduction <add>, %241, %cst_111 [0] : vector<256x128xf32> to vector<128xf32>
    %243 = vector.shape_cast %242 : vector<128xf32> to vector<1x128xf32>
    %c0_112 = arith.constant 0 : index
    %c0_113 = arith.constant 0 : index
    %244 = vector.load %arg10[%c0_112, %c0_113] : memref<256x256xf32, #tpu.memory_space<vmem>>, vector<256x256xf32>
    %245 = vector.broadcast %238 : vector<256x1xf32> to vector<256x256xf32>
    %246 = arith.mulf %244, %245 : vector<256x256xf32>
    %cst_114 = arith.constant dense<0.000000e+00> : vector<256xf32>
    %247 = vector.multi_reduction <add>, %246, %cst_114 [0] : vector<256x256xf32> to vector<256xf32>
    %248 = vector.shape_cast %247 : vector<256xf32> to vector<1x256xf32>
    %249 = vector.broadcast %243 : vector<1x128xf32> to vector<16x128xf32>
    %250 = arith.mulf %68, %249 : vector<16x128xf32>
    %cst_115 = arith.constant dense<0.000000e+00> : vector<16xf32>
    %251 = vector.multi_reduction <add>, %250, %cst_115 [1] : vector<16x128xf32> to vector<16xf32>
    %252 = vector.shape_cast %251 : vector<16xf32> to vector<16x1xf32>
    %cst_116 = arith.constant 0.0883883461 : f32
    %253 = vector.broadcast %cst_116 : f32 to vector<16x1xf32>
    %254 = arith.mulf %252, %253 : vector<16x1xf32>
    %255 = arith.addf %254, %82 : vector<16x1xf32>
    %cst_117 = arith.constant dense<0xFF800000> : vector<1xf32>
    %256 = vector.multi_reduction <maximumf>, %255, %cst_117 [0] : vector<16x1xf32> to vector<1xf32>
    %257 = vector.shape_cast %256 : vector<1xf32> to vector<1x1xf32>
    %258 = vector.broadcast %257 : vector<1x1xf32> to vector<16x1xf32>
    %259 = arith.subf %255, %258 : vector<16x1xf32>
    %260 = math.exp %259 : vector<16x1xf32>
    %cst_118 = arith.constant dense<0.000000e+00> : vector<1xf32>
    %261 = vector.multi_reduction <add>, %260, %cst_118 [0] : vector<16x1xf32> to vector<1xf32>
    %262 = vector.shape_cast %261 : vector<1xf32> to vector<1x1xf32>
    %263 = tpu.reciprocal %262 {approx = true} : vector<1x1xf32> -> vector<1x1xf32>
    %264 = vector.broadcast %263 : vector<1x1xf32> to vector<16x1xf32>
    %265 = arith.mulf %260, %264 : vector<16x1xf32>
    %266 = vector.broadcast %265 : vector<16x1xf32> to vector<16x256xf32>
    %267 = arith.mulf %266, %70 : vector<16x256xf32>
    %cst_119 = arith.constant dense<0.000000e+00> : vector<256xf32>
    %268 = vector.multi_reduction <add>, %267, %cst_119 [0] : vector<16x256xf32> to vector<256xf32>
    %269 = vector.shape_cast %268 : vector<256xf32> to vector<1x256xf32>
    %270 = arith.addf %269, %248 : vector<1x256xf32>
    %271 = arith.addf %270, %8 : vector<1x256xf32>
    %cst_120 = arith.constant dense<0xFF800000> : vector<1xf32>
    %272 = vector.multi_reduction <maximumf>, %271, %cst_120 [1] : vector<1x256xf32> to vector<1xf32>
    %273 = vector.shape_cast %272 : vector<1xf32> to vector<1x1xf32>
    %274 = vector.broadcast %273 : vector<1x1xf32> to vector<1x256xf32>
    %275 = arith.cmpf oeq, %271, %274 : vector<1x256xf32>
    %c256_i32_121 = arith.constant 256 : i32
    %276 = vector.broadcast %c256_i32_121 : i32 to vector<1x256xi32>
    %277 = arith.select %275, %4, %276 : vector<1x256xi1>, vector<1x256xi32>
    %cst_122 = arith.constant dense<2147483647> : vector<1xi32>
    %278 = vector.multi_reduction <minsi>, %277, %cst_122 [1] : vector<1x256xi32> to vector<1xi32>
    %279 = vector.shape_cast %278 : vector<1xi32> to vector<1x1xi32>
    %c3_i32 = arith.constant 3 : i32
    %280 = vector.broadcast %c3_i32 : i32 to vector<1x4xi32>
    %281 = arith.cmpi eq, %6, %280 : vector<1x4xi32>
    %282 = vector.shape_cast %279 : vector<1x1xi32> to vector<1x1xi32>
    %283 = vector.broadcast %282 : vector<1x1xi32> to vector<1x4xi32>
    %284 = arith.select %281, %283, %234 : vector<1x4xi1>, vector<1x4xi32>
    %cst_123 = arith.constant 0.000000e+00 : f32
    %285 = vector.broadcast %cst_123 : f32 to vector<16x128xf32>
    %c1_124 = arith.constant 1 : index
    %c0_125 = arith.constant 0 : index
    %c0_126 = arith.constant 0 : index
    %286 = vector.load %arg9[%c1_124, %c0_125, %c0_126] : memref<2x16x128xf32, #tpu.memory_space<vmem>>, vector<1x16x128xf32>
    %287 = vector.shape_cast %286 : vector<1x16x128xf32> to vector<16x128xf32>
    %288 = vector.shape_cast %285 : vector<16x128xf32> to vector<1x16x128xf32>
    tpu.vector_store %arg9[%c1_124, %c0_125, %c0_126], %288 {strides = array<i32>} : memref<2x16x128xf32, #tpu.memory_space<vmem>>, vector<1x16x128xf32>,
    %c1_127 = arith.constant 1 : index
    %289 = memref.load %arg2[%c1_127] : memref<2xi32, #tpu.memory_space<smem>>
    %290 = arith.index_cast %289 : i32 to index
    %c0_128 = arith.constant 0 : index
    %291 = vector.load %arg4[%290, %c0_128] : memref<128x128xf32, #tpu.memory_space<vmem>>, vector<1x128xf32>
    %c1_129 = arith.constant 1 : index
    %c0_130 = arith.constant 0 : index
    %c0_131 = arith.constant 0 : index
    %292 = vector.load %arg9[%c1_129, %c0_130, %c0_131] : memref<2x16x128xf32, #tpu.memory_space<vmem>>, vector<1x1x128xf32>
    %293 = vector.shape_cast %292 : vector<1x1x128xf32> to vector<1x128xf32>
    %294 = vector.shape_cast %291 : vector<1x128xf32> to vector<1x1x128xf32>
    tpu.vector_store %arg9[%c1_129, %c0_130, %c0_131], %294 {strides = array<i32>} : memref<2x16x128xf32, #tpu.memory_space<vmem>>, vector<1x1x128xf32>,
    %c1_132 = arith.constant 1 : index
    %c0_133 = arith.constant 0 : index
    %295 = memref.load %arg0[%c1_132, %c0_133] : memref<2x8xi32, #tpu.memory_space<smem>>
    %296 = arith.index_cast %295 : i32 to index
    %c0_134 = arith.constant 0 : index
    %297 = vector.load %arg3[%296, %c0_134] : memref<256x128xf32, #tpu.memory_space<vmem>>, vector<1x128xf32>
    %c1_135 = arith.constant 1 : index
    %c1_136 = arith.constant 1 : index
    %c0_137 = arith.constant 0 : index
    %298 = vector.load %arg9[%c1_135, %c1_136, %c0_137] : memref<2x16x128xf32, #tpu.memory_space<vmem>>, vector<1x1x128xf32>
    %299 = vector.shape_cast %298 : vector<1x1x128xf32> to vector<1x128xf32>
    %300 = vector.shape_cast %297 : vector<1x128xf32> to vector<1x1x128xf32>
    tpu.vector_store %arg9[%c1_135, %c1_136, %c0_137], %300 {strides = array<i32>} : memref<2x16x128xf32, #tpu.memory_space<vmem>>, vector<1x1x128xf32>,
    %c1_138 = arith.constant 1 : index
    %c1_139 = arith.constant 1 : index
    %301 = memref.load %arg0[%c1_138, %c1_139] : memref<2x8xi32, #tpu.memory_space<smem>>
    %302 = arith.index_cast %301 : i32 to index
    %c0_140 = arith.constant 0 : index
    %303 = vector.load %arg3[%302, %c0_140] : memref<256x128xf32, #tpu.memory_space<vmem>>, vector<1x128xf32>
    %c1_141 = arith.constant 1 : index
    %c2_142 = arith.constant 2 : index
    %c0_143 = arith.constant 0 : index
    %304 = vector.load %arg9[%c1_141, %c2_142, %c0_143] : memref<2x16x128xf32, #tpu.memory_space<vmem>>, vector<1x1x128xf32>
    %305 = vector.shape_cast %304 : vector<1x1x128xf32> to vector<1x128xf32>
    %306 = vector.shape_cast %303 : vector<1x128xf32> to vector<1x1x128xf32>
    tpu.vector_store %arg9[%c1_141, %c2_142, %c0_143], %306 {strides = array<i32>} : memref<2x16x128xf32, #tpu.memory_space<vmem>>, vector<1x1x128xf32>,
    %c1_144 = arith.constant 1 : index
    %c2_145 = arith.constant 2 : index
    %307 = memref.load %arg0[%c1_144, %c2_145] : memref<2x8xi32, #tpu.memory_space<smem>>
    %308 = arith.index_cast %307 : i32 to index
    %c0_146 = arith.constant 0 : index
    %309 = vector.load %arg3[%308, %c0_146] : memref<256x128xf32, #tpu.memory_space<vmem>>, vector<1x128xf32>
    %c1_147 = arith.constant 1 : index
    %c3_148 = arith.constant 3 : index
    %c0_149 = arith.constant 0 : index
    %310 = vector.load %arg9[%c1_147, %c3_148, %c0_149] : memref<2x16x128xf32, #tpu.memory_space<vmem>>, vector<1x1x128xf32>
    %311 = vector.shape_cast %310 : vector<1x1x128xf32> to vector<1x128xf32>
    %312 = vector.shape_cast %309 : vector<1x128xf32> to vector<1x1x128xf32>
    tpu.vector_store %arg9[%c1_147, %c3_148, %c0_149], %312 {strides = array<i32>} : memref<2x16x128xf32, #tpu.memory_space<vmem>>, vector<1x1x128xf32>,
    %c1_150 = arith.constant 1 : index
    %c3_151 = arith.constant 3 : index
    %313 = memref.load %arg0[%c1_150, %c3_151] : memref<2x8xi32, #tpu.memory_space<smem>>
    %314 = arith.index_cast %313 : i32 to index
    %c0_152 = arith.constant 0 : index
    %315 = vector.load %arg3[%314, %c0_152] : memref<256x128xf32, #tpu.memory_space<vmem>>, vector<1x128xf32>
    %c1_153 = arith.constant 1 : index
    %c4_154 = arith.constant 4 : index
    %c0_155 = arith.constant 0 : index
    %316 = vector.load %arg9[%c1_153, %c4_154, %c0_155] : memref<2x16x128xf32, #tpu.memory_space<vmem>>, vector<1x1x128xf32>
    %317 = vector.shape_cast %316 : vector<1x1x128xf32> to vector<1x128xf32>
    %318 = vector.shape_cast %315 : vector<1x128xf32> to vector<1x1x128xf32>
    tpu.vector_store %arg9[%c1_153, %c4_154, %c0_155], %318 {strides = array<i32>} : memref<2x16x128xf32, #tpu.memory_space<vmem>>, vector<1x1x128xf32>,
    %c1_156 = arith.constant 1 : index
    %c4_157 = arith.constant 4 : index
    %319 = memref.load %arg0[%c1_156, %c4_157] : memref<2x8xi32, #tpu.memory_space<smem>>
    %320 = arith.index_cast %319 : i32 to index
    %c0_158 = arith.constant 0 : index
    %321 = vector.load %arg3[%320, %c0_158] : memref<256x128xf32, #tpu.memory_space<vmem>>, vector<1x128xf32>
    %c1_159 = arith.constant 1 : index
    %c5_160 = arith.constant 5 : index
    %c0_161 = arith.constant 0 : index
    %322 = vector.load %arg9[%c1_159, %c5_160, %c0_161] : memref<2x16x128xf32, #tpu.memory_space<vmem>>, vector<1x1x128xf32>
    %323 = vector.shape_cast %322 : vector<1x1x128xf32> to vector<1x128xf32>
    %324 = vector.shape_cast %321 : vector<1x128xf32> to vector<1x1x128xf32>
    tpu.vector_store %arg9[%c1_159, %c5_160, %c0_161], %324 {strides = array<i32>} : memref<2x16x128xf32, #tpu.memory_space<vmem>>, vector<1x1x128xf32>,
    %c1_162 = arith.constant 1 : index
    %c5_163 = arith.constant 5 : index
    %325 = memref.load %arg0[%c1_162, %c5_163] : memref<2x8xi32, #tpu.memory_space<smem>>
    %326 = arith.index_cast %325 : i32 to index
    %c0_164 = arith.constant 0 : index
    %327 = vector.load %arg3[%326, %c0_164] : memref<256x128xf32, #tpu.memory_space<vmem>>, vector<1x128xf32>
    %c1_165 = arith.constant 1 : index
    %c6_166 = arith.constant 6 : index
    %c0_167 = arith.constant 0 : index
    %328 = vector.load %arg9[%c1_165, %c6_166, %c0_167] : memref<2x16x128xf32, #tpu.memory_space<vmem>>, vector<1x1x128xf32>
    %329 = vector.shape_cast %328 : vector<1x1x128xf32> to vector<1x128xf32>
    %330 = vector.shape_cast %327 : vector<1x128xf32> to vector<1x1x128xf32>
    tpu.vector_store %arg9[%c1_165, %c6_166, %c0_167], %330 {strides = array<i32>} : memref<2x16x128xf32, #tpu.memory_space<vmem>>, vector<1x1x128xf32>,
    %c1_168 = arith.constant 1 : index
    %c6_169 = arith.constant 6 : index
    %331 = memref.load %arg0[%c1_168, %c6_169] : memref<2x8xi32, #tpu.memory_space<smem>>
    %332 = arith.index_cast %331 : i32 to index
    %c0_170 = arith.constant 0 : index
    %333 = vector.load %arg3[%332, %c0_170] : memref<256x128xf32, #tpu.memory_space<vmem>>, vector<1x128xf32>
    %c1_171 = arith.constant 1 : index
    %c7_172 = arith.constant 7 : index
    %c0_173 = arith.constant 0 : index
    %334 = vector.load %arg9[%c1_171, %c7_172, %c0_173] : memref<2x16x128xf32, #tpu.memory_space<vmem>>, vector<1x1x128xf32>
    %335 = vector.shape_cast %334 : vector<1x1x128xf32> to vector<1x128xf32>
    %336 = vector.shape_cast %333 : vector<1x128xf32> to vector<1x1x128xf32>
    tpu.vector_store %arg9[%c1_171, %c7_172, %c0_173], %336 {strides = array<i32>} : memref<2x16x128xf32, #tpu.memory_space<vmem>>, vector<1x1x128xf32>,
    %c1_174 = arith.constant 1 : index
    %c7_175 = arith.constant 7 : index
    %337 = memref.load %arg0[%c1_174, %c7_175] : memref<2x8xi32, #tpu.memory_space<smem>>
    %338 = arith.index_cast %337 : i32 to index
    %c0_176 = arith.constant 0 : index
    %339 = vector.load %arg3[%338, %c0_176] : memref<256x128xf32, #tpu.memory_space<vmem>>, vector<1x128xf32>
    %c1_177 = arith.constant 1 : index
    %c8_178 = arith.constant 8 : index
    %c0_179 = arith.constant 0 : index
    %340 = vector.load %arg9[%c1_177, %c8_178, %c0_179] : memref<2x16x128xf32, #tpu.memory_space<vmem>>, vector<1x1x128xf32>
    %341 = vector.shape_cast %340 : vector<1x1x128xf32> to vector<1x128xf32>
    %342 = vector.shape_cast %339 : vector<1x128xf32> to vector<1x1x128xf32>
    tpu.vector_store %arg9[%c1_177, %c8_178, %c0_179], %342 {strides = array<i32>} : memref<2x16x128xf32, #tpu.memory_space<vmem>>, vector<1x1x128xf32>,
    %c1_180 = arith.constant 1 : index
    %c0_181 = arith.constant 0 : index
    %c0_182 = arith.constant 0 : index
    %343 = vector.load %arg9[%c1_180, %c0_181, %c0_182] : memref<2x16x128xf32, #tpu.memory_space<vmem>>, vector<1x16x128xf32>
    %344 = vector.shape_cast %343 : vector<1x16x128xf32> to vector<16x128xf32>
    %c0_183 = arith.constant 0 : index
    %c0_184 = arith.constant 0 : index
    %345 = vector.load %arg6[%c0_183, %c0_184] : memref<128x256xf32, #tpu.memory_space<vmem>>, vector<128x256xf32>
    %cst_185 = arith.constant dense<0.000000e+00> : vector<16x256xf32>
    %346 = tpu.matmul %344, %345, %cst_185 {dimension_numbers = #tpu.dot_dimension_numbers<[1], [0], [0], [1], [0, 0, 1, 1], [], []>} : vector<16x128xf32>, vector<128x256xf32>, vector<16x256xf32> -> vector<16x256xf32>
    %c1_186 = arith.constant 1 : index
    %347 = memref.load %arg1[%c1_186] : memref<2xi32, #tpu.memory_space<smem>>
    %c0_i32_187 = arith.constant 0 : i32
    %348 = vector.broadcast %c0_i32_187 : i32 to vector<16x1xi32>
    %349 = arith.cmpi eq, %7, %348 : vector<16x1xi32>
    %c8_i32_188 = arith.constant 8 : i32
    %350 = vector.broadcast %c8_i32_188 : i32 to vector<16x1xi32>
    %351 = arith.cmpi sle, %7, %350 : vector<16x1xi32>
    %352 = vector.broadcast %347 : i32 to vector<16x1xi32>
    %353 = arith.cmpi sle, %7, %352 : vector<16x1xi32>
    %354 = arith.andi %351, %353 : vector<16x1xi1>
    %355 = arith.ori %349, %354 : vector<16x1xi1>
    %cst_189 = arith.constant 0.000000e+00 : f32
    %cst_190 = arith.constant -1.000000e+09 : f32
    %356 = vector.broadcast %cst_189 : f32 to vector<16x1xf32>
    %357 = vector.broadcast %cst_190 : f32 to vector<16x1xf32>
    %358 = arith.select %355, %356, %357 : vector<16x1xi1>, vector<16x1xf32>
    %c1_i32_191 = arith.constant 1 : i32
    %359 = vector.broadcast %c1_i32_191 : i32 to vector<1x1xi32>
    %c0_i32_192 = arith.constant 0 : i32
    %360 = vector.broadcast %c0_i32_192 : i32 to vector<1x4xi32>
    %361 = vector.broadcast %359 : vector<1x1xi32> to vector<256x1xi32>
    %362 = arith.cmpi eq, %5, %361 : vector<256x1xi32>
    %363 = arith.extui %362 : vector<256x1xi1> to vector<256x1xi32>
    %364 = arith.sitofp %363 : vector<256x1xi32> to vector<256x1xf32>
    %c0_193 = arith.constant 0 : index
    %c0_194 = arith.constant 0 : index
    %365 = vector.load %arg5[%c0_193, %c0_194] : memref<256x128xf32, #tpu.memory_space<vmem>>, vector<256x128xf32>
    %366 = vector.broadcast %364 : vector<256x1xf32> to vector<256x128xf32>
    %367 = arith.mulf %365, %366 : vector<256x128xf32>
    %cst_195 = arith.constant dense<0.000000e+00> : vector<128xf32>
    %368 = vector.multi_reduction <add>, %367, %cst_195 [0] : vector<256x128xf32> to vector<128xf32>
    %369 = vector.shape_cast %368 : vector<128xf32> to vector<1x128xf32>
    %c0_196 = arith.constant 0 : index
    %c0_197 = arith.constant 0 : index
    %370 = vector.load %arg10[%c0_196, %c0_197] : memref<256x256xf32, #tpu.memory_space<vmem>>, vector<256x256xf32>
    %371 = vector.broadcast %364 : vector<256x1xf32> to vector<256x256xf32>
    %372 = arith.mulf %370, %371 : vector<256x256xf32>
    %cst_198 = arith.constant dense<0.000000e+00> : vector<256xf32>
    %373 = vector.multi_reduction <add>, %372, %cst_198 [0] : vector<256x256xf32> to vector<256xf32>
    %374 = vector.shape_cast %373 : vector<256xf32> to vector<1x256xf32>
    %375 = vector.broadcast %369 : vector<1x128xf32> to vector<16x128xf32>
    %376 = arith.mulf %344, %375 : vector<16x128xf32>
    %cst_199 = arith.constant dense<0.000000e+00> : vector<16xf32>
    %377 = vector.multi_reduction <add>, %376, %cst_199 [1] : vector<16x128xf32> to vector<16xf32>
    %378 = vector.shape_cast %377 : vector<16xf32> to vector<16x1xf32>
    %cst_200 = arith.constant 0.0883883461 : f32
    %379 = vector.broadcast %cst_200 : f32 to vector<16x1xf32>
    %380 = arith.mulf %378, %379 : vector<16x1xf32>
    %381 = arith.addf %380, %358 : vector<16x1xf32>
    %cst_201 = arith.constant dense<0xFF800000> : vector<1xf32>
    %382 = vector.multi_reduction <maximumf>, %381, %cst_201 [0] : vector<16x1xf32> to vector<1xf32>
    %383 = vector.shape_cast %382 : vector<1xf32> to vector<1x1xf32>
    %384 = vector.broadcast %383 : vector<1x1xf32> to vector<16x1xf32>
    %385 = arith.subf %381, %384 : vector<16x1xf32>
    %386 = math.exp %385 : vector<16x1xf32>
    %cst_202 = arith.constant dense<0.000000e+00> : vector<1xf32>
    %387 = vector.multi_reduction <add>, %386, %cst_202 [0] : vector<16x1xf32> to vector<1xf32>
    %388 = vector.shape_cast %387 : vector<1xf32> to vector<1x1xf32>
    %389 = tpu.reciprocal %388 {approx = true} : vector<1x1xf32> -> vector<1x1xf32>
    %390 = vector.broadcast %389 : vector<1x1xf32> to vector<16x1xf32>
    %391 = arith.mulf %386, %390 : vector<16x1xf32>
    %392 = vector.broadcast %391 : vector<16x1xf32> to vector<16x256xf32>
    %393 = arith.mulf %392, %346 : vector<16x256xf32>
    %cst_203 = arith.constant dense<0.000000e+00> : vector<256xf32>
    %394 = vector.multi_reduction <add>, %393, %cst_203 [0] : vector<16x256xf32> to vector<256xf32>
    %395 = vector.shape_cast %394 : vector<256xf32> to vector<1x256xf32>
    %396 = arith.addf %395, %374 : vector<1x256xf32>
    %397 = arith.addf %396, %8 : vector<1x256xf32>
    %cst_204 = arith.constant dense<0xFF800000> : vector<1xf32>
    %398 = vector.multi_reduction <maximumf>, %397, %cst_204 [1] : vector<1x256xf32> to vector<1xf32>
    %399 = vector.shape_cast %398 : vector<1xf32> to vector<1x1xf32>
    %400 = vector.broadcast %399 : vector<1x1xf32> to vector<1x256xf32>
    %401 = arith.cmpf oeq, %397, %400 : vector<1x256xf32>
    %c256_i32_205 = arith.constant 256 : i32
    %402 = vector.broadcast %c256_i32_205 : i32 to vector<1x256xi32>
    %403 = arith.select %401, %4, %402 : vector<1x256xi1>, vector<1x256xi32>
    %cst_206 = arith.constant dense<2147483647> : vector<1xi32>
    %404 = vector.multi_reduction <minsi>, %403, %cst_206 [1] : vector<1x256xi32> to vector<1xi32>
    %405 = vector.shape_cast %404 : vector<1xi32> to vector<1x1xi32>
    %c0_i32_207 = arith.constant 0 : i32
    %406 = vector.broadcast %c0_i32_207 : i32 to vector<1x4xi32>
    %407 = arith.cmpi eq, %6, %406 : vector<1x4xi32>
    %408 = vector.shape_cast %405 : vector<1x1xi32> to vector<1x1xi32>
    %409 = vector.broadcast %408 : vector<1x1xi32> to vector<1x4xi32>
    %410 = arith.select %407, %409, %360 : vector<1x4xi1>, vector<1x4xi32>
    %411 = vector.broadcast %405 : vector<1x1xi32> to vector<256x1xi32>
    %412 = arith.cmpi eq, %5, %411 : vector<256x1xi32>
    %413 = arith.extui %412 : vector<256x1xi1> to vector<256x1xi32>
    %414 = arith.sitofp %413 : vector<256x1xi32> to vector<256x1xf32>
    %c0_208 = arith.constant 0 : index
    %c0_209 = arith.constant 0 : index
    %415 = vector.load %arg5[%c0_208, %c0_209] : memref<256x128xf32, #tpu.memory_space<vmem>>, vector<256x128xf32>
    %416 = vector.broadcast %414 : vector<256x1xf32> to vector<256x128xf32>
    %417 = arith.mulf %415, %416 : vector<256x128xf32>
    %cst_210 = arith.constant dense<0.000000e+00> : vector<128xf32>
    %418 = vector.multi_reduction <add>, %417, %cst_210 [0] : vector<256x128xf32> to vector<128xf32>
    %419 = vector.shape_cast %418 : vector<128xf32> to vector<1x128xf32>
    %c0_211 = arith.constant 0 : index
    %c0_212 = arith.constant 0 : index
    %420 = vector.load %arg10[%c0_211, %c0_212] : memref<256x256xf32, #tpu.memory_space<vmem>>, vector<256x256xf32>
    %421 = vector.broadcast %414 : vector<256x1xf32> to vector<256x256xf32>
    %422 = arith.mulf %420, %421 : vector<256x256xf32>
    %cst_213 = arith.constant dense<0.000000e+00> : vector<256xf32>
    %423 = vector.multi_reduction <add>, %422, %cst_213 [0] : vector<256x256xf32> to vector<256xf32>
    %424 = vector.shape_cast %423 : vector<256xf32> to vector<1x256xf32>
    %425 = vector.broadcast %419 : vector<1x128xf32> to vector<16x128xf32>
    %426 = arith.mulf %344, %425 : vector<16x128xf32>
    %cst_214 = arith.constant dense<0.000000e+00> : vector<16xf32>
    %427 = vector.multi_reduction <add>, %426, %cst_214 [1] : vector<16x128xf32> to vector<16xf32>
    %428 = vector.shape_cast %427 : vector<16xf32> to vector<16x1xf32>
    %cst_215 = arith.constant 0.0883883461 : f32
    %429 = vector.broadcast %cst_215 : f32 to vector<16x1xf32>
    %430 = arith.mulf %428, %429 : vector<16x1xf32>
    %431 = arith.addf %430, %358 : vector<16x1xf32>
    %cst_216 = arith.constant dense<0xFF800000> : vector<1xf32>
    %432 = vector.multi_reduction <maximumf>, %431, %cst_216 [0] : vector<16x1xf32> to vector<1xf32>
    %433 = vector.shape_cast %432 : vector<1xf32> to vector<1x1xf32>
    %434 = vector.broadcast %433 : vector<1x1xf32> to vector<16x1xf32>
    %435 = arith.subf %431, %434 : vector<16x1xf32>
    %436 = math.exp %435 : vector<16x1xf32>
    %cst_217 = arith.constant dense<0.000000e+00> : vector<1xf32>
    %437 = vector.multi_reduction <add>, %436, %cst_217 [0] : vector<16x1xf32> to vector<1xf32>
    %438 = vector.shape_cast %437 : vector<1xf32> to vector<1x1xf32>
    %439 = tpu.reciprocal %438 {approx = true} : vector<1x1xf32> -> vector<1x1xf32>
    %440 = vector.broadcast %439 : vector<1x1xf32> to vector<16x1xf32>
    %441 = arith.mulf %436, %440 : vector<16x1xf32>
    %442 = vector.broadcast %441 : vector<16x1xf32> to vector<16x256xf32>
    %443 = arith.mulf %442, %346 : vector<16x256xf32>
    %cst_218 = arith.constant dense<0.000000e+00> : vector<256xf32>
    %444 = vector.multi_reduction <add>, %443, %cst_218 [0] : vector<16x256xf32> to vector<256xf32>
    %445 = vector.shape_cast %444 : vector<256xf32> to vector<1x256xf32>
    %446 = arith.addf %445, %424 : vector<1x256xf32>
    %447 = arith.addf %446, %8 : vector<1x256xf32>
    %cst_219 = arith.constant dense<0xFF800000> : vector<1xf32>
    %448 = vector.multi_reduction <maximumf>, %447, %cst_219 [1] : vector<1x256xf32> to vector<1xf32>
    %449 = vector.shape_cast %448 : vector<1xf32> to vector<1x1xf32>
    %450 = vector.broadcast %449 : vector<1x1xf32> to vector<1x256xf32>
    %451 = arith.cmpf oeq, %447, %450 : vector<1x256xf32>
    %c256_i32_220 = arith.constant 256 : i32
    %452 = vector.broadcast %c256_i32_220 : i32 to vector<1x256xi32>
    %453 = arith.select %451, %4, %452 : vector<1x256xi1>, vector<1x256xi32>
    %cst_221 = arith.constant dense<2147483647> : vector<1xi32>
    %454 = vector.multi_reduction <minsi>, %453, %cst_221 [1] : vector<1x256xi32> to vector<1xi32>
    %455 = vector.shape_cast %454 : vector<1xi32> to vector<1x1xi32>
    %c1_i32_222 = arith.constant 1 : i32
    %456 = vector.broadcast %c1_i32_222 : i32 to vector<1x4xi32>
    %457 = arith.cmpi eq, %6, %456 : vector<1x4xi32>
    %458 = vector.shape_cast %455 : vector<1x1xi32> to vector<1x1xi32>
    %459 = vector.broadcast %458 : vector<1x1xi32> to vector<1x4xi32>
    %460 = arith.select %457, %459, %410 : vector<1x4xi1>, vector<1x4xi32>
    %461 = vector.broadcast %455 : vector<1x1xi32> to vector<256x1xi32>
    %462 = arith.cmpi eq, %5, %461 : vector<256x1xi32>
    %463 = arith.extui %462 : vector<256x1xi1> to vector<256x1xi32>
    %464 = arith.sitofp %463 : vector<256x1xi32> to vector<256x1xf32>
    %c0_223 = arith.constant 0 : index
    %c0_224 = arith.constant 0 : index
    %465 = vector.load %arg5[%c0_223, %c0_224] : memref<256x128xf32, #tpu.memory_space<vmem>>, vector<256x128xf32>
    %466 = vector.broadcast %464 : vector<256x1xf32> to vector<256x128xf32>
    %467 = arith.mulf %465, %466 : vector<256x128xf32>
    %cst_225 = arith.constant dense<0.000000e+00> : vector<128xf32>
    %468 = vector.multi_reduction <add>, %467, %cst_225 [0] : vector<256x128xf32> to vector<128xf32>
    %469 = vector.shape_cast %468 : vector<128xf32> to vector<1x128xf32>
    %c0_226 = arith.constant 0 : index
    %c0_227 = arith.constant 0 : index
    %470 = vector.load %arg10[%c0_226, %c0_227] : memref<256x256xf32, #tpu.memory_space<vmem>>, vector<256x256xf32>
    %471 = vector.broadcast %464 : vector<256x1xf32> to vector<256x256xf32>
    %472 = arith.mulf %470, %471 : vector<256x256xf32>
    %cst_228 = arith.constant dense<0.000000e+00> : vector<256xf32>
    %473 = vector.multi_reduction <add>, %472, %cst_228 [0] : vector<256x256xf32> to vector<256xf32>
    %474 = vector.shape_cast %473 : vector<256xf32> to vector<1x256xf32>
    %475 = vector.broadcast %469 : vector<1x128xf32> to vector<16x128xf32>
    %476 = arith.mulf %344, %475 : vector<16x128xf32>
    %cst_229 = arith.constant dense<0.000000e+00> : vector<16xf32>
    %477 = vector.multi_reduction <add>, %476, %cst_229 [1] : vector<16x128xf32> to vector<16xf32>
    %478 = vector.shape_cast %477 : vector<16xf32> to vector<16x1xf32>
    %cst_230 = arith.constant 0.0883883461 : f32
    %479 = vector.broadcast %cst_230 : f32 to vector<16x1xf32>
    %480 = arith.mulf %478, %479 : vector<16x1xf32>
    %481 = arith.addf %480, %358 : vector<16x1xf32>
    %cst_231 = arith.constant dense<0xFF800000> : vector<1xf32>
    %482 = vector.multi_reduction <maximumf>, %481, %cst_231 [0] : vector<16x1xf32> to vector<1xf32>
    %483 = vector.shape_cast %482 : vector<1xf32> to vector<1x1xf32>
    %484 = vector.broadcast %483 : vector<1x1xf32> to vector<16x1xf32>
    %485 = arith.subf %481, %484 : vector<16x1xf32>
    %486 = math.exp %485 : vector<16x1xf32>
    %cst_232 = arith.constant dense<0.000000e+00> : vector<1xf32>
    %487 = vector.multi_reduction <add>, %486, %cst_232 [0] : vector<16x1xf32> to vector<1xf32>
    %488 = vector.shape_cast %487 : vector<1xf32> to vector<1x1xf32>
    %489 = tpu.reciprocal %488 {approx = true} : vector<1x1xf32> -> vector<1x1xf32>
    %490 = vector.broadcast %489 : vector<1x1xf32> to vector<16x1xf32>
    %491 = arith.mulf %486, %490 : vector<16x1xf32>
    %492 = vector.broadcast %491 : vector<16x1xf32> to vector<16x256xf32>
    %493 = arith.mulf %492, %346 : vector<16x256xf32>
    %cst_233 = arith.constant dense<0.000000e+00> : vector<256xf32>
    %494 = vector.multi_reduction <add>, %493, %cst_233 [0] : vector<16x256xf32> to vector<256xf32>
    %495 = vector.shape_cast %494 : vector<256xf32> to vector<1x256xf32>
    %496 = arith.addf %495, %474 : vector<1x256xf32>
    %497 = arith.addf %496, %8 : vector<1x256xf32>
    %cst_234 = arith.constant dense<0xFF800000> : vector<1xf32>
    %498 = vector.multi_reduction <maximumf>, %497, %cst_234 [1] : vector<1x256xf32> to vector<1xf32>
    %499 = vector.shape_cast %498 : vector<1xf32> to vector<1x1xf32>
    %500 = vector.broadcast %499 : vector<1x1xf32> to vector<1x256xf32>
    %501 = arith.cmpf oeq, %497, %500 : vector<1x256xf32>
    %c256_i32_235 = arith.constant 256 : i32
    %502 = vector.broadcast %c256_i32_235 : i32 to vector<1x256xi32>
    %503 = arith.select %501, %4, %502 : vector<1x256xi1>, vector<1x256xi32>
    %cst_236 = arith.constant dense<2147483647> : vector<1xi32>
    %504 = vector.multi_reduction <minsi>, %503, %cst_236 [1] : vector<1x256xi32> to vector<1xi32>
    %505 = vector.shape_cast %504 : vector<1xi32> to vector<1x1xi32>
    %c2_i32_237 = arith.constant 2 : i32
    %506 = vector.broadcast %c2_i32_237 : i32 to vector<1x4xi32>
    %507 = arith.cmpi eq, %6, %506 : vector<1x4xi32>
    %508 = vector.shape_cast %505 : vector<1x1xi32> to vector<1x1xi32>
    %509 = vector.broadcast %508 : vector<1x1xi32> to vector<1x4xi32>
    %510 = arith.select %507, %509, %460 : vector<1x4xi1>, vector<1x4xi32>
    %511 = vector.broadcast %505 : vector<1x1xi32> to vector<256x1xi32>
    %512 = arith.cmpi eq, %5, %511 : vector<256x1xi32>
    %513 = arith.extui %512 : vector<256x1xi1> to vector<256x1xi32>
    %514 = arith.sitofp %513 : vector<256x1xi32> to vector<256x1xf32>
    %c0_238 = arith.constant 0 : index
    %c0_239 = arith.constant 0 : index
    %515 = vector.load %arg5[%c0_238, %c0_239] : memref<256x128xf32, #tpu.memory_space<vmem>>, vector<256x128xf32>
    %516 = vector.broadcast %514 : vector<256x1xf32> to vector<256x128xf32>
    %517 = arith.mulf %515, %516 : vector<256x128xf32>
    %cst_240 = arith.constant dense<0.000000e+00> : vector<128xf32>
    %518 = vector.multi_reduction <add>, %517, %cst_240 [0] : vector<256x128xf32> to vector<128xf32>
    %519 = vector.shape_cast %518 : vector<128xf32> to vector<1x128xf32>
    %c0_241 = arith.constant 0 : index
    %c0_242 = arith.constant 0 : index
    %520 = vector.load %arg10[%c0_241, %c0_242] : memref<256x256xf32, #tpu.memory_space<vmem>>, vector<256x256xf32>
    %521 = vector.broadcast %514 : vector<256x1xf32> to vector<256x256xf32>
    %522 = arith.mulf %520, %521 : vector<256x256xf32>
    %cst_243 = arith.constant dense<0.000000e+00> : vector<256xf32>
    %523 = vector.multi_reduction <add>, %522, %cst_243 [0] : vector<256x256xf32> to vector<256xf32>
    %524 = vector.shape_cast %523 : vector<256xf32> to vector<1x256xf32>
    %525 = vector.broadcast %519 : vector<1x128xf32> to vector<16x128xf32>
    %526 = arith.mulf %344, %525 : vector<16x128xf32>
    %cst_244 = arith.constant dense<0.000000e+00> : vector<16xf32>
    %527 = vector.multi_reduction <add>, %526, %cst_244 [1] : vector<16x128xf32> to vector<16xf32>
    %528 = vector.shape_cast %527 : vector<16xf32> to vector<16x1xf32>
    %cst_245 = arith.constant 0.0883883461 : f32
    %529 = vector.broadcast %cst_245 : f32 to vector<16x1xf32>
    %530 = arith.mulf %528, %529 : vector<16x1xf32>
    %531 = arith.addf %530, %358 : vector<16x1xf32>
    %cst_246 = arith.constant dense<0xFF800000> : vector<1xf32>
    %532 = vector.multi_reduction <maximumf>, %531, %cst_246 [0] : vector<16x1xf32> to vector<1xf32>
    %533 = vector.shape_cast %532 : vector<1xf32> to vector<1x1xf32>
    %534 = vector.broadcast %533 : vector<1x1xf32> to vector<16x1xf32>
    %535 = arith.subf %531, %534 : vector<16x1xf32>
    %536 = math.exp %535 : vector<16x1xf32>
    %cst_247 = arith.constant dense<0.000000e+00> : vector<1xf32>
    %537 = vector.multi_reduction <add>, %536, %cst_247 [0] : vector<16x1xf32> to vector<1xf32>
    %538 = vector.shape_cast %537 : vector<1xf32> to vector<1x1xf32>
    %539 = tpu.reciprocal %538 {approx = true} : vector<1x1xf32> -> vector<1x1xf32>
    %540 = vector.broadcast %539 : vector<1x1xf32> to vector<16x1xf32>
    %541 = arith.mulf %536, %540 : vector<16x1xf32>
    %542 = vector.broadcast %541 : vector<16x1xf32> to vector<16x256xf32>
    %543 = arith.mulf %542, %346 : vector<16x256xf32>
    %cst_248 = arith.constant dense<0.000000e+00> : vector<256xf32>
    %544 = vector.multi_reduction <add>, %543, %cst_248 [0] : vector<16x256xf32> to vector<256xf32>
    %545 = vector.shape_cast %544 : vector<256xf32> to vector<1x256xf32>
    %546 = arith.addf %545, %524 : vector<1x256xf32>
    %547 = arith.addf %546, %8 : vector<1x256xf32>
    %cst_249 = arith.constant dense<0xFF800000> : vector<1xf32>
    %548 = vector.multi_reduction <maximumf>, %547, %cst_249 [1] : vector<1x256xf32> to vector<1xf32>
    %549 = vector.shape_cast %548 : vector<1xf32> to vector<1x1xf32>
    %550 = vector.broadcast %549 : vector<1x1xf32> to vector<1x256xf32>
    %551 = arith.cmpf oeq, %547, %550 : vector<1x256xf32>
    %c256_i32_250 = arith.constant 256 : i32
    %552 = vector.broadcast %c256_i32_250 : i32 to vector<1x256xi32>
    %553 = arith.select %551, %4, %552 : vector<1x256xi1>, vector<1x256xi32>
    %cst_251 = arith.constant dense<2147483647> : vector<1xi32>
    %554 = vector.multi_reduction <minsi>, %553, %cst_251 [1] : vector<1x256xi32> to vector<1xi32>
    %555 = vector.shape_cast %554 : vector<1xi32> to vector<1x1xi32>
    %c3_i32_252 = arith.constant 3 : i32
    %556 = vector.broadcast %c3_i32_252 : i32 to vector<1x4xi32>
    %557 = arith.cmpi eq, %6, %556 : vector<1x4xi32>
    %558 = vector.shape_cast %555 : vector<1x1xi32> to vector<1x1xi32>
    %559 = vector.broadcast %558 : vector<1x1xi32> to vector<1x4xi32>
    %560 = arith.select %557, %559, %510 : vector<1x4xi1>, vector<1x4xi32>
    %561 = tpu.concatenate %284, %560 in 0 : vector<1x4xi32>, vector<1x4xi32> -> vector<2x4xi32>
    %c0_253 = arith.constant 0 : index
    %c0_254 = arith.constant 0 : index
    %562 = vector.load %arg8[%c0_253, %c0_254] : memref<2x4xi32, #tpu.memory_space<vmem>>, vector<2x4xi32>
    tpu.vector_store %arg8[%c0_253, %c0_254], %561 {strides = array<i32>} : memref<2x4xi32, #tpu.memory_space<vmem>>, vector<2x4xi32>,
    return
  }
}

</mosaic_0001>

<bundles_post_ra>
// kernel: tpu_custom_call.1
= control target key start
LH: loop header
LB: loop body
LE: loop exit
PB: predicated region body
PF: predicated region fallthrough
CT: control target
= control target key end

     0   :  { %13 = vsyncpa [#allocation7], 0  ;;  %s8868_s0 = inlined_call_operand.hbm [shape: s32[2,8], index: 0, kind: input, shape index: {}]   ;;  %s8869_s1 = inlined_call_operand.vmem [shape: s32[2], index: 1, kind: input, shape index: {}]   ;;  %s8870_s2 = inlined_call_operand.hbm [shape: s32[2], index: 2, kind: input, shape index: {}]   ;;  %s8871_s3 = inlined_call_operand.hbm [shape: f32[256,128], index: 3, kind: input, shape index: {}]   ;;  %s8872_s4 = inlined_call_operand.hbm [shape: f32[128,128], index: 4, kind: input, shape index: {}]   ;;  %s8873_s5 = inlined_call_operand.hbm [shape: f32[256,128], index: 5, kind: input, shape index: {}]   ;;  %s8874_s6 = inlined_call_operand.hbm [shape: f32[128,256], index: 6, kind: input, shape index: {}]   ;;  %s8875_s7 = inlined_call_operand.vmem [shape: f32[1,256], index: 7, kind: input, shape index: {}]   ;;  %s8876_s8 = inlined_call_operand.hbm [shape: s32[2,4], index: 8, kind: output, shape index: {}]  }
   0x1   :  { %14 = vsyncpa [#allocation8], 0 }
   0x2   :  { %15 = vsyncpa [#allocation11], 0 }
   0x3   :  { %16 = vsyncpa [#allocation5], 0 }
   0x4   :  { %17 = vsyncpa [#allocation14], 0 }
   0x5   :  { %18 = vsyncpa [#allocation17], 0 }
   0x6   :  { %19 = vsyncpa [#allocation6], 0  ;;  %s4683_s27 = smov [#allocation13]   ;;  %s34_s9 = sshll.u32 %s8869_s1, 4  ;;  %s35_s9 = int_to_ptr.vmem [resolvable:$true] %s34_s9 }
   0x7   :  { %s63_s28 = sshll.u32 %s4683_s27, 4  ;;  %s64_s28 = int_to_ptr.vmem [resolvable:$true] %s63_s28 }
   0x8   :  { %s4549_s10 = scalar_lea.vmem %s64_s28, 2048  ;;  %p4554_p1 = scmp.lt.s32.totalorder %s64_s28, %s64_s28 }
   0x9   :  { %p4550_p0 = scmp.ne.s32.totalorder %s64_s28, %s4549_s10  ;;  %p4555_p2 = scmp.lt.s32.totalorder %s4549_s10, %s4549_s10 }
   0xb   :  { %p4556_p3 = por %p4555_p2, %p4554_p1 }
   0xd   :  { %p4557_p4 = pnand %p4556_p3, %p4550_p0 }
   0xf   :  { %4560 = shalt.err (!%p4557_p4)
}
  0x10   :  { %s4684_s11 = smov 128   ;;  %s4685_s12 = smov 8  }
  0x11   :  { %69 = dma.hbm_to_vmem [thread:$0]  %s8872_s4, 2048, %s64_s28, [#allocation14], %s4684_s11, %s4684_s11, %s4685_s12  }
  0x12   :  { %s4686_s15 = smov [#allocation4]   ;;  %s4569_s17 = scalar_lea.vmem %s35_s9, 16 }
  0x13   :  { %27 = dma.hbm_to_smem %s8868_s0, 32, %s4686_s15, [#allocation7]  }
  0x14   :  { %p4570_p5 = scmp.ne.s32.totalorder %s35_s9, %s4569_s17  ;;  %p4574_p6 = scmp.lt.s32.totalorder %s35_s9, %s35_s9 }
  0x15   :  { %p4575_p7 = scmp.lt.s32.totalorder %s4569_s17, %s4569_s17 }
  0x17   :  { %p4576_p8 = por %p4575_p7, %p4574_p6 }
  0x19   :  { %p4577_p9 = pnand %p4576_p8, %p4570_p5 }
  0x1b   :  { %4580 = shalt.err (!%p4577_p9)
}
  0x1c   :  { %s4687_s18 = smov [#allocation9]   ;;  %s4688_s19 = smov [#allocation10]  }
  0x1d   :  { %37 = dma.vmem_to_smem %s35_s9, 16, %s4687_s18, [#allocation8]  }
  0x1e   :  { %45 = dma.hbm_to_smem %s8870_s2, 16, %s4688_s19, [#allocation11]  }
  0x1f   :  { %s4689_s4 = smov [#allocation12]   ;;  %s4690_s23 = smov [#allocation15]  }
  0x20   :  { %s51_s22 = sshll.u32 %s4689_s4, 4  ;;  %s75_s24 = sshll.u32 %s4690_s23, 4  ;;  %s52_s22 = int_to_ptr.vmem [resolvable:$true] %s51_s22  ;;  %s76_s24 = int_to_ptr.vmem [resolvable:$true] %s75_s24 }
  0x21   :  { %s4597_s0 = scalar_lea.vmem %s52_s22, 4096  ;;  %p4602_p11 = scmp.lt.s32.totalorder %s52_s22, %s52_s22 }
  0x22   :  { %p4598_p10 = scmp.ne.s32.totalorder %s52_s22, %s4597_s0  ;;  %p4603_p12 = scmp.lt.s32.totalorder %s4597_s0, %s4597_s0 }
  0x24   :  { %p4604_p13 = por %p4603_p12, %p4602_p11 }
  0x26   :  { %p4605_p0 = pnand %p4604_p13, %p4598_p10 }
  0x28   :  { %4608 = shalt.err (!%p4605_p0)
}
  0x29   :  { %57 = dma.hbm_to_vmem [thread:$0]  %s8871_s3, 4096, %s52_s22, [#allocation5], %s4684_s11, %s4684_s11, %s4685_s12  }
  0x2a   :  { %s4617_s2 = scalar_lea.vmem %s76_s24, 4096  ;;  %p4622_p2 = scmp.lt.s32.totalorder %s76_s24, %s76_s24 }
  0x2b   :  { %p4618_p1 = scmp.ne.s32.totalorder %s76_s24, %s4617_s2  ;;  %p4623_p3 = scmp.lt.s32.totalorder %s4617_s2, %s4617_s2 }
  0x2d   :  { %p4624_p4 = por %p4623_p3, %p4622_p2 }
  0x2f   :  { %p4625_p5 = pnand %p4624_p4, %p4618_p1 }
  0x31   :  { %4628 = shalt.err (!%p4625_p5)
}
  0x32   :  { %81 = dma.hbm_to_vmem [thread:$0]  %s8873_s5, 4096, %s76_s24, [#allocation14], %s4684_s11, %s4684_s11, %s4685_s12  }
  0x33   :  { %s4691_s29 = smov [#allocation16]  }
  0x34   :  { %s87_s30 = sshll.u32 %s4691_s29, 4  ;;  %s88_s30 = int_to_ptr.vmem [resolvable:$true] %s87_s30 }
  0x35   :  { %s4637_s9 = scalar_lea.vmem %s88_s30, 4096  ;;  %p4642_p7 = scmp.lt.s32.totalorder %s88_s30, %s88_s30 }
  0x36   :  { %p4638_p6 = scmp.ne.s32.totalorder %s88_s30, %s4637_s9  ;;  %p4643_p8 = scmp.lt.s32.totalorder %s4637_s9, %s4637_s9 }
  0x38   :  { %p4644_p9 = por %p4643_p8, %p4642_p7 }
  0x3a   :  { %p4645_p10 = pnand %p4644_p9, %p4638_p6 }
  0x3c   :  { %4648 = shalt.err (!%p4645_p10)
}
  0x3d   :  { %s4692_s3 = smov 256   ;;  %s4693_s10 = smov 16  }
  0x3e   :  { %93 = dma.hbm_to_vmem [thread:$0]  %s8874_s6, 4096, %s88_s30, [#allocation17], %s4692_s3, %s4692_s3, %s4693_s10  }
  0x3f   :  { %4669 = dma.done.wait [#allocation7], 32  }
  0x40   :  { %4670 = vsyncadd [#allocation7], 4294967264 }
  0x41   :  { %4671 = dma.done.wait [#allocation8], 16  }
  0x42   :  { %4672 = vsyncadd [#allocation8], 4294967280 }
  0x43   :  { %4673 = dma.done.wait [#allocation11], 16  }
  0x44   :  { %4674 = vsyncadd [#allocation11], 4294967280 }
  0x45   :  { %4675 = dma.done.wait [#allocation5], 4096  }
  0x46   :  { %4676 = vsyncadd [#allocation5], 4294963200 }
  0x47   :  { %4677 = dma.done.wait [#allocation14], 6144  }
  0x48   :  { %4678 = vsyncadd [#allocation14], 4294961152 }
  0x49   :  { %4679 = dma.done.wait [#allocation17], 4096  }
  0x4a   :  { %4680 = vsyncadd [#allocation17], 4294963200 }
  0x4b   :  { %117 = sfence }
  0x4c   :  { %v4772_v0 = vld [vmem:[#allocation16 + $0xf8] sm:$0xff]  ;;  %v4774_v1 = vld [vmem:[#allocation16 + $0xf0] sm:$0xff]  ;;  %v4776_v2 = vld [vmem:[#allocation16 + $0xe8] sm:$0xff]  ;;  %s4778_s5 = sld [smem:[#allocation10]]  ;;  %v8877_v3 = vlaneseq  ;;  %v8882_v5 = vmov 0.0   ;;  %vm9015_vm11 = vcmask 1040384  }
  0x4d   :  { %182 = vmatprep.subr.mxu0 %v4772_v0  ;;  %4339 = vmatprep.subr.mxu1 %v4772_v0  ;;  %v4782_v4 = vld [vmem:[#allocation16 + $0xe0] sm:$0xff]  ;;  %540 = vst [vmem:[#allocation2] sm:$0xff] %v8882_v5  ;;  %541 = vst [vmem:[#allocation2 + $0x8] sm:$0xff] %v8882_v5  ;;  %s4788_s6 = sld [smem:[#allocation4]]  ;;  %v4792_v6 = vld [vmem:[#allocation16 + $0xd8] sm:$0xff] }
  0x4e   :  { %2372 = vst [vmem:[#allocation2 + $0x10] sm:$0xff] %v8882_v5  ;;  %2373 = vst [vmem:[#allocation2 + $0x18] sm:$0xff] %v8882_v5  ;;  %183 = vmatpush1.msra.mxu0 %v4774_v1  ;;  %4355 = vmatpush1.msra.mxu1 %v4774_v1  ;;  %s4794_s11 = sld [smem:[#allocation4 + $0x1]]  ;;  %v4798_v7 = vld [vmem:[#allocation16 + $0xd0] sm:$0xff]  ;;  %v4804_v8 = vld [vmem:[#allocation16 + $0xc8] sm:$0xff]  ;;  %v4809_v9 = vshrl.u32 %v8877_v3, 7 }
  0x4f   :  { %184 = vmatprep.subr.mxu0 %v4776_v2  ;;  %4340 = vmatprep.subr.mxu1 %v4776_v2  ;;  %s4800_s12 = sld [smem:[#allocation4 + $0x2]]  ;;  %v4813_v10 = vld [vmem:[#allocation16 + $0xc0] sm:$0xff]  ;;  %v4819_v11 = vld [vmem:[#allocation16 + $0xb8] sm:$0xff]  ;;  %v4825_v12 = vld [vmem:[#allocation16 + $0xb0] sm:$0xff] }
  0x50   :  { %185 = vmatpush1.msra.mxu0 %v4782_v4  ;;  %4356 = vmatpush1.msra.mxu1 %v4782_v4  ;;  %s4806_s15 = sld [smem:[#allocation4 + $0x3]]  ;;  %9404 = vst [vmem:[#allocation26_spill] sm:$0xff] %v4809_v9  ;;  %v4831_v13 = vld [vmem:[#allocation16 + $0xa8] sm:$0xff]  ;;  %vm703_vm0 = vcmp.eq.s32.totalorder %v4809_v9, 1  ;;  %v4838_v14 = vld [vmem:[#allocation16 + $0xa0] sm:$0xff]  ;;  %v4844_v15 = vld [vmem:[#allocation16 + $0x98] sm:$0xff] }
  0x51   :  { %186 = vmatprep.subr.mxu0 %v4792_v6  ;;  %4341 = vmatprep.subr.mxu1 %v4792_v6  ;;  %s4815_s1 = sld [smem:[#allocation4 + $0x4]]  ;;  %v4850_v16 = vld [vmem:[#allocation16 + $0x90] sm:$0xff]  ;;  %v4852_v17 = vld [vmem:[#allocation15] sm:$0xff]  ;;  %v4855_v18 = vsel %vm703_vm0, 1.0, %v8882_v5  ;;  %v4861_v19 = vld [vmem:[#allocation16 + $0x88] sm:$0xff] }
  0x52   :  { %187 = vmatpush1.msra.mxu0 %v4798_v7  ;;  %4357 = vmatpush1.msra.mxu1 %v4798_v7  ;;  %s4821_s16 = sld [smem:[#allocation4 + $0x5]]  ;;  %9405 = vst [vmem:[#allocation27_spill] sm:$0xff] %v4855_v18  ;;  %v4867_v20 = vld [vmem:[#allocation16 + $0x80] sm:$0xff]  ;;  %v4869_v21 = vld [vmem:[#allocation15 + $0x8] sm:$0xff]  ;;  %v4871_v22 = vld [vmem:[#allocation15 + $0x10] sm:$0xff]  ;;  %v2563_v24 = vmul.f32 %v4855_v18, %v4852_v17  ;;  %s543_s0 = scalar_lea.vmem [#allocation13], %s4778_s5 }
  0x53   :  { %188 = vmatprep.subr.mxu0 %v4804_v8  ;;  %4342 = vmatprep.subr.mxu1 %v4804_v8  ;;  %s4827_s17 = sld [smem:[#allocation4 + $0x6]]  ;;  %v4877_v23 = vld [vmem:[#allocation16 + $0x78] sm:$0xff]  ;;  %v4885_v25 = vld [vmem:[#allocation16 + $0x70] sm:$0xff]  ;;  %v4893_v27 = vld [vmem:[#allocation16 + $0x68] sm:$0xff]  ;;  %v2564_v28 = vmul.f32 0.0, %v4869_v21  ;;  %v2565_v29 = vmul.f32 0.0, %v4871_v22 }
  0x54   :  { %189 = vmatpush1.msra.mxu0 %v4813_v10  ;;  %4358 = vmatpush1.msra.mxu1 %v4813_v10  ;;  %s4834_s18 = sld [smem:[#allocation10 + $0x1]]  ;;  %v4887_v26 = vld [vmem:[#allocation15 + $0x18] sm:$0xff]  ;;  %v4899_v30 = vld [vmem:[#allocation16 + $0x60] sm:$0xff]  ;;  %v4903_v32 = vld [vmem:[#allocation16 + $0x50] sm:$0xff]  ;;  %s547_s25 = scalar_lea.vmem [#allocation12], %s4788_s6 }
  0x55   :  { %190 = vmatprep.subr.mxu0 %v4819_v11  ;;  %4343 = vmatprep.subr.mxu1 %v4819_v11  ;;  %s4840_s19 = sld [smem:[#allocation4 + $0x80]]  ;;  %v4901_v31 = vld [vmem:[#allocation16 + $0x58] sm:$0xff]  ;;  %v4907_v33 = vld [vmem:[#allocation16 + $0x48] sm:$0xff]  ;;  %v4909_v34 = vld [vmem:[#allocation15 + $0x20] sm:$0xff]  ;;  %v2566_v37 = vmul.f32 0.0, %v4887_v26  ;;  %v2595_v38 = vadd.f32 %v2564_v28, %v2563_v24  ;;  %s551_s26 = scalar_lea.vmem [#allocation12], %s4794_s11 }
  0x56   :  { %191 = vmatpush1.msra.mxu0 %v4825_v12  ;;  %4359 = vmatpush1.msra.mxu1 %v4825_v12  ;;  %s4846_s20 = sld [smem:[#allocation4 + $0x81]]  ;;  %v544_v35 = vld [vmem:[%s543_s0] sm:$0x1]  ;;  %s555_s2 = scalar_lea.vmem [#allocation12], %s4800_s12  ;;  %v4923_v43 = vld [vmem:[#allocation16 + $0x38] sm:$0xff]  ;;  %v4930_v48 = vld [vmem:[#allocation16 + $0x30] sm:$0xff] }
  0x57   :  { %192 = vmatprep.subr.mxu0 %v4831_v13  ;;  %4344 = vmatprep.subr.mxu1 %v4831_v13  ;;  %s4857_s21 = sld [smem:[#allocation4 + $0x82]]  ;;  %v548_v36 = vld [vmem:[%s547_s25] sm:$0x1]  ;;  %545 = vst [vmem:[#allocation2] sm:$0x1] %v544_v35  ;;  %s559_s27 = scalar_lea.vmem [#allocation12], %s4806_s15  ;;  %v2596_v47 = vadd.f32 %v2595_v38, %v2565_v29 }
  0x58   :  { %193 = vmatpush1.msra.mxu0 %v4838_v14  ;;  %4360 = vmatpush1.msra.mxu1 %v4838_v14  ;;  %s4863_s4 = sld [smem:[#allocation4 + $0x83]]  ;;  %v4916_v39 = vld [vmem:[#allocation16 + $0x40] sm:$0xff]  ;;  %549 = vst [vmem:[#allocation2 + $0x1] sm:$0x1] %v548_v36  ;;  %s563_s28 = scalar_lea.vmem [#allocation12], %s4815_s1  ;;  %v4941_v54 = vld [vmem:[#allocation16 + $0x28] sm:$0xff] }
  0x59   :  { %194 = vmatprep.subr.mxu0 %v4844_v15  ;;  %4345 = vmatprep.subr.mxu1 %v4844_v15  ;;  %s4873_s22 = sld [smem:[#allocation4 + $0x84]]  ;;  %v552_v40 = vld [vmem:[%s551_s26] sm:$0x1]  ;;  %s567_s29 = scalar_lea.vmem [#allocation12], %s4821_s16  ;;  %v2567_v56 = vmul.f32 0.0, %v4909_v34  ;;  %v2597_v57 = vadd.f32 %v2596_v47, %v2566_v37  ;;  %v4947_v58 = vld [vmem:[#allocation15 + $0x28] sm:$0xff] }
  0x5a   :  { %195 = vmatpush1.msra.mxu0 %v4850_v16  ;;  %4361 = vmatpush1.msra.mxu1 %v4850_v16  ;;  %s4879_s23 = sld [smem:[#allocation4 + $0x85]]  ;;  %v556_v41 = vld [vmem:[%s555_s2] sm:$0x1]  ;;  %553 = vst [vmem:[#allocation2 + $0x2] sm:$0x1] %v552_v40  ;;  %s571_s30 = scalar_lea.vmem [#allocation12], %s4827_s17 }
  0x5b   :  { %196 = vmatprep.subr.mxu0 %v4861_v19  ;;  %4346 = vmatprep.subr.mxu1 %v4861_v19  ;;  %s4889_s24 = sld [smem:[#allocation4 + $0x86]]  ;;  %v560_v42 = vld [vmem:[%s559_s27] sm:$0x1]  ;;  %557 = vst [vmem:[#allocation2 + $0x3] sm:$0x1] %v556_v41  ;;  %s2375_s9 = scalar_lea.vmem [#allocation13], %s4834_s18  ;;  %v2598_v29 = vadd.f32 %v2597_v57, %v2567_v56 }
  0x5c   :  { %197 = vmatpush1.msra.mxu0 %v4867_v20  ;;  %4362 = vmatpush1.msra.mxu1 %v4867_v20  ;;  %561 = vst [vmem:[#allocation2 + $0x4] sm:$0x1] %v560_v42  ;;  %v564_v44 = vld [vmem:[%s563_s28] sm:$0x1]  ;;  %s2379_s3 = scalar_lea.vmem [#allocation12], %s4840_s19  ;;  %s2383_s10 = scalar_lea.vmem [#allocation12], %s4846_s20 }
  0x5d   :  { %198 = vmatprep.subr.mxu0 %v4877_v23  ;;  %4347 = vmatprep.subr.mxu1 %v4877_v23  ;;  %v568_v45 = vld [vmem:[%s567_s29] sm:$0x1]  ;;  %565 = vst [vmem:[#allocation2 + $0x5] sm:$0x1] %v564_v44  ;;  %s2387_s13 = scalar_lea.vmem [#allocation12], %s4857_s21  ;;  %v4957_v62 = vld [vmem:[#allocation16 + $0x18] sm:$0xff] }
  0x5e   :  { %199 = vmatpush1.msra.mxu0 %v4885_v25  ;;  %4363 = vmatpush1.msra.mxu1 %v4885_v25  ;;  %v572_v46 = vld [vmem:[%s571_s30] sm:$0x1]  ;;  %569 = vst [vmem:[#allocation2 + $0x6] sm:$0x1] %v568_v45  ;;  %s2391_s14 = scalar_lea.vmem [#allocation12], %s4863_s4  ;;  %v4959_v63 = vld [vmem:[#allocation15 + $0x30] sm:$0xff] }
  0x5f   :  { %200 = vmatprep.subr.mxu0 %v4893_v27  ;;  %4348 = vmatprep.subr.mxu1 %v4893_v27  ;;  %573 = vst [vmem:[#allocation2 + $0x7] sm:$0x1] %v572_v46  ;;  %v2376_v49 = vld [vmem:[%s2375_s9] sm:$0x1]  ;;  %s2395_s5 = scalar_lea.vmem [#allocation12], %s4873_s22  ;;  %v4963_v24 = vld [vmem:[#allocation16 + $0x10] sm:$0xff] }
  0x60   :  { %201 = vmatpush1.msra.mxu0 %v4899_v30  ;;  %4364 = vmatpush1.msra.mxu1 %v4899_v30  ;;  %v2380_v50 = vld [vmem:[%s2379_s3] sm:$0x1]  ;;  %2377 = vst [vmem:[#allocation2 + $0x10] sm:$0x1] %v2376_v49  ;;  %s2399_s6 = scalar_lea.vmem [#allocation12], %s4879_s23  ;;  %v2568_v28 = vmul.f32 0.0, %v4947_v58 }
  0x61   :  { %202 = vmatprep.subr.mxu0 %v4901_v31  ;;  %4349 = vmatprep.subr.mxu1 %v4901_v31  ;;  %2381 = vst [vmem:[#allocation2 + $0x11] sm:$0x1] %v2380_v50  ;;  %v2384_v51 = vld [vmem:[%s2383_s10] sm:$0x1]  ;;  %s2403_s11 = scalar_lea.vmem [#allocation12], %s4889_s24  ;;  %s4966_s12 = sld [smem:[#allocation4 + $0x87]] }
  0x62   :  { %203 = vmatpush1.msra.mxu0 %v4903_v32  ;;  %4365 = vmatpush1.msra.mxu1 %v4903_v32  ;;  %v2388_v52 = vld [vmem:[%s2387_s13] sm:$0x1]  ;;  %2385 = vst [vmem:[#allocation2 + $0x12] sm:$0x1] %v2384_v51  ;;  %v4970_v35 = vld [vmem:[#allocation16 + $0x8] sm:$0xff]  ;;  %v4972_v36 = vld [vmem:[#allocation15 + $0x38] sm:$0xff]  ;;  %v2599_v44 = vadd.f32 %v2598_v29, %v2568_v28 }
  0x63   :  { %v2392_v53 = vld [vmem:[%s2391_s14] sm:$0x1]  ;;  %204 = vmatprep.subr.mxu0 %v4907_v33  ;;  %4350 = vmatprep.subr.mxu1 %v4907_v33  ;;  %2389 = vst [vmem:[#allocation2 + $0x13] sm:$0x1] %v2388_v52  ;;  %v2569_v38 = vmul.f32 0.0, %v4959_v63  ;;  %s4979_s15 = sld [smem:[#allocation4 + $0x7]] }
  0x64   :  { %2393 = vst [vmem:[#allocation2 + $0x14] sm:$0x1] %v2392_v53  ;;  %v2396_v55 = vld [vmem:[%s2395_s5] sm:$0x1]  ;;  %205 = vmatpush1.msra.mxu0 %v4916_v39  ;;  %4366 = vmatpush1.msra.mxu1 %v4916_v39  ;;  %v4987_v41 = vld [vmem:[#allocation15 + $0xa8] sm:$0xff]  ;;  %v2570_v42 = vmul.f32 0.0, %v4972_v36 }
  0x65   :  { %2397 = vst [vmem:[#allocation2 + $0x15] sm:$0x1] %v2396_v55  ;;  %v2400_v59 = vld [vmem:[%s2399_s6] sm:$0x1]  ;;  %206 = vmatprep.subr.mxu0 %v4923_v43  ;;  %4351 = vmatprep.subr.mxu1 %v4923_v43  ;;  %v4992_v45 = vld [vmem:[#allocation15 + $0x48] sm:$0xff]  ;;  %v2600_v47 = vadd.f32 %v2599_v44, %v2569_v38  ;;  %v4999_v49 = vld [vmem:[#allocation15 + $0x50] sm:$0xff] }
  0x66   :  { %v2404_v60 = vld [vmem:[%s2403_s11] sm:$0x1]  ;;  %2401 = vst [vmem:[#allocation2 + $0x16] sm:$0x1] %v2400_v59  ;;  %207 = vmatpush1.msra.mxu0 %v4930_v48  ;;  %4367 = vmatpush1.msra.mxu1 %v4930_v48  ;;  %v5004_v51 = vld [vmem:[#allocation15 + $0xb0] sm:$0xff]  ;;  %v2572_v52 = vmul.f32 0.0, %v4992_v45 }
  0x67   :  { %v4953_v61 = vld [vmem:[#allocation16 + $0x20] sm:$0xff]  ;;  %2405 = vst [vmem:[#allocation2 + $0x17] sm:$0x1] %v2404_v60  ;;  %208 = vmatprep.subr.mxu0 %v4941_v54  ;;  %4352 = vmatprep.subr.mxu1 %v4941_v54  ;;  %s2407_s1 = scalar_lea.vmem [#allocation12], %s4966_s12  ;;  %v2601_v53 = vadd.f32 %v2600_v47, %v2570_v42  ;;  %v5008_v55 = vld [vmem:[#allocation15 + $0x58] sm:$0xff]  ;;  %v2573_v56 = vmul.f32 0.0, %v4999_v49 }
  0x68   :  { %209 = vmatpush1.msra.mxu0 %v4953_v61  ;;  %4368 = vmatpush1.msra.mxu1 %v4953_v61  ;;  %v4976_v37 = vld [vmem:[#allocation16] sm:$0xff]  ;;  %v5019_v60 = vld [vmem:[#allocation15 + $0xb8] sm:$0xff]  ;;  %v2574_v28 = vmul.f32 0.0, %v5008_v55  ;;  %v5023_v38 = vld [vmem:[#allocation15 + $0x68] sm:$0xff]  ;;  %s4242_s17 = sld [smem:[#allocation9 + $0x1]] }
  0x69   :  { %210 = vmatprep.subr.mxu0 %v4957_v62  ;;  %4353 = vmatprep.subr.mxu1 %v4957_v62  ;;  %v4983_v40 = vld [vmem:[#allocation15 + $0x40] sm:$0xff]  ;;  %s575_s16 = scalar_lea.vmem [#allocation12], %s4979_s15  ;;  %v5029_v44 = vld [vmem:[#allocation15 + $0x70] sm:$0xff]  ;;  %v2576_v47 = vmul.f32 0.0, %v5023_v38  ;;  %v5060_v3 = vld [vmem:[#allocation15 + $0x98] sm:$0xff]  ;;  %s689_s18 = sld [smem:[#allocation9]] }
  0x6a   :  { %211 = vmatpush1.msra.mxu0 %v4963_v24  ;;  %4369 = vmatpush1.msra.mxu1 %v4963_v24  ;;  %v2571_v46 = vmul.f32 0.0, %v4983_v40  ;;  %v2408_v50 = vld [vmem:[%s2407_s1] sm:$0x1]  ;;  %v145_v18 = vld [vmem:[#allocation15 + $0xd8] sm:$0xff] }
  0x6b   :  { %212 = vmatprep.subr.mxu0 %v4970_v35  ;;  %4354 = vmatprep.subr.mxu1 %v4970_v35  ;;  %2409 = vst [vmem:[#allocation2 + $0x18] sm:$0x1] %v2408_v50  ;;  %v5015_v59 = vld [vmem:[#allocation15 + $0x60] sm:$0xff] }
  0x6c   :  { %213 = vmatpush1.msra.mxu0 %v4976_v37  ;;  %4370 = vmatpush1.msra.mxu1 %v4976_v37  ;;  %v2602_v57 = vadd.f32 %v2601_v53, %v2571_v46  ;;  %v5033_v46 = vld [vmem:[#allocation15 + $0xc0] sm:$0xff] }
  0x6d   :  { %246 = vmatprep.mubr.f32.mxu0 %v8882_v5  ;;  %372 = vmatprep.mubr.f32.mxu1 %v8882_v5 }
  0x6e   :  { %247 = vmatmul.mubr.f32.vlgmr.msra.gmra.mxu0 %v4852_v17  ;;  %373 = vmatmul.mubr.f32.vlgmr.msra.gmra.mxu1 %v4987_v41  ;;  %v576_v17 = vld [vmem:[%s575_s16] sm:$0x1]  ;;  %v2603_v29 = vadd.f32 %v2602_v57, %v2572_v52  ;;  %v5037_v52 = vld [vmem:[#allocation15 + $0x78] sm:$0xff] }
  0x6f   :  { %252 = vmatprep.mubr.f32.mxu0 %v8882_v5  ;;  %378 = vmatprep.mubr.f32.mxu1 %v8882_v5  ;;  %577 = vst [vmem:[#allocation2 + $0x8] sm:$0x1] %v576_v17  ;;  %v5043_v17 = vld [vmem:[#allocation15 + $0x80] sm:$0xff]  ;;  %v2578_v57 = vmul.f32 0.0, %v5037_v52 }
  0x70   :  { %612 = vmatprep.subr.mxu1 %v4772_v0  ;;  %v2604_v42 = vadd.f32 %v2603_v29, %v2573_v56  ;;  %v143_v56 = vld [vmem:[#allocation15 + $0xc8] sm:$0xff] }
  0x71   :  { %613 = vmatpush1.msra.mxu1 %v4774_v1  ;;  %v5049_v29 = vld [vmem:[#allocation15 + $0x88] sm:$0xff] }
  0x72   :  { %253 = vmatmul.mubr.f32.gmra.mxu0 %v4869_v21  ;;  %379 = vmatmul.mubr.f32.gmra.mxu1 %v5004_v51  ;;  %v2575_v21 = vmul.f32 0.0, %v5015_v59  ;;  %v2605_v50 = vadd.f32 %v2604_v42, %v2574_v28  ;;  %v5054_v42 = vld [vmem:[#allocation15 + $0x90] sm:$0xff] }
  0x73   :  { %258 = vmatprep.mubr.f32.mxu0 %v8882_v5  ;;  %384 = vmatprep.mubr.f32.mxu1 %v8882_v5 }
  0x74   :  { %614 = vmatprep.subr.mxu1 %v4776_v2  ;;  %v2606_v53 = vadd.f32 %v2605_v50, %v2575_v21  ;;  %v144_v50 = vld [vmem:[#allocation15 + $0xd0] sm:$0xff] }
  0x75   :  { %615 = vmatpush1.msra.mxu1 %v4782_v4 }
  0x76   :  { %259 = vmatmul.mubr.f32.gmra.mxu0 %v4871_v22  ;;  %385 = vmatmul.mubr.f32.gmra.mxu1 %v5019_v60  ;;  %v2577_v22 = vmul.f32 0.0, %v5029_v44  ;;  %v2607_v28 = vadd.f32 %v2606_v53, %v2576_v47  ;;  %v2580_v47 = vmul.f32 0.0, %v5049_v29 }
  0x77   :  { %264 = vmatprep.mubr.f32.mxu0 %v8882_v5  ;;  %390 = vmatprep.mubr.f32.mxu1 %v8882_v5 }
  0x78   :  { %616 = vmatprep.subr.mxu1 %v4792_v6  ;;  %v2608_v21 = vadd.f32 %v2607_v28, %v2577_v22  ;;  %v2581_v22 = vmul.f32 0.0, %v5054_v42  ;;  %v5065_v28 = vld [vmem:[#allocation15 + $0xa0] sm:$0xff] }
  0x79   :  { %617 = vmatpush1.msra.mxu1 %v4798_v7 }
  0x7a   :  { %265 = vmatmul.mubr.f32.gmra.mxu0 %v4887_v26  ;;  %391 = vmatmul.mubr.f32.gmra.mxu1 %v5033_v46  ;;  %v2579_v26 = vmul.f32 0.0, %v5043_v17  ;;  %v2609_v53 = vadd.f32 %v2608_v21, %v2578_v57  ;;  %v2582_v57 = vmul.f32 0.0, %v5060_v3 }
  0x7b   :  { %270 = vmatprep.mubr.f32.mxu0 %v8882_v5  ;;  %396 = vmatprep.mubr.f32.mxu1 %v8882_v5 }
  0x7c   :  { %618 = vmatprep.subr.mxu1 %v4804_v8 }
  0x7d   :  { %619 = vmatpush1.msra.mxu1 %v4813_v10 }
  0x7e   :  { %271 = vmatmul.mubr.f32.gmra.mxu0 %v4909_v34  ;;  %397 = vmatmul.mubr.f32.gmra.mxu1 %v143_v56  ;;  %v2610_v34 = vadd.f32 %v2609_v53, %v2579_v26  ;;  %v2583_v26 = vmul.f32 0.0, %v5065_v28  ;;  %v2584_v53 = vmul.f32 0.0, %v4987_v41 }
  0x7f   :  { %276 = vmatprep.mubr.f32.mxu0 %v8882_v5  ;;  %402 = vmatprep.mubr.f32.mxu1 %v8882_v5 }
  0x80   :  { %620 = vmatprep.subr.mxu1 %v4819_v11  ;;  %v2611_v21 = vadd.f32 %v2610_v34, %v2580_v47  ;;  %v146_v47 = vld [vmem:[#allocation15 + $0xe0] sm:$0xff]  ;;  %v2419_v34 = vld [vmem:[#allocation16 + $0x38] sm:$0xff] }
  0x81   :  { %621 = vmatpush1.msra.mxu1 %v4825_v12 }
  0x82   :  { %277 = vmatmul.mubr.f32.gmra.mxu0 %v4947_v58  ;;  %403 = vmatmul.mubr.f32.gmra.mxu1 %v144_v50  ;;  %v2612_v58 = vadd.f32 %v2611_v21, %v2581_v22  ;;  %v2416_v21 = vld [vmem:[#allocation16 + $0x20] sm:$0xff] }
  0x83   :  { %622 = vmatprep.subr.mxu1 %v4831_v13  ;;  %282 = vmatprep.mubr.f32.mxu0 %v8882_v5 }
  0x84   :  { %623 = vmatpush1.msra.mxu1 %v4838_v14  ;;  %408 = vmatprep.mubr.f32.mxu1 %v8882_v5  ;;  %v2613_v9 = vadd.f32 %v2612_v58, %v2582_v57  ;;  %v2418_v57 = vld [vmem:[#allocation16 + $0x30] sm:$0xff] }
  0x85   :  { %624 = vmatprep.subr.mxu1 %v4844_v15  ;;  %v2585_v15 = vmul.f32 0.0, %v5004_v51  ;;  %v2414_v58 = vld [vmem:[#allocation16 + $0x10] sm:$0xff] }
  0x86   :  { %283 = vmatmul.mubr.f32.gmra.mxu0 %v4959_v63  ;;  %409 = vmatmul.mubr.f32.gmra.mxu1 %v145_v18  ;;  %v2614_v22 = vadd.f32 %v2613_v9, %v2583_v26  ;;  %v147_v9 = vld [vmem:[#allocation15 + $0xe8] sm:$0xff]  ;;  %v2415_v26 = vld [vmem:[#allocation16 + $0x18] sm:$0xff] }
  0x87   :  { %625 = vmatpush1.msra.mxu1 %v4850_v16  ;;  %288 = vmatprep.mubr.f32.mxu0 %v8882_v5  ;;  %v2586_v16 = vmul.f32 0.0, %v5019_v60 }
  0x88   :  { %626 = vmatprep.subr.mxu1 %v4861_v19  ;;  %414 = vmatprep.mubr.f32.mxu1 %v8882_v5  ;;  %v2615_v63 = vadd.f32 %v2614_v22, %v2584_v53  ;;  %v2587_v19 = vmul.f32 0.0, %v5033_v46  ;;  %v2413_v53 = vld [vmem:[#allocation16 + $0x8] sm:$0xff] }
  0x89   :  { %627 = vmatpush1.msra.mxu1 %v4867_v20 }
  0x8a   :  { %628 = vmatprep.subr.mxu1 %v4877_v23  ;;  %289 = vmatmul.mubr.f32.gmra.mxu0 %v4972_v36  ;;  %v2616_v20 = vadd.f32 %v2615_v63, %v2585_v15  ;;  %v2588_v23 = vmul.f32 0.0, %v143_v56  ;;  %v2421_v56 = vld [vmem:[#allocation16 + $0x48] sm:$0xff]  ;;  %v2522_v15 = vstv %s4242_s17 }
  0x8b   :  { %415 = vmatmul.mubr.f32.gmra.mxu1 %v146_v47  ;;  %294 = vmatprep.mubr.f32.mxu0 %v8882_v5  ;;  %v9410_v63 = vld [vmem:[#allocation26_spill] sm:$0xff] }
  0x8c   :  { %629 = vmatpush1.msra.mxu1 %v4885_v25  ;;  %420 = vmatprep.mubr.f32.mxu1 %v8882_v5  ;;  %v2617_v36 = vadd.f32 %v2616_v20, %v2586_v16  ;;  %v2589_v25 = vmul.f32 0.0, %v144_v50  ;;  %v2420_v50 = vld [vmem:[#allocation16 + $0x40] sm:$0xff]  ;;  %v694_v16 = vstv %s689_s18  ;;  %vm690_vm1 = vcmp.eq.s32.totalorder %v9410_v63, 0 }
  0x8d   :  { %630 = vmatprep.subr.mxu1 %v4893_v27  ;;  %vm2523_vm2 = vcmp.le.s32.totalorder %v9410_v63, %v2522_v15  ;;  %vm695_vm3 = vcmp.le.s32.totalorder %v9410_v63, %v694_v16 }
  0x8e   :  { %631 = vmatpush1.msra.mxu1 %v4899_v30  ;;  %295 = vmatmul.mubr.f32.gmra.mxu0 %v4983_v40  ;;  %v2618_v27 = vadd.f32 %v2617_v36, %v2587_v19  ;;  %v148_v30 = vld [vmem:[#allocation15 + $0xf0] sm:$0xff]  ;;  %v5155_v19 = vadd.s32 8, %v9410_v63  ;;  %vm2527_vm6 = vmor %vm690_vm1, %vm2523_vm2 }
  0x8f   :  { %632 = vmatprep.subr.mxu1 %v4901_v31  ;;  %421 = vmatmul.mubr.f32.gmra.mxu1 %v147_v9  ;;  %v2590_v31 = vmul.f32 0.0, %v145_v18  ;;  %v2592_v18 = vmul.f32 0.0, %v147_v9  ;;  %vm699_vm8 = vmor %vm690_vm1, %vm695_vm3 }
  0x90   :  { %633 = vmatpush1.msra.mxu1 %v4903_v32  ;;  %300 = vmatprep.mubr.f32.mxu0 %v8882_v5  ;;  %v2619_v40 = vadd.f32 %v2618_v27, %v2588_v23  ;;  %v2591_v32 = vmul.f32 0.0, %v146_v47  ;;  %9411 = vst [vmem:[#allocation32_spill] sm:$0xff] %v5155_v19  ;;  %vm693_vm4 = vcmp.le.s32.totalorder %v5155_v19, 8  ;;  %vm2524_vm5 = vcmp.le.s32.totalorder %v5155_v19, %v2522_v15 }
  0x91   :  { %634 = vmatprep.subr.mxu1 %v4907_v33  ;;  %426 = vmatprep.mubr.f32.mxu1 %v8882_v5  ;;  %vm696_vm7 = vcmp.le.s32.totalorder %v5155_v19, %v694_v16  ;;  %vm2526_vm9 = vmand %vm693_vm4, %vm2524_vm5 }
  0x92   :  { %635 = vmatpush1.msra.mxu1 %v4916_v39  ;;  %301 = vmatmul.mubr.f32.gmra.mxu0 %v4992_v45  ;;  %v2620_v33 = vadd.f32 %v2619_v40, %v2589_v25  ;;  %v149_v39 = vld [vmem:[#allocation15 + $0xf8] sm:$0xff]  ;;  %v2426_v45 = vld [vmem:[#allocation16 + $0x70] sm:$0xff]  ;;  %vm698_vm10 = vmand %vm693_vm4, %vm696_vm7 }
  0x93   :  { %636 = vmatprep.subr.mxu1 %v4923_v43  ;;  %427 = vmatmul.mubr.f32.gmra.mxu1 %v148_v30 }
  0x94   :  { %637 = vmatpush1.msra.mxu1 %v4930_v48  ;;  %306 = vmatprep.mubr.f32.mxu0 %v8882_v5  ;;  %v2621_v43 = vadd.f32 %v2620_v33, %v2590_v31  ;;  %v578_v48 = vld [vmem:[#allocation2] sm:$0xff] }
  0x95   :  { %638 = vmatprep.subr.mxu1 %v4941_v54  ;;  %432 = vmatprep.mubr.f32.mxu1 %v8882_v5  ;;  %v2593_v54 = vmul.f32 0.0, %v148_v30 }
  0x96   :  { %639 = vmatpush1.msra.mxu1 %v4953_v61  ;;  %307 = vmatmul.mubr.f32.gmra.mxu0 %v4999_v49  ;;  %v2622_v41 = vadd.f32 %v2621_v43, %v2591_v32  ;;  %v2594_v61 = vmul.f32 0.0, %v149_v39  ;;  %v2410_v49 = vld [vmem:[#allocation2 + $0x10] sm:$0xff] }
  0x97   :  { %640 = vmatprep.subr.mxu1 %v4957_v62  ;;  %433 = vmatmul.mubr.f32.gmra.mxu1 %v149_v39  ;;  %v4695_v39 = vmov -1e+09  }
  0x98   :  { %641 = vmatpush1.msra.mxu1 %v4963_v24  ;;  %312 = vmatprep.mubr.f32.mxu0 %v8882_v5  ;;  %v2623_v62 = vadd.f32 %v2622_v41, %v2592_v18  ;;  %v5179_v18 = vsel %vm2527_vm6, 0.0, %v4695_v39  ;;  %v5181_v43 = vsel %vm699_vm8, 0.0, %v4695_v39  ;;  %v5187_v41 = vsel %vm2526_vm9, 0.0, %v4695_v39 }
  0x99   :  { %642 = vmatprep.subr.mxu1 %v4970_v35  ;;  %676 = vmatprep.mubr.f32.mxu1 %v8882_v5  ;;  %9420 = vst [vmem:[#allocation41_spill] sm:$0xff] %v5179_v18  ;;  %9421 = vst [vmem:[#allocation42_spill] sm:$0xff] %v5181_v43 }
  0x9a   :  { %643 = vmatpush1.msra.mxu1 %v4976_v37  ;;  %313 = vmatmul.mubr.f32.gmra.mxu0 %v5008_v55  ;;  %v2624_v24 = vadd.f32 %v2623_v62, %v2593_v54  ;;  %v2428_v37 = vld [vmem:[#allocation16 + $0x80] sm:$0xff]  ;;  %v2411_v55 = vld [vmem:[#allocation2 + $0x18] sm:$0xff]  ;;  %9424 = vst [vmem:[#allocation45_spill] sm:$0xff] %v5187_v41  ;;  %v5189_v62 = vsel %vm698_vm10, 0.0, %v4695_v39 }
  0x9b   :  { %2444 = vmatprep.subr.mxu1 %v4772_v0  ;;  %677 = vmatmul.mubr.f32.vlgmr.msra.gmra.mxu1 %v578_v48  ;;  %v579_v0 = vld [vmem:[#allocation2 + $0x8] sm:$0xff]  ;;  %9425 = vst [vmem:[#allocation46_spill] sm:$0xff] %v5189_v62 }
  0x9c   :  { %2445 = vmatpush1.msra.mxu1 %v4774_v1  ;;  %318 = vmatprep.mubr.f32.mxu0 %v8882_v5  ;;  %v2625_v35 = vadd.f32 %v2624_v24, %v2594_v61 }
  0x9d   :  { %2446 = vmatprep.subr.mxu1 %v4776_v2  ;;  %682 = vmatprep.mubr.f32.mxu1 %v8882_v5 }
  0x9e   :  { %2447 = vmatpush1.msra.mxu1 %v4782_v4  ;;  %319 = vmatmul.mubr.f32.gmra.mxu0 %v5015_v59  ;;  %v2626_v1 = vrot.slane %v2625_v35, 4  ;;  %v2431_v4 = vld [vmem:[#allocation16 + $0x98] sm:$0xff] }
  0x9f   :  { %2448 = vmatprep.subr.mxu1 %v4792_v6  ;;  %324 = vmatprep.mubr.f32.mxu0 %v8882_v5 }
  0xa0   :  { %2449 = vmatpush1.msra.mxu1 %v4798_v7  ;;  %v2627_v2 = vadd.f32 %v2626_v1, %v2625_v35  ;;  %v2430_v7 = vld [vmem:[#allocation16 + $0x90] sm:$0xff] }
  0xa1   :  { %2450 = vmatprep.subr.mxu1 %v4804_v8  ;;  %683 = vmatmul.mubr.f32.gmra.mxu1 %v579_v0  ;;  %v2429_v8 = vld [vmem:[#allocation16 + $0x88] sm:$0xff] }
  0xa2   :  { %2451 = vmatpush1.msra.mxu1 %v4813_v10  ;;  %325 = vmatmul.mubr.f32.gmra.mxu0 %v5023_v38  ;;  %v2628_v6 = vrot.slane %v2627_v2, 2  ;;  %v2423_v38 = vld [vmem:[#allocation16 + $0x58] sm:$0xff] }
  0xa3   :  { %2452 = vmatprep.subr.mxu1 %v4819_v11  ;;  %330 = vmatprep.mubr.f32.mxu0 %v8882_v5  ;;  %v2427_v11 = vld [vmem:[#allocation16 + $0x78] sm:$0xff] }
  0xa4   :  { %2453 = vmatpush1.msra.mxu1 %v4825_v12  ;;  %2508 = vmatprep.mubr.f32.mxu1 %v8882_v5  ;;  %v2629_v10 = vadd.f32 %v2628_v6, %v2627_v2 }
  0xa5   :  { %2454 = vmatprep.subr.mxu1 %v4831_v13  ;;  %v2425_v13 = vld [vmem:[#allocation16 + $0x68] sm:$0xff] }
  0xa6   :  { %2455 = vmatpush1.msra.mxu1 %v4838_v14  ;;  %331 = vmatmul.mubr.f32.gmra.mxu0 %v5029_v44  ;;  %v2630_v12 = vrot.slane %v2629_v10, 1  ;;  %v2424_v14 = vld [vmem:[#allocation16 + $0x60] sm:$0xff]  ;;  %v2422_v44 = vld [vmem:[#allocation16 + $0x50] sm:$0xff] }
  0xa7   :  { %2456 = vmatprep.subr.mxu1 %v2431_v4  ;;  %336 = vmatprep.mubr.f32.mxu0 %v8882_v5 }
  0xa8   :  { %2457 = vmatpush1.msra.mxu1 %v2430_v7  ;;  %v2631_v51 = vadd.f32 %v2630_v12, %v2629_v10 }
  0xa9   :  { %2458 = vmatprep.subr.mxu1 %v2429_v8 }
  0xaa   :  { %2459 = vmatpush1.msra.mxu1 %v2428_v37  ;;  %337 = vmatmul.mubr.f32.gmra.mxu0 %v5037_v52  ;;  %v2834_v59 = vmul.f32 %v2631_v51, %v2410_v49  ;;  %v1102_v60 = vmul.f32 %v2631_v51, %v578_v48  ;;  %v2835_v46 = vmul.f32 %v2631_v51, %v2411_v55 }
  0xab   :  { %2460 = vmatprep.subr.mxu1 %v2427_v11  ;;  %342 = vmatprep.mubr.f32.mxu0 %v8882_v5  ;;  %v1103_v52 = vmul.f32 %v2631_v51, %v579_v0 }
  0xac   :  { %2461 = vmatpush1.msra.mxu1 %v2426_v45  ;;  %2836 = vadd.xlane.f32.xlu0 %v2834_v59 }
  0xad   :  { %2462 = vmatprep.subr.mxu1 %v2425_v13  ;;  %1104 = vadd.xlane.f32.xlu1 %v1102_v60 }
  0xae   :  { %2463 = vmatpush1.msra.mxu1 %v2424_v14  ;;  %343 = vmatmul.mubr.f32.gmra.mxu0 %v5043_v17  ;;  %v2417_v17 = vld [vmem:[#allocation16 + $0x28] sm:$0xff] }
  0xaf   :  { %2464 = vmatprep.subr.mxu1 %v2423_v38  ;;  %348 = vmatprep.mubr.f32.mxu0 %v8882_v5 }
  0xb0   :  { %2465 = vmatpush1.msra.mxu1 %v2422_v44  ;;  %2838 = vadd.xlane.f32.xlu0 %v2835_v46 }
  0xb1   :  { %2466 = vmatprep.subr.mxu1 %v2421_v56  ;;  %1106 = vadd.xlane.f32.xlu1 %v1103_v52 }
  0xb2   :  { %349 = vmatmul.mubr.f32.gmra.mxu0 %v5049_v29  ;;  %2467 = vmatpush1.msra.mxu1 %v2420_v50  ;;  %v2412_v29 = vld [vmem:[#allocation16] sm:$0xff] }
  0xb3   :  { %354 = vmatprep.mubr.f32.mxu0 %v8882_v5  ;;  %2468 = vmatprep.subr.mxu1 %v2419_v34 }
  0xb4   :  { %2469 = vmatpush1.msra.mxu1 %v2418_v57 }
  0xb5   :  { %2470 = vmatprep.subr.mxu1 %v2417_v17 }
  0xb6   :  { %355 = vmatmul.mubr.f32.gmra.mxu0 %v5054_v42  ;;  %2471 = vmatpush1.msra.mxu1 %v2416_v21 }
  0xb7   :  { %360 = vmatprep.mubr.f32.mxu0 %v8882_v5  ;;  %2472 = vmatprep.subr.mxu1 %v2415_v26 }
  0xb8   :  { %2473 = vmatpush1.msra.mxu1 %v2414_v58 }
  0xb9   :  { %2474 = vmatprep.subr.mxu1 %v2413_v53 }
  0xba   :  { %361 = vmatmul.mubr.f32.gmra.mxu0 %v5060_v3  ;;  %2475 = vmatpush1.msra.mxu1 %v2412_v29 }
  0xbb   :  { %366 = vmatprep.mubr.f32.mxu0 %v8882_v5  ;;  %2509 = vmatmul.mubr.f32.vlgmr.msra.gmra.mxu1 %v2410_v49 }
  0xbc   :  { %2514 = vmatprep.mubr.f32.mxu1 %v8882_v5 }
  0xbe   :  { %367 = vmatmul.mubr.f32.gmra.mxu0 %v5065_v28 }
  0xbf   :  { %2515 = vmatmul.mubr.f32.gmra.mxu1 %v2411_v55 }
 0x12e   :  { %v5146_v42 = vpop.f32.mrf.mxu0  ;;  %v5148_v47 = vpop.f32.mrf.mxu1 }
 0x12f   :  { %9406 = vst [vmem:[#allocation28_spill] sm:$0xff] %v5146_v42  ;;  %9407 = vst [vmem:[#allocation29_spill] sm:$0xff] %v5148_v47 }
 0x130   :  { %v5150_v22 = vpop.f32.mrf.mxu0  ;;  %v5152_v3 = vpop.f32.mrf.mxu1 }
 0x131   :  { %9408 = vst [vmem:[#allocation30_spill] sm:$0xff] %v5150_v22  ;;  %9409 = vst [vmem:[#allocation31_spill] sm:$0xff] %v5152_v3 }
 0x132   :  { %v5157_v20 = vpop.f32.mrf.mxu0  ;;  %v5159_v9 = vpop.f32.mrf.mxu1 }
 0x133   :  { %9412 = vst [vmem:[#allocation33_spill] sm:$0xff] %v5157_v20  ;;  %9413 = vst [vmem:[#allocation34_spill] sm:$0xff] %v5159_v9 }
 0x134   :  { %v5164_v28 = vpop.f32.mrf.mxu0  ;;  %v5166_v23 = vpop.f32.mrf.mxu1 }
 0x135   :  { %9414 = vst [vmem:[#allocation35_spill] sm:$0xff] %v5164_v28  ;;  %9415 = vst [vmem:[#allocation36_spill] sm:$0xff] %v5166_v23  ;;  %v2837_v27 = vpop.xlane.xlu0 %2836 }
 0x136   :  { %v5171_v36 = vpop.f32.mrf.mxu0  ;;  %v5173_v25 = vpop.f32.mrf.mxu1  ;;  %v2840_v31 = vmul.f32 0.088388346, %v2837_v27 }
 0x137   :  { %9416 = vst [vmem:[#allocation37_spill] sm:$0xff] %v5171_v36  ;;  %9417 = vst [vmem:[#allocation38_spill] sm:$0xff] %v5173_v25  ;;  %v1105_v30 = vpop.xlane.xlu1 %1104 }
 0x138   :  { %v1108_v40 = vmul.f32 0.088388346, %v1105_v30  ;;  %v5175_v32 = vpop.f32.mrf.mxu0  ;;  %v5177_v33 = vpop.f32.mrf.mxu1  ;;  %v2842_v35 = vadd.f32 %v2840_v31, %v5179_v18 }
 0x139   :  { %9418 = vst [vmem:[#allocation39_spill] sm:$0xff] %v5175_v32  ;;  %9419 = vst [vmem:[#allocation40_spill] sm:$0xff] %v5177_v33  ;;  %v2839_v61 = vpop.xlane.xlu0 %2838 }
 0x13a   :  { %v5183_v48 = vpop.f32.mrf.mxu0  ;;  %v5185_v54 = vpop.f32.mrf.mxu1  ;;  %v1110_v0 = vadd.f32 %v1108_v40, %v5181_v43  ;;  %v2841_v1 = vmul.f32 0.088388346, %v2839_v61 }
 0x13b   :  { %9422 = vst [vmem:[#allocation43_spill] sm:$0xff] %v5183_v48  ;;  %9423 = vst [vmem:[#allocation44_spill] sm:$0xff] %v5185_v54  ;;  %v1107_v24 = vpop.xlane.xlu1 %1106 }
 0x13c   :  { %v1109_v2 = vmul.f32 0.088388346, %v1107_v24  ;;  %v5193_v4 = vpop.f32.mrf.mxu0  ;;  %v5195_v6 = vpop.f32.mrf.mxu1  ;;  %v2843_v7 = vadd.f32 %v2841_v1, %v5187_v41 }
 0x13d   :  { %9426 = vst [vmem:[#allocation47_spill] sm:$0xff] %v5193_v4  ;;  %9427 = vst [vmem:[#allocation48_spill] sm:$0xff] %v5195_v6 }
 0x13e   :  { %v1111_v8 = vadd.f32 %v1109_v2, %v5189_v62  ;;  %v5199_v10 = vpop.f32.mrf.mxu0  ;;  %v5201_v37 = vpop.f32.mrf.mxu1  ;;  %v2844_v11 = vmax.f32 %v2842_v35, %v2843_v7 }
 0x13f   :  { %9428 = vst [vmem:[#allocation49_spill] sm:$0xff] %v5199_v10  ;;  %9429 = vst [vmem:[#allocation50_spill] sm:$0xff] %v5201_v37 }
 0x140   :  { %v1112_v12 = vmax.f32 %v1110_v0, %v1111_v8  ;;  %v5203_v45 = vpop.f32.mrf.mxu0  ;;  %v5205_v49 = vpop.f32.mrf.mxu1  ;;  %v2845_v13 = vrot.slane %v2844_v11, 4 }
 0x141   :  { %9430 = vst [vmem:[#allocation51_spill] sm:$0xff] %v5203_v45  ;;  %9431 = vst [vmem:[#allocation52_spill] sm:$0xff] %v5205_v49  ;;  %v973_v62 = vmul.f32 0.0, %v5203_v45 }
 0x142   :  { %v1113_v51 = vrot.slane %v1112_v12, 4  ;;  %v5207_v14 = vpop.f32.mrf.mxu0  ;;  %v5209_v55 = vpop.f32.mrf.mxu1  ;;  %v2846_v59 = vmax.f32 %v2844_v11, %v2845_v13 }
 0x143   :  { %9432 = vst [vmem:[#allocation53_spill] sm:$0xff] %v5207_v14  ;;  %9433 = vst [vmem:[#allocation54_spill] sm:$0xff] %v5209_v55  ;;  %v974_v43 = vmul.f32 0.0, %v5207_v14 }
 0x144   :  { %v1114_v60 = vmax.f32 %v1112_v12, %v1113_v51  ;;  %v5211_v38 = vpop.f32.mrf.mxu0  ;;  %v5213_v44 = vpop.f32.mrf.mxu1  ;;  %v2847_v46 = vrot.slane %v2846_v59, 2 }
 0x145   :  { %9434 = vst [vmem:[#allocation55_spill] sm:$0xff] %v5211_v38  ;;  %9435 = vst [vmem:[#allocation56_spill] sm:$0xff] %v5213_v44  ;;  %v975_v41 = vmul.f32 0.0, %v5211_v38 }
 0x146   :  { %v1115_v52 = vrot.slane %v1114_v60, 2  ;;  %v5215_v56 = vpop.f32.mrf.mxu0  ;;  %v5217_v50 = vpop.f32.mrf.mxu1  ;;  %v2848_v34 = vmax.f32 %v2846_v59, %v2847_v46  ;;  %v9451_v46 = vld [vmem:[#allocation27_spill] sm:$0xff] }
 0x147   :  { %9436 = vst [vmem:[#allocation57_spill] sm:$0xff] %v5215_v56  ;;  %9437 = vst [vmem:[#allocation58_spill] sm:$0xff] %v5217_v50 }
 0x148   :  { %v1116_v57 = vmax.f32 %v1114_v60, %v1115_v52  ;;  %v5219_v17 = vpop.f32.mrf.mxu0  ;;  %v2849_v21 = vrot.slane %v2848_v34, 1  ;;  %v5223_v53 = vpop.f32.mrf.mxu1  ;;  %v967_v60 = vmul.f32 0.0, %v5164_v28  ;;  %v964_v52 = vmul.f32 %v9451_v46, %v5146_v42 }
 0x149   :  { %9438 = vst [vmem:[#allocation59_spill] sm:$0xff] %v5219_v17  ;;  %9440 = vst [vmem:[#allocation61_spill] sm:$0xff] %v5223_v53 }
 0x14a   :  { %v1117_v26 = vrot.slane %v1116_v57, 1  ;;  %v5221_v58 = vpop.f32.mrf.mxu0  ;;  %v2850_v29 = vmax.f32 %v2848_v34, %v2849_v21  ;;  %v968_v34 = vmul.f32 0.0, %v5171_v36 }
 0x14b   :  { %9439 = vst [vmem:[#allocation60_spill] sm:$0xff] %v5221_v58  ;;  %v5229_v61 = vpop.f32.mrf.mxu1 }
 0x14c   :  { %v1118_v15 = vmax.f32 %v1116_v57, %v1117_v26  ;;  %v5225_v16 = vpop.f32.mrf.mxu0  ;;  %v2851_v27 = vsub.f32 %v2842_v35, %v2850_v29  ;;  %v2852_v30 = vsub.f32 %v2843_v7, %v2850_v29  ;;  %9443 = vst [vmem:[#allocation64_spill] sm:$0xff] %v5229_v61  ;;  %v965_v26 = vmul.f32 %v9451_v46, %v5150_v22 }
 0x14d   :  { %9441 = vst [vmem:[#allocation62_spill] sm:$0xff] %v5225_v16  ;;  %v5235_v51 = vpop.f32.mrf.mxu1  ;;  %v969_v29 = vmul.f32 0.0, %v5175_v32 }
 0x14e   :  { %v1119_v31 = vsub.f32 %v1110_v0, %v1118_v15  ;;  %v1120_v40 = vsub.f32 %v1111_v8, %v1118_v15  ;;  %v5227_v39 = vpop.f32.mrf.mxu0  ;;  %v2853_v24 = vmul.f32 1.442695, %v2851_v27  ;;  %v2855_v1 = vmul.f32 1.442695, %v2852_v30  ;;  %9446 = vst [vmem:[#allocation67_spill] sm:$0xff] %v5235_v51 }
 0x14f   :  { %9442 = vst [vmem:[#allocation63_spill] sm:$0xff] %v5227_v39  ;;  %v5241_v7 = vpop.f32.mrf.mxu1  ;;  %v966_v8 = vmul.f32 0.0, %v5157_v20  ;;  %v970_v27 = vmul.f32 0.0, %v5183_v48  ;;  %v980_v36 = vmul.f32 0.0, %v5227_v39 }
 0x150   :  { %v1121_v2 = vmul.f32 1.442695, %v1119_v31  ;;  %v5231_v11 = vpop.f32.mrf.mxu0  ;;  %v1123_v12 = vmul.f32 1.442695, %v1120_v40  ;;  %4385 = vpow2.f32 %v2853_v24  ;;  %9449 = vst [vmem:[#allocation70_spill] sm:$0xff] %v5241_v7  ;;  %v1065_v31 = vadd.f32 %v967_v60, %v965_v26 }
 0x151   :  { %9444 = vst [vmem:[#allocation65_spill] sm:$0xff] %v5231_v11  ;;  %4387 = vpow2.f32 %v2855_v1  ;;  %v5252_v21 = vpop.f32.mrf.mxu1  ;;  %v1028_v15 = vadd.f32 %v966_v8, %v964_v52  ;;  %v971_v40 = vmul.f32 0.0, %v5193_v4  ;;  %v972_v1 = vmul.f32 0.0, %v5199_v10 }
 0x152   :  { %v5233_v13 = vpop.f32.mrf.mxu0  ;;  %4389 = vpow2.f32 %v1121_v2  ;;  %9453 = vst [vmem:[#allocation72_spill] sm:$0xff] %v5252_v21  ;;  %v1066_v46 = vadd.f32 %v1065_v31, %v969_v29  ;;  %v976_v31 = vmul.f32 0.0, %v5215_v56  ;;  %v977_v4 = vmul.f32 0.0, %v5219_v17 }
 0x153   :  { %9445 = vst [vmem:[#allocation66_spill] sm:$0xff] %v5233_v13  ;;  %4391 = vpow2.f32 %v1123_v12  ;;  %v1029_v24 = vadd.f32 %v1028_v15, %v968_v34  ;;  %v5264_v12 = vpop.f32.mrf.mxu1  ;;  %v979_v56 = vmul.f32 0.0, %v5225_v16 }
 0x154   :  { %v5237_v35 = vpop.f32.mrf.mxu0  ;;  %9456 = vst [vmem:[#allocation75_spill] sm:$0xff] %v5264_v12  ;;  %v1067_v15 = vadd.f32 %v1066_v46, %v971_v40  ;;  %v978_v40 = vmul.f32 0.0, %v5221_v58  ;;  %v982_v58 = vmul.f32 0.0, %v5233_v13 }
 0x155   :  { %9447 = vst [vmem:[#allocation68_spill] sm:$0xff] %v5237_v35  ;;  %v1030_v52 = vadd.f32 %v1029_v24, %v970_v27  ;;  %v5284_v27 = vpop.f32.mrf.mxu1 }
 0x156   :  { %v5239_v0 = vpop.f32.mrf.mxu0  ;;  %9459 = vst [vmem:[#allocation78_spill] sm:$0xff] %v5284_v27  ;;  %v1068_v10 = vadd.f32 %v1067_v15, %v973_v62 }
 0x157   :  { %9448 = vst [vmem:[#allocation69_spill] sm:$0xff] %v5239_v0  ;;  %v1031_v29 = vadd.f32 %v1030_v52, %v972_v1  ;;  %v5296_v20 = vpop.f32.mrf.mxu1  ;;  %v984_v39 = vmul.f32 0.0, %v5239_v0 }
 0x158   :  { %v5244_v59 = vpop.f32.mrf.mxu0  ;;  %v1069_v52 = vadd.f32 %v1068_v10, %v975_v41  ;;  %9462 = vst [vmem:[#allocation81_spill] sm:$0xff] %v5296_v20 }
 0x159   :  { %9450 = vst [vmem:[#allocation71_spill] sm:$0xff] %v5244_v59  ;;  %v1032_v48 = vadd.f32 %v1031_v29, %v974_v43  ;;  %v981_v43 = vmul.f32 0.0, %v5231_v11  ;;  %v5304_v16 = vpop.f32.mrf.mxu1 }
 0x15a   :  { %v5250_v57 = vpop.f32.mrf.mxu0  ;;  %v1070_v17 = vadd.f32 %v1069_v52, %v977_v4  ;;  %9464 = vst [vmem:[#allocation83_spill] sm:$0xff] %v5304_v16 }
 0x15b   :  { %9452 = vst [vmem:[#allocation27_spill] sm:$0xff] %v5250_v57  ;;  %v1033_v32 = vadd.f32 %v1032_v48, %v976_v31  ;;  %v983_v48 = vmul.f32 0.0, %v5237_v35 }
 0x15c   :  { %v5258_v30 = vpop.f32.mrf.mxu0  ;;  %v1071_v10 = vadd.f32 %v1070_v17, %v979_v56 }
 0x15d   :  { %9454 = vst [vmem:[#allocation73_spill] sm:$0xff] %v5258_v30  ;;  %v5266_v5 = vpop.eup %4385  ;;  %v1034_v29 = vadd.f32 %v1033_v32, %v978_v40  ;;  %v985_v32 = vmul.f32 0.0, %v5244_v59  ;;  %v987_v17 = vmul.f32 0.0, %v5258_v30 }
 0x15e   :  { %v5262_v2 = vpop.f32.mrf.mxu0  ;;  %v5269_v8 = vpop.eup %4387 }
 0x15f   :  { %9455 = vst [vmem:[#allocation74_spill] sm:$0xff] %v5262_v2  ;;  %v5274_v26 = vpop.eup %4389  ;;  %v2857_v34 = vadd.f32 %v5269_v8, %v5266_v5 }
 0x160   :  { %v5272_v60 = vpop.f32.mrf.mxu0  ;;  %v5279_v18 = vpop.eup %4391 }
 0x161   :  { %9457 = vst [vmem:[#allocation76_spill] sm:$0xff] %v5272_v60  ;;  %v2858_v24 = vrot.slane %v2857_v34, 4  ;;  %v1125_v14 = vadd.f32 %v5279_v18, %v5274_v26 }
 0x162   :  { %v5282_v45 = vpop.f32.mrf.mxu0 }
 0x163   :  { %9458 = vst [vmem:[#allocation77_spill] sm:$0xff] %v5282_v45  ;;  %v2859_v38 = vadd.f32 %v2858_v24, %v2857_v34  ;;  %v1126_v1 = vrot.slane %v1125_v14, 4  ;;  %v1035_v24 = vadd.f32 %v1034_v29, %v980_v36  ;;  %v5314_v29 = vpop.f32.mrf.mxu1 }
 0x164   :  { %v5290_v46 = vpop.f32.mrf.mxu0  ;;  %9467 = vst [vmem:[#allocation86_spill] sm:$0xff] %v5314_v29 }
 0x165   :  { %9460 = vst [vmem:[#allocation79_spill] sm:$0xff] %v5290_v46  ;;  %v2860_v62 = vrot.slane %v2859_v38, 2  ;;  %v1127_v15 = vadd.f32 %v1126_v1, %v1125_v14  ;;  %v1072_v14 = vadd.f32 %v1071_v10, %v981_v43  ;;  %v1036_v40 = vadd.f32 %v1035_v24, %v982_v58 }
 0x166   :  { %v5294_v28 = vpop.f32.mrf.mxu0  ;;  %v986_v1 = vmul.f32 0.0, %v5250_v57  ;;  %v990_v24 = vmul.f32 0.0, %v5282_v45 }
 0x167   :  { %9461 = vst [vmem:[#allocation80_spill] sm:$0xff] %v5294_v28  ;;  %v1128_v41 = vrot.slane %v1127_v15, 2  ;;  %v2861_v31 = vadd.f32 %v2860_v62, %v2859_v38  ;;  %v1073_v56 = vadd.f32 %v1072_v14, %v983_v48  ;;  %v1037_v36 = vadd.f32 %v1036_v40, %v984_v39 }
 0x168   :  { %v5300_v34 = vpop.f32.mrf.mxu0  ;;  %v988_v62 = vmul.f32 0.0, %v5262_v2  ;;  %v991_v14 = vmul.f32 0.0, %v5290_v46  ;;  %v992_v40 = vmul.f32 0.0, %v5294_v28  ;;  %v5324_v2 = vpop.f32.mrf.mxu1 }
 0x169   :  { %9463 = vst [vmem:[#allocation82_spill] sm:$0xff] %v5300_v34  ;;  %v1129_v4 = vadd.f32 %v1128_v41, %v1127_v15  ;;  %v2862_v15 = vrot.slane %v2861_v31, 1  ;;  %v1074_v43 = vadd.f32 %v1073_v56, %v985_v32  ;;  %v989_v41 = vmul.f32 0.0, %v5272_v60  ;;  %9470 = vst [vmem:[#allocation89_spill] sm:$0xff] %v5324_v2  ;;  %v5754_v60 = vld [vmem:[#allocation15 + $0x40] sm:$0xff] }
 0x16a   :  { %v5306_v22 = vpop.f32.mrf.mxu0  ;;  %v1038_v10 = vadd.f32 %v1037_v36, %v986_v1  ;;  %9557 = vst [vmem:[#allocation170_spill] sm:$0xff] %v5754_v60 }
 0x16b   :  { %9465 = vst [vmem:[#allocation84_spill] sm:$0xff] %v5306_v22  ;;  %v1130_v38 = vrot.slane %v1129_v4, 1  ;;  %v1075_v48 = vadd.f32 %v1074_v43, %v987_v17  ;;  %v2863_v59 = vadd.f32 %v2862_v15, %v2861_v31  ;;  %v994_v1 = vmul.f32 0.0, %v5306_v22 }
 0x16c   :  { %v5310_v52 = vpop.f32.mrf.mxu0  ;;  %v1039_v39 = vadd.f32 %v1038_v10, %v988_v62  ;;  %v5334_v10 = vpop.f32.mrf.mxu1 }
 0x16d   :  { %9466 = vst [vmem:[#allocation85_spill] sm:$0xff] %v5310_v52  ;;  %v1131_v58 = vadd.f32 %v1130_v38, %v1129_v4  ;;  %v1076_v32 = vadd.f32 %v1075_v48, %v989_v41  ;;  %v993_v4 = vmul.f32 0.0, %v5300_v34  ;;  %v995_v62 = vmul.f32 0.0, %v5310_v52  ;;  %9473 = vst [vmem:[#allocation92_spill] sm:$0xff] %v5334_v10 }
 0x16e   :  { %v5316_v0 = vpop.f32.mrf.mxu0  ;;  %v1040_v56 = vadd.f32 %v1039_v39, %v990_v24  ;;  %v5342_v39 = vpop.f32.mrf.mxu1 }
 0x16f   :  { %9468 = vst [vmem:[#allocation87_spill] sm:$0xff] %v5316_v0  ;;  %4393 = vrcp.f32 %v1131_v58  ;;  %v1077_v17 = vadd.f32 %v1076_v32, %v991_v14  ;;  %v996_v43 = vmul.f32 0.0, %v5316_v0  ;;  %9476 = vst [vmem:[#allocation95_spill] sm:$0xff] %v5342_v39 }
 0x170   :  { %v5320_v57 = vpop.f32.mrf.mxu0  ;;  %v1041_v36 = vadd.f32 %v1040_v56, %v992_v40  ;;  %4395 = vrcp.f32 %v2863_v59 }
 0x171   :  { %9469 = vst [vmem:[#allocation88_spill] sm:$0xff] %v5320_v57  ;;  %v1078_v31 = vadd.f32 %v1077_v17, %v993_v4  ;;  %v997_v41 = vmul.f32 0.0, %v5320_v57  ;;  %v5708_v57 = vld [vmem:[#allocation15 + $0x38] sm:$0xff] }
 0x172   :  { %v5326_v30 = vpop.f32.mrf.mxu0  ;;  %v1042_v15 = vadd.f32 %v1041_v36, %v994_v1  ;;  %9546 = vst [vmem:[#allocation163_spill] sm:$0xff] %v5708_v57 }
 0x173   :  { %9471 = vst [vmem:[#allocation90_spill] sm:$0xff] %v5326_v30  ;;  %v998_v58 = vmul.f32 0.0, %v5326_v30  ;;  %v1079_v48 = vadd.f32 %v1078_v31, %v995_v62 }
 0x174   :  { %v5330_v38 = vpop.f32.mrf.mxu0  ;;  %v1043_v14 = vadd.f32 %v1042_v15, %v996_v43 }
 0x175   :  { %9472 = vst [vmem:[#allocation91_spill] sm:$0xff] %v5330_v38  ;;  %v999_v40 = vmul.f32 0.0, %v5330_v38  ;;  %v1080_v0 = vadd.f32 %v1079_v48, %v997_v41 }
 0x176   :  { %v5336_v28 = vpop.f32.mrf.mxu0  ;;  %v1044_v59 = vadd.f32 %v1043_v14, %v998_v58  ;;  %v1006_v14 = vmul.f32 0.0, %v5148_v47 }
 0x177   :  { %9474 = vst [vmem:[#allocation93_spill] sm:$0xff] %v5336_v28  ;;  %v1000_v32 = vmul.f32 0.0, %v5336_v28  ;;  %v1081_v62 = vadd.f32 %v1080_v0, %v999_v40 }
 0x178   :  { %v5340_v24 = vpop.f32.mrf.mxu0 }
 0x179   :  { %9475 = vst [vmem:[#allocation94_spill] sm:$0xff] %v5340_v24  ;;  %v1001_v4 = vmul.f32 0.0, %v5340_v24  ;;  %v1045_v43 = vadd.f32 %v1044_v59, %v1000_v32  ;;  %v1007_v32 = vmul.f32 0.0, %v5152_v3  ;;  %v1011_v3 = vmul.f32 0.0, %v5177_v33 }
 0x17a   :  { %v5346_v56 = vpop.f32.mrf.mxu0 }
 0x17b   :  { %9477 = vst [vmem:[#allocation96_spill] sm:$0xff] %v5346_v56  ;;  %v5349_v1 = vpop.f32.mrf.mxu1  ;;  %v1002_v17 = vmul.f32 0.0, %v5346_v56  ;;  %v1082_v30 = vadd.f32 %v1081_v62, %v1001_v4  ;;  %v1008_v4 = vmul.f32 0.0, %v5159_v9 }
 0x17c   :  { %9478 = vst [vmem:[#allocation97_spill] sm:$0xff] %v5349_v1  ;;  %v5352_v36 = vpop.f32.mrf.mxu0  ;;  %v4394_v28 = vpop.eup %4393 }
 0x17d   :  { %9479 = vst [vmem:[#allocation98_spill] sm:$0xff] %v5352_v36  ;;  %v1003_v31 = vmul.f32 0.0, %v5352_v36  ;;  %v5357_v38 = vpop.f32.mrf.mxu1  ;;  %v1046_v41 = vadd.f32 %v1045_v43, %v1002_v17  ;;  %v4396_v40 = vpop.eup %4395  ;;  %v1133_v59 = vmul.f32 %v4394_v28, %v5274_v26  ;;  %v1134_v17 = vmul.f32 %v4394_v28, %v5279_v18 }
 0x17e   :  { %v5355_v15 = vpop.f32.mrf.mxu0  ;;  %9481 = vst [vmem:[#allocation100_spill] sm:$0xff] %v5357_v38  ;;  %v1012_v26 = vmul.f32 0.0, %v5185_v54  ;;  %v2865_v9 = vmul.f32 %v4396_v40, %v5266_v5 }
 0x17f   :  { %9480 = vst [vmem:[#allocation99_spill] sm:$0xff] %v5355_v15  ;;  %v1004_v58 = vmul.f32 0.0, %v5355_v15  ;;  %v1083_v0 = vadd.f32 %v1082_v30, %v1003_v31  ;;  %v5366_v36 = vpop.f32.mrf.mxu1  ;;  %v1009_v15 = vmul.f32 0.0, %v5166_v23  ;;  %v2866_v30 = vmul.f32 %v4396_v40, %v5269_v8 }
 0x180   :  { %v5360_v48 = vpop.f32.mrf.mxu0  ;;  %9483 = vst [vmem:[#allocation102_spill] sm:$0xff] %v5366_v36  ;;  %v1135_v47 = vmul.f32 %v1133_v59, %v5314_v29  ;;  %v1137_v28 = vmul.f32 %v1134_v17, %v5334_v10  ;;  %v1014_v8 = vmul.f32 0.0, %v5201_v37 }
 0x181   :  { %9482 = vst [vmem:[#allocation101_spill] sm:$0xff] %v5360_v48  ;;  %v1047_v56 = vadd.f32 %v1046_v41, %v1004_v58  ;;  %v1005_v24 = vmul.f32 0.0, %v5360_v48  ;;  %v1010_v41 = vmul.f32 0.0, %v5173_v25  ;;  %v5377_v48 = vpop.f32.mrf.mxu1 }
 0x182   :  { %9484 = vst [vmem:[#allocation103_spill] sm:$0xff] %v5377_v48  ;;  %v2870_v5 = vmul.f32 %v2866_v30, %v5377_v48 }
 0x183   :  { %v1048_v62 = vadd.f32 %v1047_v56, %v1006_v14  ;;  %v1084_v43 = vadd.f32 %v1083_v0, %v1005_v24  ;;  %v2869_v24 = vmul.f32 %v2866_v30, %v5366_v36  ;;  %v1013_v14 = vmul.f32 0.0, %v5195_v6 }
 0x184   :  { %v1136_v0 = vmul.f32 %v1133_v59, %v5324_v2  ;;  %v1017_v59 = vmul.f32 0.0, %v5213_v44  ;;  %v1020_v30 = vmul.f32 0.0, %v5229_v61  ;;  %v5550_v61 = vadd.s32 160, %v9410_v63 }
 0x185   :  { %v1049_v58 = vadd.f32 %v1048_v62, %v1008_v4  ;;  %v1085_v31 = vadd.f32 %v1084_v43, %v1007_v32  ;;  %v1138_v32 = vmul.f32 %v1134_v17, %v5342_v39  ;;  %v2867_v4 = vmul.f32 %v2865_v9, %v5349_v1 }
 0x186   :  { %v1015_v43 = vmul.f32 0.0, %v5205_v49  ;;  %v1018_v17 = vmul.f32 0.0, %v5217_v50  ;;  %v5525_v1 = vadd.s32 120, %v9410_v63  ;;  %9526 = vst [vmem:[#allocation143_spill] sm:$0xff] %v5550_v61  ;;  %v5556_v50 = vadd.s32 248, %v9410_v63 }
 0x187   :  { %v1050_v18 = vadd.f32 %v1049_v58, %v1010_v41  ;;  %v1086_v56 = vadd.f32 %v1085_v31, %v1009_v15  ;;  %v1016_v41 = vmul.f32 0.0, %v5209_v55  ;;  %v2868_v15 = vmul.f32 %v2865_v9, %v5357_v38 }
 0x188   :  { %v1139_v58 = vadd.f32 %v1137_v28, %v1135_v47  ;;  %v2871_v31 = vadd.f32 %v2869_v24, %v2867_v4  ;;  %v1146_v2 = vadd.f32 %v1138_v32, %v1136_v0  ;;  %v1021_v47 = vmul.f32 0.0, %v5235_v51  ;;  %9519 = vst [vmem:[#allocation136_spill] sm:$0xff] %v5525_v1  ;;  %9528 = vst [vmem:[#allocation145_spill] sm:$0xff] %v5556_v50 }
 0x189   :  { %v1051_v62 = vadd.f32 %v1050_v18, %v1012_v26  ;;  %v1087_v40 = vadd.f32 %v1086_v56, %v1011_v3  ;;  %v2878_v39 = vadd.f32 %v2870_v5, %v2868_v15  ;;  %v1019_v3 = vmul.f32 0.0, %v5223_v53 }
 0x18a   :  { %v1140_v56 = vrot.slane %v1139_v58, 4  ;;  %v2872_v48 = vrot.slane %v2871_v31, 4  ;;  %v1147_v28 = vrot.slane %v1146_v2, 4  ;;  %v1022_v24 = vmul.f32 0.0, %v5241_v7 }
 0x18b   :  { %v1088_v10 = vadd.f32 %v1087_v40, %v1013_v14  ;;  %v1052_v29 = vadd.f32 %v1051_v62, %v1014_v8  ;;  %v2879_v14 = vrot.slane %v2878_v39, 4  ;;  %v1023_v32 = vmul.f32 0.0, %v5252_v21  ;;  %v5542_v21 = vld [vmem:[#allocation15 + $0x8] sm:$0xff] }
 0x18c   :  { %v2873_v4 = vadd.f32 %v2872_v48, %v2871_v31  ;;  %v1025_v40 = vmul.f32 0.0, %v5284_v27  ;;  %v5531_v27 = vadd.s32 136, %v9410_v63  ;;  %9524 = vst [vmem:[#allocation141_spill] sm:$0xff] %v5542_v21  ;;  %v5547_v51 = vadd.s32 152, %v9410_v63 }
 0x18d   :  { %v1089_v26 = vadd.f32 %v1088_v10, %v1015_v43  ;;  %v1053_v18 = vadd.f32 %v1052_v29, %v1016_v41  ;;  %v1024_v29 = vmul.f32 0.0, %v5264_v12  ;;  %v1141_v10 = vadd.f32 %v1140_v56, %v1139_v58 }
 0x18e   :  { %v1148_v43 = vadd.f32 %v1147_v28, %v1146_v2  ;;  %v1026_v41 = vmul.f32 0.0, %v5296_v20  ;;  %v2880_v15 = vadd.f32 %v2879_v14, %v2878_v39  ;;  %v5402_v14 = vsub.s32 0, %v9410_v63  ;;  %9521 = vst [vmem:[#allocation138_spill] sm:$0xff] %v5531_v27  ;;  %9525 = vst [vmem:[#allocation142_spill] sm:$0xff] %v5547_v51 }
 0x18f   :  { %v1054_v36 = vadd.f32 %v1053_v18, %v1018_v17  ;;  %v1090_v9 = vadd.f32 %v1089_v26, %v1017_v59  ;;  %v1027_v26 = vmul.f32 0.0, %v5304_v16  ;;  %v5528_v16 = vadd.s32 128, %v9410_v63 }
 0x190   :  { %v2881_v38 = vrot.slane %v2880_v15, 2  ;;  %9485 = vst [vmem:[#allocation104_spill] sm:$0xff] %v5402_v14  ;;  %v5534_v12 = vadd.s32 144, %v9410_v63 }
 0x191   :  { %v1055_v8 = vadd.f32 %v1054_v36, %v1020_v30  ;;  %v1091_v0 = vadd.f32 %v1090_v9, %v1019_v3  ;;  %v1142_v36 = vrot.slane %v1141_v10, 2  ;;  %v2874_v30 = vrot.slane %v2873_v4, 2  ;;  %9520 = vst [vmem:[#allocation137_spill] sm:$0xff] %v5528_v16 }
 0x192   :  { %v1149_v9 = vrot.slane %v1148_v43, 2  ;;  %v2882_v28 = vadd.f32 %v2881_v38, %v2880_v15  ;;  %9522 = vst [vmem:[#allocation139_spill] sm:$0xff] %v5534_v12 }
 0x193   :  { %v1056_v62 = vadd.f32 %v1055_v8, %v1022_v24  ;;  %v1092_v5 = vadd.f32 %v1091_v0, %v1021_v47  ;;  %v2875_v47 = vadd.f32 %v2874_v30, %v2873_v4  ;;  %v1143_v24 = vadd.f32 %v1142_v36, %v1141_v10  ;;  %v539_v0 = vld [vmem:[%s8875_s7] sm:$0x3]  ;;  %s4696_s7 = smov [#allocation18]  }
 0x194   :  { %v1150_v2 = vadd.f32 %v1149_v9, %v1148_v43  ;;  %v2883_v43 = vrot.slane %v2882_v28, 1  ;;  %v5409_v38 = vrot.slane %v539_v0, %v5402_v14  ;;  %s4097_s21 = sshll.u32 %s4696_s7, 4  ;;  %s4098_s21 = int_to_ptr.vmem [resolvable:$true] %s4097_s21 }
 0x195   :  { %v1057_v59 = vadd.f32 %v1056_v62, %v1024_v29  ;;  %v1093_v17 = vadd.f32 %v1092_v5, %v1023_v32  ;;  %v2876_v62 = vrot.slane %v2875_v47, 1  ;;  %v1144_v5 = vrot.slane %v1143_v24, 1  ;;  %s4649_s4 = scalar_lea.vmem %s4098_s21, 32  ;;  %p4654_p12 = scmp.lt.s32.totalorder %s4098_s21, %s4098_s21 }
 0x196   :  { %9486 = vst [vmem:[#allocation105_spill] sm:$0xff] %v5409_v38  ;;  %v2884_v30 = vadd.f32 %v2883_v43, %v2882_v28  ;;  %p4650_p11 = scmp.ne.s32.totalorder %s4098_s21, %s4649_s4  ;;  %p4655_p13 = scmp.lt.s32.totalorder %s4649_s4, %s4649_s4 }
 0x197   :  { %v1058_v18 = vadd.f32 %v1057_v59, %v1026_v41  ;;  %v1094_v3 = vadd.f32 %v1093_v17, %v1025_v40  ;;  %v1162_v40 = vsub.s32 1, %v9410_v63  ;;  %v1151_v41 = vrot.slane %v1150_v2, 1 }
 0x198   :  { %v2877_v17 = vadd.f32 %v2876_v62, %v2875_v47  ;;  %v9488_v62 = vlaneseq  ;;  %p4656_p0 = por %p4655_p13, %p4654_p12 }
 0x199   :  { %v1059_v58 = vrot.slane %v1058_v18, 4  ;;  %v1095_v48 = vadd.f32 %v1094_v3, %v1027_v26  ;;  %v1145_v26 = vadd.f32 %v1144_v5, %v1143_v24  ;;  %v5411_v36 = vrot.slane %v539_v0, %v1162_v40 }
 0x19a   :  { %v5422_v5 = vand.u32 127, %v9488_v62  ;;  %p4657_p1 = pnand %p4656_p0, %p4650_p11 }
 0x19b   :  { %v1060_v31 = vadd.f32 %v1059_v58, %v1058_v18  ;;  %v1096_v56 = vrot.slane %v1095_v48, 4  ;;  %9487 = vst [vmem:[#allocation106_spill] sm:$0xff] %v5411_v36  ;;  %v1152_v18 = vadd.f32 %v1151_v41, %v1150_v2 }
 0x19c   :  { %9489 = vst [vmem:[#allocation107_spill] sm:$0xff] %v5422_v5  ;;  %v5425_v40 = vadd.s32 128, %v5422_v5 }
 0x19d   :  { %v1061_v8 = vrot.slane %v1060_v31, 2  ;;  %v1097_v39 = vadd.f32 %v1096_v56, %v1095_v48 }
 0x19e   :  { %9490 = vst [vmem:[#allocation108_spill] sm:$0xff] %v5425_v40 }
 0x19f   :  { %v1062_v32 = vadd.f32 %v1061_v8, %v1060_v31  ;;  %v1098_v29 = vrot.slane %v1097_v39, 2 }
 0x1a1   :  { %v1063_v4 = vrot.slane %v1062_v32, 1  ;;  %v1099_v10 = vadd.f32 %v1098_v29, %v1097_v39 }
 0x1a3   :  { %v1064_v15 = vadd.f32 %v1063_v4, %v1062_v32  ;;  %v1100_v59 = vrot.slane %v1099_v10, 1 }
 0x1a5   :  { %v1101_v3 = vadd.f32 %v1100_v59, %v1099_v10  ;;  %v2885_v9 = vadd.f32 %v2877_v17, %v1064_v15  ;;  %v1153_v58 = vadd.f32 %v1145_v26, %v1064_v15 }
 0x1a7   :  { %v2886_v48 = vadd.f32 %v2884_v30, %v1101_v3  ;;  %v2887_v31 = vadd.f32 %v2885_v9, %v5409_v38  ;;  %v1154_v56 = vadd.f32 %v1152_v18, %v1101_v3  ;;  %v1166_v8 = vadd.f32 %v5409_v38, %v1153_v58 }
 0x1a8   :  { %v5522_v38 = vadd.s32 112, %v9410_v63 }
 0x1a9   :  { %v2888_v39 = vadd.f32 %v2886_v48, %v5411_v36  ;;  %v1167_v32 = vadd.f32 %v5411_v36, %v1154_v56  ;;  %v2889_v47 = vsel %vm9015_vm11, %v2887_v31, -inf  ;;  %v1169_v2 = vsel %vm9015_vm11, %v1166_v8, -inf }
 0x1aa   :  { %v5515_v36 = vadd.s32 240, %v9410_v63  ;;  %9518 = vst [vmem:[#allocation135_spill] sm:$0xff] %v5522_v38 }
 0x1ab   :  { %v2890_v24 = vsel %vm9015_vm11, %v2888_v39, -inf  ;;  %v1170_v28 = vsel %vm9015_vm11, %v1167_v32, -inf }
 0x1ac   :  { %v2891_v0 = vmax.f32 %v2889_v47, %v2890_v24  ;;  %v1171_v29 = vmax.f32 %v1169_v2, %v1170_v28  ;;  %9516 = vst [vmem:[#allocation133_spill] sm:$0xff] %v5515_v36 }
 0x1ae   :  { %2892 = vmax.xlane.f32.xlu0 %v2891_v0  ;;  %1172 = vmax.xlane.f32.xlu1 %v1171_v29 }
 0x237   :  { %v2893_v41 = vpop.xlane.xlu0 %2892  ;;  %v1173_v4 = vpop.xlane.xlu1 %1172 }
 0x238   :  { %vm2894_vm12 = vcmp.eq.f32.partialorder %v2887_v31, %v2893_v41  ;;  %vm2895_vm13 = vcmp.eq.f32.partialorder %v2888_v39, %v2893_v41  ;;  %vm1174_vm14 = vcmp.eq.f32.partialorder %v1166_v8, %v1173_v4  ;;  %vm1175_vm15 = vcmp.eq.f32.partialorder %v1167_v32, %v1173_v4 }
 0x239   :  { %v2896_v10 = vsel %vm2894_vm12, %v5422_v5, 256  ;;  %v2897_v43 = vsel %vm2895_vm13, %v5425_v40, 256  ;;  %v1176_v15 = vsel %vm1174_vm14, %v5422_v5, 256  ;;  %v1177_v59 = vsel %vm1175_vm15, %v5425_v40, 256 }
 0x23a   :  { %v2898_v17 = vsel %vm9015_vm11, %v2896_v10, 2147483647  ;;  %v2899_v26 = vsel %vm9015_vm11, %v2897_v43, 2147483647  ;;  %v1178_v18 = vsel %vm9015_vm11, %v1176_v15, 2147483647 }
 0x23b   :  { %vm2900_vm0 = vcmp.lt.s32.totalorder %v2898_v17, %v2899_v26  ;;  %v1179_v3 = vsel %vm9015_vm11, %v1177_v59, 2147483647  ;;  %v5442_v15 = vadd.s32 16, %v9410_v63  ;;  %v5445_v59 = vadd.s32 24, %v9410_v63 }
 0x23c   :  { %vm1180_vm1 = vcmp.lt.s32.totalorder %v1178_v18, %v1179_v3  ;;  %v2901_v30 = vsel %vm2900_vm0, %v2898_v17, %v2899_v26  ;;  %v5448_v17 = vadd.s32 32, %v9410_v63  ;;  %v5512_v5 = vadd.s32 104, %v9410_v63 }
 0x23d   :  { %v2903_v9 = vshra.s32 %v2901_v30, 16  ;;  %v1181_v58 = vsel %vm1180_vm1, %v1178_v18, %v1179_v3  ;;  %v2902_v8 = vand.u32 65535, %v2901_v30  ;;  %9492 = vst [vmem:[#allocation110_spill] sm:$0xff] %v5442_v15  ;;  %9493 = vst [vmem:[#allocation111_spill] sm:$0xff] %v5445_v59  ;;  %v5451_v18 = vadd.s32 168, %v9410_v63 }
 0x23e   :  { %v1183_v48 = vshra.s32 %v1181_v58, 16  ;;  %v1182_v39 = vand.u32 65535, %v1181_v58  ;;  %9494 = vst [vmem:[#allocation112_spill] sm:$0xff] %v5448_v17  ;;  %v5454_v3 = vadd.s32 40, %v9410_v63  ;;  %v5457_v30 = vadd.s32 176, %v9410_v63  ;;  %9515 = vst [vmem:[#allocation132_spill] sm:$0xff] %v5512_v5 }
 0x23f   :  { %v2905_v31 = vcvt.s32.f32 %v2903_v9  ;;  %v2904_v47 = vcvt.s32.f32 %v2902_v8  ;;  %9495 = vst [vmem:[#allocation113_spill] sm:$0xff] %v5451_v18  ;;  %v5460_v58 = vadd.s32 48, %v9410_v63  ;;  %v5472_v8 = vadd.s32 64, %v9410_v63 }
 0x240   :  { %v1185_v56 = vcvt.s32.f32 %v1183_v48  ;;  %v1184_v2 = vcvt.s32.f32 %v1182_v39  ;;  %9496 = vst [vmem:[#allocation114_spill] sm:$0xff] %v5454_v3  ;;  %9497 = vst [vmem:[#allocation115_spill] sm:$0xff] %v5457_v30  ;;  %v5463_v48 = vadd.s32 184, %v9410_v63 }
 0x241   :  { %2906 = vmin.xlane.f32.xlu0 %v2905_v31  ;;  %9498 = vst [vmem:[#allocation116_spill] sm:$0xff] %v5460_v58  ;;  %9502 = vst [vmem:[#allocation120_spill] sm:$0xff] %v5472_v8 }
 0x242   :  { %1186 = vmin.xlane.f32.xlu1 %v1185_v56  ;;  %9499 = vst [vmem:[#allocation117_spill] sm:$0xff] %v5463_v48 }
 0x2ca   :  { %v2907_v32 = vpop.xlane.xlu0 %2906 }
 0x2cb   :  { %v1187_v24 = vpop.xlane.xlu1 %1186  ;;  %vm2908_vm2 = vcmp.eq.f32.partialorder %v2905_v31, %v2907_v32  ;;  %v2913_v62 = vcvt.f32.s32 %v2907_v32  ;;  %v5466_v31 = vadd.s32 56, %v9410_v63  ;;  %v5479_v32 = vadd.s32 200, %v9410_v63 }
 0x2cc   :  { %v2909_v28 = vsel %vm2908_vm2, %v2904_v47, inf  ;;  %vm1188_vm3 = vcmp.eq.f32.partialorder %v1185_v56, %v1187_v24  ;;  %v1193_v9 = vcvt.f32.s32 %v1187_v24  ;;  %v5469_v56 = vadd.s32 192, %v9410_v63 }
 0x2cd   :  { %2910 = vmin.xlane.f32.xlu0 %v2909_v28  ;;  %v1189_v0 = vsel %vm1188_vm3, %v1184_v2, inf  ;;  %v2914_v4 = vshll.u32 %v2913_v62, 16  ;;  %9500 = vst [vmem:[#allocation118_spill] sm:$0xff] %v5466_v31  ;;  %9503 = vst [vmem:[#allocation121_spill] sm:$0xff] %v5479_v32  ;;  %v5482_v47 = vadd.s32 72, %v9410_v63  ;;  %v5485_v24 = vadd.s32 208, %v9410_v63 }
 0x2ce   :  { %1190 = vmin.xlane.f32.xlu1 %v1189_v0  ;;  %9501 = vst [vmem:[#allocation119_spill] sm:$0xff] %v5469_v56  ;;  %v5488_v2 = vadd.s32 80, %v9410_v63  ;;  %v5491_v28 = vadd.s32 216, %v9410_v63  ;;  %v5494_v0 = vadd.s32 88, %v9410_v63  ;;  %v1194_v62 = vshll.u32 %v1193_v9, 16 }
 0x2cf   :  { %9504 = vst [vmem:[#allocation122_spill] sm:$0xff] %v5482_v47  ;;  %9505 = vst [vmem:[#allocation123_spill] sm:$0xff] %v5485_v24 }
 0x2d0   :  { %9506 = vst [vmem:[#allocation124_spill] sm:$0xff] %v5488_v2  ;;  %9507 = vst [vmem:[#allocation125_spill] sm:$0xff] %v5491_v28 }
 0x2d1   :  { %9508 = vst [vmem:[#allocation126_spill] sm:$0xff] %v5494_v0 }
 0x356   :  { %v2911_v29 = vpop.xlane.xlu0 %2910 }
 0x357   :  { %v2912_v41 = vcvt.f32.s32 %v2911_v29  ;;  %v1191_v26 = vpop.xlane.xlu1 %1190  ;;  %v5497_v29 = vadd.s32 224, %v9410_v63 }
 0x358   :  { %v1192_v39 = vcvt.f32.s32 %v1191_v26  ;;  %v9512_v26 = vmov 0.0  }
 0x359   :  { %v5435_v10 = vadd.s32 %v2914_v4, %v2912_v41  ;;  %9509 = vst [vmem:[#allocation127_spill] sm:$0xff] %v5497_v29  ;;  %v5500_v41 = vadd.s32 96, %v9410_v63  ;;  %v5503_v4 = vadd.s32 232, %v9410_v63 }
 0x35a   :  { %v5519_v9 = vadd.s32 %v1194_v62, %v1192_v39  ;;  %v5538_v39 = vld [vmem:[#allocation15] sm:$0xff] }
 0x35b   :  { %9491 = vst [vmem:[#allocation109_spill] sm:$0xff] %v5435_v10  ;;  %v5439_v43 = vrot.slane %v5435_v10, %v5402_v14  ;;  %9510 = vst [vmem:[#allocation128_spill] sm:$0xff] %v5500_v41 }
 0x35c   :  { %9511 = vst [vmem:[#allocation129_spill] sm:$0xff] %v5503_v4  ;;  %9517 = vst [vmem:[#allocation134_spill] sm:$0xff] %v5519_v9 }
 0x35d   :  { %vm2921_vm4 = vcmp.eq.s32.totalorder %v9410_v63, %v5439_v43  ;;  %vm2922_vm5 = vcmp.eq.s32.totalorder %v5155_v19, %v5439_v43  ;;  %vm2923_vm6 = vcmp.eq.s32.totalorder %v5442_v15, %v5439_v43  ;;  %vm2924_vm7 = vcmp.eq.s32.totalorder %v5445_v59, %v5439_v43  ;;  %9523 = vst [vmem:[#allocation140_spill] sm:$0xff] %v5538_v39 }
 0x35e   :  { %v5506_v10 = vsel %vm2921_vm4, 1.0, %v9512_v26  ;;  %v5509_v40 = vsel %vm2922_vm5, 1.0, %v9512_v26  ;;  %v5553_v53 = vsel %vm2923_vm6, 1.0, %v9512_v26  ;;  %vm2925_vm8 = vcmp.eq.s32.totalorder %v5448_v17, %v5439_v43 }
 0x35f   :  { %9513 = vst [vmem:[#allocation130_spill] sm:$0xff] %v5506_v10  ;;  %9514 = vst [vmem:[#allocation131_spill] sm:$0xff] %v5509_v40  ;;  %v3017_v62 = vmul.f32 %v5538_v39, %v5506_v10  ;;  %v3018_v7 = vmul.f32 %v5542_v21, %v5509_v40  ;;  %vm2926_vm9 = vcmp.eq.s32.totalorder %v5454_v3, %v5439_v43  ;;  %v5578_v39 = vsel %vm2924_vm7, 1.0, %v9512_v26 }
 0x360   :  { %9527 = vst [vmem:[#allocation144_spill] sm:$0xff] %v5553_v53  ;;  %vm2927_vm10 = vcmp.eq.s32.totalorder %v5460_v58, %v5439_v43  ;;  %v5566_v21 = vrot.slane %v5519_v9, %v5402_v14  ;;  %vm2928_vm12 = vcmp.eq.s32.totalorder %v5466_v31, %v5439_v43  ;;  %vm2929_vm13 = vcmp.eq.s32.totalorder %v5472_v8, %v5439_v43  ;;  %v5584_v9 = vld [vmem:[#allocation15 + $0x10] sm:$0xff] }
 0x361   :  { %vm2930_vm14 = vcmp.eq.s32.totalorder %v5482_v47, %v5439_v43  ;;  %9530 = vst [vmem:[#allocation147_spill] sm:$0xff] %v5578_v39  ;;  %vm2931_vm15 = vcmp.eq.s32.totalorder %v5488_v2, %v5439_v43  ;;  %vm2932_vm0 = vcmp.eq.s32.totalorder %v5494_v0, %v5439_v43  ;;  %9531 = vst [vmem:[#allocation148_spill] sm:$0xff] %v5584_v9  ;;  %v5598_v55 = vsel %vm2925_vm8, 1.0, %v9512_v26 }
 0x362   :  { %9529 = vst [vmem:[#allocation146_spill] sm:$0xff] %v5566_v21  ;;  %v3019_v14 = vmul.f32 %v5584_v9, %v5553_v53  ;;  %v3049_v44 = vadd.f32 %v3018_v7, %v3017_v62  ;;  %vm2933_vm1 = vcmp.eq.s32.totalorder %v5500_v41, %v5439_v43  ;;  %vm2934_vm2 = vcmp.eq.s32.totalorder %v5512_v5, %v5439_v43  ;;  %v5604_v7 = vld [vmem:[#allocation15 + $0x18] sm:$0xff]  ;;  %v5858_v53 = vld [vmem:[#allocation15 + $0x50] sm:$0xff] }
 0x363   :  { %vm2935_vm3 = vcmp.eq.s32.totalorder %v5522_v38, %v5439_v43  ;;  %9532 = vst [vmem:[#allocation149_spill] sm:$0xff] %v5598_v55  ;;  %vm2936_vm4 = vcmp.eq.s32.totalorder %v5525_v1, %v5439_v43  ;;  %9533 = vst [vmem:[#allocation150_spill] sm:$0xff] %v5604_v7  ;;  %v3020_v62 = vmul.f32 %v5604_v7, %v5578_v39  ;;  %v5618_v49 = vsel %vm2926_vm9, 1.0, %v9512_v26 }
 0x364   :  { %v3050_v9 = vadd.f32 %v3049_v44, %v3019_v14  ;;  %vm2938_vm6 = vcmp.eq.s32.totalorder %v5531_v27, %v5439_v43  ;;  %9534 = vst [vmem:[#allocation151_spill] sm:$0xff] %v5618_v49  ;;  %v5624_v44 = vld [vmem:[#allocation15 + $0x20] sm:$0xff]  ;;  %vm2943_vm8 = vcmp.eq.s32.totalorder %v5457_v30, %v5439_v43  ;;  %v5638_v37 = vsel %vm2927_vm10, 1.0, %v9512_v26  ;;  %9567 = vst [vmem:[#allocation176_spill] sm:$0xff] %v5858_v53 }
 0x365   :  { %9535 = vst [vmem:[#allocation152_spill] sm:$0xff] %v5624_v44  ;;  %v3021_v14 = vmul.f32 %v5624_v44, %v5598_v55  ;;  %9536 = vst [vmem:[#allocation153_spill] sm:$0xff] %v5638_v37  ;;  %vm2946_vm5 = vcmp.eq.s32.totalorder %v5479_v32, %v5439_v43  ;;  %vm2948_vm9 = vcmp.eq.s32.totalorder %v5491_v28, %v5439_v43  ;;  %v5658_v6 = vsel %vm2928_vm12, 1.0, %v9512_v26 }
 0x366   :  { %v3051_v7 = vadd.f32 %v3050_v9, %v3020_v62  ;;  %v5644_v9 = vld [vmem:[#allocation15 + $0x28] sm:$0xff]  ;;  %vm2949_vm7 = vcmp.eq.s32.totalorder %v5497_v29, %v5439_v43  ;;  %vm2950_vm10 = vcmp.eq.s32.totalorder %v5503_v4, %v5439_v43  ;;  %9538 = vst [vmem:[#allocation155_spill] sm:$0xff] %v5658_v6  ;;  %vm2951_vm11 = vcmp.eq.s32.totalorder %v5515_v36, %v5439_v43  ;;  %v5868_v36 = vld [vmem:[#allocation15 + $0x58] sm:$0xff] }
 0x367   :  { %9537 = vst [vmem:[#allocation154_spill] sm:$0xff] %v5644_v9  ;;  %v3022_v62 = vmul.f32 %v5644_v9, %v5618_v49  ;;  %v5676_v33 = vsel %vm2930_vm14, 1.0, %v9512_v26  ;;  %v5682_v25 = vsel %vm2931_vm15, 1.0, %v9512_v26  ;;  %v5688_v23 = vsel %vm2932_vm0, 1.0, %v9512_v26  ;;  %9568 = vst [vmem:[#allocation177_spill] sm:$0xff] %v5868_v36 }
 0x368   :  { %v3052_v44 = vadd.f32 %v3051_v7, %v3021_v14  ;;  %v5666_v7 = vsel %vm2929_vm13, 1.0, %v9512_v26  ;;  %v5668_v14 = vld [vmem:[#allocation15 + $0x30] sm:$0xff]  ;;  %9541 = vst [vmem:[#allocation158_spill] sm:$0xff] %v5676_v33  ;;  %9542 = vst [vmem:[#allocation159_spill] sm:$0xff] %v5682_v25  ;;  %v3024_v52 = vmul.f32 %v5708_v57, %v5658_v6  ;;  %v5716_v34 = vsel %vm2936_vm4, 1.0, %v9512_v26  ;;  %v5804_v6 = vld [vmem:[#allocation15 + $0x48] sm:$0xff] }
 0x369   :  { %9539 = vst [vmem:[#allocation156_spill] sm:$0xff] %v5666_v7  ;;  %9540 = vst [vmem:[#allocation157_spill] sm:$0xff] %v5668_v14  ;;  %v3023_v9 = vmul.f32 %v5668_v14, %v5638_v37  ;;  %v5706_v14 = vsel %vm2935_vm3, 1.0, %v9512_v26  ;;  %vm9548_vm12 = vcmp.eq.s32.totalorder %v5528_v16, %v5439_v43  ;;  %v5728_v45 = vsel %vm2938_vm6, 1.0, %v9512_v26 }
 0x36a   :  { %v3053_v54 = vadd.f32 %v3052_v44, %v3022_v62  ;;  %v5694_v44 = vsel %vm2933_vm1, 1.0, %v9512_v26  ;;  %v5700_v62 = vsel %vm2934_vm2, 1.0, %v9512_v26  ;;  %9545 = vst [vmem:[#allocation162_spill] sm:$0xff] %v5706_v14  ;;  %9547 = vst [vmem:[#allocation164_spill] sm:$0xff] %v5716_v34  ;;  %v5722_v46 = vsel %vm9548_vm12, 1.0, %v9512_v26 }
 0x36b   :  { %9543 = vst [vmem:[#allocation160_spill] sm:$0xff] %v5694_v44  ;;  %9544 = vst [vmem:[#allocation161_spill] sm:$0xff] %v5700_v62  ;;  %vm9551_vm13 = vcmp.eq.s32.totalorder %v5534_v12, %v5439_v43  ;;  %vm1202_vm14 = vcmp.eq.s32.totalorder %v9410_v63, %v5566_v21  ;;  %vm1203_vm15 = vcmp.eq.s32.totalorder %v5155_v19, %v5566_v21 }
 0x36c   :  { %v3054_v22 = vadd.f32 %v3053_v54, %v3023_v9  ;;  %9549 = vst [vmem:[#allocation165_spill] sm:$0xff] %v5722_v46  ;;  %9550 = vst [vmem:[#allocation166_spill] sm:$0xff] %v5728_v45  ;;  %v5734_v54 = vsel %vm9551_vm13, 1.0, %v9512_v26  ;;  %vm1204_vm0 = vcmp.eq.s32.totalorder %v5442_v15, %v5566_v21  ;;  %vm9553_vm1 = vcmp.eq.s32.totalorder %v5547_v51, %v5439_v43 }
 0x36d   :  { %9552 = vst [vmem:[#allocation167_spill] sm:$0xff] %v5734_v54  ;;  %v5746_v9 = vsel %vm9553_vm1, 1.0, %v9512_v26  ;;  %vm9555_vm2 = vcmp.eq.s32.totalorder %v5550_v61, %v5439_v43  ;;  %v3025_v35 = vmul.f32 %v5754_v60, %v5666_v7  ;;  %vm1205_vm3 = vcmp.eq.s32.totalorder %v5445_v59, %v5566_v21  ;;  %9564 = vst [vmem:[#allocation174_spill] sm:$0xff] %v5804_v6 }
 0x36e   :  { %9554 = vst [vmem:[#allocation168_spill] sm:$0xff] %v5746_v9  ;;  %v5752_v57 = vsel %vm9555_vm2, 1.0, %v9512_v26  ;;  %v3055_v13 = vadd.f32 %v3054_v22, %v3024_v52  ;;  %vm1206_vm4 = vcmp.eq.s32.totalorder %v5448_v17, %v5566_v21  ;;  %vm9558_vm12 = vcmp.eq.s32.totalorder %v5451_v18, %v5439_v43 }
 0x36f   :  { %9556 = vst [vmem:[#allocation169_spill] sm:$0xff] %v5752_v57  ;;  %v5768_v11 = vsel %vm9558_vm12, 1.0, %v9512_v26  ;;  %v5774_v22 = vsel %vm2943_vm8, 1.0, %v9512_v26  ;;  %vm9561_vm13 = vcmp.eq.s32.totalorder %v5463_v48, %v5439_v43  ;;  %vm2952_vm1 = vcmp.eq.s32.totalorder %v5556_v50, %v5439_v43  ;;  %v5872_v50 = vld [vmem:[#allocation15 + $0x60] sm:$0xff] }
 0x370   :  { %9559 = vst [vmem:[#allocation171_spill] sm:$0xff] %v5768_v11  ;;  %9560 = vst [vmem:[#allocation172_spill] sm:$0xff] %v5774_v22  ;;  %v5780_v52 = vsel %vm9561_vm13, 1.0, %v9512_v26  ;;  %vm1208_vm2 = vcmp.eq.s32.totalorder %v5460_v58, %v5566_v21  ;;  %vm1209_vm12 = vcmp.eq.s32.totalorder %v5466_v31, %v5566_v21  ;;  %vm9563_vm13 = vcmp.eq.s32.totalorder %v5469_v56, %v5439_v43 }
 0x371   :  { %9562 = vst [vmem:[#allocation173_spill] sm:$0xff] %v5780_v52  ;;  %v5796_v60 = vsel %vm9563_vm13, 1.0, %v9512_v26  ;;  %v5802_v7 = vsel %vm2946_vm5, 1.0, %v9512_v26  ;;  %v3026_v37 = vmul.f32 %v5804_v6, %v5676_v33  ;;  %v3056_v49 = vadd.f32 %v3055_v13, %v3025_v35  ;;  %9569 = vst [vmem:[#allocation178_spill] sm:$0xff] %v5872_v50 }
 0x372   :  { %vm1212_vm8 = vcmp.eq.s32.totalorder %v5488_v2, %v5566_v21  ;;  %vm9565_vm5 = vcmp.eq.s32.totalorder %v5485_v24, %v5439_v43  ;;  %v5824_v13 = vsel %vm2948_vm9, 1.0, %v9512_v26  ;;  %v5830_v35 = vsel %vm2949_vm7, 1.0, %v9512_v26  ;;  %v9625_v2 = vld [vmem:[#allocation30_spill] sm:$0xff] }
 0x373   :  { %v5818_v55 = vsel %vm9565_vm5, 1.0, %v9512_v26  ;;  %v5836_v6 = vsel %vm2950_vm10, 1.0, %v9512_v26  ;;  %vm1215_vm5 = vcmp.eq.s32.totalorder %v5512_v5, %v5566_v21  ;;  %vm1216_vm13 = vcmp.eq.s32.totalorder %v5522_v38, %v5566_v21 }
 0x374   :  { %vm1217_vm9 = vcmp.eq.s32.totalorder %v5525_v1, %v5566_v21  ;;  %vm1218_vm6 = vcmp.eq.s32.totalorder %v5528_v16, %v5566_v21  ;;  %v5850_v33 = vsel %vm2951_vm11, 1.0, %v9512_v26  ;;  %v5856_v39 = vsel %vm2952_vm1, 1.0, %v9512_v26 }
 0x375   :  { %9566 = vst [vmem:[#allocation175_spill] sm:$0xff] %v5856_v39  ;;  %v3027_v40 = vmul.f32 %v5858_v53, %v5682_v25  ;;  %v3057_v10 = vadd.f32 %v3056_v49, %v3026_v37  ;;  %v3028_v43 = vmul.f32 %v5868_v36, %v5688_v23  ;;  %v3029_v53 = vmul.f32 %v5872_v50, %v5694_v44  ;;  %v5876_v37 = vld [vmem:[#allocation15 + $0x68] sm:$0xff]  ;;  %v5880_v25 = vld [vmem:[#allocation15 + $0x70] sm:$0xff]  ;;  %v5892_v50 = vld [vmem:[#allocation15 + $0x78] sm:$0xff] }
 0x376   :  { %9570 = vst [vmem:[#allocation179_spill] sm:$0xff] %v5876_v37  ;;  %v3030_v49 = vmul.f32 %v5876_v37, %v5700_v62  ;;  %9571 = vst [vmem:[#allocation180_spill] sm:$0xff] %v5880_v25  ;;  %v3031_v42 = vmul.f32 %v5880_v25, %v5706_v14  ;;  %vm1222_vm1 = vcmp.eq.s32.totalorder %v5550_v61, %v5566_v21  ;;  %v5896_v36 = vld [vmem:[#allocation15 + $0x80] sm:$0xff]  ;;  %v5902_v14 = vld [vmem:[#allocation15 + $0x88] sm:$0xff]  ;;  %v6030_v63 = vsel %vm1205_vm3, 1.0, %v9512_v26 }
 0x377   :  { %9572 = vst [vmem:[#allocation181_spill] sm:$0xff] %v5892_v50  ;;  %v3032_v37 = vmul.f32 %v5892_v50, %v5716_v34  ;;  %9573 = vst [vmem:[#allocation182_spill] sm:$0xff] %v5896_v36  ;;  %v5900_v25 = vmul.f32 %v5896_v36, %v5722_v46  ;;  %v5906_v62 = vmul.f32 %v5902_v14, %v5728_v45  ;;  %v5914_v50 = vld [vmem:[#allocation15 + $0x90] sm:$0xff]  ;;  %v5920_v46 = vld [vmem:[#allocation15 + $0x98] sm:$0xff]  ;;  %v6036_v19 = vsel %vm1206_vm4, 1.0, %v9512_v26 }
 0x378   :  { %9574 = vst [vmem:[#allocation183_spill] sm:$0xff] %v5902_v14  ;;  %v3058_v44 = vadd.f32 %v3057_v10, %v3027_v40  ;;  %9575 = vst [vmem:[#allocation184_spill] sm:$0xff] %v5914_v50  ;;  %v5918_v36 = vmul.f32 %v5914_v50, %v5734_v54  ;;  %v5924_v40 = vmul.f32 %v5920_v46, %v5746_v9  ;;  %v5926_v10 = vld [vmem:[#allocation15 + $0xa0] sm:$0xff]  ;;  %v5932_v45 = vld [vmem:[#allocation15 + $0xa8] sm:$0xff]  ;;  %v6072_v31 = vsel %vm1212_vm8, 1.0, %v9512_v26 }
 0x379   :  { %9576 = vst [vmem:[#allocation185_spill] sm:$0xff] %v5920_v46  ;;  %9577 = vst [vmem:[#allocation186_spill] sm:$0xff] %v5926_v10  ;;  %v5930_v14 = vmul.f32 %v5926_v10, %v5752_v57  ;;  %v5936_v34 = vmul.f32 %v5932_v45, %v5768_v11  ;;  %vm1229_vm11 = vcmp.eq.s32.totalorder %v5491_v28, %v5566_v21  ;;  %v5944_v46 = vld [vmem:[#allocation15 + $0xb0] sm:$0xff]  ;;  %v5950_v50 = vld [vmem:[#allocation15 + $0xb8] sm:$0xff] }
 0x37a   :  { %9578 = vst [vmem:[#allocation187_spill] sm:$0xff] %v5932_v45  ;;  %vm1230_vm10 = vcmp.eq.s32.totalorder %v5497_v29, %v5566_v21  ;;  %vm1231_vm7 = vcmp.eq.s32.totalorder %v5503_v4, %v5566_v21  ;;  %9580 = vst [vmem:[#allocation189_spill] sm:$0xff] %v5944_v46  ;;  %v5948_v10 = vmul.f32 %v5944_v46, %v5774_v22  ;;  %v5956_v11 = vld [vmem:[#allocation15 + $0xc0] sm:$0xff]  ;;  %v5962_v54 = vld [vmem:[#allocation15 + $0xc8] sm:$0xff] }
 0x37b   :  { %9579 = vst [vmem:[#allocation188_spill] sm:$0xff] %v5936_v34  ;;  %9581 = vst [vmem:[#allocation190_spill] sm:$0xff] %v5950_v50  ;;  %v5954_v45 = vmul.f32 %v5950_v50, %v5780_v52  ;;  %v5960_v57 = vmul.f32 %v5956_v11, %v5796_v60  ;;  %v3059_v9 = vadd.f32 %v3058_v44, %v3028_v43  ;;  %v5968_v46 = vld [vmem:[#allocation15 + $0xd0] sm:$0xff]  ;;  %v5974_v50 = vld [vmem:[#allocation15 + $0xd8] sm:$0xff] }
 0x37c   :  { %9582 = vst [vmem:[#allocation191_spill] sm:$0xff] %v5956_v11  ;;  %9583 = vst [vmem:[#allocation192_spill] sm:$0xff] %v5962_v54  ;;  %v5966_v34 = vmul.f32 %v5962_v54, %v5802_v7  ;;  %v5972_v22 = vmul.f32 %v5968_v46, %v5818_v55  ;;  %v5978_v52 = vmul.f32 %v5974_v50, %v5824_v13  ;;  %v5980_v11 = vld [vmem:[#allocation15 + $0xe0] sm:$0xff]  ;;  %v5986_v43 = vld [vmem:[#allocation15 + $0xe8] sm:$0xff] }
 0x37d   :  { %9584 = vst [vmem:[#allocation193_spill] sm:$0xff] %v5968_v46  ;;  %9586 = vst [vmem:[#allocation195_spill] sm:$0xff] %v5974_v50  ;;  %v5984_v44 = vmul.f32 %v5980_v11, %v5830_v35  ;;  %v5990_v54 = vmul.f32 %v5986_v43, %v5836_v6  ;;  %v5992_v46 = vld [vmem:[#allocation15 + $0xf0] sm:$0xff]  ;;  %v5998_v50 = vld [vmem:[#allocation15 + $0xf8] sm:$0xff]  ;;  %vm9598_vm3 = vcmp.eq.s32.totalorder %v5494_v0, %v5566_v21  ;;  %v6102_v0 = vsel %vm1217_vm9, 1.0, %v9512_v26 }
 0x37e   :  { %9585 = vst [vmem:[#allocation194_spill] sm:$0xff] %v5972_v22  ;;  %9587 = vst [vmem:[#allocation196_spill] sm:$0xff] %v5978_v52  ;;  %v5996_v22 = vmul.f32 %v5992_v46, %v5850_v33  ;;  %v6002_v52 = vmul.f32 %v5998_v50, %v5856_v39  ;;  %vm9599_vm4 = vcmp.eq.s32.totalorder %v5500_v41, %v5566_v21  ;;  %v6108_v41 = vsel %vm1218_vm6, 1.0, %v9512_v26  ;;  %v9627_v29 = vld [vmem:[#allocation131_spill] sm:$0xff]  ;;  %v9629_v4 = vld [vmem:[#allocation37_spill] sm:$0xff] }
 0x37f   :  { %9588 = vst [vmem:[#allocation197_spill] sm:$0xff] %v5980_v11  ;;  %9589 = vst [vmem:[#allocation198_spill] sm:$0xff] %v5984_v44  ;;  %v3060_v11 = vadd.f32 %v3059_v9, %v3029_v53  ;;  %v6006_v44 = vmul.f32 %v5856_v39, %v5296_v20  ;;  %v6024_v53 = vsel %vm1204_vm0, 1.0, %v9512_v26  ;;  %vm9597_vm0 = vcmp.eq.s32.totalorder %v5482_v47, %v5566_v21  ;;  %v9628_v39 = vld [vmem:[#allocation35_spill] sm:$0xff] }
 0x380   :  { %9590 = vst [vmem:[#allocation199_spill] sm:$0xff] %v5986_v43  ;;  %9591 = vst [vmem:[#allocation200_spill] sm:$0xff] %v5992_v46  ;;  %v6012_v43 = vsel %vm1202_vm14, 1.0, %v9512_v26  ;;  %v6018_v46 = vsel %vm1203_vm15, 1.0, %v9512_v26  ;;  %vm9595_vm14 = vcmp.eq.s32.totalorder %v5454_v3, %v5566_v21  ;;  %vm9596_vm15 = vcmp.eq.s32.totalorder %v5472_v8, %v5566_v21 }
 0x381   :  { %9592 = vst [vmem:[#allocation201_spill] sm:$0xff] %v5998_v50  ;;  %9593 = vst [vmem:[#allocation202_spill] sm:$0xff] %v6002_v52  ;;  %v3061_v9 = vadd.f32 %v3060_v11, %v3030_v49  ;;  %v6042_v15 = vsel %vm9595_vm14, 1.0, %v9512_v26  ;;  %v6048_v11 = vsel %vm1208_vm2, 1.0, %v9512_v26  ;;  %v6054_v49 = vsel %vm1209_vm12, 1.0, %v9512_v26  ;;  %v9652_v52 = vld [vmem:[#allocation155_spill] sm:$0xff] }
 0x382   :  { %9594 = vst [vmem:[#allocation203_spill] sm:$0xff] %v6006_v44  ;;  %v6060_v17 = vsel %vm9596_vm15, 1.0, %v9512_v26  ;;  %v6066_v3 = vsel %vm9597_vm0, 1.0, %v9512_v26  ;;  %v6078_v8 = vsel %vm9598_vm3, 1.0, %v9512_v26  ;;  %v6084_v47 = vsel %vm9599_vm4, 1.0, %v9512_v26  ;;  %9600 = vst [vmem:[#allocation204_spill] sm:$0xff] %v6108_v41 }
 0x383   :  { %v3062_v58 = vadd.f32 %v3061_v9, %v3031_v42  ;;  %v6090_v42 = vsel %vm1215_vm5, 1.0, %v9512_v26  ;;  %v6096_v9 = vsel %vm1216_vm13, 1.0, %v9512_v26  ;;  %vm9601_vm2 = vcmp.eq.s32.totalorder %v5531_v27, %v5566_v21  ;;  %v9626_v44 = vld [vmem:[#allocation33_spill] sm:$0xff]  ;;  %v9644_v41 = vld [vmem:[#allocation55_spill] sm:$0xff] }
 0x384   :  { %v6114_v38 = vsel %vm9601_vm2, 1.0, %v9512_v26  ;;  %vm9603_vm12 = vcmp.eq.s32.totalorder %v5534_v12, %v5566_v21  ;;  %vm9605_vm8 = vcmp.eq.s32.totalorder %v5547_v51, %v5566_v21  ;;  %vm9608_vm6 = vcmp.eq.s32.totalorder %v5451_v18, %v5566_v21 }
 0x385   :  { %v3063_v5 = vadd.f32 %v3062_v58, %v3032_v37  ;;  %9602 = vst [vmem:[#allocation205_spill] sm:$0xff] %v6114_v38  ;;  %v6120_v1 = vsel %vm9603_vm12, 1.0, %v9512_v26  ;;  %v6126_v16 = vsel %vm9605_vm8, 1.0, %v9512_v26  ;;  %v6132_v58 = vsel %vm1222_vm1, 1.0, %v9512_v26 }
 0x386   :  { %9604 = vst [vmem:[#allocation206_spill] sm:$0xff] %v6120_v1  ;;  %9606 = vst [vmem:[#allocation207_spill] sm:$0xff] %v6126_v16  ;;  %v6138_v37 = vsel %vm9608_vm6, 1.0, %v9512_v26  ;;  %vm9610_vm13 = vcmp.eq.s32.totalorder %v5457_v30, %v5566_v21  ;;  %vm9612_vm5 = vcmp.eq.s32.totalorder %v5463_v48, %v5566_v21  ;;  %vm9614_vm9 = vcmp.eq.s32.totalorder %v5469_v56, %v5566_v21  ;;  %v9624_v56 = vld [vmem:[#allocation130_spill] sm:$0xff]  ;;  %v9642_v1 = vld [vmem:[#allocation151_spill] sm:$0xff] }
 0x387   :  { %9607 = vst [vmem:[#allocation208_spill] sm:$0xff] %v6132_v58  ;;  %9609 = vst [vmem:[#allocation209_spill] sm:$0xff] %v6138_v37  ;;  %v6144_v12 = vsel %vm9610_vm13, 1.0, %v9512_v26  ;;  %v6150_v51 = vsel %vm9612_vm5, 1.0, %v9512_v26  ;;  %v3064_v61 = vadd.f32 %v3063_v5, %v5900_v25  ;;  %v6157_v18 = vsel %vm9614_vm9, 1.0, %v9512_v26  ;;  %v9639_v58 = vld [vmem:[#allocation51_spill] sm:$0xff] }
 0x388   :  { %9611 = vst [vmem:[#allocation210_spill] sm:$0xff] %v6144_v12  ;;  %9613 = vst [vmem:[#allocation211_spill] sm:$0xff] %v6150_v51  ;;  %vm9616_vm1 = vcmp.eq.s32.totalorder %v5479_v32, %v5566_v21  ;;  %vm9618_vm14 = vcmp.eq.s32.totalorder %v5485_v24, %v5566_v21  ;;  %v6175_v25 = vsel %vm1229_vm11, 1.0, %v9512_v26  ;;  %v6181_v5 = vsel %vm1230_vm10, 1.0, %v9512_v26  ;;  %v9623_v24 = vld [vmem:[#allocation28_spill] sm:$0xff]  ;;  %v9637_v12 = vld [vmem:[#allocation149_spill] sm:$0xff] }
 0x389   :  { %9615 = vst [vmem:[#allocation212_spill] sm:$0xff] %v6157_v18  ;;  %v6163_v30 = vsel %vm9616_vm1, 1.0, %v9512_v26  ;;  %v6169_v48 = vsel %vm9618_vm14, 1.0, %v9512_v26  ;;  %9620 = vst [vmem:[#allocation215_spill] sm:$0xff] %v6175_v25  ;;  %v6187_v32 = vsel %vm1231_vm7, 1.0, %v9512_v26  ;;  %v6191_v27 = vmul.f32 %v9624_v56, %v9623_v24  ;;  %v9631_v25 = vld [vmem:[#allocation39_spill] sm:$0xff] }
 0x38a   :  { %9617 = vst [vmem:[#allocation213_spill] sm:$0xff] %v6163_v30  ;;  %9619 = vst [vmem:[#allocation214_spill] sm:$0xff] %v6169_v48  ;;  %v3065_v28 = vadd.f32 %v3064_v61, %v5906_v62  ;;  %v6196_v59 = vmul.f32 %v9624_v56, %v9625_v2  ;;  %v6200_v20 = vmul.f32 %v9627_v29, %v9626_v44  ;;  %v9632_v61 = vld [vmem:[#allocation43_spill] sm:$0xff]  ;;  %v9647_v21 = vld [vmem:[#allocation153_spill] sm:$0xff]  ;;  %vm9933_vm11 = vcmask 1040384  }
 0x38b   :  { %9621 = vst [vmem:[#allocation216_spill] sm:$0xff] %v6181_v5  ;;  %9622 = vst [vmem:[#allocation217_spill] sm:$0xff] %v6187_v32  ;;  %v6204_v50 = vmul.f32 %v9627_v29, %v9628_v39  ;;  %v9630_v32 = vld [vmem:[#allocation144_spill] sm:$0xff]  ;;  %v9633_v62 = vld [vmem:[#allocation147_spill] sm:$0xff]  ;;  %v6229_v16 = vmul.f32 %v9637_v12, %v9639_v58  ;;  %v6237_v26 = vmul.f32 %v9642_v1, %v9644_v41 }
 0x38c   :  { %v6208_v5 = vmul.f32 %v9630_v32, %v9629_v4  ;;  %v6212_v48 = vmul.f32 %v9630_v32, %v9631_v25  ;;  %v6216_v56 = vmul.f32 %v9633_v62, %v9632_v61  ;;  %v9634_v30 = vld [vmem:[#allocation47_spill] sm:$0xff]  ;;  %v3066_v51 = vadd.f32 %v3065_v28, %v5918_v36  ;;  %v9636_v29 = vld [vmem:[#allocation49_spill] sm:$0xff]  ;;  %vm9934_vm15 = vmmov %vm9933_vm11 }
 0x38d   :  { %v6220_v18 = vmul.f32 %v9633_v62, %v9634_v30  ;;  %v6225_v37 = vmul.f32 %v9637_v12, %v9636_v29  ;;  %9640 = vst [vmem:[#allocation144_spill] sm:$0xff] %v6229_v16  ;;  %v9641_v32 = vld [vmem:[#allocation53_spill] sm:$0xff]  ;;  %9645 = vst [vmem:[#allocation149_spill] sm:$0xff] %v6237_v26  ;;  %v9649_v36 = vld [vmem:[#allocation59_spill] sm:$0xff] }
 0x38e   :  { %v6233_v38 = vmul.f32 %v9642_v1, %v9641_v32  ;;  %v9646_v62 = vld [vmem:[#allocation57_spill] sm:$0xff]  ;;  %v6245_v28 = vmul.f32 %v9647_v21, %v9649_v36  ;;  %v3067_v16 = vadd.f32 %v3066_v51, %v5924_v40  ;;  %v9654_v32 = vld [vmem:[#allocation62_spill] sm:$0xff]  ;;  %v9656_v1 = vld [vmem:[#allocation63_spill] sm:$0xff] }
 0x38f   :  { %9635 = vst [vmem:[#allocation130_spill] sm:$0xff] %v6220_v18  ;;  %9638 = vst [vmem:[#allocation131_spill] sm:$0xff] %v6225_v37  ;;  %v6241_v18 = vmul.f32 %v9647_v21, %v9646_v62  ;;  %v9651_v37 = vld [vmem:[#allocation60_spill] sm:$0xff]  ;;  %v9659_v62 = vld [vmem:[#allocation65_spill] sm:$0xff] }
 0x390   :  { %9643 = vst [vmem:[#allocation147_spill] sm:$0xff] %v6233_v38  ;;  %9650 = vst [vmem:[#allocation153_spill] sm:$0xff] %v6245_v28  ;;  %v6249_v12 = vmul.f32 %v9652_v52, %v9651_v37  ;;  %v6254_v38 = vmul.f32 %v9652_v52, %v9654_v32  ;;  %v9657_v26 = vld [vmem:[#allocation156_spill] sm:$0xff]  ;;  %v9661_v21 = vld [vmem:[#allocation66_spill] sm:$0xff] }
 0x391   :  { %9648 = vst [vmem:[#allocation151_spill] sm:$0xff] %v6241_v18  ;;  %v6258_v41 = vmul.f32 %v9657_v26, %v9656_v1  ;;  %v6262_v18 = vmul.f32 %v9657_v26, %v9659_v62  ;;  %v9662_v28 = vld [vmem:[#allocation158_spill] sm:$0xff]  ;;  %v9664_v37 = vld [vmem:[#allocation68_spill] sm:$0xff]  ;;  %v9666_v51 = vld [vmem:[#allocation69_spill] sm:$0xff] }
 0x392   :  { %9653 = vst [vmem:[#allocation155_spill] sm:$0xff] %v6249_v12  ;;  %9655 = vst [vmem:[#allocation62_spill] sm:$0xff] %v6254_v38  ;;  %v6266_v36 = vmul.f32 %v9662_v28, %v9661_v21  ;;  %v6270_v12 = vmul.f32 %v9662_v28, %v9664_v37  ;;  %v9667_v40 = vld [vmem:[#allocation159_spill] sm:$0xff]  ;;  %v9673_v21 = vld [vmem:[#allocation73_spill] sm:$0xff] }
 0x393   :  { %9658 = vst [vmem:[#allocation156_spill] sm:$0xff] %v6258_v41  ;;  %9660 = vst [vmem:[#allocation218_spill] sm:$0xff] %v6262_v18  ;;  %v6274_v52 = vmul.f32 %v9667_v40, %v9666_v51  ;;  %v9669_v38 = vld [vmem:[#allocation71_spill] sm:$0xff]  ;;  %v3068_v41 = vadd.f32 %v3067_v16, %v5930_v14  ;;  %v9675_v28 = vld [vmem:[#allocation74_spill] sm:$0xff] }
 0x394   :  { %9663 = vst [vmem:[#allocation158_spill] sm:$0xff] %v6266_v36  ;;  %9665 = vst [vmem:[#allocation219_spill] sm:$0xff] %v6270_v12  ;;  %v6278_v1 = vmul.f32 %v9667_v40, %v9669_v38  ;;  %v9671_v26 = vld [vmem:[#allocation27_spill] sm:$0xff]  ;;  %v6287_v36 = vmul.f32 %v5688_v23, %v9673_v21  ;;  %v9676_v12 = vld [vmem:[#allocation160_spill] sm:$0xff] }
 0x395   :  { %9668 = vst [vmem:[#allocation159_spill] sm:$0xff] %v6274_v52  ;;  %v6283_v18 = vmul.f32 %v5688_v23, %v9671_v26  ;;  %v6291_v37 = vmul.f32 %v9676_v12, %v9675_v28  ;;  %v9678_v51 = vld [vmem:[#allocation76_spill] sm:$0xff]  ;;  %v9680_v40 = vld [vmem:[#allocation77_spill] sm:$0xff]  ;;  %v9683_v16 = vld [vmem:[#allocation79_spill] sm:$0xff] }
 0x396   :  { %9670 = vst [vmem:[#allocation220_spill] sm:$0xff] %v6278_v1  ;;  %9674 = vst [vmem:[#allocation222_spill] sm:$0xff] %v6287_v36  ;;  %v6295_v52 = vmul.f32 %v9676_v12, %v9678_v51  ;;  %v9681_v1 = vld [vmem:[#allocation161_spill] sm:$0xff]  ;;  %v9686_v26 = vld [vmem:[#allocation162_spill] sm:$0xff] }
 0x397   :  { %9672 = vst [vmem:[#allocation221_spill] sm:$0xff] %v6283_v18  ;;  %9677 = vst [vmem:[#allocation160_spill] sm:$0xff] %v6291_v37  ;;  %v6299_v38 = vmul.f32 %v9681_v1, %v9680_v40  ;;  %v6303_v14 = vmul.f32 %v9681_v1, %v9683_v16  ;;  %v9685_v18 = vld [vmem:[#allocation80_spill] sm:$0xff]  ;;  %v9689_v28 = vld [vmem:[#allocation82_spill] sm:$0xff] }
 0x398   :  { %9679 = vst [vmem:[#allocation223_spill] sm:$0xff] %v6295_v52  ;;  %v6307_v23 = vmul.f32 %v9686_v26, %v9685_v18  ;;  %v9688_v36 = vld [vmem:[#allocation188_spill] sm:$0xff]  ;;  %v6312_v37 = vmul.f32 %v9686_v26, %v9689_v28  ;;  %v9694_v40 = vld [vmem:[#allocation85_spill] sm:$0xff]  ;;  %v9696_v1 = vld [vmem:[#allocation87_spill] sm:$0xff] }
 0x399   :  { %9682 = vst [vmem:[#allocation161_spill] sm:$0xff] %v6299_v38  ;;  %9684 = vst [vmem:[#allocation224_spill] sm:$0xff] %v6303_v14  ;;  %v3069_v21 = vadd.f32 %v3068_v41, %v9688_v36  ;;  %v9691_v12 = vld [vmem:[#allocation84_spill] sm:$0xff]  ;;  %v9697_v14 = vld [vmem:[#allocation165_spill] sm:$0xff] }
 0x39a   :  { %9687 = vst [vmem:[#allocation162_spill] sm:$0xff] %v6307_v23  ;;  %9690 = vst [vmem:[#allocation188_spill] sm:$0xff] %v6312_v37  ;;  %v9692_v52 = vld [vmem:[#allocation164_spill] sm:$0xff]  ;;  %v6324_v16 = vmul.f32 %v9697_v14, %v9696_v1  ;;  %v9701_v41 = vld [vmem:[#allocation90_spill] sm:$0xff] }
 0x39b   :  { %v6316_v51 = vmul.f32 %v9692_v52, %v9691_v12  ;;  %v6320_v38 = vmul.f32 %v9692_v52, %v9694_v40  ;;  %v9699_v18 = vld [vmem:[#allocation88_spill] sm:$0xff]  ;;  %v9702_v36 = vld [vmem:[#allocation166_spill] sm:$0xff]  ;;  %v9704_v37 = vld [vmem:[#allocation91_spill] sm:$0xff] }
 0x39c   :  { %9698 = vst [vmem:[#allocation165_spill] sm:$0xff] %v6324_v16  ;;  %v6328_v23 = vmul.f32 %v9697_v14, %v9699_v18  ;;  %v6332_v26 = vmul.f32 %v9702_v36, %v9701_v41  ;;  %v6336_v12 = vmul.f32 %v9702_v36, %v9704_v37  ;;  %v9706_v52 = vld [vmem:[#allocation93_spill] sm:$0xff]  ;;  %v9709_v1 = vld [vmem:[#allocation94_spill] sm:$0xff]  ;;  %v9711_v14 = vld [vmem:[#allocation96_spill] sm:$0xff] }
 0x39d   :  { %9693 = vst [vmem:[#allocation164_spill] sm:$0xff] %v6316_v51  ;;  %9695 = vst [vmem:[#allocation225_spill] sm:$0xff] %v6320_v38  ;;  %v3070_v51 = vadd.f32 %v3069_v21, %v5948_v10  ;;  %v9707_v38 = vld [vmem:[#allocation167_spill] sm:$0xff]  ;;  %v9714_v41 = vld [vmem:[#allocation98_spill] sm:$0xff] }
 0x39e   :  { %9700 = vst [vmem:[#allocation226_spill] sm:$0xff] %v6328_v23  ;;  %9703 = vst [vmem:[#allocation166_spill] sm:$0xff] %v6332_v26  ;;  %v6341_v40 = vmul.f32 %v9707_v38, %v9706_v52  ;;  %v6345_v16 = vmul.f32 %v9707_v38, %v9709_v1  ;;  %v9712_v23 = vld [vmem:[#allocation168_spill] sm:$0xff]  ;;  %v9716_v36 = vld [vmem:[#allocation99_spill] sm:$0xff] }
 0x39f   :  { %9705 = vst [vmem:[#allocation227_spill] sm:$0xff] %v6336_v12  ;;  %v6349_v18 = vmul.f32 %v9712_v23, %v9711_v14  ;;  %v6353_v26 = vmul.f32 %v9712_v23, %v9714_v41  ;;  %v9717_v12 = vld [vmem:[#allocation169_spill] sm:$0xff]  ;;  %v9722_v52 = vld [vmem:[#allocation171_spill] sm:$0xff]  ;;  %v9726_v23 = vld [vmem:[#allocation34_spill] sm:$0xff] }
 0x3a0   :  { %9708 = vst [vmem:[#allocation167_spill] sm:$0xff] %v6341_v40  ;;  %9710 = vst [vmem:[#allocation228_spill] sm:$0xff] %v6345_v16  ;;  %v6357_v37 = vmul.f32 %v9717_v12, %v9716_v36  ;;  %v9719_v10 = vld [vmem:[#allocation101_spill] sm:$0xff]  ;;  %v3071_v16 = vadd.f32 %v3070_v51, %v5954_v45  ;;  %v9724_v14 = vld [vmem:[#allocation31_spill] sm:$0xff] }
 0x3a1   :  { %9713 = vst [vmem:[#allocation168_spill] sm:$0xff] %v6349_v18  ;;  %9715 = vst [vmem:[#allocation229_spill] sm:$0xff] %v6353_v26  ;;  %v6361_v21 = vmul.f32 %v9717_v12, %v9719_v10  ;;  %v9721_v40 = vld [vmem:[#allocation29_spill] sm:$0xff]  ;;  %v6370_v18 = vmul.f32 %v9722_v52, %v9724_v14  ;;  %v9727_v26 = vld [vmem:[#allocation172_spill] sm:$0xff] }
 0x3a2   :  { %9718 = vst [vmem:[#allocation169_spill] sm:$0xff] %v6357_v37  ;;  %v6365_v38 = vmul.f32 %v9722_v52, %v9721_v40  ;;  %v6374_v41 = vmul.f32 %v9727_v26, %v9726_v23  ;;  %v9729_v36 = vld [vmem:[#allocation36_spill] sm:$0xff]  ;;  %v9731_v12 = vld [vmem:[#allocation38_spill] sm:$0xff]  ;;  %vm9939_vm0 = vmmov %vm9933_vm11 }
 0x3a3   :  { %9720 = vst [vmem:[#allocation230_spill] sm:$0xff] %v6361_v21  ;;  %9725 = vst [vmem:[#allocation231_spill] sm:$0xff] %v6370_v18  ;;  %v6378_v37 = vmul.f32 %v9727_v26, %v9729_v36  ;;  %v9732_v21 = vld [vmem:[#allocation173_spill] sm:$0xff]  ;;  %v9734_v40 = vld [vmem:[#allocation40_spill] sm:$0xff] }
 0x3a4   :  { %9723 = vst [vmem:[#allocation171_spill] sm:$0xff] %v6365_v38  ;;  %9728 = vst [vmem:[#allocation172_spill] sm:$0xff] %v6374_v41  ;;  %v6382_v10 = vmul.f32 %v9732_v21, %v9731_v12  ;;  %v6386_v38 = vmul.f32 %v9732_v21, %v9734_v40  ;;  %v9736_v45 = vld [vmem:[#allocation44_spill] sm:$0xff]  ;;  %v3072_v41 = vadd.f32 %v3071_v16, %v5960_v57  ;;  %v9740_v26 = vld [vmem:[#allocation50_spill] sm:$0xff] }
 0x3a5   :  { %9730 = vst [vmem:[#allocation232_spill] sm:$0xff] %v6378_v37  ;;  %v6390_v51 = vmul.f32 %v5796_v60, %v9736_v45  ;;  %v9738_v52 = vld [vmem:[#allocation48_spill] sm:$0xff]  ;;  %v6399_v37 = vmul.f32 %v5802_v7, %v9740_v26  ;;  %v9744_v21 = vld [vmem:[#allocation54_spill] sm:$0xff]  ;;  %v9750_v57 = vld [vmem:[#allocation61_spill] sm:$0xff] }
 0x3a6   :  { %9733 = vst [vmem:[#allocation173_spill] sm:$0xff] %v6382_v10  ;;  %9735 = vst [vmem:[#allocation233_spill] sm:$0xff] %v6386_v38  ;;  %v6394_v18 = vmul.f32 %v5796_v60, %v9738_v52  ;;  %v9742_v12 = vld [vmem:[#allocation52_spill] sm:$0xff]  ;;  %v6407_v38 = vmul.f32 %v5818_v55, %v9744_v21  ;;  %v9748_v60 = vld [vmem:[#allocation58_spill] sm:$0xff]  ;;  %v6419_v16 = vmul.f32 %v5824_v13, %v9750_v57 }
 0x3a7   :  { %9737 = vst [vmem:[#allocation234_spill] sm:$0xff] %v6390_v51  ;;  %9741 = vst [vmem:[#allocation236_spill] sm:$0xff] %v6399_v37  ;;  %v6403_v10 = vmul.f32 %v5802_v7, %v9742_v12  ;;  %v9746_v45 = vld [vmem:[#allocation56_spill] sm:$0xff]  ;;  %v9754_v21 = vld [vmem:[#allocation67_spill] sm:$0xff] }
 0x3a8   :  { %9739 = vst [vmem:[#allocation235_spill] sm:$0xff] %v6394_v18  ;;  %9745 = vst [vmem:[#allocation238_spill] sm:$0xff] %v6407_v38  ;;  %v6411_v51 = vmul.f32 %v5818_v55, %v9746_v45  ;;  %v6415_v18 = vmul.f32 %v5824_v13, %v9748_v60  ;;  %v9752_v37 = vld [vmem:[#allocation64_spill] sm:$0xff]  ;;  %v6428_v38 = vmul.f32 %v5830_v35, %v9754_v21  ;;  %v9756_v55 = vld [vmem:[#allocation70_spill] sm:$0xff] }
 0x3a9   :  { %9743 = vst [vmem:[#allocation237_spill] sm:$0xff] %v6403_v10  ;;  %9751 = vst [vmem:[#allocation241_spill] sm:$0xff] %v6419_v16  ;;  %v6423_v7 = vmul.f32 %v5830_v35, %v9752_v37  ;;  %v3073_v10 = vadd.f32 %v3072_v41, %v5966_v34  ;;  %v9758_v60 = vld [vmem:[#allocation72_spill] sm:$0xff]  ;;  %v9760_v13 = vld [vmem:[#allocation75_spill] sm:$0xff] }
 0x3aa   :  { %9747 = vst [vmem:[#allocation239_spill] sm:$0xff] %v6411_v51  ;;  %9749 = vst [vmem:[#allocation240_spill] sm:$0xff] %v6415_v18  ;;  %v6432_v51 = vmul.f32 %v5836_v6, %v9756_v55  ;;  %v6436_v18 = vmul.f32 %v5836_v6, %v9758_v60  ;;  %v6440_v16 = vmul.f32 %v5850_v33, %v9760_v13  ;;  %v9762_v37 = vld [vmem:[#allocation78_spill] sm:$0xff]  ;;  %v9764_v34 = vld [vmem:[#allocation140_spill] sm:$0xff] }
 0x3ab   :  { %9753 = vst [vmem:[#allocation242_spill] sm:$0xff] %v6423_v7  ;;  %9755 = vst [vmem:[#allocation243_spill] sm:$0xff] %v6428_v38  ;;  %v6444_v7 = vmul.f32 %v5850_v33, %v9762_v37  ;;  %v1298_v35 = vmul.f32 %v9764_v34, %v6012_v43  ;;  %v9765_v41 = vld [vmem:[#allocation141_spill] sm:$0xff]  ;;  %v9766_v55 = vld [vmem:[#allocation194_spill] sm:$0xff] }
 0x3ac   :  { %9757 = vst [vmem:[#allocation244_spill] sm:$0xff] %v6432_v51  ;;  %9759 = vst [vmem:[#allocation245_spill] sm:$0xff] %v6436_v18  ;;  %v1299_v38 = vmul.f32 %v9765_v41, %v6018_v46  ;;  %v3074_v51 = vadd.f32 %v3073_v10, %v9766_v55  ;;  %v9767_v21 = vld [vmem:[#allocation148_spill] sm:$0xff]  ;;  %v9768_v18 = vld [vmem:[#allocation150_spill] sm:$0xff] }
 0x3ad   :  { %9761 = vst [vmem:[#allocation246_spill] sm:$0xff] %v6440_v16  ;;  %9763 = vst [vmem:[#allocation247_spill] sm:$0xff] %v6444_v7  ;;  %v1300_v6 = vmul.f32 %v9767_v21, %v6024_v53  ;;  %v1301_v60 = vmul.f32 %v9768_v18, %v6030_v63  ;;  %v9769_v16 = vld [vmem:[#allocation152_spill] sm:$0xff]  ;;  %v9770_v33 = vld [vmem:[#allocation154_spill] sm:$0xff] }
 0x3ae   :  { %v1302_v13 = vmul.f32 %v9769_v16, %v6036_v19  ;;  %v1303_v7 = vmul.f32 %v9770_v33, %v6042_v15  ;;  %v9771_v37 = vld [vmem:[#allocation157_spill] sm:$0xff]  ;;  %v9772_v57 = vld [vmem:[#allocation163_spill] sm:$0xff]  ;;  %v9773_v10 = vld [vmem:[#allocation170_spill] sm:$0xff]  ;;  %v1367_v16 = vmul.f32 %v6012_v43, %v9623_v24  ;;  %v1370_v33 = vmul.f32 %v6018_v46, %v9628_v39 }
 0x3af   :  { %v1304_v34 = vmul.f32 %v9771_v37, %v6048_v11  ;;  %v6463_v41 = vmul.f32 %v9772_v57, %v6054_v49  ;;  %v6467_v55 = vmul.f32 %v9773_v10, %v6060_v17  ;;  %v9774_v21 = vld [vmem:[#allocation196_spill] sm:$0xff]  ;;  %v9775_v18 = vld [vmem:[#allocation174_spill] sm:$0xff]  ;;  %v1368_v37 = vmul.f32 %v6012_v43, %v9625_v2  ;;  %v9778_v43 = vld [vmem:[#allocation177_spill] sm:$0xff] }
 0x3b0   :  { %v3075_v45 = vadd.f32 %v3074_v51, %v9774_v21  ;;  %v6472_v12 = vmul.f32 %v9775_v18, %v6066_v3  ;;  %v1369_v57 = vmul.f32 %v6018_v46, %v9626_v44  ;;  %v3150_v10 = vadd.f32 %v6200_v20, %v6191_v27  ;;  %v9776_v21 = vld [vmem:[#allocation198_spill] sm:$0xff]  ;;  %v9777_v26 = vld [vmem:[#allocation176_spill] sm:$0xff]  ;;  %v9780_v46 = vld [vmem:[#allocation179_spill] sm:$0xff] }
 0x3b1   :  { %v3187_v51 = vadd.f32 %v6204_v50, %v6196_v59  ;;  %v6489_v24 = vmul.f32 %v9777_v26, %v6072_v31  ;;  %v6493_v2 = vmul.f32 %v9778_v43, %v6078_v8  ;;  %v9779_v44 = vld [vmem:[#allocation178_spill] sm:$0xff]  ;;  %v6501_v20 = vmul.f32 %v9780_v46, %v6090_v42  ;;  %v9781_v50 = vld [vmem:[#allocation180_spill] sm:$0xff]  ;;  %v9782_v59 = vld [vmem:[#allocation181_spill] sm:$0xff] }
 0x3b2   :  { %v3076_v18 = vadd.f32 %v3075_v45, %v9776_v21  ;;  %v6497_v52 = vmul.f32 %v9779_v44, %v6084_v47  ;;  %v6505_v27 = vmul.f32 %v9781_v50, %v6096_v9  ;;  %v6509_v45 = vmul.f32 %v9782_v59, %v6102_v0  ;;  %vm9940_vm3 = vmmov %vm9939_vm0 }
 0x3b3   :  { %v1330_v26 = vadd.f32 %v1299_v38, %v1298_v35  ;;  %v1371_v43 = vmul.f32 %v6024_v53, %v9629_v4  ;;  %v1372_v44 = vmul.f32 %v6024_v53, %v9631_v25  ;;  %v1373_v46 = vmul.f32 %v6030_v63, %v9632_v61  ;;  %vm9943_vm12 = vmmov %vm9939_vm0 }
 0x3b4   :  { %v3077_v21 = vadd.f32 %v3076_v18, %v5990_v54  ;;  %v1431_v40 = vadd.f32 %v1369_v57, %v1367_v16  ;;  %v1468_v50 = vadd.f32 %v1370_v33, %v1368_v37  ;;  %v3151_v36 = vadd.f32 %v3150_v10, %v6208_v5  ;;  %v9784_v37 = vld [vmem:[#allocation53_spill] sm:$0xff]  ;;  %v9785_v57 = vld [vmem:[#allocation130_spill] sm:$0xff]  ;;  %vm9944_vm8 = vmmov %vm9939_vm0 }
 0x3b5   :  { %v1331_v39 = vadd.f32 %v1330_v26, %v1300_v6  ;;  %v1374_v38 = vmul.f32 %v6030_v63, %v9634_v30  ;;  %v1375_v54 = vmul.f32 %v6036_v19, %v9636_v29  ;;  %v3188_v35 = vadd.f32 %v3187_v51, %v6212_v48  ;;  %v9783_v6 = vld [vmem:[#allocation202_spill] sm:$0xff]  ;;  %v9789_v51 = vld [vmem:[#allocation144_spill] sm:$0xff]  ;;  %vm9945_vm9 = vmmov %vm9939_vm0 }
 0x3b6   :  { %v3078_v59 = vadd.f32 %v3077_v21, %v5996_v22  ;;  %v1432_v53 = vadd.f32 %v1431_v40, %v1371_v43  ;;  %v1469_v25 = vadd.f32 %v1468_v50, %v1372_v44  ;;  %v3152_v61 = vadd.f32 %v3151_v36, %v6216_v56  ;;  %v9786_v21 = vld [vmem:[#allocation131_spill] sm:$0xff]  ;;  %v9788_v56 = vld [vmem:[#allocation57_spill] sm:$0xff]  ;;  %vm9946_vm1 = vmmov %vm9939_vm0 }
 0x3b7   :  { %v1332_v18 = vadd.f32 %v1331_v39, %v1301_v60  ;;  %v1376_v5 = vmul.f32 %v6036_v19, %v9639_v58  ;;  %v1377_v22 = vmul.f32 %v6042_v15, %v9784_v37  ;;  %v3189_v63 = vadd.f32 %v3188_v35, %v9785_v57  ;;  %v9787_v40 = vld [vmem:[#allocation55_spill] sm:$0xff] }
 0x3b8   :  { %v3079_v16 = vadd.f32 %v3078_v59, %v9783_v6  ;;  %v1433_v10 = vadd.f32 %v1432_v53, %v1373_v46  ;;  %v1470_v26 = vadd.f32 %v1469_v25, %v1374_v38  ;;  %v3153_v48 = vadd.f32 %v3152_v61, %v9786_v21  ;;  %v9790_v59 = vld [vmem:[#allocation147_spill] sm:$0xff]  ;;  %v9792_v46 = vld [vmem:[#allocation60_spill] sm:$0xff]  ;;  %v9793_v38 = vld [vmem:[#allocation149_spill] sm:$0xff] }
 0x3b9   :  { %v1333_v33 = vadd.f32 %v1332_v18, %v1302_v13  ;;  %v1378_v60 = vmul.f32 %v6042_v15, %v9787_v40  ;;  %v1379_v36 = vmul.f32 %v6048_v11, %v9788_v56  ;;  %v3190_v43 = vadd.f32 %v3189_v63, %v9789_v51  ;;  %v9791_v13 = vld [vmem:[#allocation59_spill] sm:$0xff]  ;;  %v9794_v15 = vld [vmem:[#allocation146_spill] sm:$0xff]  ;;  %v9795_v53 = vld [vmem:[#allocation133_spill] sm:$0xff] }
 0x3ba   :  { %v3080_v39 = vrot.slane %v3079_v16, 4  ;;  %v1434_v44 = vadd.f32 %v1433_v10, %v1375_v54  ;;  %v1471_v50 = vadd.f32 %v1470_v26, %v1376_v5  ;;  %v3154_v6 = vadd.f32 %v3153_v48, %v9790_v59  ;;  %v9798_v10 = vld [vmem:[#allocation153_spill] sm:$0xff] }
 0x3bb   :  { %v1334_v19 = vadd.f32 %v1333_v33, %v1303_v7  ;;  %v1380_v25 = vmul.f32 %v6048_v11, %v9791_v13  ;;  %v1381_v61 = vmul.f32 %v6054_v49, %v9792_v46  ;;  %v3191_v18 = vadd.f32 %v3190_v43, %v9793_v38  ;;  %v9796_v7 = vld [vmem:[#allocation151_spill] sm:$0xff] }
 0x3bc   :  { %v3081_v35 = vadd.f32 %v3080_v39, %v3079_v16  ;;  %vm1232_vm7 = vcmp.eq.s32.totalorder %v9795_v53, %v9794_v15  ;;  %v1435_v21 = vadd.f32 %v1434_v44, %v1377_v22  ;;  %v1472_v63 = vadd.f32 %v1471_v50, %v1378_v60  ;;  %v9797_v33 = vld [vmem:[#allocation63_spill] sm:$0xff]  ;;  %v9800_v60 = vld [vmem:[#allocation66_spill] sm:$0xff] }
 0x3bd   :  { %v1335_v57 = vadd.f32 %v1334_v19, %v1304_v34  ;;  %v3155_v54 = vadd.f32 %v3154_v6, %v9796_v7  ;;  %v1382_v16 = vmul.f32 %v6054_v49, %v9654_v32  ;;  %v1383_v11 = vmul.f32 %v6060_v17, %v9797_v33  ;;  %v9799_v43 = vld [vmem:[#allocation155_spill] sm:$0xff]  ;;  %v9801_v44 = vld [vmem:[#allocation62_spill] sm:$0xff]  ;;  %v9802_v6 = vld [vmem:[#allocation156_spill] sm:$0xff] }
 0x3be   :  { %v3082_v5 = vrot.slane %v3081_v35, 2  ;;  %v3192_v26 = vadd.f32 %v3191_v18, %v9798_v10  ;;  %v1436_v39 = vadd.f32 %v1435_v21, %v1379_v36  ;;  %v1473_v51 = vadd.f32 %v1472_v63, %v1380_v25  ;;  %v9803_v36 = vld [vmem:[#allocation68_spill] sm:$0xff]  ;;  %v9805_v21 = vld [vmem:[#allocation218_spill] sm:$0xff] }
 0x3bf   :  { %v1336_v48 = vadd.f32 %v1335_v57, %v6463_v41  ;;  %v3156_v59 = vadd.f32 %v3155_v54, %v9799_v43  ;;  %v1384_v22 = vmul.f32 %v6060_v17, %v9659_v62  ;;  %v1385_v19 = vmul.f32 %v6066_v3, %v9800_v60  ;;  %v9804_v57 = vld [vmem:[#allocation69_spill] sm:$0xff]  ;;  %v9806_v54 = vld [vmem:[#allocation158_spill] sm:$0xff] }
 0x3c0   :  { %v3083_v34 = vadd.f32 %v3082_v5, %v3081_v35  ;;  %v3193_v49 = vadd.f32 %v3192_v26, %v9801_v44  ;;  %v1437_v18 = vadd.f32 %v1436_v39, %v1381_v61  ;;  %v1474_v7 = vadd.f32 %v1473_v51, %v1382_v16  ;;  %v9808_v16 = vld [vmem:[#allocation27_spill] sm:$0xff] }
 0x3c1   :  { %v1337_v50 = vadd.f32 %v1336_v48, %v6467_v55  ;;  %v3157_v38 = vadd.f32 %v3156_v59, %v9802_v6  ;;  %v1386_v25 = vmul.f32 %v6066_v3, %v9803_v36  ;;  %v1387_v35 = vmul.f32 %v6072_v31, %v9804_v57  ;;  %v9807_v48 = vld [vmem:[#allocation71_spill] sm:$0xff] }
 0x3c2   :  { %v3084_v41 = vrot.slane %v3083_v34, 1  ;;  %v3194_v17 = vadd.f32 %v3193_v49, %v9805_v21  ;;  %v1438_v10 = vadd.f32 %v1437_v18, %v1383_v11  ;;  %v1475_v26 = vadd.f32 %v1474_v7, %v1384_v22  ;;  %v9809_v51 = vld [vmem:[#allocation219_spill] sm:$0xff]  ;;  %v9811_v22 = vld [vmem:[#allocation73_spill] sm:$0xff]  ;;  %v9812_v18 = vld [vmem:[#allocation220_spill] sm:$0xff] }
 0x3c3   :  { %v1338_v63 = vadd.f32 %v1337_v50, %v6472_v12  ;;  %v3158_v5 = vadd.f32 %v3157_v38, %v9806_v54  ;;  %v1388_v61 = vmul.f32 %v6072_v31, %v9807_v48  ;;  %v1389_v39 = vmul.f32 %v6078_v8, %v9808_v16  ;;  %v9810_v59 = vld [vmem:[#allocation159_spill] sm:$0xff]  ;;  %v4466_v38 = vld [vmem:[#allocation2 + $0x18] sm:$0xff] }
 0x3c4   :  { %v3085_v55 = vadd.f32 %v3084_v41, %v3083_v34  ;;  %v3195_v3 = vadd.f32 %v3194_v17, %v9809_v51  ;;  %v1439_v49 = vadd.f32 %v1438_v10, %v1385_v19  ;;  %v1476_v6 = vadd.f32 %v1475_v26, %v1386_v25  ;;  %v4465_v12 = vld [vmem:[#allocation2 + $0x10] sm:$0xff]  ;;  %v9813_v41 = vld [vmem:[#allocation221_spill] sm:$0xff]  ;;  %v9815_v25 = vld [vmem:[#allocation74_spill] sm:$0xff] }
 0x3c5   :  { %v1339_v43 = vadd.f32 %v1338_v63, %v6489_v24  ;;  %v3159_v44 = vadd.f32 %v3158_v5, %v9810_v59  ;;  %v1390_v34 = vmul.f32 %v6078_v8, %v9811_v22  ;;  %v9814_v24 = vmov 0.0   ;;  %v9816_v8 = vld [vmem:[#allocation76_spill] sm:$0xff]  ;;  %v9817_v10 = vld [vmem:[#allocation222_spill] sm:$0xff] }
 0x3c6   :  { %v3224_v50 = vmul.f32 %v4465_v12, %v3085_v55  ;;  %v3225_v11 = vmul.f32 %v4466_v38, %v3085_v55  ;;  %v3196_v31 = vadd.f32 %v3195_v3, %v9812_v18  ;;  %v1440_v17 = vadd.f32 %v1439_v49, %v1387_v35  ;;  %v9818_v35 = vld [vmem:[#allocation160_spill] sm:$0xff] }
 0x3c7   :  { %v1340_v7 = vadd.f32 %v1339_v43, %v6493_v2  ;;  %v3160_v21 = vadd.f32 %v3159_v44, %v9813_v41  ;;  %v1477_v54 = vadd.f32 %v1476_v6, %v1388_v61  ;;  %v6584_v19 = vsel %vm1232_vm7, 1.0, %v9814_v24  ;;  %v9819_v3 = vld [vmem:[#allocation204_spill] sm:$0xff]  ;;  %v9820_v43 = vld [vmem:[#allocation182_spill] sm:$0xff]  ;;  %v9821_v44 = vld [vmem:[#allocation77_spill] sm:$0xff] }
 0x3c8   :  { %3226 = vadd.xlane.f32.xlu0 %v3224_v50  ;;  %3228 = vadd.xlane.f32.xlu1 %v3225_v11  ;;  %v1391_v63 = vmul.f32 %v6084_v47, %v9815_v25  ;;  %v1392_v5 = vmul.f32 %v6084_v47, %v9816_v8  ;;  %v3197_v2 = vadd.f32 %v3196_v31, %v9817_v10  ;;  %v9822_v6 = vld [vmem:[#allocation79_spill] sm:$0xff]  ;;  %v9824_v11 = vld [vmem:[#allocation161_spill] sm:$0xff]  ;;  %v9827_v41 = vld [vmem:[#allocation80_spill] sm:$0xff] }
 0x3c9   :  { %v1341_v26 = vadd.f32 %v1340_v7, %v6497_v52  ;;  %v3161_v55 = vadd.f32 %v3160_v21, %v9818_v35  ;;  %v1441_v61 = vadd.f32 %v1440_v17, %v1389_v39  ;;  %v1478_v51 = vadd.f32 %v1477_v54, %v1390_v34  ;;  %v9823_v50 = vld [vmem:[#allocation223_spill] sm:$0xff]  ;;  %v9825_v7 = vld [vmem:[#allocation205_spill] sm:$0xff]  ;;  %v9828_v54 = vld [vmem:[#allocation224_spill] sm:$0xff] }
 0x3ca   :  { %v1314_v59 = vmul.f32 %v9820_v43, %v9819_v3  ;;  %v1393_v49 = vmul.f32 %v6090_v42, %v9821_v44  ;;  %v1394_v12 = vmul.f32 %v6090_v42, %v9822_v6  ;;  %v3198_v38 = vadd.f32 %v3197_v2, %v9823_v50  ;;  %v9826_v39 = vld [vmem:[#allocation183_spill] sm:$0xff]  ;;  %v9829_v2 = vld [vmem:[#allocation162_spill] sm:$0xff]  ;;  %v9833_v43 = vld [vmem:[#allocation85_spill] sm:$0xff] }
 0x3cb   :  { %v1342_v47 = vadd.f32 %v1341_v26, %v6501_v20  ;;  %v3162_v18 = vadd.f32 %v3161_v55, %v9824_v11  ;;  %v1442_v52 = vadd.f32 %v1441_v61, %v1391_v63  ;;  %v1479_v31 = vadd.f32 %v1478_v51, %v1392_v5  ;;  %v9830_v55 = vld [vmem:[#allocation206_spill] sm:$0xff]  ;;  %v9831_v63 = vld [vmem:[#allocation184_spill] sm:$0xff] }
 0x3cc   :  { %v1315_v34 = vmul.f32 %v9826_v39, %v9825_v7  ;;  %v1395_v21 = vmul.f32 %v6096_v9, %v9827_v41  ;;  %v1396_v17 = vmul.f32 %v6096_v9, %v9689_v28  ;;  %v3199_v10 = vadd.f32 %v3198_v38, %v9828_v54  ;;  %v9832_v61 = vld [vmem:[#allocation84_spill] sm:$0xff] }
 0x3cd   :  { %v1343_v42 = vadd.f32 %v1342_v47, %v6505_v27  ;;  %v3163_v35 = vadd.f32 %v3162_v18, %v9829_v2  ;;  %v1443_v20 = vadd.f32 %v1442_v52, %v1393_v49  ;;  %v1480_v26 = vadd.f32 %v1479_v31, %v1394_v12  ;;  %v9834_v11 = vld [vmem:[#allocation188_spill] sm:$0xff]  ;;  %v9836_v18 = vld [vmem:[#allocation207_spill] sm:$0xff]  ;;  %v9837_v49 = vld [vmem:[#allocation185_spill] sm:$0xff] }
 0x3ce   :  { %v1316_v5 = vmul.f32 %v9831_v63, %v9830_v55  ;;  %v1397_v51 = vmul.f32 %v6102_v0, %v9832_v61  ;;  %v1398_v50 = vmul.f32 %v6102_v0, %v9833_v43  ;;  %v3200_v39 = vadd.f32 %v3199_v10, %v9834_v11  ;;  %v9835_v38 = vld [vmem:[#allocation164_spill] sm:$0xff]  ;;  %v9838_v52 = vld [vmem:[#allocation87_spill] sm:$0xff]  ;;  %v9840_v61 = vld [vmem:[#allocation225_spill] sm:$0xff] }
 0x3cf   :  { %v1344_v9 = vadd.f32 %v1343_v42, %v6509_v45  ;;  %v3164_v54 = vadd.f32 %v3163_v35, %v9835_v38  ;;  %v1444_v27 = vadd.f32 %v1443_v20, %v1395_v21  ;;  %v1481_v47 = vadd.f32 %v1480_v26, %v1396_v17  ;;  %v9839_v2 = vld [vmem:[#allocation88_spill] sm:$0xff]  ;;  %v9841_v43 = vld [vmem:[#allocation165_spill] sm:$0xff]  ;;  %v9843_v35 = vld [vmem:[#allocation186_spill] sm:$0xff] }
 0x3d0   :  { %v1317_v12 = vmul.f32 %v9837_v49, %v9836_v18  ;;  %v1399_v31 = vmul.f32 %v9819_v3, %v9838_v52  ;;  %v1400_v63 = vmul.f32 %v9819_v3, %v9839_v2  ;;  %v3201_v28 = vadd.f32 %v3200_v39, %v9840_v61  ;;  %v9842_v42 = vld [vmem:[#allocation208_spill] sm:$0xff]  ;;  %v9844_v17 = vld [vmem:[#allocation90_spill] sm:$0xff]  ;;  %v9845_v26 = vld [vmem:[#allocation91_spill] sm:$0xff] }
 0x3d1   :  { %v1345_v0 = vadd.f32 %v1344_v9, %v1314_v59  ;;  %v3165_v10 = vadd.f32 %v3164_v54, %v9841_v43  ;;  %v1445_v11 = vadd.f32 %v1444_v27, %v1397_v51  ;;  %v1482_v45 = vadd.f32 %v1481_v47, %v1398_v50  ;;  %v9846_v49 = vld [vmem:[#allocation226_spill] sm:$0xff]  ;;  %v9848_v39 = vld [vmem:[#allocation209_spill] sm:$0xff]  ;;  %v9849_v43 = vld [vmem:[#allocation187_spill] sm:$0xff] }
 0x3d2   :  { %v1318_v21 = vmul.f32 %v9843_v35, %v9842_v42  ;;  %v1401_v20 = vmul.f32 %v9825_v7, %v9844_v17  ;;  %v1402_v38 = vmul.f32 %v9825_v7, %v9845_v26  ;;  %v3202_v52 = vadd.f32 %v3201_v28, %v9846_v49  ;;  %v9847_v3 = vld [vmem:[#allocation166_spill] sm:$0xff]  ;;  %v9850_v50 = vld [vmem:[#allocation93_spill] sm:$0xff]  ;;  %v9851_v27 = vld [vmem:[#allocation227_spill] sm:$0xff] }
 0x3d3   :  { %v1346_v41 = vadd.f32 %v1345_v0, %v1315_v34  ;;  %v3166_v2 = vadd.f32 %v3165_v10, %v9847_v3  ;;  %v1446_v61 = vadd.f32 %v1445_v11, %v1399_v31  ;;  %v1483_v59 = vadd.f32 %v1482_v45, %v1400_v63  ;;  %v9852_v7 = vld [vmem:[#allocation167_spill] sm:$0xff]  ;;  %v9853_v0 = vld [vmem:[#allocation210_spill] sm:$0xff]  ;;  %v9854_v10 = vld [vmem:[#allocation189_spill] sm:$0xff] }
 0x3d4   :  { %v1319_v51 = vmul.f32 %v9849_v43, %v9848_v39  ;;  %v1403_v9 = vmul.f32 %v9830_v55, %v9850_v50  ;;  %v1404_v54 = vmul.f32 %v9830_v55, %v9709_v1  ;;  %v3203_v47 = vadd.f32 %v3202_v52, %v9851_v27  ;;  %v9855_v63 = vld [vmem:[#allocation96_spill] sm:$0xff]  ;;  %v9856_v45 = vld [vmem:[#allocation98_spill] sm:$0xff] }
 0x3d5   :  { %v1347_v35 = vadd.f32 %v1346_v41, %v1316_v5  ;;  %v3167_v26 = vadd.f32 %v3166_v2, %v9852_v7  ;;  %v1447_v28 = vadd.f32 %v1446_v61, %v1401_v20  ;;  %v1484_v34 = vadd.f32 %v1483_v59, %v1402_v38  ;;  %v9857_v3 = vld [vmem:[#allocation228_spill] sm:$0xff]  ;;  %v9859_v5 = vld [vmem:[#allocation211_spill] sm:$0xff]  ;;  %v9860_v2 = vld [vmem:[#allocation190_spill] sm:$0xff] }
 0x3d6   :  { %v1320_v31 = vmul.f32 %v9854_v10, %v9853_v0  ;;  %v1405_v11 = vmul.f32 %v9836_v18, %v9855_v63  ;;  %v1406_v49 = vmul.f32 %v9836_v18, %v9856_v45  ;;  %v3204_v43 = vadd.f32 %v3203_v47, %v9857_v3  ;;  %v9858_v55 = vld [vmem:[#allocation168_spill] sm:$0xff]  ;;  %v9861_v38 = vld [vmem:[#allocation99_spill] sm:$0xff]  ;;  %v9862_v59 = vld [vmem:[#allocation101_spill] sm:$0xff] }
 0x3d7   :  { %v1348_v50 = vadd.f32 %v1347_v35, %v1317_v12  ;;  %v3168_v1 = vadd.f32 %v3167_v26, %v9858_v55  ;;  %v1448_v52 = vadd.f32 %v1447_v28, %v1403_v9  ;;  %v1485_v41 = vadd.f32 %v1484_v34, %v1404_v54  ;;  %v9863_v7 = vld [vmem:[#allocation229_spill] sm:$0xff]  ;;  %v9865_v35 = vld [vmem:[#allocation212_spill] sm:$0xff]  ;;  %v9866_v26 = vld [vmem:[#allocation191_spill] sm:$0xff] }
 0x3d8   :  { %v1321_v20 = vmul.f32 %v9860_v2, %v9859_v5  ;;  %v1407_v61 = vmul.f32 %v9842_v42, %v9861_v38  ;;  %v1408_v27 = vmul.f32 %v9842_v42, %v9862_v59  ;;  %v3205_v10 = vadd.f32 %v3204_v43, %v9863_v7  ;;  %v9864_v18 = vld [vmem:[#allocation169_spill] sm:$0xff]  ;;  %v9868_v3 = vld [vmem:[#allocation230_spill] sm:$0xff]  ;;  %v9869_v42 = vld [vmem:[#allocation171_spill] sm:$0xff] }
 0x3d9   :  { %v1349_v63 = vadd.f32 %v1348_v50, %v1318_v21  ;;  %v3169_v45 = vadd.f32 %v3168_v1, %v9864_v18  ;;  %v1449_v47 = vadd.f32 %v1448_v52, %v1405_v11  ;;  %v1486_v12 = vadd.f32 %v1485_v41, %v1406_v49  ;;  %v9867_v54 = vld [vmem:[#allocation29_spill] sm:$0xff]  ;;  %v9871_v1 = vld [vmem:[#allocation192_spill] sm:$0xff]  ;;  %v9873_v7 = vld [vmem:[#allocation231_spill] sm:$0xff] }
 0x3da   :  { %v1322_v9 = vmul.f32 %v9866_v26, %v9865_v35  ;;  %v1409_v28 = vmul.f32 %v9848_v39, %v9867_v54  ;;  %v1410_v34 = vmul.f32 %v9848_v39, %v9724_v14  ;;  %v3206_v55 = vadd.f32 %v3205_v10, %v9868_v3  ;;  %v9870_v50 = vld [vmem:[#allocation213_spill] sm:$0xff]  ;;  %v9872_v52 = vld [vmem:[#allocation36_spill] sm:$0xff] }
 0x3db   :  { %v1350_v2 = vadd.f32 %v1349_v63, %v1319_v51  ;;  %v3170_v59 = vadd.f32 %v3169_v45, %v9869_v42  ;;  %v1450_v43 = vadd.f32 %v1449_v47, %v1407_v61  ;;  %v1487_v21 = vadd.f32 %v1486_v12, %v1408_v27  ;;  %v9874_v39 = vld [vmem:[#allocation172_spill] sm:$0xff]  ;;  %v9875_v63 = vld [vmem:[#allocation214_spill] sm:$0xff]  ;;  %v9876_v45 = vld [vmem:[#allocation193_spill] sm:$0xff] }
 0x3dc   :  { %v1323_v11 = vmul.f32 %v9871_v1, %v9870_v50  ;;  %v1411_v49 = vmul.f32 %v9853_v0, %v9726_v23  ;;  %v1412_v41 = vmul.f32 %v9853_v0, %v9872_v52  ;;  %v3207_v18 = vadd.f32 %v3206_v55, %v9873_v7  ;;  %v9877_v27 = vld [vmem:[#allocation38_spill] sm:$0xff]  ;;  %v9878_v12 = vld [vmem:[#allocation40_spill] sm:$0xff]  ;;  %v9880_v0 = vld [vmem:[#allocation173_spill] sm:$0xff] }
 0x3dd   :  { %v1351_v26 = vadd.f32 %v1350_v2, %v1320_v31  ;;  %v3171_v14 = vadd.f32 %v3170_v59, %v9874_v39  ;;  %v1451_v10 = vadd.f32 %v1450_v43, %v1409_v28  ;;  %v1488_v51 = vadd.f32 %v1487_v21, %v1410_v34  ;;  %v9879_v42 = vld [vmem:[#allocation232_spill] sm:$0xff]  ;;  %v9883_v43 = vld [vmem:[#allocation50_spill] sm:$0xff]  ;;  %v9884_v7 = vld [vmem:[#allocation233_spill] sm:$0xff] }
 0x3de   :  { %v1324_v61 = vmul.f32 %v9876_v45, %v9875_v63  ;;  %v1413_v47 = vmul.f32 %v9859_v5, %v9877_v27  ;;  %v1414_v3 = vmul.f32 %v9859_v5, %v9878_v12  ;;  %v3208_v1 = vadd.f32 %v3207_v18, %v9879_v42  ;;  %v9881_v2 = vld [vmem:[#allocation44_spill] sm:$0xff]  ;;  %v9885_v5 = vld [vmem:[#allocation234_spill] sm:$0xff] }
 0x3df   :  { %v1352_v23 = vadd.f32 %v1351_v26, %v1321_v20  ;;  %v3172_v52 = vadd.f32 %v3171_v14, %v9880_v0  ;;  %v1452_v55 = vadd.f32 %v1451_v10, %v1411_v49  ;;  %v1489_v31 = vadd.f32 %v1488_v51, %v1412_v41  ;;  %v9882_v28 = vld [vmem:[#allocation48_spill] sm:$0xff]  ;;  %v9887_v49 = vld [vmem:[#allocation54_spill] sm:$0xff] }
 0x3e0   :  { %v1415_v59 = vmul.f32 %v9865_v35, %v9881_v2  ;;  %v1416_v34 = vmul.f32 %v9865_v35, %v9882_v28  ;;  %v1417_v21 = vmul.f32 %v9870_v50, %v9883_v43  ;;  %v3209_v39 = vadd.f32 %v3208_v1, %v9884_v7  ;;  %v9886_v26 = vld [vmem:[#allocation52_spill] sm:$0xff]  ;;  %v9889_v35 = vld [vmem:[#allocation235_spill] sm:$0xff] }
 0x3e1   :  { %v1353_v45 = vadd.f32 %v1352_v23, %v1322_v9  ;;  %v3173_v12 = vadd.f32 %v3172_v52, %v9885_v5  ;;  %v1453_v18 = vadd.f32 %v1452_v55, %v1413_v47  ;;  %v1490_v20 = vadd.f32 %v1489_v31, %v1414_v3  ;;  %v9888_v10 = vld [vmem:[#allocation56_spill] sm:$0xff]  ;;  %v9891_v9 = vld [vmem:[#allocation58_spill] sm:$0xff]  ;;  %v9892_v52 = vld [vmem:[#allocation215_spill] sm:$0xff] }
 0x3e2   :  { %v1418_v14 = vmul.f32 %v9870_v50, %v9886_v26  ;;  %v1419_v41 = vmul.f32 %v9875_v63, %v9887_v49  ;;  %v1420_v51 = vmul.f32 %v9875_v63, %v9888_v10  ;;  %v3210_v42 = vadd.f32 %v3209_v39, %v9889_v35  ;;  %v9890_v43 = vld [vmem:[#allocation236_spill] sm:$0xff]  ;;  %v9893_v3 = vld [vmem:[#allocation145_spill] sm:$0xff]  ;;  %v9894_v50 = vld [vmem:[#allocation195_spill] sm:$0xff] }
 0x3e3   :  { %v1354_v0 = vadd.f32 %v1353_v45, %v1323_v11  ;;  %v3174_v28 = vadd.f32 %v3173_v12, %v9890_v43  ;;  %v1454_v1 = vadd.f32 %v1453_v18, %v1415_v59  ;;  %v1491_v23 = vadd.f32 %v1490_v20, %v1416_v34  ;;  %v9895_v31 = vld [vmem:[#allocation237_spill] sm:$0xff]  ;;  %v9896_v63 = vld [vmem:[#allocation238_spill] sm:$0xff]  ;;  %v9898_v59 = vld [vmem:[#allocation64_spill] sm:$0xff] }
 0x3e4   :  { %v1421_v47 = vmul.f32 %v9892_v52, %v9891_v9  ;;  %vm1233_vm10 = vcmp.eq.s32.totalorder %v9893_v3, %v9794_v15  ;;  %v1325_v55 = vmul.f32 %v9894_v50, %v9892_v52  ;;  %v3211_v7 = vadd.f32 %v3210_v42, %v9895_v31  ;;  %v9897_v45 = vld [vmem:[#allocation61_spill] sm:$0xff]  ;;  %v9899_v34 = vld [vmem:[#allocation216_spill] sm:$0xff]  ;;  %v9901_v35 = vld [vmem:[#allocation239_spill] sm:$0xff] }
 0x3e5   :  { %v1355_v5 = vadd.f32 %v1354_v0, %v1324_v61  ;;  %v3175_v10 = vadd.f32 %v3174_v28, %v9896_v63  ;;  %v1455_v39 = vadd.f32 %v1454_v1, %v1417_v21  ;;  %v1492_v11 = vadd.f32 %v1491_v23, %v1418_v14  ;;  %v9900_v18 = vld [vmem:[#allocation197_spill] sm:$0xff]  ;;  %v9902_v50 = vld [vmem:[#allocation240_spill] sm:$0xff]  ;;  %v9903_v0 = vld [vmem:[#allocation67_spill] sm:$0xff] }
 0x3e6   :  { %v1422_v12 = vmul.f32 %v9892_v52, %v9897_v45  ;;  %v1423_v43 = vmul.f32 %v9899_v34, %v9898_v59  ;;  %v1326_v20 = vmul.f32 %v9900_v18, %v9899_v34  ;;  %v3212_v9 = vadd.f32 %v3211_v7, %v9901_v35  ;;  %v9904_v14 = vld [vmem:[#allocation217_spill] sm:$0xff]  ;;  %v9905_v1 = vld [vmem:[#allocation199_spill] sm:$0xff]  ;;  %v9907_v7 = vld [vmem:[#allocation242_spill] sm:$0xff] }
 0x3e7   :  { %v1356_v49 = vadd.f32 %v1355_v5, %v1325_v55  ;;  %v3176_v26 = vadd.f32 %v3175_v10, %v9902_v50  ;;  %v1456_v42 = vadd.f32 %v1455_v39, %v1419_v41  ;;  %v1493_v61 = vadd.f32 %v1492_v11, %v1420_v51  ;;  %v9906_v52 = vld [vmem:[#allocation241_spill] sm:$0xff]  ;;  %v9908_v41 = vld [vmem:[#allocation70_spill] sm:$0xff]  ;;  %v9909_v39 = vld [vmem:[#allocation72_spill] sm:$0xff] }
 0x3e8   :  { %v1424_v28 = vmul.f32 %v9899_v34, %v9903_v0  ;;  %v4168_v21 = vsel %vm1233_vm10, 1.0, %v9814_v24  ;;  %v1327_v23 = vmul.f32 %v9905_v1, %v9904_v14  ;;  %v3213_v31 = vadd.f32 %v3212_v9, %v9906_v52  ;;  %v9910_v34 = vld [vmem:[#allocation200_spill] sm:$0xff]  ;;  %v9911_v18 = vld [vmem:[#allocation243_spill] sm:$0xff]  ;;  %v9916_v52 = vld [vmem:[#allocation245_spill] sm:$0xff] }
 0x3e9   :  { %v1357_v63 = vadd.f32 %v1356_v49, %v1326_v20  ;;  %v3177_v55 = vadd.f32 %v3176_v26, %v9907_v7  ;;  %v1457_v5 = vadd.f32 %v1456_v42, %v1421_v47  ;;  %v1494_v10 = vadd.f32 %v1493_v61, %v1422_v12  ;;  %v9912_v1 = vld [vmem:[#allocation244_spill] sm:$0xff]  ;;  %v9913_v20 = vld [vmem:[#allocation75_spill] sm:$0xff]  ;;  %v9914_v47 = vld [vmem:[#allocation78_spill] sm:$0xff] }
 0x3ea   :  { %v1425_v51 = vmul.f32 %v9904_v14, %v9908_v41  ;;  %v1426_v11 = vmul.f32 %v9904_v14, %v9909_v39  ;;  %v1328_v15 = vmul.f32 %v9910_v34, %v6584_v19  ;;  %v3214_v35 = vadd.f32 %v3213_v31, %v9911_v18  ;;  %v9915_v42 = vld [vmem:[#allocation201_spill] sm:$0xff]  ;;  %v9917_v39 = vld [vmem:[#allocation246_spill] sm:$0xff]  ;;  %v9983_v54 = vld [vmem:[#allocation136_spill] sm:$0xff] }
 0x3eb   :  { %v1358_v50 = vadd.f32 %v1357_v63, %v1327_v23  ;;  %v3178_v0 = vadd.f32 %v3177_v55, %v9912_v1  ;;  %v1458_v9 = vadd.f32 %v1457_v5, %v1423_v43  ;;  %v1495_v49 = vadd.f32 %v1494_v10, %v1424_v28  ;;  %v9918_v23 = vld [vmem:[#allocation83_spill] sm:$0xff]  ;;  %v9920_v43 = vld [vmem:[#allocation81_spill] sm:$0xff] }
 0x3ec   :  { %v1427_v26 = vmul.f32 %v6584_v19, %v9913_v20  ;;  %v1428_v12 = vmul.f32 %v6584_v19, %v9914_v47  ;;  %v1329_v61 = vmul.f32 %v9915_v42, %v4168_v21  ;;  %v3215_v14 = vadd.f32 %v3214_v35, %v9916_v52  ;;  %v9919_v63 = vld [vmem:[#allocation175_spill] sm:$0xff] }
 0x3ed   :  { %v1359_v7 = vadd.f32 %v1358_v50, %v1328_v15  ;;  %v3179_v34 = vadd.f32 %v3178_v0, %v9917_v39  ;;  %v1459_v41 = vadd.f32 %v1458_v9, %v1425_v51  ;;  %v1496_v31 = vadd.f32 %v1495_v49, %v1426_v11  ;;  %v9921_v10 = vld [vmem:[#allocation247_spill] sm:$0xff] }
 0x3ee   :  { %v3149_v55 = vmul.f32 %v9919_v63, %v9918_v23  ;;  %v1429_v28 = vmul.f32 %v4168_v21, %v9920_v43  ;;  %v1430_v5 = vmul.f32 %v4168_v21, %v9918_v23  ;;  %v3216_v18 = vadd.f32 %v3215_v14, %v9921_v10  ;;  %v9922_v19 = vld [vmem:[#allocation203_spill] sm:$0xff]  ;;  %v4468_v63 = vld [vmem:[#allocation2] sm:$0xff] }
 0x3ef   :  { %v1360_v1 = vadd.f32 %v1359_v7, %v1329_v61  ;;  %v3180_v47 = vadd.f32 %v3179_v34, %v9922_v19  ;;  %v1460_v42 = vadd.f32 %v1459_v41, %v1427_v26  ;;  %v1497_v20 = vadd.f32 %v1496_v31, %v1428_v12  ;;  %v4467_v52 = vld [vmem:[#allocation2 + $0x8] sm:$0xff]  ;;  %v9923_v7 = vld [vmem:[#allocation41_spill] sm:$0xff] }
 0x3f0   :  { %v3217_v35 = vadd.f32 %v3216_v18, %v3149_v55  ;;  %v9924_v31 = vld [vmem:[#allocation45_spill] sm:$0xff] }
 0x3f1   :  { %v1361_v15 = vrot.slane %v1360_v1, 4  ;;  %v6747_v50 = vadd.f32 %v1460_v42, %v1429_v28  ;;  %v6749_v0 = vadd.f32 %v1497_v20, %v1430_v5 }
 0x3f3   :  { %v1362_v51 = vadd.f32 %v1361_v15, %v1360_v1 }
 0x3f5   :  { %v1363_v39 = vrot.slane %v1362_v51, 2 }
 0x3f7   :  { %v1364_v11 = vadd.f32 %v1363_v39, %v1362_v51 }
 0x3f9   :  { %v1365_v9 = vrot.slane %v1364_v11, 1 }
 0x3fb   :  { %v1366_v49 = vadd.f32 %v1365_v9, %v1364_v11 }
 0x3fd   :  { %v1506_v21 = vmul.f32 %v4467_v52, %v1366_v49  ;;  %v1505_v14 = vmul.f32 %v4468_v63, %v1366_v49 }
 0x3ff   :  { %1509 = vadd.xlane.f32.xlu1 %v1506_v21  ;;  %1507 = vadd.xlane.f32.xlu0 %v1505_v14 }
 0x451   :  { %v3227_v61 = vpop.xlane.xlu0 %3226  ;;  %v3229_v41 = vpop.xlane.xlu1 %3228 }
 0x452   :  { %v3230_v26 = vmul.f32 0.088388346, %v3227_v61  ;;  %v3231_v12 = vmul.f32 0.088388346, %v3229_v41 }
 0x454   :  { %v3232_v34 = vadd.f32 %v3230_v26, %v9923_v7  ;;  %v3233_v20 = vadd.f32 %v3231_v12, %v9924_v31  ;;  %v9929_v31 = vld [vmem:[#allocation102_spill] sm:$0xff] }
 0x456   :  { %v3234_v55 = vmax.f32 %v3232_v34, %v3233_v20 }
 0x458   :  { %v3235_v28 = vrot.slane %v3234_v55, 4 }
 0x45a   :  { %v3236_v5 = vmax.f32 %v3234_v55, %v3235_v28 }
 0x45c   :  { %v3237_v10 = vrot.slane %v3236_v5, 2 }
 0x45e   :  { %v3238_v18 = vmax.f32 %v3236_v5, %v3237_v10  ;;  %v9926_v5 = vld [vmem:[#allocation46_spill] sm:$0xff] }
 0x460   :  { %v3239_v1 = vrot.slane %v3238_v18, 1 }
 0x462   :  { %v3240_v19 = vmax.f32 %v3238_v18, %v3239_v1 }
 0x464   :  { %v3241_v42 = vsub.f32 %v3232_v34, %v3240_v19  ;;  %v3242_v15 = vsub.f32 %v3233_v20, %v3240_v19  ;;  %v9925_v34 = vld [vmem:[#allocation42_spill] sm:$0xff]  ;;  %v3181_v19 = vrot.slane %v3180_v47, 4 }
 0x466   :  { %v3243_v51 = vmul.f32 1.442695, %v3241_v42  ;;  %v3245_v39 = vmul.f32 1.442695, %v3242_v15  ;;  %v3218_v42 = vrot.slane %v3217_v35, 4 }
 0x468   :  { %4397 = vpow2.f32 %v3243_v51 }
 0x469   :  { %4399 = vpow2.f32 %v3245_v39 }
 0x475   :  { %v4398_v11 = vpop.eup %4397 }
 0x476   :  { %v4400_v9 = vpop.eup %4399 }
 0x477   :  { %v3247_v49 = vadd.f32 %v4400_v9, %v4398_v11 }
 0x479   :  { %v3248_v52 = vrot.slane %v3247_v49, 4 }
 0x47b   :  { %v3249_v21 = vadd.f32 %v3248_v52, %v3247_v49  ;;  %v3182_v49 = vadd.f32 %v3181_v19, %v3180_v47 }
 0x47d   :  { %v3250_v63 = vrot.slane %v3249_v21, 2  ;;  %v3183_v7 = vrot.slane %v3182_v49, 2 }
 0x47f   :  { %v3251_v14 = vadd.f32 %v3250_v63, %v3249_v21  ;;  %v3219_v63 = vadd.f32 %v3218_v42, %v3217_v35  ;;  %v3184_v35 = vadd.f32 %v3183_v7, %v3182_v49  ;;  %v9932_v49 = vld [vmem:[#allocation106_spill] sm:$0xff] }
 0x481   :  { %v3252_v61 = vrot.slane %v3251_v14, 1  ;;  %v3220_v45 = vrot.slane %v3219_v63, 2 }
 0x483   :  { %v3253_v41 = vadd.f32 %v3252_v61, %v3251_v14  ;;  %v9927_v61 = vld [vmem:[#allocation97_spill] sm:$0xff]  ;;  %v3221_v42 = vadd.f32 %v3220_v45, %v3219_v63 }
 0x484   :  { %v9931_v45 = vld [vmem:[#allocation105_spill] sm:$0xff] }
 0x485   :  { %4401 = vrcp.f32 %v3253_v41 }
 0x488   :  { %v1508_v26 = vpop.xlane.xlu0 %1507  ;;  %v1510_v12 = vpop.xlane.xlu1 %1509 }
 0x489   :  { %v1511_v55 = vmul.f32 0.088388346, %v1508_v26  ;;  %v1512_v28 = vmul.f32 0.088388346, %v1510_v12  ;;  %v9928_v26 = vld [vmem:[#allocation100_spill] sm:$0xff] }
 0x48b   :  { %v1513_v20 = vadd.f32 %v1511_v55, %v9925_v34  ;;  %v1514_v10 = vadd.f32 %v1512_v28, %v9926_v5  ;;  %v9930_v34 = vld [vmem:[#allocation103_spill] sm:$0xff] }
 0x48d   :  { %v1515_v18 = vmax.f32 %v1513_v20, %v1514_v10 }
 0x48f   :  { %v1516_v1 = vrot.slane %v1515_v18, 4 }
 0x491   :  { %v1517_v15 = vmax.f32 %v1515_v18, %v1516_v1 }
 0x492   :  { %v4402_v51 = vpop.eup %4401 }
 0x493   :  { %v1518_v39 = vrot.slane %v1517_v15, 2  ;;  %v3255_v52 = vmul.f32 %v4402_v51, %v4398_v11  ;;  %v3256_v21 = vmul.f32 %v4402_v51, %v4400_v9 }
 0x495   :  { %v1519_v14 = vmax.f32 %v1517_v15, %v1518_v39  ;;  %v3257_v41 = vmul.f32 %v3255_v52, %v9927_v61  ;;  %v3258_v12 = vmul.f32 %v3255_v52, %v9928_v26  ;;  %v3259_v55 = vmul.f32 %v3256_v21, %v9929_v31  ;;  %v9965_v61 = vld [vmem:[#allocation122_spill] sm:$0xff] }
 0x496   :  { %v3260_v28 = vmul.f32 %v3256_v21, %v9930_v34  ;;  %v3185_v21 = vrot.slane %v3184_v35, 1 }
 0x497   :  { %v1520_v5 = vrot.slane %v1519_v14, 1  ;;  %v3261_v59 = vadd.f32 %v3259_v55, %v3257_v41  ;;  %v3222_v41 = vrot.slane %v3221_v42, 1 }
 0x498   :  { %v3268_v18 = vadd.f32 %v3260_v28, %v3258_v12 }
 0x499   :  { %v1521_v1 = vmax.f32 %v1519_v14, %v1520_v5  ;;  %v3262_v2 = vrot.slane %v3261_v59, 4  ;;  %v3186_v14 = vadd.f32 %v3185_v21, %v3184_v35 }
 0x49a   :  { %v3269_v47 = vrot.slane %v3268_v18, 4 }
 0x49b   :  { %v1522_v11 = vsub.f32 %v1513_v20, %v1521_v1  ;;  %v1523_v9 = vsub.f32 %v1514_v10, %v1521_v1  ;;  %v3263_v19 = vadd.f32 %v3262_v2, %v3261_v59  ;;  %v3223_v20 = vadd.f32 %v3222_v41, %v3221_v42 }
 0x49c   :  { %v3270_v15 = vadd.f32 %v3269_v47, %v3268_v18 }
 0x49d   :  { %v1524_v51 = vmul.f32 1.442695, %v1522_v11  ;;  %v1526_v39 = vmul.f32 1.442695, %v1523_v9  ;;  %v3264_v52 = vrot.slane %v3263_v19, 2 }
 0x49e   :  { %v3271_v31 = vrot.slane %v3270_v15, 2 }
 0x49f   :  { %4403 = vpow2.f32 %v1524_v51  ;;  %v3265_v34 = vadd.f32 %v3264_v52, %v3263_v19  ;;  %v1499_v52 = vrot.slane %v6749_v0, 4 }
 0x4a0   :  { %4405 = vpow2.f32 %v1526_v39  ;;  %v3272_v55 = vadd.f32 %v3271_v31, %v3270_v15  ;;  %v1462_v39 = vrot.slane %v6747_v50, 4 }
 0x4a1   :  { %v3266_v12 = vrot.slane %v3265_v34, 1 }
 0x4a2   :  { %v3273_v5 = vrot.slane %v3272_v55, 1  ;;  %v1463_v41 = vadd.f32 %v1462_v39, %v6747_v50 }
 0x4a3   :  { %v3267_v28 = vadd.f32 %v3266_v12, %v3265_v34 }
 0x4a4   :  { %v3274_v10 = vadd.f32 %v3273_v5, %v3272_v55  ;;  %v1500_v55 = vadd.f32 %v1499_v52, %v6749_v0 }
 0x4a5   :  { %v3275_v7 = vadd.f32 %v3267_v28, %v3186_v14  ;;  %v9935_v14 = vld [vmem:[#allocation86_spill] sm:$0xff] }
 0x4a6   :  { %v3276_v2 = vadd.f32 %v3274_v10, %v3223_v20  ;;  %v9936_v20 = vld [vmem:[#allocation89_spill] sm:$0xff] }
 0x4a7   :  { %v3277_v59 = vadd.f32 %v3275_v7, %v9931_v45  ;;  %v9937_v7 = vld [vmem:[#allocation92_spill] sm:$0xff] }
 0x4a8   :  { %v3278_v63 = vadd.f32 %v3276_v2, %v9932_v49 }
 0x4a9   :  { %v3279_v18 = vsel %vm9933_vm11, %v3277_v59, -inf }
 0x4aa   :  { %v3280_v1 = vsel %vm9934_vm15, %v3278_v63, -inf }
 0x4ab   :  { %v3281_v47 = vmax.f32 %v3279_v18, %v3280_v1  ;;  %v9938_v18 = vld [vmem:[#allocation95_spill] sm:$0xff] }
 0x4ac   :  { %v4404_v11 = vpop.eup %4403 }
 0x4ad   :  { %v4406_v9 = vpop.eup %4405  ;;  %3282 = vmax.xlane.f32.xlu0 %v3281_v47  ;;  %v1464_v47 = vrot.slane %v1463_v41, 2 }
 0x4ae   :  { %v1528_v31 = vadd.f32 %v4406_v9, %v4404_v11 }
 0x4b0   :  { %v1529_v19 = vrot.slane %v1528_v31, 4 }
 0x4b2   :  { %v1530_v35 = vadd.f32 %v1529_v19, %v1528_v31  ;;  %v1501_v31 = vrot.slane %v1500_v55, 2 }
 0x4b4   :  { %v1531_v34 = vrot.slane %v1530_v35, 2  ;;  %v1502_v50 = vadd.f32 %v1501_v31, %v1500_v55 }
 0x4b6   :  { %v1532_v42 = vadd.f32 %v1531_v34, %v1530_v35  ;;  %v1503_v52 = vrot.slane %v1502_v50, 1 }
 0x4b8   :  { %v1533_v15 = vrot.slane %v1532_v42, 1 }
 0x4ba   :  { %v1534_v51 = vadd.f32 %v1533_v15, %v1532_v42  ;;  %v1465_v15 = vadd.f32 %v1464_v47, %v1463_v41 }
 0x4bc   :  { %4407 = vrcp.f32 %v1534_v51  ;;  %v1466_v39 = vrot.slane %v1465_v15, 1 }
 0x4c9   :  { %v4408_v21 = vpop.eup %4407 }
 0x4ca   :  { %v1536_v12 = vmul.f32 %v4408_v21, %v4404_v11  ;;  %v1537_v5 = vmul.f32 %v4408_v21, %v4406_v9 }
 0x4cc   :  { %v1538_v28 = vmul.f32 %v1536_v12, %v9935_v14  ;;  %v1539_v10 = vmul.f32 %v1536_v12, %v9936_v20  ;;  %v1540_v2 = vmul.f32 %v1537_v5, %v9937_v7  ;;  %v1541_v1 = vmul.f32 %v1537_v5, %v9938_v18 }
 0x4cd   :  { %v1467_v14 = vadd.f32 %v1466_v39, %v1465_v15  ;;  %v1504_v5 = vadd.f32 %v1503_v52, %v1502_v50 }
 0x4ce   :  { %v1542_v19 = vadd.f32 %v1540_v2, %v1538_v28  ;;  %v1549_v35 = vadd.f32 %v1541_v1, %v1539_v10 }
 0x4d0   :  { %v1543_v34 = vrot.slane %v1542_v19, 4  ;;  %v1550_v42 = vrot.slane %v1549_v35, 4 }
 0x4d2   :  { %v1544_v51 = vadd.f32 %v1543_v34, %v1542_v19  ;;  %v1551_v0 = vadd.f32 %v1550_v42, %v1549_v35  ;;  %v9941_v19 = vld [vmem:[#allocation107_spill] sm:$0xff]  ;;  %v9942_v34 = vld [vmem:[#allocation108_spill] sm:$0xff] }
 0x4d3   :  { %vm1196_vm11 = vcmp.eq.s32.totalorder %v9941_v19, 0  ;;  %vm1587_vm15 = vcmp.eq.s32.totalorder %v9941_v19, 1 }
 0x4d4   :  { %v1545_v11 = vrot.slane %v1544_v51, 2  ;;  %v1552_v9 = vrot.slane %v1551_v0, 2 }
 0x4d6   :  { %v1546_v21 = vadd.f32 %v1545_v11, %v1544_v51  ;;  %v1553_v12 = vadd.f32 %v1552_v9, %v1551_v0 }
 0x4d8   :  { %v1547_v20 = vrot.slane %v1546_v21, 1  ;;  %v1554_v7 = vrot.slane %v1553_v12, 1 }
 0x4da   :  { %v1548_v18 = vadd.f32 %v1547_v20, %v1546_v21  ;;  %v1555_v26 = vadd.f32 %v1554_v7, %v1553_v12 }
 0x4dc   :  { %v1556_v28 = vadd.f32 %v1548_v18, %v1467_v14  ;;  %v1557_v10 = vadd.f32 %v1555_v26, %v1504_v5 }
 0x4de   :  { %v1558_v2 = vadd.f32 %v1556_v28, %v9931_v45  ;;  %v1559_v41 = vadd.f32 %v1557_v10, %v9932_v49  ;;  %v9963_v49 = vld [vmem:[#allocation120_spill] sm:$0xff]  ;;  %v6848_v45 = vld [vmem:[#allocation15 + $0x28] sm:$0xff] }
 0x4df   :  { %9964 = vst [vmem:[#allocation154_spill] sm:$0xff] %v6848_v45 }
 0x4e0   :  { %v1560_v55 = vsel %vm9939_vm0, %v1558_v2, -inf  ;;  %v1561_v1 = vsel %vm9940_vm3, %v1559_v41, -inf }
 0x4e1   :  { %v1562_v47 = vmax.f32 %v1560_v55, %v1561_v1 }
 0x4e3   :  { %1563 = vmax.xlane.f32.xlu1 %v1562_v47 }
 0x536   :  { %v3283_v31 = vpop.xlane.xlu0 %3282 }
 0x537   :  { %vm3284_vm4 = vcmp.eq.f32.partialorder %v3277_v59, %v3283_v31  ;;  %vm3285_vm2 = vcmp.eq.f32.partialorder %v3278_v63, %v3283_v31 }
 0x538   :  { %v3286_v35 = vsel %vm3284_vm4, %v9941_v19, 256  ;;  %v3287_v20 = vsel %vm3285_vm2, %v9942_v34, 256 }
 0x539   :  { %v3288_v14 = vsel %vm9943_vm12, %v3286_v35, 2147483647  ;;  %v3289_v26 = vsel %vm9944_vm8, %v3287_v20, 2147483647  ;;  %v9947_v35 = vld [vmem:[#allocation109_spill] sm:$0xff] }
 0x53a   :  { %vm3290_vm6 = vcmp.lt.s32.totalorder %v3288_v14, %v3289_v26  ;;  %v2916_v20 = vsel %vm1196_vm11, %v9947_v35, 0 }
 0x53b   :  { %v3291_v7 = vsel %vm3290_vm6, %v3288_v14, %v3289_v26  ;;  %v9949_v26 = vld [vmem:[#allocation104_spill] sm:$0xff] }
 0x53c   :  { %v3293_v18 = vshra.s32 %v3291_v7, 16  ;;  %v3292_v39 = vand.u32 65535, %v3291_v7 }
 0x53e   :  { %v3295_v42 = vcvt.s32.f32 %v3293_v18  ;;  %v3294_v21 = vcvt.s32.f32 %v3292_v39  ;;  %v9950_v18 = vld [vmem:[#allocation26_spill] sm:$0xff] }
 0x540   :  { %3296 = vmin.xlane.f32.xlu0 %v3295_v42 }
 0x56c   :  { %v1564_v15 = vpop.xlane.xlu1 %1563 }
 0x56d   :  { %vm1565_vm13 = vcmp.eq.f32.partialorder %v1558_v2, %v1564_v15  ;;  %vm1566_vm5 = vcmp.eq.f32.partialorder %v1559_v41, %v1564_v15 }
 0x56e   :  { %v1567_v50 = vsel %vm1565_vm13, %v9941_v19, 256  ;;  %v1568_v59 = vsel %vm1566_vm5, %v9942_v34, 256 }
 0x56f   :  { %v1569_v63 = vsel %vm9945_vm9, %v1567_v50, 2147483647  ;;  %v1570_v51 = vsel %vm9946_vm1, %v1568_v59, 2147483647  ;;  %v9952_v59 = vld [vmem:[#allocation110_spill] sm:$0xff] }
 0x570   :  { %vm1571_vm14 = vcmp.lt.s32.totalorder %v1569_v63, %v1570_v51 }
 0x571   :  { %v1572_v0 = vsel %vm1571_vm14, %v1569_v63, %v1570_v51  ;;  %v9953_v63 = vld [vmem:[#allocation111_spill] sm:$0xff]  ;;  %v6808_v51 = vld [vmem:[#allocation15] sm:$0xff] }
 0x572   :  { %v1574_v11 = vshra.s32 %v1572_v0, 16  ;;  %v1573_v5 = vand.u32 65535, %v1572_v0  ;;  %9954 = vst [vmem:[#allocation141_spill] sm:$0xff] %v6808_v51 }
 0x574   :  { %v1576_v9 = vcvt.s32.f32 %v1574_v11  ;;  %v1575_v10 = vcvt.s32.f32 %v1573_v5  ;;  %v6811_v11 = vld [vmem:[#allocation15 + $0x8] sm:$0xff]  ;;  %v6822_v5 = vld [vmem:[#allocation15 + $0x10] sm:$0xff] }
 0x575   :  { %9955 = vst [vmem:[#allocation194_spill] sm:$0xff] %v6811_v11  ;;  %9958 = vst [vmem:[#allocation148_spill] sm:$0xff] %v6822_v5 }
 0x576   :  { %1577 = vmin.xlane.f32.xlu1 %v1576_v9 }
 0x5c9   :  { %v3297_v52 = vpop.xlane.xlu0 %3296 }
 0x5ca   :  { %vm3298_vm7 = vcmp.eq.f32.partialorder %v3295_v42, %v3297_v52  ;;  %v3303_v41 = vcvt.f32.s32 %v3297_v52  ;;  %v9951_v42 = vld [vmem:[#allocation32_spill] sm:$0xff] }
 0x5cb   :  { %v3299_v12 = vsel %vm3298_vm7, %v3294_v21, inf  ;;  %v9956_v52 = vld [vmem:[#allocation112_spill] sm:$0xff] }
 0x5cc   :  { %3300 = vmin.xlane.f32.xlu0 %v3299_v12  ;;  %v3304_v1 = vshll.u32 %v3303_v41, 16  ;;  %v9957_v12 = vld [vmem:[#allocation114_spill] sm:$0xff] }
 0x5ff   :  { %v6783_v28 = vpop.xlane.xlu1 %1577 }
 0x600   :  { %vm1579_vm10 = vcmp.eq.f32.partialorder %v1576_v9, %v6783_v28 }
 0x601   :  { %v1580_v2 = vsel %vm1579_vm10, %v1575_v10, inf }
 0x602   :  { %1581 = vmin.xlane.f32.xlu1 %v1580_v2 }
 0x655   :  { %v3301_v55 = vpop.xlane.xlu0 %3300 }
 0x656   :  { %v3302_v47 = vcvt.f32.s32 %v3301_v55  ;;  %v9959_v55 = vld [vmem:[#allocation116_spill] sm:$0xff] }
 0x658   :  { %v3305_v31 = vadd.s32 %v3304_v1, %v3302_v47  ;;  %v6830_v1 = vld [vmem:[#allocation15 + $0x18] sm:$0xff] }
 0x659   :  { %9960 = vst [vmem:[#allocation150_spill] sm:$0xff] %v6830_v1 }
 0x65a   :  { %v6793_v14 = vsel %vm1587_vm15, %v3305_v31, %v2916_v20  ;;  %v6796_v7 = vrot.slane %v3305_v31, %v9949_v26  ;;  %v9961_v20 = vld [vmem:[#allocation118_spill] sm:$0xff] }
 0x65b   :  { %9948 = vst [vmem:[#allocation140_spill] sm:$0xff] %v6793_v14  ;;  %v6839_v14 = vld [vmem:[#allocation15 + $0x20] sm:$0xff] }
 0x65c   :  { %vm3311_vm0 = vcmp.eq.s32.totalorder %v9950_v18, %v6796_v7  ;;  %vm3312_vm3 = vcmp.eq.s32.totalorder %v9951_v42, %v6796_v7  ;;  %vm3313_vm4 = vcmp.eq.s32.totalorder %v9952_v59, %v6796_v7  ;;  %vm3314_vm2 = vcmp.eq.s32.totalorder %v9953_v63, %v6796_v7  ;;  %9962 = vst [vmem:[#allocation152_spill] sm:$0xff] %v6839_v14  ;;  %v9978_v42 = vld [vmem:[#allocation132_spill] sm:$0xff] }
 0x65d   :  { %v4275_v15 = vsel %vm3311_vm0, 1.0, %v9814_v24  ;;  %v4276_v50 = vsel %vm3312_vm3, 1.0, %v9814_v24  ;;  %v4277_v39 = vsel %vm3313_vm4, 1.0, %v9814_v24  ;;  %vm3315_vm12 = vcmp.eq.s32.totalorder %v9956_v52, %v6796_v7  ;;  %v9975_v52 = vld [vmem:[#allocation33_spill] sm:$0xff] }
 0x65e   :  { %v3407_v0 = vmul.f32 %v6808_v51, %v4275_v15  ;;  %v3408_v9 = vmul.f32 %v6811_v11, %v4276_v50  ;;  %v6818_v21 = vsel %vm3314_vm2, 1.0, %v9814_v24  ;;  %vm3316_vm8 = vcmp.eq.s32.totalorder %v9957_v12, %v6796_v7 }
 0x65f   :  { %v3409_v10 = vmul.f32 %v6822_v5, %v4277_v39  ;;  %v6826_v41 = vsel %vm3315_vm12, 1.0, %v9814_v24  ;;  %vm3317_vm6 = vcmp.eq.s32.totalorder %v9959_v55, %v6796_v7  ;;  %v3410_v47 = vmul.f32 %v6830_v1, %v6818_v21  ;;  %v9967_v5 = vld [vmem:[#allocation124_spill] sm:$0xff]  ;;  %v6888_v55 = vld [vmem:[#allocation15 + $0x48] sm:$0xff] }
 0x660   :  { %v3439_v2 = vadd.f32 %v3408_v9, %v3407_v0  ;;  %v6835_v35 = vsel %vm3316_vm8, 1.0, %v9814_v24  ;;  %vm3318_vm13 = vcmp.eq.s32.totalorder %v9961_v20, %v6796_v7  ;;  %v3411_v0 = vmul.f32 %v6839_v14, %v6826_v41  ;;  %v6857_v14 = vld [vmem:[#allocation15 + $0x30] sm:$0xff]  ;;  %9972 = vst [vmem:[#allocation196_spill] sm:$0xff] %v6888_v55 }
 0x661   :  { %v6844_v34 = vsel %vm3317_vm6, 1.0, %v9814_v24  ;;  %vm3319_vm5 = vcmp.eq.s32.totalorder %v9963_v49, %v6796_v7  ;;  %vm3320_vm9 = vcmp.eq.s32.totalorder %v9965_v61, %v6796_v7  ;;  %v6855_v1 = vsel %vm3318_vm13, 1.0, %v9814_v24  ;;  %9966 = vst [vmem:[#allocation157_spill] sm:$0xff] %v6857_v14 }
 0x662   :  { %v3440_v31 = vadd.f32 %v3439_v2, %v3409_v10  ;;  %v3412_v10 = vmul.f32 %v6848_v45, %v6835_v35  ;;  %vm3321_vm1 = vcmp.eq.s32.totalorder %v9967_v5, %v6796_v7  ;;  %v6864_v11 = vsel %vm3319_vm5, 1.0, %v9814_v24  ;;  %v6871_v45 = vld [vmem:[#allocation15 + $0x38] sm:$0xff] }
 0x663   :  { %9969 = vst [vmem:[#allocation163_spill] sm:$0xff] %v6871_v45  ;;  %v3414_v51 = vmul.f32 %v6871_v45, %v6855_v1  ;;  %v6883_v49 = vsel %vm3321_vm1, 1.0, %v9814_v24  ;;  %v3478_v63 = vmul.f32 %v4276_v50, %v9975_v52  ;;  %vm3324_vm10 = vcmp.eq.s32.totalorder %v9978_v42, %v6796_v7  ;;  %v9980_v52 = vld [vmem:[#allocation135_spill] sm:$0xff] }
 0x664   :  { %v3441_v9 = vadd.f32 %v3440_v31, %v3410_v47  ;;  %v3413_v47 = vmul.f32 %v6857_v14, %v6844_v34  ;;  %v6878_v14 = vld [vmem:[#allocation15 + $0x40] sm:$0xff]  ;;  %vm3325_vm0 = vcmp.eq.s32.totalorder %v9980_v52, %v6796_v7 }
 0x665   :  { %9971 = vst [vmem:[#allocation170_spill] sm:$0xff] %v6878_v14  ;;  %v3415_v5 = vmul.f32 %v6878_v14, %v6864_v11  ;;  %v9976_v14 = vld [vmem:[#allocation35_spill] sm:$0xff] }
 0x666   :  { %v3442_v2 = vadd.f32 %v3441_v9, %v3411_v0  ;;  %v9968_v0 = vld [vmem:[#allocation126_spill] sm:$0xff]  ;;  %v6869_v9 = vsel %vm3320_vm9, 1.0, %v9814_v24 }
 0x667   :  { %vm3322_vm14 = vcmp.eq.s32.totalorder %v9968_v0, %v6796_v7 }
 0x668   :  { %v3443_v31 = vadd.f32 %v3442_v2, %v3412_v10  ;;  %v1584_v10 = vcvt.f32.s32 %v6783_v28  ;;  %v9970_v2 = vld [vmem:[#allocation128_spill] sm:$0xff]  ;;  %v6886_v20 = vsel %vm3322_vm14, 1.0, %v9814_v24  ;;  %v3416_v28 = vmul.f32 %v6888_v55, %v6869_v9 }
 0x669   :  { %vm3323_vm7 = vcmp.eq.s32.totalorder %v9970_v2, %v6796_v7  ;;  %v9974_v2 = vld [vmem:[#allocation30_spill] sm:$0xff]  ;;  %v6904_v55 = vld [vmem:[#allocation15 + $0x50] sm:$0xff] }
 0x66a   :  { %v3444_v61 = vadd.f32 %v3443_v31, %v3413_v47  ;;  %v9973_v47 = vld [vmem:[#allocation28_spill] sm:$0xff]  ;;  %v3477_v12 = vmul.f32 %v4275_v15, %v9974_v2  ;;  %v6902_v18 = vsel %vm3323_vm7, 1.0, %v9814_v24  ;;  %9979 = vst [vmem:[#allocation174_spill] sm:$0xff] %v6904_v55 }
 0x66b   :  { %v3476_v31 = vmul.f32 %v4275_v15, %v9973_v47  ;;  %v9982_v47 = vld [vmem:[#allocation39_spill] sm:$0xff] }
 0x66c   :  { %v3445_v0 = vadd.f32 %v3444_v61, %v3414_v51  ;;  %v3479_v61 = vmul.f32 %v4276_v50, %v9976_v14  ;;  %v9977_v51 = vld [vmem:[#allocation134_spill] sm:$0xff]  ;;  %v6910_v50 = vld [vmem:[#allocation15 + $0x58] sm:$0xff]  ;;  %v3480_v14 = vmul.f32 %v4277_v39, %v9629_v4  ;;  %v3481_v42 = vmul.f32 %v4277_v39, %v9982_v47 }
 0x66d   :  { %v1197_v59 = vsel %vm1196_vm11, %v9977_v51, 0  ;;  %9981 = vst [vmem:[#allocation198_spill] sm:$0xff] %v6910_v50  ;;  %v3418_v51 = vmul.f32 %v6910_v50, %v6886_v20  ;;  %v3540_v26 = vadd.f32 %v3478_v63, %v3476_v31  ;;  %vm3326_vm11 = vcmp.eq.s32.totalorder %v9983_v54, %v6796_v7  ;;  %v9986_v31 = vld [vmem:[#allocation137_spill] sm:$0xff] }
 0x66e   :  { %v3446_v45 = vadd.f32 %v3445_v0, %v3415_v5  ;;  %v3417_v5 = vmul.f32 %v6904_v55, %v6883_v49  ;;  %v1585_v0 = vshll.u32 %v1584_v10, 16  ;;  %v3577_v27 = vadd.f32 %v3479_v61, %v3477_v12  ;;  %v6921_v10 = vld [vmem:[#allocation15 + $0x60] sm:$0xff]  ;;  %v9985_v55 = vld [vmem:[#allocation43_spill] sm:$0xff] }
 0x66f   :  { %9984 = vst [vmem:[#allocation176_spill] sm:$0xff] %v6921_v10  ;;  %v3482_v50 = vmul.f32 %v6818_v21, %v9985_v55  ;;  %v3483_v39 = vmul.f32 %v6818_v21, %v9634_v30  ;;  %v3541_v63 = vadd.f32 %v3540_v26, %v3480_v14  ;;  %vm3327_vm3 = vcmp.eq.s32.totalorder %v9986_v31, %v6796_v7  ;;  %v9987_v61 = vld [vmem:[#allocation138_spill] sm:$0xff] }
 0x670   :  { %v3447_v15 = vadd.f32 %v3446_v45, %v3416_v28  ;;  %v6919_v45 = vsel %vm3324_vm10, 1.0, %v9814_v24  ;;  %v3419_v28 = vmul.f32 %v6921_v10, %v6902_v18  ;;  %v3578_v12 = vadd.f32 %v3577_v27, %v3481_v42  ;;  %v9989_v27 = vld [vmem:[#allocation142_spill] sm:$0xff] }
 0x671   :  { %vm3328_vm4 = vcmp.eq.s32.totalorder %v9987_v61, %v6796_v7  ;;  %vm3330_vm12 = vcmp.eq.s32.totalorder %v9989_v27, %v6796_v7  ;;  %v6945_v26 = vsel %vm3325_vm0, 1.0, %v9814_v24  ;;  %v6947_v42 = vld [vmem:[#allocation15 + $0x68] sm:$0xff]  ;;  %vm3341_vm0 = vcmp.eq.s32.totalorder %v9795_v53, %v6796_v7 }
 0x672   :  { %v3448_v2 = vadd.f32 %v3447_v15, %v3417_v5  ;;  %v9988_v5 = vld [vmem:[#allocation139_spill] sm:$0xff]  ;;  %v3484_v15 = vmul.f32 %v6826_v41, %v9636_v29  ;;  %v3579_v21 = vadd.f32 %v3578_v12, %v3483_v39  ;;  %9990 = vst [vmem:[#allocation177_spill] sm:$0xff] %v6947_v42 }
 0x673   :  { %vm3329_vm2 = vcmp.eq.s32.totalorder %v9988_v5, %v6796_v7  ;;  %v9991_v12 = vld [vmem:[#allocation143_spill] sm:$0xff] }
 0x674   :  { %v3449_v4 = vadd.f32 %v3448_v2, %v3418_v51  ;;  %v3485_v2 = vmul.f32 %v6826_v41, %v9639_v58  ;;  %v3542_v51 = vadd.f32 %v3541_v63, %v3482_v50  ;;  %v3486_v41 = vmul.f32 %v6835_v35, %v9784_v37  ;;  %v9992_v58 = vld [vmem:[#allocation113_spill] sm:$0xff]  ;;  %v9993_v29 = vld [vmem:[#allocation115_spill] sm:$0xff] }
 0x675   :  { %vm3331_vm8 = vcmp.eq.s32.totalorder %v9991_v12, %v6796_v7  ;;  %vm3332_vm6 = vcmp.eq.s32.totalorder %v9992_v58, %v6796_v7  ;;  %vm3333_vm13 = vcmp.eq.s32.totalorder %v9993_v29, %v6796_v7  ;;  %v7123_v29 = vld [vmem:[#allocation15 + $0xb0] sm:$0xff]  ;;  %v7127_v58 = vld [vmem:[#allocation15 + $0xb8] sm:$0xff]  ;;  %v7133_v12 = vld [vmem:[#allocation15 + $0xc0] sm:$0xff] }
 0x676   :  { %v3450_v10 = vadd.f32 %v3449_v4, %v3419_v28  ;;  %v3420_v4 = vmul.f32 %v6947_v42, %v6919_v45  ;;  %v3487_v28 = vmul.f32 %v6835_v35, %v9787_v40  ;;  %v3543_v39 = vadd.f32 %v3542_v51, %v3484_v15  ;;  %v9994_v35 = vld [vmem:[#allocation117_spill] sm:$0xff]  ;;  %v9995_v15 = vld [vmem:[#allocation119_spill] sm:$0xff]  ;;  %10012 = vst [vmem:[#allocation151_spill] sm:$0xff] %v7123_v29 }
 0x677   :  { %v3580_v63 = vadd.f32 %v3579_v21, %v3485_v2  ;;  %vm3334_vm5 = vcmp.eq.s32.totalorder %v9994_v35, %v6796_v7  ;;  %vm3335_vm9 = vcmp.eq.s32.totalorder %v9995_v15, %v6796_v7  ;;  %v6969_v2 = vld [vmem:[#allocation15 + $0x70] sm:$0xff]  ;;  %v7040_v19 = vsel %vm3332_vm6, 1.0, %v9814_v24  ;;  %v7119_v35 = vld [vmem:[#allocation15 + $0xa8] sm:$0xff]  ;;  %10013 = vst [vmem:[#allocation63_spill] sm:$0xff] %v7127_v58  ;;  %10014 = vst [vmem:[#allocation153_spill] sm:$0xff] %v7133_v12 }
 0x678   :  { %v3451_v30 = vadd.f32 %v3450_v10, %v3420_v4  ;;  %v3544_v37 = vadd.f32 %v3543_v39, %v3486_v41  ;;  %9996 = vst [vmem:[#allocation178_spill] sm:$0xff] %v6969_v2  ;;  %v3421_v51 = vmul.f32 %v6969_v2, %v6945_v26  ;;  %v9997_v10 = vld [vmem:[#allocation121_spill] sm:$0xff]  ;;  %v6986_v4 = vsel %vm3326_vm11, 1.0, %v9814_v24  ;;  %10011 = vst [vmem:[#allocation146_spill] sm:$0xff] %v7119_v35  ;;  %v7139_v5 = vld [vmem:[#allocation15 + $0xc8] sm:$0xff] }
 0x679   :  { %v3581_v55 = vadd.f32 %v3580_v63, %v3487_v28  ;;  %vm3336_vm1 = vcmp.eq.s32.totalorder %v9997_v10, %v6796_v7  ;;  %v10004_v63 = vld [vmem:[#allocation129_spill] sm:$0xff]  ;;  %v7046_v2 = vsel %vm3333_vm13, 1.0, %v9814_v24  ;;  %vm3342_vm11 = vcmp.eq.s32.totalorder %v9893_v3, %v6796_v7  ;;  %v7107_v10 = vld [vmem:[#allocation15 + $0x90] sm:$0xff]  ;;  %10015 = vst [vmem:[#allocation155_spill] sm:$0xff] %v7139_v5 }
 0x67a   :  { %v3452_v28 = vadd.f32 %v3451_v30, %v3421_v51  ;;  %vm3340_vm10 = vcmp.eq.s32.totalorder %v10004_v63, %v6796_v7  ;;  %v7012_v30 = vsel %vm3328_vm4, 1.0, %v9814_v24  ;;  %v7026_v51 = vld [vmem:[#allocation15 + $0x78] sm:$0xff]  ;;  %v4306_v47 = vsel %vm3342_vm11, 1.0, %v9814_v24  ;;  %10008 = vst [vmem:[#allocation144_spill] sm:$0xff] %v7107_v10 }
 0x67b   :  { %10005 = vst [vmem:[#allocation202_spill] sm:$0xff] %v7026_v51 }
 0x68b   :  { %v1582_v14 = vpop.xlane.xlu1 %1581 }
 0x68c   :  { %v1583_v50 = vcvt.f32.s32 %v1582_v14  ;;  %v3488_v14 = vmul.f32 %v6844_v34, %v9788_v56  ;;  %v7066_v56 = vsel %vm3336_vm1, 1.0, %v9814_v24 }
 0x68e   :  { %v6961_v42 = vadd.s32 %v1585_v0, %v1583_v50  ;;  %v3489_v0 = vmul.f32 %v6844_v34, %v9791_v13  ;;  %v6988_v41 = vadd.f32 %v3544_v37, %v3488_v14  ;;  %v10000_v50 = vld [vmem:[#allocation123_spill] sm:$0xff]  ;;  %v10001_v34 = vld [vmem:[#allocation125_spill] sm:$0xff]  ;;  %v7006_v37 = vsel %vm3327_vm3, 1.0, %v9814_v24 }
 0x68f   :  { %vm3337_vm14 = vcmp.eq.s32.totalorder %v10000_v50, %v6796_v7  ;;  %vm3338_vm7 = vcmp.eq.s32.totalorder %v10001_v34, %v6796_v7  ;;  %v7024_v14 = vsel %vm3330_vm12, 1.0, %v9814_v24  ;;  %v7060_v13 = vsel %vm3335_vm9, 1.0, %v9814_v24  ;;  %v7099_v34 = vld [vmem:[#allocation15 + $0x80] sm:$0xff]  ;;  %v7103_v50 = vld [vmem:[#allocation15 + $0x88] sm:$0xff] }
 0x690   :  { %v6980_v21 = vsel %vm1587_vm15, %v6961_v42, %v1197_v59  ;;  %9999 = vst [vmem:[#allocation180_spill] sm:$0xff] %v6988_v41  ;;  %v6994_v39 = vadd.f32 %v3581_v55, %v3489_v0  ;;  %v10003_v59 = vld [vmem:[#allocation127_spill] sm:$0xff]  ;;  %v7018_v55 = vsel %vm3329_vm2, 1.0, %v9814_v24  ;;  %v3422_v0 = vmul.f32 %v7026_v51, %v6986_v4  ;;  %10006 = vst [vmem:[#allocation130_spill] sm:$0xff] %v7099_v34 }
 0x691   :  { %9998 = vst [vmem:[#allocation179_spill] sm:$0xff] %v6980_v21  ;;  %vm3339_vm15 = vcmp.eq.s32.totalorder %v10003_v59, %v6796_v7  ;;  %v7034_v21 = vsel %vm3331_vm8, 1.0, %v9814_v24  ;;  %v7054_v51 = vsel %vm3334_vm5, 1.0, %v9814_v24  ;;  %v7072_v3 = vsel %vm3337_vm14, 1.0, %v9814_v24  ;;  %10007 = vst [vmem:[#allocation131_spill] sm:$0xff] %v7103_v50  ;;  %v7111_v7 = vld [vmem:[#allocation15 + $0x98] sm:$0xff] }
 0x692   :  { %10002 = vst [vmem:[#allocation181_spill] sm:$0xff] %v6994_v39  ;;  %v3453_v40 = vadd.f32 %v3452_v28, %v3422_v0  ;;  %v7078_v39 = vsel %vm3338_vm7, 1.0, %v9814_v24  ;;  %v7084_v41 = vsel %vm3339_vm15, 1.0, %v9814_v24  ;;  %v7090_v28 = vsel %vm3340_vm10, 1.0, %v9814_v24  ;;  %10009 = vst [vmem:[#allocation147_spill] sm:$0xff] %v7111_v7 }
 0x693   :  { %v7096_v0 = vsel %vm3341_vm0, 1.0, %v9814_v24  ;;  %v3423_v59 = vmul.f32 %v7099_v34, %v7006_v37  ;;  %v3424_v63 = vmul.f32 %v7103_v50, %v7012_v30  ;;  %v3425_v15 = vmul.f32 %v7107_v10, %v7018_v55  ;;  %v7115_v24 = vld [vmem:[#allocation15 + $0xa0] sm:$0xff] }
 0x694   :  { %v3426_v53 = vmul.f32 %v7111_v7, %v7024_v14  ;;  %10010 = vst [vmem:[#allocation149_spill] sm:$0xff] %v7115_v24  ;;  %v3427_v34 = vmul.f32 %v7115_v24, %v7034_v21  ;;  %v3428_v50 = vmul.f32 %v7119_v35, %v7040_v19  ;;  %v3429_v10 = vmul.f32 %v7123_v29, %v7046_v2  ;;  %v7145_v29 = vld [vmem:[#allocation15 + $0xd0] sm:$0xff] }
 0x695   :  { %v7131_v7 = vmul.f32 %v7127_v58, %v7054_v51  ;;  %v7137_v24 = vmul.f32 %v7133_v12, %v7060_v13  ;;  %v3454_v27 = vadd.f32 %v3453_v40, %v3423_v59  ;;  %v7143_v35 = vmul.f32 %v7139_v5, %v7066_v56  ;;  %10016 = vst [vmem:[#allocation66_spill] sm:$0xff] %v7145_v29  ;;  %v7151_v58 = vld [vmem:[#allocation15 + $0xd8] sm:$0xff]  ;;  %v7157_v12 = vld [vmem:[#allocation15 + $0xe0] sm:$0xff]  ;;  %v7163_v59 = vld [vmem:[#allocation15 + $0xe8] sm:$0xff] }
 0x696   :  { %v7149_v61 = vmul.f32 %v7145_v29, %v7072_v3  ;;  %10017 = vst [vmem:[#allocation62_spill] sm:$0xff] %v7151_v58  ;;  %v7155_v31 = vmul.f32 %v7151_v58, %v7078_v39  ;;  %10019 = vst [vmem:[#allocation68_spill] sm:$0xff] %v7157_v12  ;;  %v7161_v40 = vmul.f32 %v7157_v12, %v7084_v41  ;;  %v7169_v29 = vld [vmem:[#allocation15 + $0xf0] sm:$0xff]  ;;  %v7175_v58 = vld [vmem:[#allocation15 + $0xf8] sm:$0xff] }
 0x697   :  { %10021 = vst [vmem:[#allocation158_spill] sm:$0xff] %v7163_v59  ;;  %v7167_v5 = vmul.f32 %v7163_v59, %v7090_v28  ;;  %10022 = vst [vmem:[#allocation219_spill] sm:$0xff] %v7169_v29  ;;  %v7173_v54 = vmul.f32 %v7169_v29, %v7096_v0  ;;  %v3455_v52 = vadd.f32 %v3454_v27, %v3424_v63 }
 0x698   :  { %10018 = vst [vmem:[#allocation156_spill] sm:$0xff] %v7155_v31  ;;  %10020 = vst [vmem:[#allocation218_spill] sm:$0xff] %v7161_v40  ;;  %v7178_v31 = vmul.f32 %v7175_v58, %v4306_v47  ;;  %v7181_v12 = vmul.f32 %v4306_v47, %v9920_v43  ;;  %v7184_v40 = vmul.f32 %v4306_v47, %v9918_v23 }
 0x699   :  { %10023 = vst [vmem:[#allocation159_spill] sm:$0xff] %v7173_v54  ;;  %10024 = vst [vmem:[#allocation220_spill] sm:$0xff] %v7175_v58  ;;  %v7188_v59 = vmul.f32 %v6855_v1, %v9792_v46  ;;  %v7192_v29 = vmul.f32 %v6855_v1, %v9654_v32  ;;  %v3456_v54 = vadd.f32 %v3455_v52, %v3425_v15 }
 0x69a   :  { %10025 = vst [vmem:[#allocation221_spill] sm:$0xff] %v7181_v12  ;;  %10026 = vst [vmem:[#allocation222_spill] sm:$0xff] %v7184_v40  ;;  %v7196_v58 = vmul.f32 %v6864_v11, %v9797_v33  ;;  %v7200_v27 = vmul.f32 %v6864_v11, %v9659_v62  ;;  %v7204_v47 = vmul.f32 %v6869_v9, %v9800_v60 }
 0x69b   :  { %v7208_v63 = vmul.f32 %v6869_v9, %v9803_v36  ;;  %v7212_v1 = vmul.f32 %v6883_v49, %v9804_v57  ;;  %v7216_v52 = vmul.f32 %v6883_v49, %v9807_v48  ;;  %v7220_v11 = vmul.f32 %v6886_v20, %v9808_v16  ;;  %v10035_v16 = vld [vmem:[#allocation87_spill] sm:$0xff] }
 0x69c   :  { %v3457_v15 = vadd.f32 %v3456_v54, %v3426_v53  ;;  %v7224_v23 = vmul.f32 %v6886_v20, %v9811_v22  ;;  %v7228_v9 = vmul.f32 %v6902_v18, %v9815_v25  ;;  %v7232_v43 = vmul.f32 %v6902_v18, %v9816_v8  ;;  %v10027_v53 = vld [vmem:[#allocation80_spill] sm:$0xff]  ;;  %v10029_v20 = vld [vmem:[#allocation82_spill] sm:$0xff]  ;;  %v10033_v8 = vld [vmem:[#allocation85_spill] sm:$0xff] }
 0x69d   :  { %v7236_v49 = vmul.f32 %v6919_v45, %v9821_v44  ;;  %v7240_v40 = vmul.f32 %v6919_v45, %v9822_v6  ;;  %v7244_v54 = vmul.f32 %v6945_v26, %v10027_v53  ;;  %v7248_v12 = vmul.f32 %v6945_v26, %v10029_v20  ;;  %v10031_v22 = vld [vmem:[#allocation84_spill] sm:$0xff]  ;;  %v10044_v20 = vld [vmem:[#allocation94_spill] sm:$0xff] }
 0x69e   :  { %v3458_v25 = vadd.f32 %v3457_v15, %v3427_v34  ;;  %v7252_v18 = vmul.f32 %v6986_v4, %v10031_v22  ;;  %v7256_v44 = vmul.f32 %v6986_v4, %v10033_v8  ;;  %v7260_v45 = vmul.f32 %v7006_v37, %v10035_v16  ;;  %v10037_v6 = vld [vmem:[#allocation88_spill] sm:$0xff]  ;;  %v10040_v34 = vld [vmem:[#allocation91_spill] sm:$0xff]  ;;  %v10042_v22 = vld [vmem:[#allocation93_spill] sm:$0xff] }
 0x69f   :  { %10028 = vst [vmem:[#allocation160_spill] sm:$0xff] %v7244_v54  ;;  %10030 = vst [vmem:[#allocation204_spill] sm:$0xff] %v7248_v12  ;;  %v7264_v53 = vmul.f32 %v7006_v37, %v10037_v6  ;;  %v7268_v26 = vmul.f32 %v7012_v30, %v9844_v17  ;;  %v7272_v15 = vmul.f32 %v7012_v30, %v10040_v34  ;;  %v10048_v6 = vld [vmem:[#allocation98_spill] sm:$0xff]  ;;  %v10051_v34 = vld [vmem:[#allocation101_spill] sm:$0xff] }
 0x6a0   :  { %10032 = vst [vmem:[#allocation182_spill] sm:$0xff] %v7252_v18  ;;  %10034 = vst [vmem:[#allocation223_spill] sm:$0xff] %v7256_v44  ;;  %v7276_v4 = vmul.f32 %v7018_v55, %v10042_v22  ;;  %v3459_v8 = vadd.f32 %v3458_v25, %v3428_v50  ;;  %v7280_v16 = vmul.f32 %v7018_v55, %v10044_v20  ;;  %v10053_v25 = vld [vmem:[#allocation29_spill] sm:$0xff]  ;;  %v10055_v55 = vld [vmem:[#allocation31_spill] sm:$0xff] }
 0x6a1   :  { %10036 = vst [vmem:[#allocation161_spill] sm:$0xff] %v7260_v45  ;;  %10038 = vst [vmem:[#allocation205_spill] sm:$0xff] %v7264_v53  ;;  %v10046_v45 = vld [vmem:[#allocation96_spill] sm:$0xff]  ;;  %v7288_v17 = vmul.f32 %v7024_v14, %v10048_v6  ;;  %v7292_v30 = vmul.f32 %v7034_v21, %v9861_v38  ;;  %v7296_v22 = vmul.f32 %v7034_v21, %v10051_v34 }
 0x6a2   :  { %10039 = vst [vmem:[#allocation183_spill] sm:$0xff] %v7268_v26  ;;  %10041 = vst [vmem:[#allocation224_spill] sm:$0xff] %v7272_v15  ;;  %v7284_v37 = vmul.f32 %v7024_v14, %v10046_v45  ;;  %v7300_v50 = vmul.f32 %v7040_v19, %v10053_v25  ;;  %v7304_v45 = vmul.f32 %v7040_v19, %v10055_v55  ;;  %v10059_v6 = vld [vmem:[#allocation36_spill] sm:$0xff]  ;;  %v10125_v15 = vmov 0.0  }
 0x6a3   :  { %10043 = vst [vmem:[#allocation162_spill] sm:$0xff] %v7276_v4  ;;  %10045 = vst [vmem:[#allocation206_spill] sm:$0xff] %v7280_v16  ;;  %v3460_v20 = vadd.f32 %v3459_v8, %v3429_v10  ;;  %v7312_v38 = vmul.f32 %v7046_v2, %v10059_v6  ;;  %v10063_v34 = vld [vmem:[#allocation104_spill] sm:$0xff]  ;;  %v10123_v16 = vld [vmem:[#allocation125_spill] sm:$0xff] }
 0x6a4   :  { %10047 = vst [vmem:[#allocation184_spill] sm:$0xff] %v7284_v37  ;;  %10049 = vst [vmem:[#allocation188_spill] sm:$0xff] %v7288_v17  ;;  %v10057_v37 = vld [vmem:[#allocation34_spill] sm:$0xff]  ;;  %v7320_v25 = vrot.slane %v6961_v42, %v10063_v34  ;;  %v10066_v8 = vld [vmem:[#allocation44_spill] sm:$0xff] }
 0x6a5   :  { %10050 = vst [vmem:[#allocation164_spill] sm:$0xff] %v7292_v30  ;;  %10052 = vst [vmem:[#allocation207_spill] sm:$0xff] %v7296_v22  ;;  %v7308_v14 = vmul.f32 %v7046_v2, %v10057_v37  ;;  %v10061_v30 = vld [vmem:[#allocation38_spill] sm:$0xff]  ;;  %v7328_v10 = vmul.f32 %v7060_v13, %v10066_v8  ;;  %v10068_v37 = vld [vmem:[#allocation48_spill] sm:$0xff]  ;;  %v3461_v6 = vadd.f32 %v3460_v20, %v7131_v7 }
 0x6a6   :  { %10054 = vst [vmem:[#allocation185_spill] sm:$0xff] %v7300_v50  ;;  %10056 = vst [vmem:[#allocation225_spill] sm:$0xff] %v7304_v45  ;;  %v7316_v21 = vmul.f32 %v7054_v51, %v10061_v30  ;;  %v10064_v50 = vld [vmem:[#allocation40_spill] sm:$0xff]  ;;  %v7332_v2 = vmul.f32 %v7060_v13, %v10068_v37  ;;  %v10070_v30 = vld [vmem:[#allocation50_spill] sm:$0xff]  ;;  %vm1620_vm11 = vcmp.eq.s32.totalorder %v10123_v16, %v7320_v25 }
 0x6a7   :  { %10058 = vst [vmem:[#allocation165_spill] sm:$0xff] %v7308_v14  ;;  %10060 = vst [vmem:[#allocation208_spill] sm:$0xff] %v7312_v38  ;;  %v7324_v19 = vmul.f32 %v7054_v51, %v10064_v50  ;;  %v7337_v55 = vmul.f32 %v7066_v56, %v10070_v30  ;;  %v10072_v42 = vld [vmem:[#allocation52_spill] sm:$0xff]  ;;  %v10074_v51 = vld [vmem:[#allocation54_spill] sm:$0xff] }
 0x6a8   :  { %10062 = vst [vmem:[#allocation186_spill] sm:$0xff] %v7316_v21  ;;  %10067 = vst [vmem:[#allocation166_spill] sm:$0xff] %v7328_v10  ;;  %v7341_v34 = vmul.f32 %v7066_v56, %v10072_v42  ;;  %v7345_v50 = vmul.f32 %v7072_v3, %v10074_v51  ;;  %v10076_v8 = vld [vmem:[#allocation56_spill] sm:$0xff]  ;;  %v10078_v13 = vld [vmem:[#allocation58_spill] sm:$0xff]  ;;  %v3462_v42 = vadd.f32 %v3461_v6, %v7137_v24 }
 0x6a9   :  { %10065 = vst [vmem:[#allocation226_spill] sm:$0xff] %v7324_v19  ;;  %10069 = vst [vmem:[#allocation209_spill] sm:$0xff] %v7332_v2  ;;  %v7349_v10 = vmul.f32 %v7072_v3, %v10076_v8  ;;  %v7353_v37 = vmul.f32 %v7078_v39, %v10078_v13  ;;  %v10080_v7 = vld [vmem:[#allocation61_spill] sm:$0xff]  ;;  %v10082_v30 = vld [vmem:[#allocation64_spill] sm:$0xff] }
 0x6aa   :  { %10071 = vst [vmem:[#allocation187_spill] sm:$0xff] %v7337_v55  ;;  %10073 = vst [vmem:[#allocation227_spill] sm:$0xff] %v7341_v34  ;;  %v7357_v20 = vmul.f32 %v7078_v39, %v10080_v7  ;;  %v7361_v56 = vmul.f32 %v7084_v41, %v10082_v30  ;;  %v10084_v51 = vld [vmem:[#allocation67_spill] sm:$0xff]  ;;  %v10086_v3 = vld [vmem:[#allocation70_spill] sm:$0xff] }
 0x6ab   :  { %10075 = vst [vmem:[#allocation167_spill] sm:$0xff] %v7345_v50  ;;  %10077 = vst [vmem:[#allocation210_spill] sm:$0xff] %v7349_v10  ;;  %v7366_v50 = vmul.f32 %v7084_v41, %v10084_v51  ;;  %v7370_v8 = vmul.f32 %v7090_v28, %v10086_v3  ;;  %v10088_v13 = vld [vmem:[#allocation72_spill] sm:$0xff]  ;;  %v10090_v39 = vld [vmem:[#allocation26_spill] sm:$0xff]  ;;  %v3463_v51 = vadd.f32 %v3462_v42, %v7143_v35 }
 0x6ac   :  { %10079 = vst [vmem:[#allocation189_spill] sm:$0xff] %v7353_v37  ;;  %10081 = vst [vmem:[#allocation228_spill] sm:$0xff] %v7357_v20  ;;  %v7374_v37 = vmul.f32 %v7090_v28, %v10088_v13  ;;  %vm1593_vm3 = vcmp.eq.s32.totalorder %v10090_v39, %v7320_v25  ;;  %v10091_v30 = vld [vmem:[#allocation32_spill] sm:$0xff]  ;;  %v10092_v7 = vld [vmem:[#allocation75_spill] sm:$0xff] }
 0x6ad   :  { %10083 = vst [vmem:[#allocation168_spill] sm:$0xff] %v7361_v56  ;;  %10085 = vst [vmem:[#allocation211_spill] sm:$0xff] %v7366_v50  ;;  %vm1594_vm4 = vcmp.eq.s32.totalorder %v10091_v30, %v7320_v25  ;;  %v7382_v24 = vmul.f32 %v7096_v0, %v10092_v7  ;;  %v10094_v6 = vld [vmem:[#allocation78_spill] sm:$0xff]  ;;  %v10097_v28 = vld [vmem:[#allocation111_spill] sm:$0xff]  ;;  %v3464_v42 = vadd.f32 %v3463_v51, %v7149_v61  ;;  %v4169_v26 = vsel %vm1593_vm3, 1.0, %v10125_v15 }
 0x6ae   :  { %10087 = vst [vmem:[#allocation190_spill] sm:$0xff] %v7370_v8  ;;  %10089 = vst [vmem:[#allocation229_spill] sm:$0xff] %v7374_v37  ;;  %v7386_v41 = vmul.f32 %v7096_v0, %v10094_v6  ;;  %v10096_v3 = vld [vmem:[#allocation110_spill] sm:$0xff]  ;;  %vm1596_vm12 = vcmp.eq.s32.totalorder %v10097_v28, %v7320_v25  ;;  %v10098_v13 = vld [vmem:[#allocation112_spill] sm:$0xff] }
 0x6af   :  { %10093 = vst [vmem:[#allocation169_spill] sm:$0xff] %v7382_v24  ;;  %vm1595_vm2 = vcmp.eq.s32.totalorder %v10096_v3, %v7320_v25  ;;  %vm1597_vm8 = vcmp.eq.s32.totalorder %v10098_v13, %v7320_v25  ;;  %v10099_v37 = vld [vmem:[#allocation114_spill] sm:$0xff]  ;;  %v10100_v7 = vld [vmem:[#allocation116_spill] sm:$0xff]  ;;  %v10108_v56 = vld [vmem:[#allocation135_spill] sm:$0xff]  ;;  %v4172_v44 = vsel %vm1596_vm12, 1.0, %v10125_v15 }
 0x6b0   :  { %10095 = vst [vmem:[#allocation212_spill] sm:$0xff] %v7386_v41  ;;  %vm1598_vm6 = vcmp.eq.s32.totalorder %v10099_v37, %v7320_v25  ;;  %vm1599_vm13 = vcmp.eq.s32.totalorder %v10100_v7, %v7320_v25  ;;  %v10101_v0 = vld [vmem:[#allocation118_spill] sm:$0xff]  ;;  %v10102_v6 = vld [vmem:[#allocation120_spill] sm:$0xff]  ;;  %v10110_v10 = vld [vmem:[#allocation137_spill] sm:$0xff] }
 0x6b1   :  { %vm1600_vm5 = vcmp.eq.s32.totalorder %v10101_v0, %v7320_v25  ;;  %vm1601_vm9 = vcmp.eq.s32.totalorder %v10102_v6, %v7320_v25  ;;  %v10103_v41 = vld [vmem:[#allocation122_spill] sm:$0xff]  ;;  %v10104_v24 = vld [vmem:[#allocation124_spill] sm:$0xff]  ;;  %v10112_v61 = vld [vmem:[#allocation139_spill] sm:$0xff]  ;;  %v7477_v3 = vsel %vm1599_vm13, 1.0, %v10125_v15 }
 0x6b2   :  { %v10105_v35 = vld [vmem:[#allocation126_spill] sm:$0xff]  ;;  %v10106_v8 = vld [vmem:[#allocation128_spill] sm:$0xff]  ;;  %v10115_v19 = vld [vmem:[#allocation143_spill] sm:$0xff]  ;;  %v7483_v28 = vsel %vm1600_vm5, 1.0, %v10125_v15  ;;  %v7490_v37 = vsel %vm1601_vm9, 1.0, %v10125_v15  ;;  %vm10127_vm3 = vcmp.eq.s32.totalorder %v10103_v41, %v7320_v25  ;;  %vm10139_vm5 = vcmp.eq.s32.totalorder %v10110_v10, %v7320_v25 }
 0x6b3   :  { %v10107_v50 = vld [vmem:[#allocation132_spill] sm:$0xff]  ;;  %v10111_v34 = vld [vmem:[#allocation138_spill] sm:$0xff]  ;;  %v10116_v21 = vld [vmem:[#allocation113_spill] sm:$0xff]  ;;  %v7496_v7 = vsel %vm10127_vm3, 1.0, %v10125_v15  ;;  %vm10131_vm12 = vcmp.eq.s32.totalorder %v10106_v8, %v7320_v25  ;;  %vm10143_vm3 = vcmp.eq.s32.totalorder %v10112_v61, %v7320_v25 }
 0x6b4   :  { %v10109_v20 = vld [vmem:[#allocation136_spill] sm:$0xff]  ;;  %v10114_v2 = vld [vmem:[#allocation142_spill] sm:$0xff]  ;;  %v10117_v38 = vld [vmem:[#allocation115_spill] sm:$0xff]  ;;  %vm10141_vm9 = vcmp.eq.s32.totalorder %v10111_v34, %v7320_v25 }
 0x6b5   :  { %v10113_v51 = vld [vmem:[#allocation156_spill] sm:$0xff]  ;;  %vm1612_vm10 = vcmp.eq.s32.totalorder %v10114_v2, %v7320_v25  ;;  %v10118_v14 = vld [vmem:[#allocation117_spill] sm:$0xff]  ;;  %v10119_v45 = vld [vmem:[#allocation119_spill] sm:$0xff]  ;;  %vm10137_vm13 = vcmp.eq.s32.totalorder %v10109_v20, %v7320_v25 }
 0x6b6   :  { %v3465_v55 = vadd.f32 %v3464_v42, %v10113_v51  ;;  %vm1616_vm7 = vcmp.eq.s32.totalorder %v10118_v14, %v7320_v25  ;;  %vm1617_vm1 = vcmp.eq.s32.totalorder %v10119_v45, %v7320_v25  ;;  %v10120_v42 = vld [vmem:[#allocation121_spill] sm:$0xff]  ;;  %v10121_v51 = vld [vmem:[#allocation218_spill] sm:$0xff]  ;;  %v10122_v17 = vld [vmem:[#allocation123_spill] sm:$0xff]  ;;  %v7533_v8 = vsel %vm10137_vm13, 1.0, %v10125_v15 }
 0x6b7   :  { %vm1618_vm15 = vcmp.eq.s32.totalorder %v10120_v42, %v7320_v25  ;;  %vm1619_vm0 = vcmp.eq.s32.totalorder %v10122_v17, %v7320_v25  ;;  %v10124_v4 = vld [vmem:[#allocation127_spill] sm:$0xff]  ;;  %10138 = vst [vmem:[#allocation192_spill] sm:$0xff] %v7533_v8  ;;  %v10156_v39 = vld [vmem:[#allocation194_spill] sm:$0xff]  ;;  %v10167_v17 = vld [vmem:[#allocation152_spill] sm:$0xff] }
 0x6b8   :  { %v3466_v22 = vadd.f32 %v3465_v55, %v10121_v51  ;;  %vm1621_vm14 = vcmp.eq.s32.totalorder %v10124_v4, %v7320_v25  ;;  %v4170_v55 = vsel %vm1594_vm4, 1.0, %v10125_v15  ;;  %v4171_v51 = vsel %vm1595_vm2, 1.0, %v10125_v15  ;;  %v10126_v13 = vld [vmem:[#allocation159_spill] sm:$0xff]  ;;  %v10169_v16 = vld [vmem:[#allocation157_spill] sm:$0xff] }
 0x6b9   :  { %vm10128_vm4 = vcmp.eq.s32.totalorder %v10104_v24, %v7320_v25  ;;  %vm10129_vm2 = vcmp.eq.s32.totalorder %v10105_v35, %v7320_v25  ;;  %v7593_v20 = vsel %vm1618_vm15, 1.0, %v10125_v15  ;;  %v10160_v45 = vld [vmem:[#allocation35_spill] sm:$0xff]  ;;  %v7607_v42 = vsel %vm1619_vm0, 1.0, %v10125_v15 }
 0x6ba   :  { %v3467_v53 = vadd.f32 %v3466_v22, %v7167_v5  ;;  %v4173_v22 = vsel %vm1597_vm8, 1.0, %v10125_v15  ;;  %v7471_v5 = vsel %vm1598_vm6, 1.0, %v10125_v15  ;;  %v7502_v0 = vsel %vm10128_vm4, 1.0, %v10125_v15  ;;  %10154 = vst [vmem:[#allocation236_spill] sm:$0xff] %v7593_v20  ;;  %10162 = vst [vmem:[#allocation215_spill] sm:$0xff] %v7607_v42  ;;  %v10171_v8 = vld [vmem:[#allocation39_spill] sm:$0xff] }
 0x6bb   :  { %vm10133_vm8 = vcmp.eq.s32.totalorder %v10107_v50, %v7320_v25  ;;  %vm10135_vm6 = vcmp.eq.s32.totalorder %v10108_v56, %v7320_v25  ;;  %v7539_v50 = vsel %vm10139_vm5, 1.0, %v10125_v15  ;;  %v7545_v56 = vsel %vm10141_vm9, 1.0, %v10125_v15 }
 0x6bc   :  { %v3468_v30 = vadd.f32 %v3467_v53, %v10126_v13  ;;  %v7508_v53 = vsel %vm10129_vm2, 1.0, %v10125_v15  ;;  %v7514_v13 = vsel %vm10131_vm12, 1.0, %v10125_v15  ;;  %v7520_v41 = vsel %vm10133_vm8, 1.0, %v10125_v15  ;;  %10140 = vst [vmem:[#allocation231_spill] sm:$0xff] %v7539_v50  ;;  %10142 = vst [vmem:[#allocation172_spill] sm:$0xff] %v7545_v56 }
 0x6bd   :  { %10130 = vst [vmem:[#allocation191_spill] sm:$0xff] %v7508_v53  ;;  %10132 = vst [vmem:[#allocation230_spill] sm:$0xff] %v7514_v13  ;;  %v7526_v24 = vsel %vm10135_vm6, 1.0, %v10125_v15  ;;  %vm10146_vm4 = vcmp.eq.s32.totalorder %v10115_v19, %v7320_v25  ;;  %vm10148_vm2 = vcmp.eq.s32.totalorder %v10116_v21, %v7320_v25  ;;  %vm10150_vm12 = vcmp.eq.s32.totalorder %v10117_v38, %v7320_v25  ;;  %v10155_v38 = vld [vmem:[#allocation141_spill] sm:$0xff] }
 0x6be   :  { %10134 = vst [vmem:[#allocation171_spill] sm:$0xff] %v7520_v41  ;;  %10136 = vst [vmem:[#allocation213_spill] sm:$0xff] %v7526_v24  ;;  %v3469_v35 = vadd.f32 %v3468_v30, %v7178_v31  ;;  %v7551_v31 = vsel %vm10143_vm3, 1.0, %v10125_v15  ;;  %v7557_v30 = vsel %vm1612_vm10, 1.0, %v10125_v15  ;;  %v7563_v10 = vsel %vm10146_vm4, 1.0, %v10125_v15 }
 0x6bf   :  { %10144 = vst [vmem:[#allocation214_spill] sm:$0xff] %v7551_v31  ;;  %10145 = vst [vmem:[#allocation193_spill] sm:$0xff] %v7557_v30  ;;  %v7569_v34 = vsel %vm10148_vm2, 1.0, %v10125_v15  ;;  %v7575_v2 = vsel %vm10150_vm12, 1.0, %v10125_v15  ;;  %v7581_v19 = vsel %vm1616_vm7, 1.0, %v10125_v15  ;;  %v7587_v21 = vsel %vm1617_vm1, 1.0, %v10125_v15 }
 0x6c0   :  { %10147 = vst [vmem:[#allocation232_spill] sm:$0xff] %v7563_v10  ;;  %10149 = vst [vmem:[#allocation173_spill] sm:$0xff] %v7569_v34  ;;  %v3470_v61 = vrot.slane %v3469_v35, 4  ;;  %v1689_v6 = vmul.f32 %v10155_v38, %v4169_v26  ;;  %v10157_v34 = vld [vmem:[#allocation28_spill] sm:$0xff]  ;;  %v10159_v31 = vld [vmem:[#allocation33_spill] sm:$0xff]  ;;  %v1761_v50 = vmul.f32 %v4170_v55, %v10160_v45  ;;  %v7613_v38 = vsel %vm1620_vm11, 1.0, %v10125_v15 }
 0x6c1   :  { %10151 = vst [vmem:[#allocation233_spill] sm:$0xff] %v7575_v2  ;;  %10152 = vst [vmem:[#allocation234_spill] sm:$0xff] %v7581_v19  ;;  %v1690_v2 = vmul.f32 %v10156_v39, %v4170_v55  ;;  %v1758_v14 = vmul.f32 %v4169_v26, %v10157_v34  ;;  %v10158_v19 = vld [vmem:[#allocation30_spill] sm:$0xff]  ;;  %v1760_v56 = vmul.f32 %v4170_v55, %v10159_v31  ;;  %v10165_v39 = vld [vmem:[#allocation148_spill] sm:$0xff]  ;;  %vm10317_vm15 = vcmask 1040384  }
 0x6c2   :  { %10153 = vst [vmem:[#allocation235_spill] sm:$0xff] %v7587_v21  ;;  %v3471_v10 = vadd.f32 %v3470_v61, %v3469_v35  ;;  %v1759_v30 = vmul.f32 %v4169_v26, %v10158_v19  ;;  %v10161_v21 = vld [vmem:[#allocation129_spill] sm:$0xff]  ;;  %10163 = vst [vmem:[#allocation195_spill] sm:$0xff] %v7613_v38  ;;  %v7619_v26 = vsel %vm1621_vm14, 1.0, %v10125_v15  ;;  %v1691_v35 = vmul.f32 %v10165_v39, %v4171_v51  ;;  %v10166_v55 = vld [vmem:[#allocation150_spill] sm:$0xff] }
 0x6c3   :  { %vm1622_vm1 = vcmp.eq.s32.totalorder %v10161_v21, %v7320_v25  ;;  %10164 = vst [vmem:[#allocation237_spill] sm:$0xff] %v7619_v26  ;;  %v1692_v45 = vmul.f32 %v10166_v55, %v4172_v44  ;;  %v1693_v31 = vmul.f32 %v10167_v17, %v4173_v22  ;;  %v10168_v19 = vld [vmem:[#allocation154_spill] sm:$0xff]  ;;  %v1695_v42 = vmul.f32 %v10169_v16, %v7477_v3  ;;  %v10170_v38 = vld [vmem:[#allocation37_spill] sm:$0xff]  ;;  %v10172_v39 = vld [vmem:[#allocation180_spill] sm:$0xff] }
 0x6c4   :  { %v3472_v61 = vrot.slane %v3471_v10, 2  ;;  %v1694_v34 = vmul.f32 %v10168_v19, %v7471_v5  ;;  %v1762_v20 = vmul.f32 %v4171_v51, %v10170_v38  ;;  %v1763_v24 = vmul.f32 %v4171_v51, %v10171_v8  ;;  %v10173_v55 = vld [vmem:[#allocation43_spill] sm:$0xff]  ;;  %v10175_v19 = vld [vmem:[#allocation181_spill] sm:$0xff]  ;;  %vm10318_vm10 = vmmov %vm10317_vm15 }
 0x6c5   :  { %v1721_v4 = vadd.f32 %v1690_v2, %v1689_v6  ;;  %v1822_v26 = vadd.f32 %v1760_v56, %v1758_v14  ;;  %v1859_v13 = vadd.f32 %v1761_v50, %v1759_v30  ;;  %v3546_v18 = vadd.f32 %v10172_v39, %v7188_v59  ;;  %v10174_v17 = vld [vmem:[#allocation47_spill] sm:$0xff]  ;;  %v10176_v2 = vld [vmem:[#allocation49_spill] sm:$0xff]  ;;  %vm10323_vm0 = vmmov %vm10318_vm10 }
 0x6c6   :  { %v3473_v41 = vadd.f32 %v3472_v61, %v3471_v10  ;;  %v1764_v53 = vmul.f32 %v4172_v44, %v10173_v55  ;;  %v1765_v48 = vmul.f32 %v4172_v44, %v10174_v17  ;;  %v3583_v12 = vadd.f32 %v10175_v19, %v7192_v29  ;;  %v10177_v14 = vld [vmem:[#allocation51_spill] sm:$0xff]  ;;  %vm10324_vm11 = vmmov %vm10323_vm0 }
 0x6c7   :  { %v1722_v57 = vadd.f32 %v1721_v4, %v1691_v35  ;;  %v1823_v54 = vadd.f32 %v1822_v26, %v1762_v20  ;;  %v1860_v38 = vadd.f32 %v1859_v13, %v1763_v24  ;;  %v3547_v51 = vadd.f32 %v3546_v18, %v7196_v58  ;;  %v10178_v4 = vld [vmem:[#allocation53_spill] sm:$0xff]  ;;  %v10179_v35 = vld [vmem:[#allocation55_spill] sm:$0xff]  ;;  %vm10327_vm13 = vmmov %vm10323_vm0 }
 0x6c8   :  { %v3474_v16 = vrot.slane %v3473_v41, 1  ;;  %v1766_v10 = vmul.f32 %v4173_v22, %v10176_v2  ;;  %v1767_v50 = vmul.f32 %v4173_v22, %v10177_v14  ;;  %v3584_v59 = vadd.f32 %v3583_v12, %v7200_v27  ;;  %v4501_v18 = vld [vmem:[#allocation2 + $0x10] sm:$0xff]  ;;  %v4502_v22 = vld [vmem:[#allocation2 + $0x18] sm:$0xff]  ;;  %vm10328_vm5 = vmmov %vm10323_vm0 }
 0x6c9   :  { %v1723_v56 = vadd.f32 %v1722_v57, %v1692_v45  ;;  %v1824_v30 = vadd.f32 %v1823_v54, %v1764_v53  ;;  %v1861_v61 = vadd.f32 %v1860_v38, %v1765_v48  ;;  %v3548_v44 = vadd.f32 %v3547_v51, %v7204_v47  ;;  %v10180_v27 = vld [vmem:[#allocation57_spill] sm:$0xff]  ;;  %v10182_v26 = vld [vmem:[#allocation163_spill] sm:$0xff]  ;;  %vm10329_vm2 = vmmov %vm10323_vm0 }
 0x6ca   :  { %v3475_v6 = vadd.f32 %v3474_v16, %v3473_v41  ;;  %v1768_v29 = vmul.f32 %v7471_v5, %v10178_v4  ;;  %v1769_v20 = vmul.f32 %v7471_v5, %v10179_v35  ;;  %v3585_v58 = vadd.f32 %v3584_v59, %v7208_v63  ;;  %v10181_v5 = vld [vmem:[#allocation59_spill] sm:$0xff]  ;;  %vm10330_vm12 = vmmov %vm10323_vm0 }
 0x6cb   :  { %v1724_v24 = vadd.f32 %v1723_v56, %v1693_v31  ;;  %v1825_v45 = vadd.f32 %v1824_v30, %v1766_v10  ;;  %v1862_v12 = vadd.f32 %v1861_v61, %v1767_v50  ;;  %v1770_v48 = vmul.f32 %v7477_v3, %v10180_v27 }
 0x6cc   :  { %v3614_v13 = vmul.f32 %v4501_v18, %v3475_v6  ;;  %v3615_v57 = vmul.f32 %v4502_v22, %v3475_v6  ;;  %v3549_v47 = vadd.f32 %v3548_v44, %v7212_v1  ;;  %v3586_v41 = vadd.f32 %v3585_v58, %v7216_v52  ;;  %v10186_v22 = vld [vmem:[#allocation160_spill] sm:$0xff] }
 0x6cd   :  { %v1725_v54 = vadd.f32 %v1724_v24, %v1694_v34  ;;  %v7654_v63 = vsel %vm1622_vm1, 1.0, %v10125_v15  ;;  %v1771_v53 = vmul.f32 %v7477_v3, %v10181_v5  ;;  %v1826_v31 = vadd.f32 %v1825_v45, %v1768_v29  ;;  %v10183_v3 = vld [vmem:[#allocation170_spill] sm:$0xff]  ;;  %v10187_v45 = vld [vmem:[#allocation204_spill] sm:$0xff] }
 0x6ce   :  { %3616 = vadd.xlane.f32.xlu0 %v3614_v13  ;;  %3618 = vadd.xlane.f32.xlu1 %v3615_v57  ;;  %v1863_v38 = vadd.f32 %v1862_v12, %v1769_v20  ;;  %v1696_v34 = vmul.f32 %v10182_v26, %v7483_v28  ;;  %v3550_v1 = vadd.f32 %v3549_v47, %v7220_v11  ;;  %v10192_v26 = vld [vmem:[#allocation182_spill] sm:$0xff] }
 0x6cf   :  { %v1726_v39 = vadd.f32 %v1725_v54, %v1695_v42  ;;  %v3587_v52 = vadd.f32 %v3586_v41, %v7224_v23  ;;  %v1772_v19 = vmul.f32 %v7483_v28, %v9792_v46  ;;  %v1773_v16 = vmul.f32 %v7483_v28, %v9654_v32  ;;  %v10184_v28 = vld [vmem:[#allocation196_spill] sm:$0xff] }
 0x6d0   :  { %v1827_v51 = vadd.f32 %v1826_v31, %v1770_v48  ;;  %v1864_v10 = vadd.f32 %v1863_v38, %v1771_v53  ;;  %v1697_v50 = vmul.f32 %v10183_v3, %v7490_v37  ;;  %v3551_v59 = vadd.f32 %v3550_v1, %v7228_v9  ;;  %v10188_v48 = vld [vmem:[#allocation69_spill] sm:$0xff]  ;;  %v10190_v53 = vld [vmem:[#allocation191_spill] sm:$0xff] }
 0x6d1   :  { %v1727_v56 = vadd.f32 %v1726_v39, %v1696_v34  ;;  %v3588_v42 = vadd.f32 %v3587_v52, %v7232_v43  ;;  %v1774_v11 = vmul.f32 %v7490_v37, %v9797_v33  ;;  %v1775_v23 = vmul.f32 %v7490_v37, %v9659_v62  ;;  %v10185_v37 = vld [vmem:[#allocation174_spill] sm:$0xff]  ;;  %v10193_v39 = vld [vmem:[#allocation223_spill] sm:$0xff] }
 0x6d2   :  { %v1828_v6 = vadd.f32 %v1827_v51, %v1772_v19  ;;  %v1865_v30 = vadd.f32 %v1864_v10, %v1773_v16  ;;  %v1698_v61 = vmul.f32 %v10184_v28, %v7496_v7  ;;  %v3552_v29 = vadd.f32 %v3551_v59, %v7236_v49  ;;  %v10194_v52 = vld [vmem:[#allocation27_spill] sm:$0xff]  ;;  %v10195_v16 = vld [vmem:[#allocation73_spill] sm:$0xff] }
 0x6d3   :  { %v1728_v44 = vadd.f32 %v1727_v56, %v1697_v50  ;;  %v3589_v20 = vadd.f32 %v3588_v42, %v7240_v40  ;;  %v1776_v9 = vmul.f32 %v7496_v7, %v9800_v60  ;;  %v1777_v43 = vmul.f32 %v7496_v7, %v9803_v36  ;;  %v10189_v40 = vld [vmem:[#allocation71_spill] sm:$0xff]  ;;  %v10191_v7 = vld [vmem:[#allocation198_spill] sm:$0xff]  ;;  %v10198_v42 = vld [vmem:[#allocation161_spill] sm:$0xff] }
 0x6d4   :  { %v1829_v24 = vadd.f32 %v1828_v6, %v1774_v11  ;;  %v1866_v58 = vadd.f32 %v1865_v30, %v1775_v23  ;;  %v1699_v18 = vmul.f32 %v10185_v37, %v7502_v0  ;;  %v3553_v57 = vadd.f32 %v3552_v29, %v10186_v22  ;;  %v10196_v50 = vld [vmem:[#allocation230_spill] sm:$0xff]  ;;  %v10199_v23 = vld [vmem:[#allocation205_spill] sm:$0xff]  ;;  %v10204_v37 = vld [vmem:[#allocation183_spill] sm:$0xff] }
 0x6d5   :  { %v1729_v13 = vadd.f32 %v1728_v44, %v1698_v61  ;;  %v3590_v12 = vadd.f32 %v3589_v20, %v10187_v45  ;;  %v1778_v49 = vmul.f32 %v7502_v0, %v10188_v48  ;;  %v1779_v54 = vmul.f32 %v7502_v0, %v10189_v40  ;;  %v10197_v0 = vld [vmem:[#allocation176_spill] sm:$0xff]  ;;  %v10200_v30 = vld [vmem:[#allocation74_spill] sm:$0xff] }
 0x6d6   :  { %v1830_v47 = vadd.f32 %v1829_v24, %v1776_v9  ;;  %v1867_v41 = vadd.f32 %v1866_v58, %v1777_v43  ;;  %v1700_v31 = vmul.f32 %v10191_v7, %v10190_v53  ;;  %v3554_v34 = vadd.f32 %v3553_v57, %v10192_v26  ;;  %v10201_v61 = vld [vmem:[#allocation76_spill] sm:$0xff]  ;;  %v10202_v9 = vld [vmem:[#allocation171_spill] sm:$0xff]  ;;  %v10203_v43 = vld [vmem:[#allocation177_spill] sm:$0xff] }
 0x6d7   :  { %v1730_v38 = vadd.f32 %v1729_v13, %v1699_v18  ;;  %v3591_v1 = vadd.f32 %v3590_v12, %v10193_v39  ;;  %v1780_v19 = vmul.f32 %v10190_v53, %v10194_v52  ;;  %v1781_v51 = vmul.f32 %v10190_v53, %v10195_v16  ;;  %v10205_v13 = vld [vmem:[#allocation224_spill] sm:$0xff]  ;;  %v10206_v57 = vld [vmem:[#allocation77_spill] sm:$0xff]  ;;  %v10207_v12 = vld [vmem:[#allocation79_spill] sm:$0xff] }
 0x6d8   :  { %v1831_v10 = vadd.f32 %v1830_v47, %v1778_v49  ;;  %v1868_v3 = vadd.f32 %v1867_v41, %v1779_v54  ;;  %v1701_v56 = vmul.f32 %v10197_v0, %v10196_v50  ;;  %v3555_v11 = vadd.f32 %v3554_v34, %v10198_v42  ;;  %v10208_v41 = vld [vmem:[#allocation213_spill] sm:$0xff]  ;;  %v10209_v53 = vld [vmem:[#allocation178_spill] sm:$0xff]  ;;  %v10214_v0 = vld [vmem:[#allocation192_spill] sm:$0xff] }
 0x6d9   :  { %v1731_v59 = vadd.f32 %v1730_v38, %v1700_v31  ;;  %v3592_v6 = vadd.f32 %v3591_v1, %v10199_v23  ;;  %v1782_v28 = vmul.f32 %v10196_v50, %v10200_v30  ;;  %v1783_v44 = vmul.f32 %v10196_v50, %v10201_v61  ;;  %v10210_v38 = vld [vmem:[#allocation162_spill] sm:$0xff]  ;;  %v10212_v1 = vld [vmem:[#allocation80_spill] sm:$0xff] }
 0x6da   :  { %v1832_v29 = vadd.f32 %v1831_v10, %v1780_v19  ;;  %v1869_v20 = vadd.f32 %v1868_v3, %v1781_v51  ;;  %v1702_v24 = vmul.f32 %v10203_v43, %v10202_v9  ;;  %v3556_v18 = vadd.f32 %v3555_v11, %v10204_v37  ;;  %v10211_v34 = vld [vmem:[#allocation206_spill] sm:$0xff]  ;;  %v10216_v11 = vld [vmem:[#allocation184_spill] sm:$0xff] }
 0x6db   :  { %v1732_v58 = vadd.f32 %v1731_v59, %v1701_v56  ;;  %v3593_v22 = vadd.f32 %v3592_v6, %v10205_v13  ;;  %v1784_v45 = vmul.f32 %v10202_v9, %v10206_v57  ;;  %v1785_v49 = vmul.f32 %v10202_v9, %v10207_v12  ;;  %v10213_v51 = vld [vmem:[#allocation82_spill] sm:$0xff]  ;;  %v10217_v6 = vld [vmem:[#allocation188_spill] sm:$0xff] }
 0x6dc   :  { %v1833_v54 = vadd.f32 %v1832_v29, %v1782_v28  ;;  %v1870_v47 = vadd.f32 %v1869_v20, %v1783_v44  ;;  %v1703_v7 = vmul.f32 %v10209_v53, %v10208_v41  ;;  %v3557_v26 = vadd.f32 %v3556_v18, %v10210_v38  ;;  %v10215_v56 = vld [vmem:[#allocation202_spill] sm:$0xff]  ;;  %v10218_v44 = vld [vmem:[#allocation84_spill] sm:$0xff]  ;;  %v10219_v20 = vld [vmem:[#allocation85_spill] sm:$0xff] }
 0x6dd   :  { %v1733_v31 = vadd.f32 %v1732_v58, %v1702_v24  ;;  %v3594_v39 = vadd.f32 %v3593_v22, %v10211_v34  ;;  %v1786_v19 = vmul.f32 %v10208_v41, %v10212_v1  ;;  %v1787_v10 = vmul.f32 %v10208_v41, %v10213_v51  ;;  %v10220_v58 = vld [vmem:[#allocation231_spill] sm:$0xff]  ;;  %v10221_v37 = vld [vmem:[#allocation130_spill] sm:$0xff]  ;;  %v10222_v22 = vld [vmem:[#allocation164_spill] sm:$0xff] }
 0x6de   :  { %v1834_v3 = vadd.f32 %v1833_v54, %v1784_v45  ;;  %v1871_v50 = vadd.f32 %v1870_v47, %v1785_v49  ;;  %v1704_v59 = vmul.f32 %v10215_v56, %v10214_v0  ;;  %v3558_v23 = vadd.f32 %v3557_v26, %v10216_v11  ;;  %v10223_v49 = vld [vmem:[#allocation207_spill] sm:$0xff]  ;;  %v10225_v53 = vld [vmem:[#allocation88_spill] sm:$0xff]  ;;  %v10230_v56 = vld [vmem:[#allocation90_spill] sm:$0xff] }
 0x6df   :  { %v1734_v42 = vadd.f32 %v1733_v31, %v1703_v7  ;;  %v3595_v28 = vadd.f32 %v3594_v39, %v10217_v6  ;;  %v1788_v29 = vmul.f32 %v10214_v0, %v10218_v44  ;;  %v1789_v9 = vmul.f32 %v10214_v0, %v10219_v20  ;;  %v10224_v47 = vld [vmem:[#allocation87_spill] sm:$0xff]  ;;  %v10226_v26 = vld [vmem:[#allocation172_spill] sm:$0xff] }
 0x6e0   :  { %v1835_v43 = vadd.f32 %v1834_v3, %v1786_v19  ;;  %v1872_v24 = vadd.f32 %v1871_v50, %v1787_v10  ;;  %v1705_v18 = vmul.f32 %v10221_v37, %v10220_v58  ;;  %v3559_v45 = vadd.f32 %v3558_v23, %v10222_v22  ;;  %v10227_v34 = vld [vmem:[#allocation131_spill] sm:$0xff]  ;;  %v10228_v10 = vld [vmem:[#allocation185_spill] sm:$0xff]  ;;  %v10235_v37 = vld [vmem:[#allocation208_spill] sm:$0xff] }
 0x6e1   :  { %v1735_v13 = vadd.f32 %v1734_v42, %v1704_v59  ;;  %v3596_v54 = vadd.f32 %v3595_v28, %v10223_v49  ;;  %v1790_v41 = vmul.f32 %v10220_v58, %v10224_v47  ;;  %v1791_v7 = vmul.f32 %v10220_v58, %v10225_v53  ;;  %v10229_v50 = vld [vmem:[#allocation225_spill] sm:$0xff]  ;;  %v10231_v42 = vld [vmem:[#allocation91_spill] sm:$0xff]  ;;  %v10232_v28 = vld [vmem:[#allocation214_spill] sm:$0xff] }
 0x6e2   :  { %v1836_v31 = vadd.f32 %v1835_v43, %v1788_v29  ;;  %v1873_v38 = vadd.f32 %v1872_v24, %v1789_v9  ;;  %v1706_v39 = vmul.f32 %v10227_v34, %v10226_v26  ;;  %v3560_v3 = vadd.f32 %v3559_v45, %v10228_v10  ;;  %v10233_v58 = vld [vmem:[#allocation144_spill] sm:$0xff]  ;;  %v10234_v43 = vld [vmem:[#allocation165_spill] sm:$0xff]  ;;  %v10237_v45 = vld [vmem:[#allocation94_spill] sm:$0xff] }
 0x6e3   :  { %v1736_v19 = vadd.f32 %v1735_v13, %v1705_v18  ;;  %v3597_v0 = vadd.f32 %v3596_v54, %v10229_v50  ;;  %v1792_v59 = vmul.f32 %v10226_v26, %v10230_v56  ;;  %v1793_v11 = vmul.f32 %v10226_v26, %v10231_v42  ;;  %v10236_v13 = vld [vmem:[#allocation93_spill] sm:$0xff]  ;;  %v10239_v26 = vld [vmem:[#allocation147_spill] sm:$0xff]  ;;  %v10241_v50 = vld [vmem:[#allocation226_spill] sm:$0xff] }
 0x6e4   :  { %v1837_v23 = vadd.f32 %v1836_v31, %v1790_v41  ;;  %v1874_v6 = vadd.f32 %v1873_v38, %v1791_v7  ;;  %v1707_v29 = vmul.f32 %v10233_v58, %v10232_v28  ;;  %v3561_v24 = vadd.f32 %v3560_v3, %v10234_v43  ;;  %v10238_v10 = vld [vmem:[#allocation193_spill] sm:$0xff]  ;;  %v10240_v31 = vld [vmem:[#allocation186_spill] sm:$0xff]  ;;  %v10269_v42 = vld [vmem:[#allocation235_spill] sm:$0xff] }
 0x6e5   :  { %v1737_v9 = vadd.f32 %v1736_v19, %v1706_v39  ;;  %v3598_v18 = vadd.f32 %v3597_v0, %v10235_v37  ;;  %v1794_v22 = vmul.f32 %v10232_v28, %v10236_v13  ;;  %v1795_v49 = vmul.f32 %v10232_v28, %v10237_v45  ;;  %v10242_v19 = vld [vmem:[#allocation96_spill] sm:$0xff]  ;;  %v10243_v0 = vld [vmem:[#allocation98_spill] sm:$0xff]  ;;  %v10245_v28 = vld [vmem:[#allocation149_spill] sm:$0xff] }
 0x6e6   :  { %v1838_v54 = vadd.f32 %v1837_v23, %v1792_v59  ;;  %v1875_v34 = vadd.f32 %v1874_v6, %v1793_v11  ;;  %v1708_v41 = vmul.f32 %v10239_v26, %v10238_v10  ;;  %v3562_v38 = vadd.f32 %v3561_v24, %v10240_v31  ;;  %v10244_v13 = vld [vmem:[#allocation232_spill] sm:$0xff]  ;;  %v10246_v23 = vld [vmem:[#allocation166_spill] sm:$0xff]  ;;  %v10247_v26 = vld [vmem:[#allocation209_spill] sm:$0xff] }
 0x6e7   :  { %v1738_v7 = vadd.f32 %v1737_v9, %v1707_v29  ;;  %v3599_v39 = vadd.f32 %v3598_v18, %v10241_v50  ;;  %v1796_v3 = vmul.f32 %v10238_v10, %v10242_v19  ;;  %v1797_v58 = vmul.f32 %v10238_v10, %v10243_v0  ;;  %v10248_v9 = vld [vmem:[#allocation99_spill] sm:$0xff]  ;;  %v10249_v18 = vld [vmem:[#allocation101_spill] sm:$0xff]  ;;  %v10251_v10 = vld [vmem:[#allocation146_spill] sm:$0xff] }
 0x6e8   :  { %v1839_v43 = vadd.f32 %v1838_v54, %v1794_v22  ;;  %v1876_v37 = vadd.f32 %v1875_v34, %v1795_v49  ;;  %v1709_v59 = vmul.f32 %v10245_v28, %v10244_v13  ;;  %v3563_v6 = vadd.f32 %v3562_v38, %v10246_v23  ;;  %v10250_v45 = vld [vmem:[#allocation173_spill] sm:$0xff]  ;;  %v10252_v54 = vld [vmem:[#allocation187_spill] sm:$0xff] }
 0x6e9   :  { %v1739_v11 = vadd.f32 %v1738_v7, %v1708_v41  ;;  %v3600_v29 = vadd.f32 %v3599_v39, %v10247_v26  ;;  %v1798_v24 = vmul.f32 %v10244_v13, %v10248_v9  ;;  %v1799_v31 = vmul.f32 %v10244_v13, %v10249_v18  ;;  %v10253_v28 = vld [vmem:[#allocation227_spill] sm:$0xff]  ;;  %v10254_v7 = vld [vmem:[#allocation29_spill] sm:$0xff] }
 0x6ea   :  { %v1840_v50 = vadd.f32 %v1839_v43, %v1796_v3  ;;  %v1877_v19 = vadd.f32 %v1876_v37, %v1797_v58  ;;  %v1710_v22 = vmul.f32 %v10251_v10, %v10250_v45  ;;  %v3564_v34 = vadd.f32 %v3563_v6, %v10252_v54  ;;  %v10255_v39 = vld [vmem:[#allocation31_spill] sm:$0xff]  ;;  %v10256_v0 = vld [vmem:[#allocation233_spill] sm:$0xff]  ;;  %v10259_v10 = vld [vmem:[#allocation210_spill] sm:$0xff] }
 0x6eb   :  { %v1740_v49 = vadd.f32 %v1739_v11, %v1709_v59  ;;  %v3601_v41 = vadd.f32 %v3600_v29, %v10253_v28  ;;  %v1800_v38 = vmul.f32 %v10250_v45, %v10254_v7  ;;  %v1801_v23 = vmul.f32 %v10250_v45, %v10255_v39  ;;  %v10257_v13 = vld [vmem:[#allocation151_spill] sm:$0xff]  ;;  %v10260_v11 = vld [vmem:[#allocation133_spill] sm:$0xff]  ;;  %v10261_v6 = vld [vmem:[#allocation34_spill] sm:$0xff] }
 0x6ec   :  { %v1841_v26 = vadd.f32 %v1840_v50, %v1798_v24  ;;  %v1878_v9 = vadd.f32 %v1877_v19, %v1799_v31  ;;  %v1711_v3 = vmul.f32 %v10257_v13, %v10256_v0  ;;  %v10258_v43 = vld [vmem:[#allocation167_spill] sm:$0xff]  ;;  %vm1623_vm14 = vcmp.eq.s32.totalorder %v10260_v11, %v7320_v25  ;;  %v10262_v54 = vld [vmem:[#allocation36_spill] sm:$0xff]  ;;  %v10263_v19 = vld [vmem:[#allocation234_spill] sm:$0xff] }
 0x6ed   :  { %v1741_v58 = vadd.f32 %v1740_v49, %v1710_v22  ;;  %v3565_v37 = vadd.f32 %v3564_v34, %v10258_v43  ;;  %v3602_v59 = vadd.f32 %v3601_v41, %v10259_v10  ;;  %v1802_v29 = vmul.f32 %v10256_v0, %v10261_v6  ;;  %v10264_v31 = vld [vmem:[#allocation63_spill] sm:$0xff]  ;;  %v10265_v22 = vld [vmem:[#allocation189_spill] sm:$0xff]  ;;  %v10266_v34 = vld [vmem:[#allocation228_spill] sm:$0xff] }
 0x6ee   :  { %v1803_v28 = vmul.f32 %v10256_v0, %v10262_v54  ;;  %v1842_v45 = vadd.f32 %v1841_v26, %v1800_v38  ;;  %v1879_v24 = vadd.f32 %v1878_v9, %v1801_v23  ;;  %v1712_v50 = vmul.f32 %v10264_v31, %v10263_v19  ;;  %v10267_v41 = vld [vmem:[#allocation38_spill] sm:$0xff]  ;;  %v10268_v39 = vld [vmem:[#allocation40_spill] sm:$0xff]  ;;  %v10270_v0 = vld [vmem:[#allocation153_spill] sm:$0xff] }
 0x6ef   :  { %v1742_v13 = vadd.f32 %v1741_v58, %v1711_v3  ;;  %v3566_v49 = vadd.f32 %v3565_v37, %v10265_v22  ;;  %v3603_v43 = vadd.f32 %v3602_v59, %v10266_v34  ;;  %v1804_v10 = vmul.f32 %v10263_v19, %v10267_v41  ;;  %v10271_v23 = vld [vmem:[#allocation168_spill] sm:$0xff]  ;;  %v10272_v31 = vld [vmem:[#allocation211_spill] sm:$0xff] }
 0x6f0   :  { %v1805_v7 = vmul.f32 %v10263_v19, %v10268_v39  ;;  %v1843_v6 = vadd.f32 %v1842_v45, %v1802_v29  ;;  %v1880_v18 = vadd.f32 %v1879_v24, %v1803_v28  ;;  %v1713_v38 = vmul.f32 %v10270_v0, %v10269_v42  ;;  %v10273_v58 = vld [vmem:[#allocation44_spill] sm:$0xff]  ;;  %v10276_v19 = vld [vmem:[#allocation155_spill] sm:$0xff]  ;;  %v10277_v45 = vld [vmem:[#allocation190_spill] sm:$0xff] }
 0x6f1   :  { %v1743_v9 = vadd.f32 %v1742_v13, %v1712_v50  ;;  %v3567_v26 = vadd.f32 %v3566_v49, %v10271_v23  ;;  %v3604_v3 = vadd.f32 %v3603_v43, %v10272_v31  ;;  %v1806_v37 = vmul.f32 %v10269_v42, %v10273_v58  ;;  %v10274_v59 = vld [vmem:[#allocation48_spill] sm:$0xff]  ;;  %v10278_v0 = vld [vmem:[#allocation229_spill] sm:$0xff]  ;;  %v10279_v13 = vld [vmem:[#allocation50_spill] sm:$0xff] }
 0x6f2   :  { %v1807_v22 = vmul.f32 %v10269_v42, %v10274_v59  ;;  %v1844_v34 = vadd.f32 %v1843_v6, %v1804_v10  ;;  %v1881_v41 = vadd.f32 %v1880_v18, %v1805_v7  ;;  %v10275_v54 = vld [vmem:[#allocation236_spill] sm:$0xff]  ;;  %v10281_v39 = vld [vmem:[#allocation215_spill] sm:$0xff]  ;;  %v10282_v42 = vld [vmem:[#allocation66_spill] sm:$0xff] }
 0x6f3   :  { %v1714_v29 = vmul.f32 %v10276_v19, %v10275_v54  ;;  %v1744_v28 = vadd.f32 %v1743_v9, %v1713_v38  ;;  %v3568_v24 = vadd.f32 %v3567_v26, %v10277_v45  ;;  %v3605_v50 = vadd.f32 %v3604_v3, %v10278_v0  ;;  %v10280_v43 = vld [vmem:[#allocation52_spill] sm:$0xff]  ;;  %v10283_v7 = vld [vmem:[#allocation169_spill] sm:$0xff]  ;;  %v10285_v9 = vld [vmem:[#allocation54_spill] sm:$0xff] }
 0x6f4   :  { %v1808_v49 = vmul.f32 %v10275_v54, %v10279_v13  ;;  %v1809_v23 = vmul.f32 %v10275_v54, %v10280_v43  ;;  %v1845_v31 = vadd.f32 %v1844_v34, %v1806_v37  ;;  %v1882_v58 = vadd.f32 %v1881_v41, %v1807_v22  ;;  %v10284_v19 = vld [vmem:[#allocation212_spill] sm:$0xff]  ;;  %v10287_v59 = vld [vmem:[#allocation195_spill] sm:$0xff]  ;;  %v10288_v54 = vld [vmem:[#allocation62_spill] sm:$0xff] }
 0x6f5   :  { %v1715_v6 = vmul.f32 %v10282_v42, %v10281_v39  ;;  %v1745_v18 = vadd.f32 %v1744_v28, %v1714_v29  ;;  %v3569_v10 = vadd.f32 %v3568_v24, %v10283_v7  ;;  %v3606_v38 = vadd.f32 %v3605_v50, %v10284_v19  ;;  %v10286_v3 = vld [vmem:[#allocation56_spill] sm:$0xff]  ;;  %v10289_v22 = vld [vmem:[#allocation221_spill] sm:$0xff]  ;;  %v10290_v29 = vld [vmem:[#allocation222_spill] sm:$0xff] }
 0x6f6   :  { %v1810_v26 = vmul.f32 %v10281_v39, %v10285_v9  ;;  %v1811_v45 = vmul.f32 %v10281_v39, %v10286_v3  ;;  %v1846_v0 = vadd.f32 %v1845_v31, %v1808_v49  ;;  %v1883_v13 = vadd.f32 %v1882_v58, %v1809_v23  ;;  %v10291_v24 = vld [vmem:[#allocation58_spill] sm:$0xff]  ;;  %v10292_v42 = vld [vmem:[#allocation61_spill] sm:$0xff]  ;;  %v10295_v31 = vld [vmem:[#allocation68_spill] sm:$0xff] }
 0x6f7   :  { %v1716_v37 = vmul.f32 %v10288_v54, %v10287_v59  ;;  %v1746_v41 = vadd.f32 %v1745_v18, %v1715_v6  ;;  %v7823_v34 = vadd.f32 %v3569_v10, %v10289_v22  ;;  %v7826_v28 = vadd.f32 %v3606_v38, %v10290_v29  ;;  %v10293_v49 = vld [vmem:[#allocation145_spill] sm:$0xff]  ;;  %v10296_v10 = vld [vmem:[#allocation64_spill] sm:$0xff]  ;;  %v10297_v54 = vld [vmem:[#allocation67_spill] sm:$0xff] }
 0x6f8   :  { %v1812_v50 = vmul.f32 %v10287_v59, %v10291_v24  ;;  %v1813_v7 = vmul.f32 %v10287_v59, %v10292_v42  ;;  %v1847_v19 = vadd.f32 %v1846_v0, %v1810_v26  ;;  %v1884_v39 = vadd.f32 %v1883_v13, %v1811_v45  ;;  %v10294_v23 = vld [vmem:[#allocation237_spill] sm:$0xff]  ;;  %v10298_v45 = vld [vmem:[#allocation70_spill] sm:$0xff]  ;;  %v10306_v56 = vld [vmem:[#allocation83_spill] sm:$0xff] }
 0x6f9   :  { %v4199_v58 = vsel %vm1623_vm14, 1.0, %v10125_v15  ;;  %vm1624_vm7 = vcmp.eq.s32.totalorder %v10293_v49, %v7320_v25  ;;  %v1717_v6 = vmul.f32 %v10295_v31, %v10294_v23  ;;  %v1747_v18 = vadd.f32 %v1746_v41, %v1716_v37  ;;  %v10299_v22 = vld [vmem:[#allocation158_spill] sm:$0xff]  ;;  %v10300_v25 = vld [vmem:[#allocation72_spill] sm:$0xff] }
 0x6fa   :  { %v1814_v38 = vmul.f32 %v10294_v23, %v10296_v10  ;;  %v1815_v59 = vmul.f32 %v10294_v23, %v10297_v54  ;;  %v1848_v26 = vadd.f32 %v1847_v19, %v1812_v50  ;;  %v1885_v13 = vadd.f32 %v1884_v39, %v1813_v7  ;;  %v10301_v10 = vld [vmem:[#allocation219_spill] sm:$0xff]  ;;  %v10303_v7 = vld [vmem:[#allocation78_spill] sm:$0xff]  ;;  %v10304_v54 = vld [vmem:[#allocation220_spill] sm:$0xff] }
 0x6fb   :  { %v1816_v0 = vmul.f32 %v7654_v63, %v10298_v45  ;;  %v1718_v29 = vmul.f32 %v10299_v22, %v7654_v63  ;;  %v1748_v42 = vadd.f32 %v1747_v18, %v1717_v6  ;;  %v1817_v24 = vmul.f32 %v7654_v63, %v10300_v25  ;;  %v10302_v23 = vld [vmem:[#allocation75_spill] sm:$0xff]  ;;  %v10305_v6 = vld [vmem:[#allocation81_spill] sm:$0xff] }
 0x6fc   :  { %v4200_v37 = vsel %vm1624_vm7, 1.0, %v10125_v15  ;;  %v1849_v41 = vadd.f32 %v1848_v26, %v1814_v38  ;;  %v1886_v31 = vadd.f32 %v1885_v13, %v1815_v59  ;;  %v1719_v3 = vmul.f32 %v10301_v10, %v4199_v58 }
 0x6fd   :  { %v1749_v9 = vadd.f32 %v1748_v42, %v1718_v29  ;;  %v1818_v50 = vmul.f32 %v4199_v58, %v10302_v23  ;;  %v1819_v19 = vmul.f32 %v4199_v58, %v10303_v7  ;;  %v1720_v43 = vmul.f32 %v10304_v54, %v4200_v37  ;;  %v4503_v29 = vld [vmem:[#allocation2 + $0x8] sm:$0xff] }
 0x6fe   :  { %v1850_v39 = vadd.f32 %v1849_v41, %v1816_v0  ;;  %v1887_v45 = vadd.f32 %v1886_v31, %v1817_v24  ;;  %v1820_v18 = vmul.f32 %v4200_v37, %v10305_v6  ;;  %v1821_v63 = vmul.f32 %v4200_v37, %v10306_v56 }
 0x6ff   :  { %v1750_v22 = vadd.f32 %v1749_v9, %v1719_v3  ;;  %v4504_v9 = vld [vmem:[#allocation2] sm:$0xff] }
 0x700   :  { %v1851_v25 = vadd.f32 %v1850_v39, %v1818_v50  ;;  %v1888_v53 = vadd.f32 %v1887_v45, %v1819_v19 }
 0x701   :  { %v1751_v38 = vadd.f32 %v1750_v22, %v1720_v43 }
 0x702   :  { %v7857_v59 = vadd.f32 %v1851_v25, %v1820_v18  ;;  %v7859_v10 = vadd.f32 %v1888_v53, %v1821_v63  ;;  %v10307_v25 = vld [vmem:[#allocation41_spill] sm:$0xff] }
 0x703   :  { %v1752_v42 = vrot.slane %v1751_v38, 4  ;;  %v10308_v53 = vld [vmem:[#allocation45_spill] sm:$0xff] }
 0x705   :  { %v1753_v26 = vadd.f32 %v1752_v42, %v1751_v38 }
 0x707   :  { %v1754_v13 = vrot.slane %v1753_v26, 2 }
 0x709   :  { %v1755_v58 = vadd.f32 %v1754_v13, %v1753_v26 }
 0x70b   :  { %v1756_v0 = vrot.slane %v1755_v58, 1 }
 0x70d   :  { %v1757_v24 = vadd.f32 %v1756_v0, %v1755_v58 }
 0x70f   :  { %v1897_v54 = vmul.f32 %v4503_v29, %v1757_v24  ;;  %v1896_v3 = vmul.f32 %v4504_v9, %v1757_v24 }
 0x711   :  { %1900 = vadd.xlane.f32.xlu1 %v1897_v54  ;;  %1898 = vadd.xlane.f32.xlu0 %v1896_v3 }
 0x757   :  { %v3617_v37 = vpop.xlane.xlu0 %3616  ;;  %v3619_v41 = vpop.xlane.xlu1 %3618 }
 0x758   :  { %v3620_v45 = vmul.f32 0.088388346, %v3617_v37  ;;  %v3621_v43 = vmul.f32 0.088388346, %v3619_v41 }
 0x75a   :  { %v3622_v31 = vadd.f32 %v3620_v45, %v10307_v25  ;;  %v3623_v50 = vadd.f32 %v3621_v43, %v10308_v53 }
 0x75c   :  { %v3624_v19 = vmax.f32 %v3622_v31, %v3623_v50 }
 0x75e   :  { %v3625_v39 = vrot.slane %v3624_v19, 4 }
 0x760   :  { %v3626_v22 = vmax.f32 %v3624_v19, %v3625_v39  ;;  %v3571_v19 = vrot.slane %v7823_v34, 4  ;;  %v3608_v39 = vrot.slane %v7826_v28, 4 }
 0x762   :  { %v3627_v18 = vrot.slane %v3626_v22, 2 }
 0x764   :  { %v3628_v63 = vmax.f32 %v3626_v22, %v3627_v18 }
 0x766   :  { %v3629_v38 = vrot.slane %v3628_v63, 1 }
 0x768   :  { %v3630_v42 = vmax.f32 %v3628_v63, %v3629_v38  ;;  %v3572_v38 = vadd.f32 %v3571_v19, %v7823_v34 }
 0x76a   :  { %v3631_v26 = vsub.f32 %v3622_v31, %v3630_v42  ;;  %v3632_v13 = vsub.f32 %v3623_v50, %v3630_v42  ;;  %v3609_v42 = vadd.f32 %v3608_v39, %v7826_v28 }
 0x76c   :  { %v3633_v58 = vmul.f32 1.442695, %v3631_v26  ;;  %v3635_v0 = vmul.f32 1.442695, %v3632_v13  ;;  %v3610_v25 = vrot.slane %v3609_v42, 2 }
 0x76e   :  { %4409 = vpow2.f32 %v3633_v58  ;;  %v10309_v58 = vld [vmem:[#allocation97_spill] sm:$0xff] }
 0x76f   :  { %4411 = vpow2.f32 %v3635_v0 }
 0x77b   :  { %v4410_v24 = vpop.eup %4409 }
 0x77c   :  { %v4412_v29 = vpop.eup %4411 }
 0x77d   :  { %v3637_v54 = vadd.f32 %v4412_v29, %v4410_v24 }
 0x77f   :  { %v3638_v9 = vrot.slane %v3637_v54, 4 }
 0x781   :  { %v3639_v3 = vadd.f32 %v3638_v9, %v3637_v54  ;;  %v10310_v54 = vld [vmem:[#allocation100_spill] sm:$0xff] }
 0x783   :  { %v3640_v37 = vrot.slane %v3639_v3, 2 }
 0x785   :  { %v3641_v41 = vadd.f32 %v3640_v37, %v3639_v3  ;;  %v10311_v3 = vld [vmem:[#allocation102_spill] sm:$0xff] }
 0x787   :  { %v3642_v45 = vrot.slane %v3641_v41, 1 }
 0x789   :  { %v3643_v43 = vadd.f32 %v3642_v45, %v3641_v41  ;;  %v10312_v41 = vld [vmem:[#allocation103_spill] sm:$0xff] }
 0x78b   :  { %4413 = vrcp.f32 %v3643_v43  ;;  %v10313_v43 = vld [vmem:[#allocation42_spill] sm:$0xff] }
 0x798   :  { %v4414_v31 = vpop.eup %4413 }
 0x799   :  { %v3645_v50 = vmul.f32 %v4414_v31, %v4410_v24  ;;  %v3646_v22 = vmul.f32 %v4414_v31, %v4412_v29  ;;  %v10314_v24 = vld [vmem:[#allocation46_spill] sm:$0xff]  ;;  %v3573_v31 = vrot.slane %v3572_v38, 2 }
 0x79a   :  { %v1899_v18 = vpop.xlane.xlu0 %1898  ;;  %v1901_v63 = vpop.xlane.xlu1 %1900 }
 0x79b   :  { %v1902_v26 = vmul.f32 0.088388346, %v1899_v18  ;;  %v1903_v13 = vmul.f32 0.088388346, %v1901_v63  ;;  %v3647_v0 = vmul.f32 %v3645_v50, %v10309_v58  ;;  %v3648_v9 = vmul.f32 %v3645_v50, %v10310_v54 }
 0x79c   :  { %v3649_v37 = vmul.f32 %v3646_v22, %v10311_v3  ;;  %v3650_v45 = vmul.f32 %v3646_v22, %v10312_v41  ;;  %v3574_v63 = vadd.f32 %v3573_v31, %v3572_v38  ;;  %v3611_v58 = vadd.f32 %v3610_v25, %v3609_v42 }
 0x79d   :  { %v1904_v53 = vadd.f32 %v1902_v26, %v10313_v43  ;;  %v1905_v29 = vadd.f32 %v1903_v13, %v10314_v24 }
 0x79e   :  { %v3651_v7 = vadd.f32 %v3649_v37, %v3647_v0  ;;  %v3658_v34 = vadd.f32 %v3650_v45, %v3648_v9  ;;  %v3575_v41 = vrot.slane %v3574_v63, 1  ;;  %v3612_v26 = vrot.slane %v3611_v58, 1 }
 0x79f   :  { %v1906_v19 = vmax.f32 %v1904_v53, %v1905_v29 }
 0x7a0   :  { %v3652_v28 = vrot.slane %v3651_v7, 4  ;;  %v3659_v39 = vrot.slane %v3658_v34, 4  ;;  %v3576_v37 = vadd.f32 %v3575_v41, %v3574_v63  ;;  %v3613_v45 = vadd.f32 %v3612_v26, %v3611_v58 }
 0x7a1   :  { %v1907_v18 = vrot.slane %v1906_v19, 4  ;;  %v1853_v63 = vrot.slane %v7857_v59, 4 }
 0x7a2   :  { %v3653_v23 = vadd.f32 %v3652_v28, %v3651_v7  ;;  %v3660_v50 = vadd.f32 %v3659_v39, %v3658_v34  ;;  %v10315_v34 = vld [vmem:[#allocation105_spill] sm:$0xff]  ;;  %v10316_v28 = vld [vmem:[#allocation106_spill] sm:$0xff] }
 0x7a3   :  { %v1908_v54 = vmax.f32 %v1906_v19, %v1907_v18  ;;  %v1854_v26 = vadd.f32 %v1853_v63, %v7857_v59 }
 0x7a4   :  { %v3654_v3 = vrot.slane %v3653_v23, 2  ;;  %v3661_v47 = vrot.slane %v3660_v50, 2 }
 0x7a5   :  { %v1909_v22 = vrot.slane %v1908_v54, 2 }
 0x7a6   :  { %v3655_v43 = vadd.f32 %v3654_v3, %v3653_v23  ;;  %v3662_v13 = vadd.f32 %v3661_v47, %v3660_v50  ;;  %v1890_v50 = vrot.slane %v7859_v10, 4 }
 0x7a7   :  { %v1910_v24 = vmax.f32 %v1908_v54, %v1909_v22 }
 0x7a8   :  { %v3656_v20 = vrot.slane %v3655_v43, 1  ;;  %v3663_v0 = vrot.slane %v3662_v13, 1 }
 0x7a9   :  { %v1911_v9 = vrot.slane %v1910_v24, 1 }
 0x7aa   :  { %v3657_v44 = vadd.f32 %v3656_v20, %v3655_v43  ;;  %v3664_v51 = vadd.f32 %v3663_v0, %v3662_v13  ;;  %v1891_v13 = vadd.f32 %v1890_v50, %v7859_v10 }
 0x7ab   :  { %v1912_v38 = vmax.f32 %v1910_v24, %v1911_v9 }
 0x7ac   :  { %v3665_v25 = vadd.f32 %v3657_v44, %v3576_v37  ;;  %v3666_v7 = vadd.f32 %v3664_v51, %v3613_v45  ;;  %v10319_v37 = vld [vmem:[#allocation86_spill] sm:$0xff] }
 0x7ad   :  { %v1913_v42 = vsub.f32 %v1904_v53, %v1912_v38  ;;  %v1914_v31 = vsub.f32 %v1905_v29, %v1912_v38  ;;  %v10320_v38 = vld [vmem:[#allocation89_spill] sm:$0xff] }
 0x7ae   :  { %v7874_v19 = vadd.f32 %v3665_v25, %v10315_v34  ;;  %v7877_v39 = vadd.f32 %v3666_v7, %v10316_v28  ;;  %v10321_v7 = vld [vmem:[#allocation92_spill] sm:$0xff] }
 0x7af   :  { %v1915_v47 = vmul.f32 1.442695, %v1913_v42  ;;  %v1917_v23 = vmul.f32 1.442695, %v1914_v31  ;;  %v10322_v31 = vld [vmem:[#allocation95_spill] sm:$0xff] }
 0x7b0   :  { %v3669_v54 = vsel %vm10317_vm15, %v7874_v19, -inf  ;;  %v3670_v20 = vsel %vm10318_vm10, %v7877_v39, -inf }
 0x7b1   :  { %4415 = vpow2.f32 %v1915_v47  ;;  %v3671_v58 = vmax.f32 %v3669_v54, %v3670_v20  ;;  %v1892_v54 = vrot.slane %v1891_v13, 2 }
 0x7b2   :  { %4417 = vpow2.f32 %v1917_v23  ;;  %v1855_v23 = vrot.slane %v1854_v26, 2 }
 0x7b3   :  { %3672 = vmax.xlane.f32.xlu0 %v3671_v58  ;;  %v1893_v59 = vadd.f32 %v1892_v54, %v1891_v13 }
 0x7be   :  { %v4416_v51 = vpop.eup %4415 }
 0x7bf   :  { %v4418_v44 = vpop.eup %4417 }
 0x7c0   :  { %v1919_v53 = vadd.f32 %v4418_v44, %v4416_v51 }
 0x7c2   :  { %v1920_v3 = vrot.slane %v1919_v53, 4 }
 0x7c4   :  { %v1921_v41 = vadd.f32 %v1920_v3, %v1919_v53 }
 0x7c6   :  { %v1922_v43 = vrot.slane %v1921_v41, 2 }
 0x7c8   :  { %v1923_v24 = vadd.f32 %v1922_v43, %v1921_v41  ;;  %v1856_v41 = vadd.f32 %v1855_v23, %v1854_v26 }
 0x7ca   :  { %v1924_v29 = vrot.slane %v1923_v24, 1 }
 0x7cc   :  { %v1925_v18 = vadd.f32 %v1924_v29, %v1923_v24  ;;  %v1857_v24 = vrot.slane %v1856_v41, 1  ;;  %v1894_v29 = vrot.slane %v1893_v59, 1 }
 0x7ce   :  { %4419 = vrcp.f32 %v1925_v18 }
 0x7db   :  { %v4420_v22 = vpop.eup %4419 }
 0x7dc   :  { %v1927_v0 = vmul.f32 %v4420_v22, %v4416_v51  ;;  %v1928_v9 = vmul.f32 %v4420_v22, %v4418_v44 }
 0x7de   :  { %v1929_v45 = vmul.f32 %v1927_v0, %v10319_v37  ;;  %v1930_v25 = vmul.f32 %v1927_v0, %v10320_v38  ;;  %v1931_v42 = vmul.f32 %v1928_v9, %v10321_v7  ;;  %v1932_v47 = vmul.f32 %v1928_v9, %v10322_v31  ;;  %v10347_v38 = vld [vmem:[#allocation120_spill] sm:$0xff]  ;;  %v7967_v37 = vld [vmem:[#allocation15 + $0x28] sm:$0xff] }
 0x7df   :  { %v1858_v0 = vadd.f32 %v1857_v24, %v1856_v41  ;;  %v1895_v9 = vadd.f32 %v1894_v29, %v1893_v59  ;;  %10348 = vst [vmem:[#allocation199_spill] sm:$0xff] %v7967_v37 }
 0x7e0   :  { %v1933_v20 = vadd.f32 %v1931_v42, %v1929_v45  ;;  %v1940_v58 = vadd.f32 %v1932_v47, %v1930_v25 }
 0x7e2   :  { %v1934_v53 = vrot.slane %v1933_v20, 4  ;;  %v1941_v3 = vrot.slane %v1940_v58, 4 }
 0x7e4   :  { %v1935_v43 = vadd.f32 %v1934_v53, %v1933_v20  ;;  %v1942_v10 = vadd.f32 %v1941_v3, %v1940_v58  ;;  %v10325_v20 = vld [vmem:[#allocation107_spill] sm:$0xff]  ;;  %v10326_v53 = vld [vmem:[#allocation108_spill] sm:$0xff] }
 0x7e5   :  { %vm1978_vm15 = vcmp.eq.s32.totalorder %v10325_v20, 2 }
 0x7e6   :  { %v1936_v51 = vrot.slane %v1935_v43, 2  ;;  %v1943_v44 = vrot.slane %v1942_v10, 2 }
 0x7e8   :  { %v1937_v18 = vadd.f32 %v1936_v51, %v1935_v43  ;;  %v1944_v63 = vadd.f32 %v1943_v44, %v1942_v10 }
 0x7ea   :  { %v1938_v50 = vrot.slane %v1937_v18, 1  ;;  %v1945_v22 = vrot.slane %v1944_v63, 1 }
 0x7ec   :  { %v1939_v31 = vadd.f32 %v1938_v50, %v1937_v18  ;;  %v1946_v7 = vadd.f32 %v1945_v22, %v1944_v63 }
 0x7ee   :  { %v1947_v45 = vadd.f32 %v1939_v31, %v1858_v0  ;;  %v1948_v25 = vadd.f32 %v1946_v7, %v1895_v9 }
 0x7f0   :  { %v1949_v42 = vadd.f32 %v1947_v45, %v10315_v34  ;;  %v1950_v26 = vadd.f32 %v1948_v25, %v10316_v28  ;;  %v10349_v28 = vld [vmem:[#allocation122_spill] sm:$0xff] }
 0x7f2   :  { %v1951_v13 = vsel %vm10323_vm0, %v1949_v42, -inf  ;;  %v1952_v47 = vsel %vm10324_vm11, %v1950_v26, -inf }
 0x7f3   :  { %v1953_v23 = vmax.f32 %v1951_v13, %v1952_v47 }
 0x7f5   :  { %1954 = vmax.xlane.f32.xlu1 %v1953_v23 }
 0x83c   :  { %v3673_v54 = vpop.xlane.xlu0 %3672 }
 0x83d   :  { %vm3674_vm8 = vcmp.eq.f32.partialorder %v7874_v19, %v3673_v54  ;;  %vm3675_vm6 = vcmp.eq.f32.partialorder %v7877_v39, %v3673_v54 }
 0x83e   :  { %v3676_v58 = vsel %vm3674_vm8, %v10325_v20, 256  ;;  %v3677_v31 = vsel %vm3675_vm6, %v10326_v53, 256 }
 0x83f   :  { %v3678_v7 = vsel %vm10327_vm13, %v3676_v58, 2147483647  ;;  %v3679_v3 = vsel %vm10328_vm5, %v3677_v31, 2147483647  ;;  %v10331_v58 = vld [vmem:[#allocation140_spill] sm:$0xff] }
 0x840   :  { %vm3680_vm9 = vcmp.lt.s32.totalorder %v3678_v7, %v3679_v3 }
 0x841   :  { %v3681_v41 = vsel %vm3680_vm9, %v3678_v7, %v3679_v3  ;;  %v10333_v7 = vld [vmem:[#allocation104_spill] sm:$0xff] }
 0x842   :  { %v3683_v59 = vshra.s32 %v3681_v41, 16  ;;  %v3682_v63 = vand.u32 65535, %v3681_v41  ;;  %v10334_v41 = vld [vmem:[#allocation26_spill] sm:$0xff] }
 0x844   :  { %v3685_v43 = vcvt.s32.f32 %v3683_v59  ;;  %v3684_v22 = vcvt.s32.f32 %v3682_v63  ;;  %v10335_v59 = vld [vmem:[#allocation32_spill] sm:$0xff] }
 0x845   :  { %v10340_v63 = vld [vmem:[#allocation112_spill] sm:$0xff] }
 0x846   :  { %3686 = vmin.xlane.f32.xlu0 %v3685_v43 }
 0x87e   :  { %v1955_v10 = vpop.xlane.xlu1 %1954 }
 0x87f   :  { %vm1956_vm3 = vcmp.eq.f32.partialorder %v1949_v42, %v1955_v10  ;;  %vm1957_vm4 = vcmp.eq.f32.partialorder %v1950_v26, %v1955_v10 }
 0x880   :  { %v1958_v19 = vsel %vm1956_vm3, %v10325_v20, 256  ;;  %v1959_v39 = vsel %vm1957_vm4, %v10326_v53, 256  ;;  %v10392_v20 = vld [vmem:[#allocation125_spill] sm:$0xff] }
 0x881   :  { %v1960_v51 = vsel %vm10329_vm2, %v1958_v19, 2147483647  ;;  %v1961_v44 = vsel %vm10330_vm12, %v1959_v39, 2147483647  ;;  %v10336_v19 = vld [vmem:[#allocation110_spill] sm:$0xff]  ;;  %v10337_v39 = vld [vmem:[#allocation111_spill] sm:$0xff] }
 0x882   :  { %vm1962_vm1 = vcmp.lt.s32.totalorder %v1960_v51, %v1961_v44 }
 0x883   :  { %v1963_v24 = vsel %vm1962_vm1, %v1960_v51, %v1961_v44  ;;  %v7927_v51 = vld [vmem:[#allocation15] sm:$0xff] }
 0x884   :  { %v1965_v29 = vshra.s32 %v1963_v24, 16  ;;  %v1964_v9 = vand.u32 65535, %v1963_v24  ;;  %10338 = vst [vmem:[#allocation216_spill] sm:$0xff] %v7927_v51  ;;  %v7930_v24 = vld [vmem:[#allocation15 + $0x8] sm:$0xff] }
 0x885   :  { %10339 = vst [vmem:[#allocation197_spill] sm:$0xff] %v7930_v24 }
 0x886   :  { %v1967_v18 = vcvt.s32.f32 %v1965_v29  ;;  %v1966_v25 = vcvt.s32.f32 %v1964_v9 }
 0x888   :  { %1968 = vmin.xlane.f32.xlu1 %v1967_v18 }
 0x8cf   :  { %v3687_v50 = vpop.xlane.xlu0 %3686 }
 0x8d0   :  { %vm3688_vm14 = vcmp.eq.f32.partialorder %v3685_v43, %v3687_v50  ;;  %v3693_v26 = vcvt.f32.s32 %v3687_v50 }
 0x8d1   :  { %v3689_v0 = vsel %vm3688_vm14, %v3684_v22, inf  ;;  %v10341_v22 = vld [vmem:[#allocation114_spill] sm:$0xff] }
 0x8d2   :  { %3690 = vmin.xlane.f32.xlu0 %v3689_v0  ;;  %v3694_v47 = vshll.u32 %v3693_v26, 16  ;;  %v7941_v0 = vld [vmem:[#allocation15 + $0x10] sm:$0xff] }
 0x8d3   :  { %10342 = vst [vmem:[#allocation239_spill] sm:$0xff] %v7941_v0  ;;  %v10343_v26 = vld [vmem:[#allocation116_spill] sm:$0xff] }
 0x911   :  { %v7905_v45 = vpop.xlane.xlu1 %1968 }
 0x912   :  { %vm1970_vm7 = vcmp.eq.f32.partialorder %v1967_v18, %v7905_v45 }
 0x913   :  { %v1971_v42 = vsel %vm1970_vm7, %v1966_v25, inf }
 0x914   :  { %1972 = vmin.xlane.f32.xlu1 %v1971_v42 }
 0x95b   :  { %v3691_v13 = vpop.xlane.xlu0 %3690 }
 0x95c   :  { %v3692_v23 = vcvt.f32.s32 %v3691_v13  ;;  %v7949_v13 = vld [vmem:[#allocation15 + $0x18] sm:$0xff] }
 0x95d   :  { %10344 = vst [vmem:[#allocation240_spill] sm:$0xff] %v7949_v13 }
 0x95e   :  { %v3695_v54 = vadd.s32 %v3694_v47, %v3692_v23 }
 0x960   :  { %v7912_v31 = vsel %vm1978_vm15, %v3695_v54, %v10331_v58  ;;  %v7915_v3 = vrot.slane %v3695_v54, %v10333_v7  ;;  %v10345_v58 = vld [vmem:[#allocation118_spill] sm:$0xff] }
 0x961   :  { %10332 = vst [vmem:[#allocation238_spill] sm:$0xff] %v7912_v31  ;;  %v7958_v31 = vld [vmem:[#allocation15 + $0x20] sm:$0xff] }
 0x962   :  { %vm3701_vm10 = vcmp.eq.s32.totalorder %v10334_v41, %v7915_v3  ;;  %vm3702_vm0 = vcmp.eq.s32.totalorder %v10335_v59, %v7915_v3  ;;  %vm3703_vm11 = vcmp.eq.s32.totalorder %v10336_v19, %v7915_v3  ;;  %vm3704_vm8 = vcmp.eq.s32.totalorder %v10337_v39, %v7915_v3  ;;  %10346 = vst [vmem:[#allocation217_spill] sm:$0xff] %v7958_v31  ;;  %v8021_v59 = vld [vmem:[#allocation15 + $0x50] sm:$0xff] }
 0x963   :  { %v4307_v43 = vsel %vm3701_vm10, 1.0, %v10125_v15  ;;  %v4308_v10 = vsel %vm3702_vm0, 1.0, %v10125_v15  ;;  %v4309_v18 = vsel %vm3703_vm11, 1.0, %v10125_v15  ;;  %vm3705_vm6 = vcmp.eq.s32.totalorder %v10340_v63, %v7915_v3  ;;  %v10360_v63 = vld [vmem:[#allocation33_spill] sm:$0xff]  ;;  %10363 = vst [vmem:[#allocation244_spill] sm:$0xff] %v8021_v59 }
 0x964   :  { %v3797_v44 = vmul.f32 %v7927_v51, %v4307_v43  ;;  %v3798_v29 = vmul.f32 %v7930_v24, %v4308_v10  ;;  %v7937_v50 = vsel %vm3704_vm8, 1.0, %v10125_v15  ;;  %vm3706_vm13 = vcmp.eq.s32.totalorder %v10341_v22, %v7915_v3 }
 0x965   :  { %v3799_v9 = vmul.f32 %v7941_v0, %v4309_v18  ;;  %v7945_v42 = vsel %vm3705_vm6, 1.0, %v10125_v15  ;;  %vm3707_vm5 = vcmp.eq.s32.totalorder %v10343_v26, %v7915_v3  ;;  %v3800_v47 = vmul.f32 %v7949_v13, %v7937_v50  ;;  %v10351_v13 = vld [vmem:[#allocation124_spill] sm:$0xff]  ;;  %v10359_v26 = vld [vmem:[#allocation30_spill] sm:$0xff] }
 0x966   :  { %v3829_v25 = vadd.f32 %v3798_v29, %v3797_v44  ;;  %v7954_v54 = vsel %vm3706_vm13, 1.0, %v10125_v15  ;;  %vm3708_vm9 = vcmp.eq.s32.totalorder %v10345_v58, %v7915_v3  ;;  %v3801_v44 = vmul.f32 %v7958_v31, %v7945_v42  ;;  %v7976_v31 = vld [vmem:[#allocation15 + $0x30] sm:$0xff] }
 0x967   :  { %v7963_v53 = vsel %vm3707_vm5, 1.0, %v10125_v15  ;;  %vm3709_vm3 = vcmp.eq.s32.totalorder %v10347_v38, %v7915_v3  ;;  %vm3710_vm4 = vcmp.eq.s32.totalorder %v10349_v28, %v7915_v3  ;;  %v7974_v34 = vsel %vm3708_vm9, 1.0, %v10125_v15  ;;  %10350 = vst [vmem:[#allocation241_spill] sm:$0xff] %v7976_v31 }
 0x968   :  { %v3830_v23 = vadd.f32 %v3829_v25, %v3799_v9  ;;  %v3802_v9 = vmul.f32 %v7967_v37, %v7954_v54  ;;  %vm3711_vm2 = vcmp.eq.s32.totalorder %v10351_v13, %v7915_v3  ;;  %v7983_v0 = vsel %vm3709_vm3, 1.0, %v10125_v15  ;;  %v7990_v37 = vld [vmem:[#allocation15 + $0x38] sm:$0xff] }
 0x969   :  { %10353 = vst [vmem:[#allocation242_spill] sm:$0xff] %v7990_v37  ;;  %v3804_v24 = vmul.f32 %v7990_v37, %v7974_v34  ;;  %v8003_v28 = vsel %vm3711_vm2, 1.0, %v10125_v15  ;;  %v8008_v37 = vld [vmem:[#allocation15 + $0x48] sm:$0xff]  ;;  %v3867_v22 = vmul.f32 %v4307_v43, %v10359_v26  ;;  %v3868_v39 = vmul.f32 %v4308_v10, %v10360_v63 }
 0x96a   :  { %v3831_v29 = vadd.f32 %v3830_v23, %v3800_v47  ;;  %v3803_v47 = vmul.f32 %v7976_v31, %v7963_v53  ;;  %v7998_v31 = vld [vmem:[#allocation15 + $0x40] sm:$0xff]  ;;  %10357 = vst [vmem:[#allocation243_spill] sm:$0xff] %v8008_v37 }
 0x96b   :  { %10356 = vst [vmem:[#allocation200_spill] sm:$0xff] %v7998_v31 }
 0x96c   :  { %v3832_v25 = vadd.f32 %v3831_v29, %v3801_v44  ;;  %v10352_v44 = vld [vmem:[#allocation126_spill] sm:$0xff]  ;;  %v7988_v29 = vsel %vm3710_vm4, 1.0, %v10125_v15 }
 0x96d   :  { %vm3712_vm12 = vcmp.eq.s32.totalorder %v10352_v44, %v7915_v3  ;;  %v3805_v44 = vmul.f32 %v7998_v31, %v7983_v0  ;;  %v10361_v31 = vld [vmem:[#allocation35_spill] sm:$0xff] }
 0x96e   :  { %v3833_v23 = vadd.f32 %v3832_v25, %v3802_v9  ;;  %v10354_v9 = vld [vmem:[#allocation128_spill] sm:$0xff]  ;;  %v8006_v38 = vsel %vm3712_vm12, 1.0, %v10125_v15  ;;  %vm3728_vm12 = vcmp.eq.s32.totalorder %v10392_v20, %v7915_v3 }
 0x96f   :  { %vm3713_vm1 = vcmp.eq.s32.totalorder %v10354_v9, %v7915_v3  ;;  %v10355_v25 = vld [vmem:[#allocation132_spill] sm:$0xff] }
 0x970   :  { %v3834_v51 = vadd.f32 %v3833_v23, %v3803_v47  ;;  %vm3714_vm14 = vcmp.eq.s32.totalorder %v10355_v25, %v7915_v3  ;;  %v3806_v47 = vmul.f32 %v8008_v37, %v7988_v29  ;;  %v10358_v23 = vld [vmem:[#allocation28_spill] sm:$0xff]  ;;  %v8019_v19 = vsel %vm3713_vm1, 1.0, %v10125_v15  ;;  %v8044_v25 = vld [vmem:[#allocation15 + $0x60] sm:$0xff] }
 0x971   :  { %v3866_v9 = vmul.f32 %v4307_v43, %v10358_v23  ;;  %v3807_v37 = vmul.f32 %v8021_v59, %v8003_v28  ;;  %v8031_v43 = vsel %vm3714_vm14, 1.0, %v10125_v15  ;;  %v3871_v59 = vmul.f32 %v4309_v18, %v10171_v8  ;;  %v10367_v23 = vld [vmem:[#allocation137_spill] sm:$0xff]  ;;  %10368 = vst [vmem:[#allocation245_spill] sm:$0xff] %v8044_v25 }
 0x972   :  { %v3835_v13 = vadd.f32 %v3834_v51, %v3804_v24  ;;  %v3869_v51 = vmul.f32 %v4308_v10, %v10361_v31  ;;  %v10362_v24 = vld [vmem:[#allocation135_spill] sm:$0xff]  ;;  %v8033_v10 = vld [vmem:[#allocation15 + $0x58] sm:$0xff]  ;;  %vm3717_vm0 = vcmp.eq.s32.totalorder %v10367_v23, %v7915_v3  ;;  %v3809_v7 = vmul.f32 %v8044_v25, %v8019_v19 }
 0x973   :  { %vm3715_vm7 = vcmp.eq.s32.totalorder %v10362_v24, %v7915_v3  ;;  %10365 = vst [vmem:[#allocation201_spill] sm:$0xff] %v8033_v10  ;;  %v10366_v31 = vld [vmem:[#allocation37_spill] sm:$0xff]  ;;  %v8076_v25 = vld [vmem:[#allocation15 + $0x70] sm:$0xff]  ;;  %vm3730_vm14 = vcmp.eq.s32.totalorder %v10161_v21, %v7915_v3 }
 0x974   :  { %v3836_v58 = vadd.f32 %v3835_v13, %v3805_v44  ;;  %v10364_v13 = vld [vmem:[#allocation136_spill] sm:$0xff]  ;;  %v3808_v44 = vmul.f32 %v8033_v10, %v8006_v38  ;;  %v3870_v63 = vmul.f32 %v4309_v18, %v10366_v31  ;;  %v8042_v24 = vsel %vm3715_vm7, 1.0, %v10125_v15  ;;  %v10369_v18 = vld [vmem:[#allocation138_spill] sm:$0xff]  ;;  %10372 = vst [vmem:[#allocation175_spill] sm:$0xff] %v8076_v25 }
 0x975   :  { %vm3716_vm10 = vcmp.eq.s32.totalorder %v10364_v13, %v7915_v3  ;;  %v3872_v10 = vmul.f32 %v7937_v50, %v10173_v55  ;;  %vm3718_vm11 = vcmp.eq.s32.totalorder %v10369_v18, %v7915_v3  ;;  %vm3731_vm7 = vcmp.eq.s32.totalorder %v10260_v11, %v7915_v3 }
 0x976   :  { %v3837_v41 = vadd.f32 %v3836_v58, %v3806_v47  ;;  %v3930_v58 = vadd.f32 %v3868_v39, %v3866_v9  ;;  %v3967_v47 = vadd.f32 %v3869_v51, %v3867_v22  ;;  %v8058_v22 = vsel %vm3716_vm10, 1.0, %v10125_v15  ;;  %v8060_v9 = vld [vmem:[#allocation15 + $0x68] sm:$0xff] }
 0x977   :  { %10370 = vst [vmem:[#allocation246_spill] sm:$0xff] %v8060_v9  ;;  %v3810_v51 = vmul.f32 %v8060_v9, %v8031_v43  ;;  %v3811_v9 = vmul.f32 %v8076_v25, %v8042_v24  ;;  %vm3732_vm10 = vcmp.eq.s32.totalorder %v10293_v49, %v7915_v3  ;;  %v4336_v11 = vsel %vm3730_vm14, 1.0, %v10125_v15  ;;  %v8249_v49 = vld [vmem:[#allocation15 + $0xe8] sm:$0xff] }
 0x978   :  { %v3838_v26 = vadd.f32 %v3837_v41, %v3807_v37  ;;  %v3873_v37 = vmul.f32 %v7937_v50, %v10174_v17  ;;  %v3931_v41 = vadd.f32 %v3930_v58, %v3870_v63  ;;  %v3968_v39 = vadd.f32 %v3967_v47, %v3871_v59  ;;  %v10371_v58 = vld [vmem:[#allocation139_spill] sm:$0xff]  ;;  %10399 = vst [vmem:[#allocation180_spill] sm:$0xff] %v8249_v49 }
 0x979   :  { %v3875_v59 = vmul.f32 %v7945_v42, %v10177_v14  ;;  %vm3719_vm8 = vcmp.eq.s32.totalorder %v10371_v58, %v7915_v3  ;;  %v8074_v47 = vsel %vm3717_vm0, 1.0, %v10125_v15  ;;  %v4337_v20 = vsel %vm3731_vm7, 1.0, %v10125_v15 }
 0x97a   :  { %v3839_v31 = vadd.f32 %v3838_v26, %v3808_v44  ;;  %v3874_v26 = vmul.f32 %v7945_v42, %v10176_v2  ;;  %v3932_v63 = vadd.f32 %v3931_v41, %v3872_v10  ;;  %v3969_v44 = vadd.f32 %v3968_v39, %v3873_v37  ;;  %v8090_v39 = vld [vmem:[#allocation15 + $0x78] sm:$0xff] }
 0x97b   :  { %v3877_v42 = vmul.f32 %v7954_v54, %v10179_v35  ;;  %v8088_v41 = vsel %vm3718_vm11, 1.0, %v10125_v15  ;;  %10373 = vst [vmem:[#allocation247_spill] sm:$0xff] %v8090_v39  ;;  %v3812_v25 = vmul.f32 %v8090_v39, %v8058_v22 }
 0x97c   :  { %v3840_v50 = vadd.f32 %v3839_v31, %v3809_v7  ;;  %v3876_v31 = vmul.f32 %v7954_v54, %v10178_v4  ;;  %v3933_v10 = vadd.f32 %v3932_v63, %v3874_v26  ;;  %v3970_v37 = vadd.f32 %v3969_v44, %v3875_v59  ;;  %v10374_v59 = vld [vmem:[#allocation142_spill] sm:$0xff] }
 0x97d   :  { %v3878_v4 = vmul.f32 %v7963_v53, %v10180_v27  ;;  %v3879_v54 = vmul.f32 %v7963_v53, %v10181_v5  ;;  %vm3720_vm6 = vcmp.eq.s32.totalorder %v10374_v59, %v7915_v3  ;;  %v8104_v63 = vsel %vm3719_vm8, 1.0, %v10125_v15  ;;  %v8106_v44 = vld [vmem:[#allocation15 + $0x80] sm:$0xff] }
 0x97e   :  { %v3841_v7 = vadd.f32 %v3840_v50, %v3810_v51  ;;  %v3934_v26 = vadd.f32 %v3933_v10, %v3876_v31  ;;  %v3971_v50 = vadd.f32 %v3970_v37, %v3877_v42  ;;  %10375 = vst [vmem:[#allocation203_spill] sm:$0xff] %v8106_v44  ;;  %v3813_v39 = vmul.f32 %v8106_v44, %v8074_v47  ;;  %v8115_v37 = vld [vmem:[#allocation15 + $0x88] sm:$0xff] }
 0x97f   :  { %v3881_v31 = vmul.f32 %v7974_v34, %v9654_v32  ;;  %v1975_v10 = vcvt.f32.s32 %v7905_v45  ;;  %10376 = vst [vmem:[#allocation109_spill] sm:$0xff] %v8115_v37  ;;  %v3814_v5 = vmul.f32 %v8115_v37, %v8088_v41  ;;  %v3882_v27 = vmul.f32 %v7983_v0, %v9797_v33  ;;  %v8131_v45 = vld [vmem:[#allocation15 + $0x90] sm:$0xff] }
 0x980   :  { %v3842_v51 = vadd.f32 %v3841_v7, %v3811_v9  ;;  %v3880_v9 = vmul.f32 %v7974_v34, %v9792_v46  ;;  %v3935_v7 = vadd.f32 %v3934_v26, %v3878_v4  ;;  %v3972_v42 = vadd.f32 %v3971_v50, %v3879_v54  ;;  %v10377_v34 = vld [vmem:[#allocation143_spill] sm:$0xff]  ;;  %10378 = vst [vmem:[#allocation134_spill] sm:$0xff] %v8131_v45 }
 0x981   :  { %v3883_v46 = vmul.f32 %v7983_v0, %v9659_v62  ;;  %vm3721_vm13 = vcmp.eq.s32.totalorder %v10377_v34, %v7915_v3  ;;  %v8129_v4 = vsel %vm3720_vm6, 1.0, %v10125_v15  ;;  %v3815_v54 = vmul.f32 %v8131_v45, %v8104_v63 }
 0x982   :  { %v3843_v53 = vadd.f32 %v3842_v51, %v3812_v25  ;;  %v3936_v25 = vadd.f32 %v3935_v7, %v3880_v9  ;;  %v3973_v51 = vadd.f32 %v3972_v42, %v3881_v31  ;;  %v3885_v26 = vmul.f32 %v7988_v29, %v9803_v36 }
 0x983   :  { %v3887_v7 = vmul.f32 %v8003_v28, %v10189_v40  ;;  %v1976_v62 = vshll.u32 %v1975_v10, 16  ;;  %v10483_v40 = vld [vmem:[#allocation197_spill] sm:$0xff] }
 0x984   :  { %v3844_v44 = vadd.f32 %v3843_v53, %v3813_v39  ;;  %v3884_v39 = vmul.f32 %v7988_v29, %v9800_v60  ;;  %v3937_v50 = vadd.f32 %v3936_v25, %v3882_v27  ;;  %v3974_v9 = vadd.f32 %v3973_v51, %v3883_v46  ;;  %v8149_v29 = vld [vmem:[#allocation15 + $0x98] sm:$0xff] }
 0x985   :  { %v3886_v53 = vmul.f32 %v8003_v28, %v10188_v48  ;;  %10379 = vst [vmem:[#allocation156_spill] sm:$0xff] %v8149_v29  ;;  %v3816_v46 = vmul.f32 %v8149_v29, %v8129_v4  ;;  %v3888_v27 = vmul.f32 %v8006_v38, %v10194_v52  ;;  %v3889_v28 = vmul.f32 %v8006_v38, %v10195_v16  ;;  %v10380_v51 = vld [vmem:[#allocation113_spill] sm:$0xff]  ;;  %v10421_v52 = vld [vmem:[#allocation34_spill] sm:$0xff]  ;;  %v10484_v48 = vld [vmem:[#allocation28_spill] sm:$0xff] }
 0x986   :  { %v3845_v0 = vadd.f32 %v3844_v44, %v3814_v5  ;;  %v3938_v42 = vadd.f32 %v3937_v50, %v3884_v39  ;;  %v3975_v37 = vadd.f32 %v3974_v9, %v3885_v26  ;;  %v8147_v5 = vsel %vm3721_vm13, 1.0, %v10125_v15  ;;  %v10417_v16 = vld [vmem:[#allocation29_spill] sm:$0xff] }
 0x987   :  { %vm3722_vm5 = vcmp.eq.s32.totalorder %v10380_v51, %v7915_v3  ;;  %v3890_v39 = vmul.f32 %v8019_v19, %v10200_v30  ;;  %v3891_v26 = vmul.f32 %v8019_v19, %v10201_v61  ;;  %v4338_v29 = vsel %vm3732_vm10, 1.0, %v10125_v15  ;;  %v8255_v61 = vld [vmem:[#allocation15 + $0xf8] sm:$0xff] }
 0x988   :  { %v3846_v31 = vadd.f32 %v3845_v0, %v3815_v54  ;;  %v3939_v10 = vadd.f32 %v3938_v42, %v3886_v53  ;;  %v3976_v25 = vadd.f32 %v3975_v37, %v3887_v7  ;;  %v8170_v37 = vsel %vm3722_vm5, 1.0, %v10125_v15  ;;  %v10383_v42 = vld [vmem:[#allocation179_spill] sm:$0xff]  ;;  %10401 = vst [vmem:[#allocation47_spill] sm:$0xff] %v8255_v61 }
 0x989   :  { %v3828_v30 = vmul.f32 %v8255_v61, %v4338_v29  ;;  %v10405_v61 = vld [vmem:[#allocation84_spill] sm:$0xff] }
 0x98a   :  { %v3847_v54 = vadd.f32 %v3846_v31, %v3816_v46  ;;  %v3940_v50 = vadd.f32 %v3939_v10, %v3888_v27  ;;  %v3977_v9 = vadd.f32 %v3976_v25, %v3889_v28  ;;  %v10385_v46 = vld [vmem:[#allocation117_spill] sm:$0xff]  ;;  %v8186_v27 = vld [vmem:[#allocation15 + $0xa8] sm:$0xff] }
 0x98b   :  { %vm3724_vm3 = vcmp.eq.s32.totalorder %v10385_v46, %v7915_v3  ;;  %10386 = vst [vmem:[#allocation141_spill] sm:$0xff] %v8186_v27  ;;  %v10387_v10 = vld [vmem:[#allocation119_spill] sm:$0xff] }
 0x98c   :  { %v8172_v53 = vadd.f32 %v3940_v50, %v3890_v39  ;;  %v8174_v31 = vadd.f32 %v3977_v9, %v3891_v26  ;;  %vm3725_vm4 = vcmp.eq.s32.totalorder %v10387_v10, %v7915_v3  ;;  %v10388_v39 = vld [vmem:[#allocation121_spill] sm:$0xff]  ;;  %v8200_v26 = vld [vmem:[#allocation15 + $0xb0] sm:$0xff] }
 0x98d   :  { %10389 = vst [vmem:[#allocation194_spill] sm:$0xff] %v8200_v26  ;;  %v8205_v9 = vsel %vm3725_vm4, 1.0, %v10125_v15  ;;  %v8246_v10 = vld [vmem:[#allocation15 + $0xe0] sm:$0xff] }
 0x98e   :  { %10398 = vst [vmem:[#allocation39_spill] sm:$0xff] %v8246_v10 }
 0x99d   :  { %v1973_v45 = vpop.xlane.xlu1 %1972 }
 0x99e   :  { %v1974_v44 = vcvt.f32.s32 %v1973_v45  ;;  %v8165_v45 = vld [vmem:[#allocation15 + $0xa0] sm:$0xff] }
 0x99f   :  { %10381 = vst [vmem:[#allocation218_spill] sm:$0xff] %v8165_v45  ;;  %v3817_v38 = vmul.f32 %v8165_v45, %v8147_v5 }
 0x9a0   :  { %v8161_v0 = vadd.s32 %v1976_v62, %v1974_v44  ;;  %v10382_v62 = vld [vmem:[#allocation115_spill] sm:$0xff]  ;;  %v3818_v44 = vmul.f32 %v8186_v27, %v8170_v37  ;;  %v8218_v27 = vld [vmem:[#allocation15 + $0xc0] sm:$0xff] }
 0x9a1   :  { %vm3723_vm9 = vcmp.eq.s32.totalorder %v10382_v62, %v7915_v3  ;;  %v3848_v7 = vadd.f32 %v3847_v54, %v3817_v38  ;;  %v8196_v54 = vsel %vm3724_vm3, 1.0, %v10125_v15  ;;  %v10390_v38 = vld [vmem:[#allocation123_spill] sm:$0xff]  ;;  %10393 = vst [vmem:[#allocation150_spill] sm:$0xff] %v8218_v27 }
 0x9a2   :  { %v8182_v19 = vsel %vm1978_vm15, %v8161_v0, %v10383_v42  ;;  %v8191_v28 = vsel %vm3723_vm9, 1.0, %v10125_v15  ;;  %vm3726_vm15 = vcmp.eq.s32.totalorder %v10388_v39, %v7915_v3  ;;  %vm3727_vm2 = vcmp.eq.s32.totalorder %v10390_v38, %v7915_v3  ;;  %v8209_v42 = vld [vmem:[#allocation15 + $0xb8] sm:$0xff]  ;;  %v10394_v38 = vld [vmem:[#allocation127_spill] sm:$0xff] }
 0x9a3   :  { %10384 = vst [vmem:[#allocation159_spill] sm:$0xff] %v8182_v19  ;;  %v3849_v25 = vadd.f32 %v3848_v7, %v3818_v44  ;;  %v3819_v50 = vmul.f32 %v8200_v26, %v8191_v28  ;;  %10391 = vst [vmem:[#allocation148_spill] sm:$0xff] %v8209_v42  ;;  %v3820_v7 = vmul.f32 %v8209_v42, %v8196_v54  ;;  %v8214_v19 = vsel %vm3726_vm15, 1.0, %v10125_v15 }
 0x9a4   :  { %v3821_v26 = vmul.f32 %v8218_v27, %v8205_v9  ;;  %vm3729_vm1 = vcmp.eq.s32.totalorder %v10394_v38, %v7915_v3  ;;  %v4333_v45 = vsel %vm3727_vm2, 1.0, %v10125_v15  ;;  %v4334_v27 = vsel %vm3728_vm12, 1.0, %v10125_v15 }
 0x9a5   :  { %v3850_v44 = vadd.f32 %v3849_v25, %v3819_v50  ;;  %v8229_v25 = vld [vmem:[#allocation15 + $0xc8] sm:$0xff]  ;;  %v4335_v21 = vsel %vm3729_vm1, 1.0, %v10125_v15 }
 0x9a6   :  { %10395 = vst [vmem:[#allocation152_spill] sm:$0xff] %v8229_v25  ;;  %v3822_v50 = vmul.f32 %v8229_v25, %v8214_v19  ;;  %v8243_v25 = vld [vmem:[#allocation15 + $0xd8] sm:$0xff]  ;;  %v3825_v3 = vmul.f32 %v8246_v10, %v4335_v21  ;;  %v8270_v10 = vmul.f32 %v8031_v43, %v10207_v12 }
 0x9a7   :  { %v3851_v39 = vadd.f32 %v3850_v44, %v3820_v7  ;;  %v8236_v7 = vld [vmem:[#allocation15 + $0xd0] sm:$0xff]  ;;  %10397 = vst [vmem:[#allocation157_spill] sm:$0xff] %v8243_v25  ;;  %v10411_v12 = vld [vmem:[#allocation93_spill] sm:$0xff] }
 0x9a8   :  { %10396 = vst [vmem:[#allocation154_spill] sm:$0xff] %v8236_v7  ;;  %v3823_v44 = vmul.f32 %v8236_v7, %v4333_v45 }
 0x9a9   :  { %v3852_v42 = vadd.f32 %v3851_v39, %v3821_v26  ;;  %v3824_v39 = vmul.f32 %v8243_v25, %v4334_v27  ;;  %v8259_v25 = vmul.f32 %v4338_v29, %v10305_v6 }
 0x9ab   :  { %v3853_v38 = vadd.f32 %v3852_v42, %v3822_v50  ;;  %v3826_v42 = vmul.f32 %v8249_v49, %v4336_v11  ;;  %v8252_v50 = vld [vmem:[#allocation15 + $0xf0] sm:$0xff]  ;;  %10402 = vst [vmem:[#allocation181_spill] sm:$0xff] %v8259_v25 }
 0x9ac   :  { %10400 = vst [vmem:[#allocation43_spill] sm:$0xff] %v8252_v50  ;;  %v3827_v7 = vmul.f32 %v8252_v50, %v4337_v20 }
 0x9ad   :  { %v3854_v26 = vadd.f32 %v3853_v38, %v3823_v44  ;;  %v8262_v38 = vmul.f32 %v4338_v29, %v10306_v56  ;;  %v8266_v44 = vmul.f32 %v8031_v43, %v10206_v57  ;;  %v8282_v29 = vmul.f32 %v8058_v22, %v10405_v61  ;;  %v10406_v56 = vld [vmem:[#allocation85_spill] sm:$0xff]  ;;  %v10413_v57 = vld [vmem:[#allocation96_spill] sm:$0xff] }
 0x9ae   :  { %v8286_v50 = vmul.f32 %v8058_v22, %v10406_v56  ;;  %v8306_v22 = vmul.f32 %v8104_v63, %v10411_v12  ;;  %v10412_v56 = vld [vmem:[#allocation94_spill] sm:$0xff] }
 0x9af   :  { %v3855_v46 = vadd.f32 %v3854_v26, %v3824_v39  ;;  %10403 = vst [vmem:[#allocation49_spill] sm:$0xff] %v8262_v38  ;;  %v8274_v39 = vmul.f32 %v8042_v24, %v10212_v1  ;;  %v10404_v26 = vld [vmem:[#allocation82_spill] sm:$0xff] }
 0x9b0   :  { %v8278_v6 = vmul.f32 %v8042_v24, %v10404_v26  ;;  %v10409_v1 = vld [vmem:[#allocation90_spill] sm:$0xff]  ;;  %v10410_v26 = vld [vmem:[#allocation91_spill] sm:$0xff] }
 0x9b1   :  { %v3856_v49 = vadd.f32 %v3855_v46, %v3825_v3  ;;  %v10407_v46 = vld [vmem:[#allocation87_spill] sm:$0xff]  ;;  %v10408_v3 = vld [vmem:[#allocation88_spill] sm:$0xff]  ;;  %v8298_v24 = vmul.f32 %v8088_v41, %v10409_v1  ;;  %v8302_v61 = vmul.f32 %v8088_v41, %v10410_v26 }
 0x9b2   :  { %v8290_v43 = vmul.f32 %v8074_v47, %v10407_v46  ;;  %v8294_v38 = vmul.f32 %v8074_v47, %v10408_v3  ;;  %v8310_v46 = vmul.f32 %v8104_v63, %v10412_v56  ;;  %v8314_v47 = vmul.f32 %v8129_v4, %v10413_v57  ;;  %v10415_v1 = vld [vmem:[#allocation99_spill] sm:$0xff]  ;;  %v10416_v3 = vld [vmem:[#allocation101_spill] sm:$0xff] }
 0x9b3   :  { %v3857_v25 = vadd.f32 %v3856_v49, %v3826_v42  ;;  %v10414_v49 = vld [vmem:[#allocation98_spill] sm:$0xff]  ;;  %v8322_v41 = vmul.f32 %v8147_v5, %v10415_v1  ;;  %v8326_v12 = vmul.f32 %v8147_v5, %v10416_v3  ;;  %v8330_v63 = vmul.f32 %v8170_v37, %v10417_v16  ;;  %v10419_v56 = vld [vmem:[#allocation31_spill] sm:$0xff]  ;;  %v10429_v3 = vld [vmem:[#allocation104_spill] sm:$0xff] }
 0x9b4   :  { %v8318_v42 = vmul.f32 %v8129_v4, %v10414_v49  ;;  %v8334_v57 = vmul.f32 %v8170_v37, %v10419_v56  ;;  %v8338_v4 = vmul.f32 %v8191_v28, %v10421_v52  ;;  %v10423_v49 = vld [vmem:[#allocation36_spill] sm:$0xff]  ;;  %v8354_v37 = vrot.slane %v8161_v0, %v10429_v3 }
 0x9b5   :  { %v3858_v26 = vadd.f32 %v3857_v25, %v3827_v7  ;;  %10418 = vst [vmem:[#allocation51_spill] sm:$0xff] %v8330_v63  ;;  %v8342_v1 = vmul.f32 %v8191_v28, %v10423_v49  ;;  %v10425_v25 = vld [vmem:[#allocation38_spill] sm:$0xff]  ;;  %v10427_v7 = vld [vmem:[#allocation40_spill] sm:$0xff] }
 0x9b6   :  { %10420 = vst [vmem:[#allocation55_spill] sm:$0xff] %v8334_v57  ;;  %10422 = vst [vmem:[#allocation163_spill] sm:$0xff] %v8338_v4  ;;  %v8346_v5 = vmul.f32 %v8196_v54, %v10425_v25  ;;  %v8350_v16 = vmul.f32 %v8196_v54, %v10427_v7  ;;  %v10430_v57 = vld [vmem:[#allocation44_spill] sm:$0xff]  ;;  %v10434_v49 = vld [vmem:[#allocation50_spill] sm:$0xff]  ;;  %vm2000_vm15 = vcmp.eq.s32.totalorder %v10367_v23, %v8354_v37 }
 0x9b7   :  { %10424 = vst [vmem:[#allocation170_spill] sm:$0xff] %v8342_v1  ;;  %v3859_v56 = vadd.f32 %v3858_v26, %v3828_v30  ;;  %v8358_v52 = vmul.f32 %v8205_v9, %v10430_v57  ;;  %v10432_v4 = vld [vmem:[#allocation48_spill] sm:$0xff]  ;;  %v8366_v25 = vmul.f32 %v8214_v19, %v10434_v49  ;;  %v10438_v7 = vld [vmem:[#allocation54_spill] sm:$0xff]  ;;  %vm2001_vm2 = vcmp.eq.s32.totalorder %v10369_v18, %v8354_v37 }
 0x9b8   :  { %10426 = vst [vmem:[#allocation196_spill] sm:$0xff] %v8346_v5  ;;  %10428 = vst [vmem:[#allocation174_spill] sm:$0xff] %v8350_v16  ;;  %v8362_v28 = vmul.f32 %v8205_v9, %v10432_v4  ;;  %v10436_v5 = vld [vmem:[#allocation52_spill] sm:$0xff]  ;;  %v8373_v0 = vmul.f32 %v4333_v45, %v10438_v7  ;;  %v10442_v57 = vld [vmem:[#allocation58_spill] sm:$0xff]  ;;  %vm2002_vm12 = vcmp.eq.s32.totalorder %v10371_v58, %v8354_v37 }
 0x9b9   :  { %10431 = vst [vmem:[#allocation160_spill] sm:$0xff] %v8358_v52  ;;  %10435 = vst [vmem:[#allocation191_spill] sm:$0xff] %v8366_v25  ;;  %v8370_v54 = vmul.f32 %v8214_v19, %v10436_v5  ;;  %v10440_v30 = vld [vmem:[#allocation56_spill] sm:$0xff]  ;;  %v3860_v3 = vrot.slane %v3859_v56, 4  ;;  %v8379_v52 = vmul.f32 %v4334_v27, %v10442_v57  ;;  %v10444_v9 = vld [vmem:[#allocation61_spill] sm:$0xff]  ;;  %vm2003_vm1 = vcmp.eq.s32.totalorder %v10374_v59, %v8354_v37 }
 0x9ba   :  { %10433 = vst [vmem:[#allocation204_spill] sm:$0xff] %v8362_v28  ;;  %10439 = vst [vmem:[#allocation182_spill] sm:$0xff] %v8373_v0  ;;  %v8376_v26 = vmul.f32 %v4333_v45, %v10440_v30  ;;  %v8382_v4 = vmul.f32 %v4334_v27, %v10444_v9  ;;  %v10446_v28 = vld [vmem:[#allocation64_spill] sm:$0xff]  ;;  %v10448_v25 = vld [vmem:[#allocation67_spill] sm:$0xff]  ;;  %vm2004_vm14 = vcmp.eq.s32.totalorder %v10377_v34, %v8354_v37 }
 0x9bb   :  { %10437 = vst [vmem:[#allocation198_spill] sm:$0xff] %v8370_v54  ;;  %10443 = vst [vmem:[#allocation230_spill] sm:$0xff] %v8379_v52  ;;  %v8385_v49 = vmul.f32 %v4335_v21, %v10446_v28  ;;  %v8388_v16 = vmul.f32 %v4335_v21, %v10448_v25  ;;  %v10450_v19 = vld [vmem:[#allocation70_spill] sm:$0xff]  ;;  %v10452_v7 = vld [vmem:[#allocation72_spill] sm:$0xff]  ;;  %v3861_v28 = vadd.f32 %v3860_v3, %v3859_v56  ;;  %v8566_v23 = vsel %vm2004_vm14, 1.0, %v10125_v15 }
 0x9bc   :  { %10441 = vst [vmem:[#allocation223_spill] sm:$0xff] %v8376_v26  ;;  %10445 = vst [vmem:[#allocation176_spill] sm:$0xff] %v8382_v4  ;;  %v8391_v5 = vmul.f32 %v4336_v11, %v10450_v19  ;;  %v8394_v0 = vmul.f32 %v4336_v11, %v10452_v7  ;;  %v10454_v45 = vld [vmem:[#allocation75_spill] sm:$0xff]  ;;  %v10456_v57 = vld [vmem:[#allocation26_spill] sm:$0xff]  ;;  %vm2005_vm7 = vcmp.eq.s32.totalorder %v10380_v51, %v8354_v37 }
 0x9bd   :  { %10447 = vst [vmem:[#allocation161_spill] sm:$0xff] %v8385_v49  ;;  %10449 = vst [vmem:[#allocation205_spill] sm:$0xff] %v8388_v16  ;;  %v8397_v30 = vmul.f32 %v4337_v20, %v10454_v45  ;;  %vm1984_vm0 = vcmp.eq.s32.totalorder %v10456_v57, %v8354_v37  ;;  %v10457_v27 = vld [vmem:[#allocation32_spill] sm:$0xff]  ;;  %v10458_v9 = vld [vmem:[#allocation78_spill] sm:$0xff]  ;;  %v3862_v3 = vrot.slane %v3861_v28, 2  ;;  %vm2006_vm10 = vcmp.eq.s32.totalorder %v10382_v62, %v8354_v37 }
 0x9be   :  { %10451 = vst [vmem:[#allocation171_spill] sm:$0xff] %v8391_v5  ;;  %10453 = vst [vmem:[#allocation177_spill] sm:$0xff] %v8394_v0  ;;  %vm1985_vm11 = vcmp.eq.s32.totalorder %v10457_v27, %v8354_v37  ;;  %v8404_v49 = vmul.f32 %v4337_v20, %v10458_v9  ;;  %v10460_v21 = vld [vmem:[#allocation110_spill] sm:$0xff]  ;;  %v10461_v19 = vld [vmem:[#allocation111_spill] sm:$0xff]  ;;  %v8572_v18 = vsel %vm2005_vm7, 1.0, %v10125_v15  ;;  %v8578_v58 = vsel %vm2006_vm10, 1.0, %v10125_v15 }
 0x9bf   :  { %10455 = vst [vmem:[#allocation183_spill] sm:$0xff] %v8397_v30  ;;  %vm1986_vm8 = vcmp.eq.s32.totalorder %v10460_v21, %v8354_v37  ;;  %vm1987_vm6 = vcmp.eq.s32.totalorder %v10461_v19, %v8354_v37  ;;  %v10462_v11 = vld [vmem:[#allocation112_spill] sm:$0xff]  ;;  %v10463_v45 = vld [vmem:[#allocation114_spill] sm:$0xff]  ;;  %v10472_v5 = vld [vmem:[#allocation135_spill] sm:$0xff]  ;;  %v3863_v16 = vadd.f32 %v3862_v3, %v3861_v28  ;;  %v4201_v3 = vsel %vm1984_vm0, 1.0, %v10125_v15 }
 0x9c0   :  { %10459 = vst [vmem:[#allocation224_spill] sm:$0xff] %v8404_v49  ;;  %vm1988_vm13 = vcmp.eq.s32.totalorder %v10462_v11, %v8354_v37  ;;  %vm1989_vm5 = vcmp.eq.s32.totalorder %v10463_v45, %v8354_v37  ;;  %v10464_v7 = vld [vmem:[#allocation116_spill] sm:$0xff]  ;;  %v10465_v56 = vld [vmem:[#allocation118_spill] sm:$0xff]  ;;  %v4202_v4 = vsel %vm1985_vm11, 1.0, %v10125_v15  ;;  %v4203_v52 = vsel %vm1986_vm8, 1.0, %v10125_v15  ;;  %10490 = vst [vmem:[#allocation192_spill] sm:$0xff] %v8566_v23 }
 0x9c1   :  { %vm1990_vm9 = vcmp.eq.s32.totalorder %v10464_v7, %v8354_v37  ;;  %vm1991_vm3 = vcmp.eq.s32.totalorder %v10465_v56, %v8354_v37  ;;  %v10466_v20 = vld [vmem:[#allocation120_spill] sm:$0xff]  ;;  %v10467_v9 = vld [vmem:[#allocation122_spill] sm:$0xff]  ;;  %v3864_v28 = vrot.slane %v3863_v16, 1  ;;  %v4204_v26 = vsel %vm1987_vm6, 1.0, %v10125_v15  ;;  %10491 = vst [vmem:[#allocation202_spill] sm:$0xff] %v8572_v18  ;;  %10492 = vst [vmem:[#allocation184_spill] sm:$0xff] %v8578_v58 }
 0x9c2   :  { %vm1992_vm4 = vcmp.eq.s32.totalorder %v10466_v20, %v8354_v37  ;;  %v10468_v25 = vld [vmem:[#allocation124_spill] sm:$0xff]  ;;  %v10469_v49 = vld [vmem:[#allocation126_spill] sm:$0xff]  ;;  %v4205_v57 = vsel %vm1988_vm13, 1.0, %v10125_v15  ;;  %v4206_v27 = vsel %vm1989_vm5, 1.0, %v10125_v15  ;;  %v8476_v21 = vsel %vm1990_vm9, 1.0, %v10125_v15  ;;  %v10493_v59 = vld [vmem:[#allocation239_spill] sm:$0xff] }
 0x9c3   :  { %v10470_v30 = vld [vmem:[#allocation128_spill] sm:$0xff]  ;;  %v3865_v54 = vadd.f32 %v3864_v28, %v3863_v16  ;;  %v8482_v16 = vsel %vm1991_vm3, 1.0, %v10125_v15  ;;  %v8488_v19 = vsel %vm1992_vm4, 1.0, %v10125_v15  ;;  %vm10473_vm0 = vcmp.eq.s32.totalorder %v10467_v9, %v8354_v37 }
 0x9c4   :  { %v10471_v0 = vld [vmem:[#allocation132_spill] sm:$0xff]  ;;  %v8494_v45 = vsel %vm10473_vm0, 1.0, %v10125_v15  ;;  %vm10474_vm11 = vcmp.eq.s32.totalorder %v10468_v25, %v8354_v37  ;;  %vm10476_vm8 = vcmp.eq.s32.totalorder %v10469_v49, %v8354_v37  ;;  %vm10478_vm6 = vcmp.eq.s32.totalorder %v10470_v30, %v8354_v37 }
 0x9c5   :  { %v8500_v7 = vsel %vm10474_vm11, 1.0, %v10125_v15  ;;  %v4537_v11 = vld [vmem:[#allocation2 + $0x10] sm:$0xff]  ;;  %v8506_v20 = vsel %vm10476_vm8, 1.0, %v10125_v15  ;;  %v8512_v9 = vsel %vm10478_vm6, 1.0, %v10125_v15  ;;  %v4538_v28 = vld [vmem:[#allocation2 + $0x18] sm:$0xff]  ;;  %vm10480_vm13 = vcmp.eq.s32.totalorder %v10471_v0, %v8354_v37 }
 0x9c6   :  { %10475 = vst [vmem:[#allocation213_spill] sm:$0xff] %v8500_v7  ;;  %v4004_v56 = vmul.f32 %v4537_v11, %v3865_v54  ;;  %10477 = vst [vmem:[#allocation178_spill] sm:$0xff] %v8506_v20  ;;  %v4005_v1 = vmul.f32 %v4538_v28, %v3865_v54  ;;  %v8518_v25 = vsel %vm10480_vm13, 1.0, %v10125_v15  ;;  %v10482_v11 = vld [vmem:[#allocation216_spill] sm:$0xff]  ;;  %v2081_v49 = vmul.f32 %v10483_v40, %v4202_v4  ;;  %v10486_v54 = vld [vmem:[#allocation30_spill] sm:$0xff] }
 0x9c7   :  { %10479 = vst [vmem:[#allocation162_spill] sm:$0xff] %v8512_v9  ;;  %10481 = vst [vmem:[#allocation206_spill] sm:$0xff] %v8518_v25  ;;  %v2080_v63 = vmul.f32 %v10482_v11, %v4201_v3  ;;  %v2149_v20 = vmul.f32 %v4201_v3, %v10484_v48  ;;  %vm10485_vm5 = vcmp.eq.s32.totalorder %v10472_v5, %v8354_v37  ;;  %v10487_v9 = vld [vmem:[#allocation33_spill] sm:$0xff]  ;;  %v10488_v7 = vld [vmem:[#allocation35_spill] sm:$0xff]  ;;  %v8542_v48 = vsel %vm2000_vm15, 1.0, %v10125_v15 }
 0x9c8   :  { %4006 = vadd.xlane.f32.xlu0 %v4004_v56  ;;  %v8527_v30 = vsel %vm10485_vm5, 1.0, %v10125_v15  ;;  %4008 = vadd.xlane.f32.xlu1 %v4005_v1  ;;  %v2150_v28 = vmul.f32 %v4201_v3, %v10486_v54  ;;  %v2151_v0 = vmul.f32 %v4202_v4, %v10487_v9  ;;  %v2152_v25 = vmul.f32 %v4202_v4, %v10488_v7  ;;  %v10494_v3 = vld [vmem:[#allocation37_spill] sm:$0xff]  ;;  %v10495_v18 = vld [vmem:[#allocation240_spill] sm:$0xff] }
 0x9c9   :  { %vm10489_vm9 = vcmp.eq.s32.totalorder %v10364_v13, %v8354_v37  ;;  %v8548_v1 = vsel %vm2001_vm2, 1.0, %v10125_v15  ;;  %v8554_v4 = vsel %vm2002_vm12, 1.0, %v10125_v15  ;;  %v8560_v13 = vsel %vm2003_vm1, 1.0, %v10125_v15 }
 0x9ca   :  { %v8536_v40 = vsel %vm10489_vm9, 1.0, %v10125_v15  ;;  %v2082_v5 = vmul.f32 %v10493_v59, %v4203_v52  ;;  %v2153_v7 = vmul.f32 %v4203_v52, %v10494_v3  ;;  %v2154_v34 = vmul.f32 %v4203_v52, %v10171_v8 }
 0x9cb   :  { %v2112_v56 = vadd.f32 %v2081_v49, %v2080_v63  ;;  %v2213_v9 = vadd.f32 %v2151_v0, %v2149_v20  ;;  %v2250_v11 = vadd.f32 %v2152_v25, %v2150_v28  ;;  %v3942_v51 = vadd.f32 %v8172_v53, %v8266_v44  ;;  %v10496_v63 = vld [vmem:[#allocation217_spill] sm:$0xff] }
 0x9cc   :  { %v3979_v54 = vadd.f32 %v8174_v31, %v8270_v10  ;;  %v2083_v23 = vmul.f32 %v10495_v18, %v4204_v26  ;;  %v2155_v62 = vmul.f32 %v4204_v26, %v10173_v55  ;;  %v2156_v58 = vmul.f32 %v4204_v26, %v10174_v17  ;;  %v10497_v26 = vld [vmem:[#allocation199_spill] sm:$0xff]  ;;  %v10498_v28 = vld [vmem:[#allocation53_spill] sm:$0xff] }
 0x9cd   :  { %v2113_v59 = vadd.f32 %v2112_v56, %v2082_v5  ;;  %v2214_v15 = vadd.f32 %v2213_v9, %v2153_v7  ;;  %v2251_v3 = vadd.f32 %v2250_v11, %v2154_v34  ;;  %v3943_v8 = vadd.f32 %v3942_v51, %v8274_v39 }
 0x9ce   :  { %v3980_v52 = vadd.f32 %v3979_v54, %v8278_v6  ;;  %v2084_v20 = vmul.f32 %v10496_v63, %v4205_v57  ;;  %v2157_v53 = vmul.f32 %v4205_v57, %v10176_v2  ;;  %v2158_v44 = vmul.f32 %v4205_v57, %v10177_v14 }
 0x9cf   :  { %v2114_v31 = vadd.f32 %v2113_v59, %v2083_v23  ;;  %v2215_v10 = vadd.f32 %v2214_v15, %v2155_v62  ;;  %v2252_v25 = vadd.f32 %v2251_v3, %v2156_v58  ;;  %v3944_v55 = vadd.f32 %v3943_v8, %v8282_v29  ;;  %v10499_v15 = vld [vmem:[#allocation241_spill] sm:$0xff] }
 0x9d0   :  { %v3981_v17 = vadd.f32 %v3980_v52, %v8286_v50  ;;  %v2085_v49 = vmul.f32 %v10497_v26, %v4206_v27  ;;  %v2159_v0 = vmul.f32 %v4206_v27, %v10498_v28  ;;  %v2160_v39 = vmul.f32 %v4206_v27, %v10179_v35  ;;  %v10500_v23 = vld [vmem:[#allocation57_spill] sm:$0xff]  ;;  %v10501_v50 = vld [vmem:[#allocation59_spill] sm:$0xff] }
 0x9d1   :  { %v2115_v6 = vadd.f32 %v2114_v31, %v2084_v20  ;;  %v2216_v18 = vadd.f32 %v2215_v10, %v2157_v53  ;;  %v2253_v5 = vadd.f32 %v2252_v25, %v2158_v44  ;;  %v3945_v2 = vadd.f32 %v3944_v55, %v8290_v43  ;;  %v10502_v43 = vld [vmem:[#allocation242_spill] sm:$0xff]  ;;  %v10505_v52 = vld [vmem:[#allocation65_spill] sm:$0xff] }
 0x9d2   :  { %v3982_v14 = vadd.f32 %v3981_v17, %v8294_v38  ;;  %v2086_v57 = vmul.f32 %v10499_v15, %v8476_v21  ;;  %v2161_v29 = vmul.f32 %v8476_v21, %v10500_v23  ;;  %v2162_v58 = vmul.f32 %v8476_v21, %v10501_v50  ;;  %v10503_v38 = vld [vmem:[#allocation60_spill] sm:$0xff]  ;;  %v10507_v17 = vld [vmem:[#allocation213_spill] sm:$0xff]  ;;  %v10515_v15 = vld [vmem:[#allocation27_spill] sm:$0xff] }
 0x9d3   :  { %v2116_v7 = vadd.f32 %v2115_v6, %v2085_v49  ;;  %v2217_v34 = vadd.f32 %v2216_v18, %v2159_v0  ;;  %v2254_v56 = vadd.f32 %v2253_v5, %v2160_v39  ;;  %v3946_v35 = vadd.f32 %v3945_v2, %v8298_v24  ;;  %v10504_v24 = vld [vmem:[#allocation200_spill] sm:$0xff]  ;;  %v10509_v49 = vld [vmem:[#allocation69_spill] sm:$0xff]  ;;  %v10510_v0 = vld [vmem:[#allocation71_spill] sm:$0xff] }
 0x9d4   :  { %v3983_v27 = vadd.f32 %v3982_v14, %v8302_v61  ;;  %v2087_v9 = vmul.f32 %v10502_v43, %v8482_v16  ;;  %v2163_v11 = vmul.f32 %v8482_v16, %v10503_v38  ;;  %v2164_v51 = vmul.f32 %v8482_v16, %v9654_v32  ;;  %v10511_v6 = vld [vmem:[#allocation51_spill] sm:$0xff]  ;;  %v10513_v2 = vld [vmem:[#allocation178_spill] sm:$0xff]  ;;  %v10516_v23 = vld [vmem:[#allocation73_spill] sm:$0xff] }
 0x9d5   :  { %v2117_v54 = vadd.f32 %v2116_v7, %v2086_v57  ;;  %v2218_v62 = vadd.f32 %v2217_v34, %v2161_v29  ;;  %v2255_v59 = vadd.f32 %v2254_v56, %v2162_v58  ;;  %v3947_v21 = vadd.f32 %v3946_v35, %v8306_v22  ;;  %v10506_v22 = vld [vmem:[#allocation243_spill] sm:$0xff]  ;;  %v10518_v34 = vld [vmem:[#allocation170_spill] sm:$0xff] }
 0x9d6   :  { %v3984_v3 = vadd.f32 %v3983_v27, %v8310_v46  ;;  %v2088_v8 = vmul.f32 %v10504_v24, %v8488_v19  ;;  %v2165_v61 = vmul.f32 %v8488_v19, %v9797_v33  ;;  %v2166_v63 = vmul.f32 %v8488_v19, %v10505_v52  ;;  %v10517_v58 = vld [vmem:[#allocation163_spill] sm:$0xff]  ;;  %v10519_v43 = vld [vmem:[#allocation162_spill] sm:$0xff] }
 0x9d7   :  { %v2118_v20 = vadd.f32 %v2117_v54, %v2087_v9  ;;  %v3948_v53 = vadd.f32 %v3947_v21, %v8314_v47  ;;  %v2219_v16 = vadd.f32 %v2218_v62, %v2163_v11  ;;  %v2256_v44 = vadd.f32 %v2255_v59, %v2164_v51  ;;  %v10520_v9 = vld [vmem:[#allocation245_spill] sm:$0xff]  ;;  %v10521_v11 = vld [vmem:[#allocation74_spill] sm:$0xff]  ;;  %v10522_v54 = vld [vmem:[#allocation76_spill] sm:$0xff] }
 0x9d8   :  { %v3985_v32 = vadd.f32 %v3984_v3, %v8318_v42  ;;  %v2089_v31 = vmul.f32 %v10506_v22, %v8494_v45  ;;  %v2167_v46 = vmul.f32 %v8494_v45, %v9800_v60  ;;  %v2168_v10 = vmul.f32 %v8494_v45, %v9803_v36  ;;  %v10508_v42 = vld [vmem:[#allocation244_spill] sm:$0xff]  ;;  %v10512_v36 = vld [vmem:[#allocation55_spill] sm:$0xff]  ;;  %v10524_v24 = vld [vmem:[#allocation174_spill] sm:$0xff] }
 0x9d9   :  { %v2119_v33 = vadd.f32 %v2118_v20, %v2088_v8  ;;  %v3949_v25 = vadd.f32 %v3948_v53, %v8322_v41  ;;  %v2220_v55 = vadd.f32 %v2219_v16, %v2165_v61  ;;  %v2257_v47 = vadd.f32 %v2256_v44, %v2166_v63  ;;  %v10523_v21 = vld [vmem:[#allocation196_spill] sm:$0xff]  ;;  %v10525_v63 = vld [vmem:[#allocation206_spill] sm:$0xff]  ;;  %v10528_v44 = vld [vmem:[#allocation79_spill] sm:$0xff] }
 0x9da   :  { %v3986_v19 = vadd.f32 %v3985_v32, %v8326_v12  ;;  %v2090_v26 = vmul.f32 %v10508_v42, %v10507_v17  ;;  %v2169_v28 = vmul.f32 %v10507_v17, %v10509_v49  ;;  %v2170_v39 = vmul.f32 %v10507_v17, %v10510_v0  ;;  %v10514_v12 = vld [vmem:[#allocation201_spill] sm:$0xff]  ;;  %v10526_v20 = vld [vmem:[#allocation246_spill] sm:$0xff]  ;;  %v10532_v42 = vld [vmem:[#allocation80_spill] sm:$0xff] }
 0x9db   :  { %v2120_v60 = vadd.f32 %v2119_v33, %v2089_v31  ;;  %v3950_v18 = vadd.f32 %v3949_v25, %v10511_v6  ;;  %v2221_v5 = vadd.f32 %v2220_v55, %v2167_v46  ;;  %v2258_v41 = vadd.f32 %v2257_v47, %v2168_v10  ;;  %v10527_v32 = vld [vmem:[#allocation77_spill] sm:$0xff]  ;;  %v10529_v46 = vld [vmem:[#allocation160_spill] sm:$0xff]  ;;  %v10531_v47 = vld [vmem:[#allocation175_spill] sm:$0xff] }
 0x9dc   :  { %v3987_v45 = vadd.f32 %v3986_v19, %v10512_v36  ;;  %v2091_v14 = vmul.f32 %v10514_v12, %v10513_v2  ;;  %v2171_v57 = vmul.f32 %v10513_v2, %v10515_v15  ;;  %v2172_v29 = vmul.f32 %v10513_v2, %v10516_v23  ;;  %v10530_v33 = vld [vmem:[#allocation204_spill] sm:$0xff]  ;;  %v10533_v49 = vld [vmem:[#allocation82_spill] sm:$0xff]  ;;  %v10539_v23 = vld [vmem:[#allocation117_spill] sm:$0xff] }
 0x9dd   :  { %v2121_v50 = vadd.f32 %v2120_v60, %v2090_v26  ;;  %v3951_v7 = vadd.f32 %v3950_v18, %v10517_v58  ;;  %v2222_v35 = vadd.f32 %v2221_v5, %v2169_v28  ;;  %v2259_v27 = vadd.f32 %v2258_v41, %v2170_v39  ;;  %v10534_v39 = vld [vmem:[#allocation191_spill] sm:$0xff]  ;;  %v10535_v6 = vld [vmem:[#allocation198_spill] sm:$0xff]  ;;  %v10537_v2 = vld [vmem:[#allocation84_spill] sm:$0xff] }
 0x9de   :  { %v3988_v56 = vadd.f32 %v3987_v45, %v10518_v34  ;;  %v2092_v38 = vmul.f32 %v10520_v9, %v10519_v43  ;;  %v2173_v51 = vmul.f32 %v10519_v43, %v10521_v11  ;;  %v2174_v62 = vmul.f32 %v10519_v43, %v10522_v54  ;;  %v10536_v5 = vld [vmem:[#allocation247_spill] sm:$0xff]  ;;  %v10544_v9 = vld [vmem:[#allocation88_spill] sm:$0xff] }
 0x9df   :  { %v2122_v59 = vadd.f32 %v2121_v50, %v2091_v14  ;;  %v3952_v3 = vadd.f32 %v3951_v7, %v10523_v21  ;;  %v2223_v61 = vadd.f32 %v2222_v35, %v2171_v57  ;;  %v2260_v52 = vadd.f32 %v2259_v27, %v2172_v29  ;;  %v10538_v14 = vld [vmem:[#allocation85_spill] sm:$0xff]  ;;  %v10541_v50 = vld [vmem:[#allocation223_spill] sm:$0xff] }
 0x9e0   :  { %v3989_v8 = vadd.f32 %v3988_v56, %v10524_v24  ;;  %v2093_v53 = vmul.f32 %v10526_v20, %v10525_v63  ;;  %v2175_v16 = vmul.f32 %v10525_v63, %v10527_v32  ;;  %v2176_v22 = vmul.f32 %v10525_v63, %v10528_v44  ;;  %v10542_v56 = vld [vmem:[#allocation203_spill] sm:$0xff]  ;;  %v10548_v24 = vld [vmem:[#allocation109_spill] sm:$0xff] }
 0x9e1   :  { %v2123_v31 = vadd.f32 %v2122_v59, %v2092_v38  ;;  %v3953_v10 = vadd.f32 %v3952_v3, %v10529_v46  ;;  %v2224_v19 = vadd.f32 %v2223_v61, %v2173_v51  ;;  %v2261_v55 = vadd.f32 %v2260_v52, %v2174_v62  ;;  %v10543_v27 = vld [vmem:[#allocation87_spill] sm:$0xff]  ;;  %v10546_v51 = vld [vmem:[#allocation230_spill] sm:$0xff]  ;;  %v10547_v62 = vld [vmem:[#allocation176_spill] sm:$0xff] }
 0x9e2   :  { %v3990_v25 = vadd.f32 %v3989_v8, %v10530_v33  ;;  %v2094_v17 = vmul.f32 %v10531_v47, %v8527_v30  ;;  %v2177_v26 = vmul.f32 %v8527_v30, %v10532_v42  ;;  %v2178_v28 = vmul.f32 %v8527_v30, %v10533_v49  ;;  %v10540_v30 = vld [vmem:[#allocation182_spill] sm:$0xff]  ;;  %v10545_v11 = vld [vmem:[#allocation119_spill] sm:$0xff]  ;;  %v10554_v33 = vld [vmem:[#allocation93_spill] sm:$0xff] }
 0x9e3   :  { %v2124_v0 = vadd.f32 %v2123_v31, %v2093_v53  ;;  %v3954_v60 = vadd.f32 %v3953_v10, %v10534_v39  ;;  %v2225_v36 = vadd.f32 %v2224_v19, %v2175_v16  ;;  %v2262_v45 = vadd.f32 %v2261_v55, %v2176_v22  ;;  %v10549_v61 = vld [vmem:[#allocation90_spill] sm:$0xff]  ;;  %v10550_v63 = vld [vmem:[#allocation91_spill] sm:$0xff]  ;;  %v10551_v53 = vld [vmem:[#allocation161_spill] sm:$0xff] }
 0x9e4   :  { %v3991_v18 = vadd.f32 %v3990_v25, %v10535_v6  ;;  %v2095_v41 = vmul.f32 %v10536_v5, %v8536_v40  ;;  %v2179_v12 = vmul.f32 %v8536_v40, %v10537_v2  ;;  %v2180_v15 = vmul.f32 %v8536_v40, %v10538_v14  ;;  %v10552_v16 = vld [vmem:[#allocation205_spill] sm:$0xff]  ;;  %v10553_v46 = vld [vmem:[#allocation134_spill] sm:$0xff]  ;;  %v10561_v5 = vld [vmem:[#allocation183_spill] sm:$0xff] }
 0x9e5   :  { %v2125_v57 = vadd.f32 %v2124_v0, %v2094_v17  ;;  %vm2007_vm3 = vcmp.eq.s32.totalorder %v10539_v23, %v8354_v37  ;;  %v3955_v29 = vadd.f32 %v3954_v60, %v10540_v30  ;;  %v2226_v7 = vadd.f32 %v2225_v36, %v2177_v26  ;;  %v10555_v19 = vld [vmem:[#allocation94_spill] sm:$0xff]  ;;  %v10556_v17 = vld [vmem:[#allocation171_spill] sm:$0xff]  ;;  %v10558_v0 = vld [vmem:[#allocation156_spill] sm:$0xff] }
 0x9e6   :  { %v3992_v58 = vadd.f32 %v3991_v18, %v10541_v50  ;;  %v2263_v34 = vadd.f32 %v2262_v45, %v2178_v28  ;;  %v2096_v35 = vmul.f32 %v10542_v56, %v8542_v48  ;;  %v2181_v43 = vmul.f32 %v8542_v48, %v10543_v27  ;;  %v10559_v60 = vld [vmem:[#allocation96_spill] sm:$0xff]  ;;  %v10560_v18 = vld [vmem:[#allocation98_spill] sm:$0xff]  ;;  %v10567_v56 = vld [vmem:[#allocation181_spill] sm:$0xff] }
 0x9e7   :  { %v2182_v38 = vmul.f32 %v8542_v48, %v10544_v9  ;;  %v2126_v40 = vadd.f32 %v2125_v57, %v2095_v41  ;;  %vm2008_vm4 = vcmp.eq.s32.totalorder %v10545_v11, %v8354_v37  ;;  %v3956_v54 = vadd.f32 %v3955_v29, %v10546_v51  ;;  %v10564_v57 = vld [vmem:[#allocation218_spill] sm:$0xff]  ;;  %v10565_v29 = vld [vmem:[#allocation99_spill] sm:$0xff] }
 0x9e8   :  { %v3993_v59 = vadd.f32 %v3992_v58, %v10547_v62  ;;  %v2227_v21 = vadd.f32 %v2226_v7, %v2179_v12  ;;  %v2264_v3 = vadd.f32 %v2263_v34, %v2180_v15  ;;  %v2097_v8 = vmul.f32 %v10548_v24, %v8548_v1  ;;  %v10563_v15 = vld [vmem:[#allocation192_spill] sm:$0xff]  ;;  %v10566_v58 = vld [vmem:[#allocation101_spill] sm:$0xff] }
 0x9e9   :  { %v2183_v52 = vmul.f32 %v8548_v1, %v10549_v61  ;;  %v2184_v20 = vmul.f32 %v8548_v1, %v10550_v63  ;;  %v2127_v48 = vadd.f32 %v2126_v40, %v2096_v35  ;;  %v3957_v32 = vadd.f32 %v3956_v54, %v10551_v53  ;;  %v10557_v1 = vld [vmem:[#allocation177_spill] sm:$0xff]  ;;  %v10571_v54 = vld [vmem:[#allocation202_spill] sm:$0xff] }
 0x9ea   :  { %v3994_v44 = vadd.f32 %v3993_v59, %v10552_v16  ;;  %v2228_v22 = vadd.f32 %v2227_v21, %v2181_v43  ;;  %v2265_v31 = vadd.f32 %v2264_v3, %v2182_v38  ;;  %v2098_v10 = vmul.f32 %v10553_v46, %v8554_v4  ;;  %v10569_v38 = vld [vmem:[#allocation121_spill] sm:$0xff]  ;;  %v10577_v53 = vld [vmem:[#allocation194_spill] sm:$0xff] }
 0x9eb   :  { %v2185_v25 = vmul.f32 %v8554_v4, %v10554_v33  ;;  %v2186_v55 = vmul.f32 %v8554_v4, %v10555_v19  ;;  %v2128_v47 = vadd.f32 %v2127_v48, %v2097_v8  ;;  %v3958_v42 = vadd.f32 %v3957_v32, %v10556_v17  ;;  %v10562_v4 = vld [vmem:[#allocation224_spill] sm:$0xff]  ;;  %v10572_v62 = vld [vmem:[#allocation141_spill] sm:$0xff]  ;;  %v10574_v8 = vld [vmem:[#allocation31_spill] sm:$0xff] }
 0x9ec   :  { %v3995_v26 = vadd.f32 %v3994_v44, %v10557_v1  ;;  %v2229_v49 = vadd.f32 %v2228_v22, %v2183_v52  ;;  %v2266_v28 = vadd.f32 %v2265_v31, %v2184_v20  ;;  %v2099_v39 = vmul.f32 %v10558_v0, %v8560_v13  ;;  %v10573_v3 = vld [vmem:[#allocation29_spill] sm:$0xff]  ;;  %v10575_v20 = vld [vmem:[#allocation123_spill] sm:$0xff]  ;;  %v10576_v48 = vld [vmem:[#allocation184_spill] sm:$0xff] }
 0x9ed   :  { %v2187_v6 = vmul.f32 %v8560_v13, %v10559_v60  ;;  %v2188_v36 = vmul.f32 %v8560_v13, %v10560_v18  ;;  %v2129_v45 = vadd.f32 %v2128_v47, %v2098_v10  ;;  %v3959_v41 = vadd.f32 %v3958_v42, %v10561_v5  ;;  %v10568_v13 = vld [vmem:[#allocation49_spill] sm:$0xff]  ;;  %v10578_v44 = vld [vmem:[#allocation34_spill] sm:$0xff]  ;;  %v10579_v31 = vld [vmem:[#allocation36_spill] sm:$0xff] }
 0x9ee   :  { %v3996_v2 = vadd.f32 %v3995_v26, %v10562_v4  ;;  %v2230_v12 = vadd.f32 %v2229_v49, %v2185_v25  ;;  %v2267_v14 = vadd.f32 %v2266_v28, %v2186_v55  ;;  %v2100_v30 = vmul.f32 %v10564_v57, %v10563_v15  ;;  %v10580_v25 = vld [vmem:[#allocation125_spill] sm:$0xff]  ;;  %v10581_v19 = vld [vmem:[#allocation148_spill] sm:$0xff]  ;;  %v10582_v17 = vld [vmem:[#allocation38_spill] sm:$0xff] }
 0x9ef   :  { %v2189_v50 = vmul.f32 %v10563_v15, %v10565_v29  ;;  %v2190_v7 = vmul.f32 %v10563_v15, %v10566_v58  ;;  %v2130_v34 = vadd.f32 %v2129_v45, %v2099_v39  ;;  %v8725_v35 = vadd.f32 %v3959_v41, %v10567_v56  ;;  %v10583_v1 = vld [vmem:[#allocation40_spill] sm:$0xff]  ;;  %v10584_v0 = vld [vmem:[#allocation127_spill] sm:$0xff]  ;;  %v10585_v60 = vld [vmem:[#allocation150_spill] sm:$0xff] }
 0x9f0   :  { %v8728_v27 = vadd.f32 %v3996_v2, %v10568_v13  ;;  %v2231_v43 = vadd.f32 %v2230_v12, %v2187_v6  ;;  %v2268_v9 = vadd.f32 %v2267_v14, %v2188_v36  ;;  %vm2009_vm15 = vcmp.eq.s32.totalorder %v10569_v38, %v8354_v37  ;;  %v10586_v36 = vld [vmem:[#allocation44_spill] sm:$0xff]  ;;  %v10588_v12 = vld [vmem:[#allocation129_spill] sm:$0xff]  ;;  %v10590_v29 = vld [vmem:[#allocation50_spill] sm:$0xff] }
 0x9f1   :  { %v10570_v40 = vmov 0.0   ;;  %v2101_v59 = vmul.f32 %v10572_v62, %v10571_v54  ;;  %v2131_v21 = vadd.f32 %v2130_v34, %v2100_v30  ;;  %v2191_v24 = vmul.f32 %v10571_v54, %v10573_v3  ;;  %v10587_v5 = vld [vmem:[#allocation48_spill] sm:$0xff]  ;;  %v10592_v13 = vld [vmem:[#allocation133_spill] sm:$0xff] }
 0x9f2   :  { %v4224_v51 = vsel %vm2007_vm3, 1.0, %v10570_v40  ;;  %v2192_v61 = vmul.f32 %v10571_v54, %v10574_v8  ;;  %v2232_v52 = vadd.f32 %v2231_v43, %v2189_v50  ;;  %v2269_v63 = vadd.f32 %v2268_v9, %v2190_v7  ;;  %v10589_v15 = vld [vmem:[#allocation152_spill] sm:$0xff]  ;;  %v10593_v9 = vld [vmem:[#allocation154_spill] sm:$0xff] }
 0x9f3   :  { %vm2010_vm2 = vcmp.eq.s32.totalorder %v10575_v20, %v8354_v37  ;;  %v4225_v23 = vsel %vm2008_vm4, 1.0, %v10570_v40  ;;  %v2102_v32 = vmul.f32 %v10577_v53, %v10576_v48  ;;  %v2132_v16 = vadd.f32 %v2131_v21, %v2101_v59  ;;  %v10591_v58 = vld [vmem:[#allocation52_spill] sm:$0xff]  ;;  %v10594_v54 = vld [vmem:[#allocation54_spill] sm:$0xff] }
 0x9f4   :  { %v2193_v22 = vmul.f32 %v10576_v48, %v10578_v44  ;;  %v2194_v46 = vmul.f32 %v10576_v48, %v10579_v31  ;;  %v2233_v10 = vadd.f32 %v2232_v52, %v2191_v24  ;;  %v2270_v33 = vadd.f32 %v2269_v63, %v2192_v61  ;;  %v10595_v59 = vld [vmem:[#allocation56_spill] sm:$0xff]  ;;  %v10596_v61 = vld [vmem:[#allocation157_spill] sm:$0xff]  ;;  %v10597_v20 = vld [vmem:[#allocation58_spill] sm:$0xff] }
 0x9f5   :  { %vm2011_vm12 = vcmp.eq.s32.totalorder %v10580_v25, %v8354_v37  ;;  %v4226_v11 = vsel %vm2009_vm15, 1.0, %v10570_v40  ;;  %v2103_v55 = vmul.f32 %v10581_v19, %v4224_v51  ;;  %v2133_v47 = vadd.f32 %v2132_v16, %v2102_v32  ;;  %v10598_v48 = vld [vmem:[#allocation61_spill] sm:$0xff]  ;;  %v10600_v31 = vld [vmem:[#allocation39_spill] sm:$0xff] }
 0x9f6   :  { %v2195_v42 = vmul.f32 %v4224_v51, %v10582_v17  ;;  %v2196_v26 = vmul.f32 %v4224_v51, %v10583_v1  ;;  %v2234_v49 = vadd.f32 %v2233_v10, %v2193_v22  ;;  %v2271_v28 = vadd.f32 %v2270_v33, %v2194_v46  ;;  %v10599_v22 = vld [vmem:[#allocation145_spill] sm:$0xff]  ;;  %v10601_v33 = vld [vmem:[#allocation64_spill] sm:$0xff]  ;;  %v10603_v17 = vld [vmem:[#allocation70_spill] sm:$0xff] }
 0x9f7   :  { %vm2012_vm1 = vcmp.eq.s32.totalorder %v10584_v0, %v8354_v37  ;;  %v4227_v39 = vsel %vm2010_vm2, 1.0, %v10570_v40  ;;  %v2104_v6 = vmul.f32 %v10585_v60, %v4225_v23  ;;  %v2134_v18 = vadd.f32 %v2133_v47, %v2103_v55  ;;  %v10604_v1 = vld [vmem:[#allocation180_spill] sm:$0xff] }
 0x9f8   :  { %v2197_v45 = vmul.f32 %v4225_v23, %v10586_v36  ;;  %v2198_v41 = vmul.f32 %v4225_v23, %v10587_v5  ;;  %v2235_v4 = vadd.f32 %v2234_v49, %v2195_v42  ;;  %v2272_v2 = vadd.f32 %v2271_v28, %v2196_v26  ;;  %v10605_v28 = vld [vmem:[#allocation72_spill] sm:$0xff] }
 0x9f9   :  { %vm2013_vm14 = vcmp.eq.s32.totalorder %v10588_v12, %v8354_v37  ;;  %v4228_v14 = vsel %vm2011_vm12, 1.0, %v10570_v40  ;;  %v2105_v57 = vmul.f32 %v10589_v15, %v4226_v11  ;;  %v2135_v30 = vadd.f32 %v2134_v18, %v2104_v6  ;;  %v10606_v6 = vld [vmem:[#allocation43_spill] sm:$0xff] }
 0x9fa   :  { %v2199_v50 = vmul.f32 %v4226_v11, %v10590_v29  ;;  %v2200_v7 = vmul.f32 %v4226_v11, %v10591_v58  ;;  %v2236_v34 = vadd.f32 %v2235_v4, %v2197_v45  ;;  %v2273_v56 = vadd.f32 %v2272_v2, %v2198_v41  ;;  %v10602_v11 = vld [vmem:[#allocation67_spill] sm:$0xff]  ;;  %v10608_v41 = vld [vmem:[#allocation78_spill] sm:$0xff] }
 0x9fb   :  { %vm2014_vm7 = vcmp.eq.s32.totalorder %v10592_v13, %v8354_v37  ;;  %v4229_v43 = vsel %vm2012_vm1, 1.0, %v10570_v40  ;;  %v2106_v38 = vmul.f32 %v10593_v9, %v4227_v39  ;;  %v2136_v51 = vadd.f32 %v2135_v30, %v2105_v57  ;;  %v10607_v45 = vld [vmem:[#allocation75_spill] sm:$0xff]  ;;  %v10610_v30 = vld [vmem:[#allocation81_spill] sm:$0xff] }
 0x9fc   :  { %v2201_v62 = vmul.f32 %v4227_v39, %v10594_v54  ;;  %v2202_v21 = vmul.f32 %v4227_v39, %v10595_v59  ;;  %v2237_v3 = vadd.f32 %v2236_v34, %v2199_v50  ;;  %v2274_v24 = vadd.f32 %v2273_v56, %v2200_v7  ;;  %v10611_v50 = vld [vmem:[#allocation83_spill] sm:$0xff] }
 0x9fd   :  { %v4230_v8 = vsel %vm2013_vm14, 1.0, %v10570_v40  ;;  %v2107_v52 = vmul.f32 %v10596_v61, %v4228_v14  ;;  %v2137_v63 = vadd.f32 %v2136_v51, %v2106_v38  ;;  %v2203_v23 = vmul.f32 %v4228_v14, %v10597_v20  ;;  %v4539_v59 = vld [vmem:[#allocation2 + $0x8] sm:$0xff]  ;;  %v10612_v20 = vld [vmem:[#allocation41_spill] sm:$0xff] }
 0x9fe   :  { %v2204_v53 = vmul.f32 %v4228_v14, %v10598_v48  ;;  %v2238_v32 = vadd.f32 %v2237_v3, %v2201_v62  ;;  %v2275_v16 = vadd.f32 %v2274_v24, %v2202_v21  ;;  %v4231_v44 = vsel %vm2014_vm7, 1.0, %v10570_v40  ;;  %v10609_v14 = vld [vmem:[#allocation47_spill] sm:$0xff]  ;;  %v4540_v3 = vld [vmem:[#allocation2] sm:$0xff] }
 0x9ff   :  { %vm2015_vm10 = vcmp.eq.s32.totalorder %v10599_v22, %v8354_v37  ;;  %v2108_v46 = vmul.f32 %v10600_v31, %v4229_v43  ;;  %v2138_v10 = vadd.f32 %v2137_v63, %v2107_v52  ;;  %v2205_v25 = vmul.f32 %v4229_v43, %v10601_v33  ;;  %v10613_v48 = vld [vmem:[#allocation45_spill] sm:$0xff] }
 0xa00   :  { %v2206_v19 = vmul.f32 %v4229_v43, %v10602_v11  ;;  %v2239_v55 = vadd.f32 %v2238_v32, %v2203_v23  ;;  %v2276_v47 = vadd.f32 %v2275_v16, %v2204_v53  ;;  %v2207_v42 = vmul.f32 %v4230_v8, %v10603_v17 }
 0xa01   :  { %v2109_v26 = vmul.f32 %v10604_v1, %v4230_v8  ;;  %v2139_v49 = vadd.f32 %v2138_v10, %v2108_v46  ;;  %v2208_v0 = vmul.f32 %v4230_v8, %v10605_v28  ;;  %v4232_v39 = vsel %vm2015_vm10, 1.0, %v10570_v40 }
 0xa02   :  { %v2240_v60 = vadd.f32 %v2239_v55, %v2205_v25  ;;  %v2277_v37 = vadd.f32 %v2276_v47, %v2206_v19  ;;  %v2110_v18 = vmul.f32 %v10606_v6, %v4231_v44  ;;  %v2209_v5 = vmul.f32 %v4231_v44, %v10607_v45 }
 0xa03   :  { %v2140_v36 = vadd.f32 %v2139_v49, %v2109_v26  ;;  %v2210_v4 = vmul.f32 %v4231_v44, %v10608_v41  ;;  %v2111_v15 = vmul.f32 %v10609_v14, %v4232_v39  ;;  %v2211_v29 = vmul.f32 %v4232_v39, %v10610_v30 }
 0xa04   :  { %v2241_v2 = vadd.f32 %v2240_v60, %v2207_v42  ;;  %v2278_v12 = vadd.f32 %v2277_v37, %v2208_v0  ;;  %v2212_v58 = vmul.f32 %v4232_v39, %v10611_v50  ;;  %v3961_v39 = vrot.slane %v8725_v35, 4 }
 0xa05   :  { %v2141_v57 = vadd.f32 %v2140_v36, %v2110_v18  ;;  %v3998_v60 = vrot.slane %v8728_v27, 4  ;;  %vm10622_vm0 = vcmask 1040384  }
 0xa06   :  { %v2242_v7 = vadd.f32 %v2241_v2, %v2209_v5  ;;  %v2279_v40 = vadd.f32 %v2278_v12, %v2210_v4  ;;  %v3962_v6 = vadd.f32 %v3961_v39, %v8725_v35  ;;  %v10614_v5 = vld [vmem:[#allocation97_spill] sm:$0xff]  ;;  %v10615_v4 = vld [vmem:[#allocation100_spill] sm:$0xff]  ;;  %v10616_v12 = vld [vmem:[#allocation102_spill] sm:$0xff] }
 0xa07   :  { %v2142_v34 = vadd.f32 %v2141_v57, %v2111_v15  ;;  %v3999_v18 = vadd.f32 %v3998_v60, %v8728_v27  ;;  %v10617_v15 = vld [vmem:[#allocation103_spill] sm:$0xff]  ;;  %vm10623_vm11 = vmmov %vm10622_vm0 }
 0xa08   :  { %v8813_v56 = vadd.f32 %v2242_v7, %v2211_v29  ;;  %v8815_v13 = vadd.f32 %v2279_v40, %v2212_v58  ;;  %v3963_v30 = vrot.slane %v3962_v6, 2  ;;  %vm10628_vm8 = vmmov %vm10622_vm0 }
 0xa09   :  { %v2143_v43 = vrot.slane %v2142_v34, 4  ;;  %v4000_v29 = vrot.slane %v3999_v18, 2  ;;  %vm10629_vm6 = vmmov %vm10622_vm0 }
 0xa0a   :  { %vm10632_vm9 = vmmov %vm10622_vm0 }
 0xa0b   :  { %v2144_v9 = vadd.f32 %v2143_v43, %v2142_v34  ;;  %v3964_v34 = vadd.f32 %v3963_v30, %v3962_v6  ;;  %v4001_v35 = vadd.f32 %v4000_v29, %v3999_v18  ;;  %vm10633_vm3 = vmmov %vm10622_vm0 }
 0xa0c   :  { %vm10634_vm12 = vmmov %vm10622_vm0 }
 0xa0d   :  { %v2145_v38 = vrot.slane %v2144_v9, 2  ;;  %vm10635_vm1 = vmmov %vm10622_vm0 }
 0xa0f   :  { %v2146_v51 = vadd.f32 %v2145_v38, %v2144_v9 }
 0xa11   :  { %v2147_v54 = vrot.slane %v2146_v51, 1 }
 0xa13   :  { %v2148_v62 = vadd.f32 %v2147_v54, %v2146_v51  ;;  %v3965_v51 = vrot.slane %v3964_v34, 1  ;;  %v4002_v54 = vrot.slane %v4001_v35, 1 }
 0xa15   :  { %v2288_v21 = vmul.f32 %v4539_v59, %v2148_v62  ;;  %v2287_v24 = vmul.f32 %v4540_v3, %v2148_v62 }
 0xa17   :  { %2291 = vadd.xlane.f32.xlu1 %v2288_v21  ;;  %2289 = vadd.xlane.f32.xlu0 %v2287_v24 }
 0xa51   :  { %v4007_v8 = vpop.xlane.xlu0 %4006  ;;  %v4009_v61 = vpop.xlane.xlu1 %4008 }
 0xa52   :  { %v4010_v52 = vmul.f32 0.088388346, %v4007_v8  ;;  %v4011_v63 = vmul.f32 0.088388346, %v4009_v61 }
 0xa54   :  { %v4012_v23 = vadd.f32 %v4010_v52, %v10612_v20  ;;  %v4013_v53 = vadd.f32 %v4011_v63, %v10613_v48  ;;  %v3966_v63 = vadd.f32 %v3965_v51, %v3964_v34  ;;  %v4003_v20 = vadd.f32 %v4002_v54, %v4001_v35  ;;  %v10625_v34 = vld [vmem:[#allocation89_spill] sm:$0xff] }
 0xa56   :  { %v4014_v32 = vmax.f32 %v4012_v23, %v4013_v53 }
 0xa58   :  { %v4015_v16 = vrot.slane %v4014_v32, 4 }
 0xa5a   :  { %v4016_v44 = vmax.f32 %v4014_v32, %v4015_v16 }
 0xa5c   :  { %v4017_v22 = vrot.slane %v4016_v44, 2 }
 0xa5e   :  { %v4018_v31 = vmax.f32 %v4016_v44, %v4017_v22 }
 0xa60   :  { %v4019_v46 = vrot.slane %v4018_v31, 1 }
 0xa62   :  { %v4020_v10 = vmax.f32 %v4018_v31, %v4019_v46 }
 0xa64   :  { %v4021_v33 = vsub.f32 %v4012_v23, %v4020_v10  ;;  %v4022_v25 = vsub.f32 %v4013_v53, %v4020_v10  ;;  %v10618_v23 = vld [vmem:[#allocation42_spill] sm:$0xff] }
 0xa65   :  { %v10619_v53 = vld [vmem:[#allocation46_spill] sm:$0xff] }
 0xa66   :  { %v4023_v11 = vmul.f32 1.442695, %v4021_v33  ;;  %v4025_v19 = vmul.f32 1.442695, %v4022_v25  ;;  %v10620_v33 = vld [vmem:[#allocation105_spill] sm:$0xff] }
 0xa68   :  { %4421 = vpow2.f32 %v4023_v11  ;;  %v10621_v11 = vld [vmem:[#allocation106_spill] sm:$0xff] }
 0xa69   :  { %4423 = vpow2.f32 %v4025_v19 }
 0xa75   :  { %v4422_v55 = vpop.eup %4421 }
 0xa76   :  { %v4424_v47 = vpop.eup %4423 }
 0xa77   :  { %v4027_v17 = vadd.f32 %v4424_v47, %v4422_v55 }
 0xa79   :  { %v4028_v42 = vrot.slane %v4027_v17, 4 }
 0xa7b   :  { %v4029_v1 = vadd.f32 %v4028_v42, %v4027_v17 }
 0xa7d   :  { %v4030_v26 = vrot.slane %v4029_v1, 2 }
 0xa7f   :  { %v4031_v49 = vadd.f32 %v4030_v26, %v4029_v1 }
 0xa81   :  { %v4032_v28 = vrot.slane %v4031_v49, 1 }
 0xa83   :  { %v4033_v0 = vadd.f32 %v4032_v28, %v4031_v49 }
 0xa85   :  { %4425 = vrcp.f32 %v4033_v0 }
 0xa92   :  { %v4426_v37 = vpop.eup %4425 }
 0xa93   :  { %v4035_v36 = vmul.f32 %v4426_v37, %v4422_v55  ;;  %v4036_v45 = vmul.f32 %v4426_v37, %v4424_v47 }
 0xa95   :  { %v4037_v41 = vmul.f32 %v4035_v36, %v10614_v5  ;;  %v4038_v2 = vmul.f32 %v4035_v36, %v10615_v4  ;;  %v4039_v14 = vmul.f32 %v4036_v45, %v10616_v12  ;;  %v4040_v57 = vmul.f32 %v4036_v45, %v10617_v15 }
 0xa96   :  { %v2281_v15 = vrot.slane %v8815_v13, 4 }
 0xa97   :  { %v4041_v50 = vadd.f32 %v4039_v14, %v4037_v41  ;;  %v4048_v58 = vadd.f32 %v4040_v57, %v4038_v2  ;;  %v2244_v14 = vrot.slane %v8813_v56, 4 }
 0xa98   :  { %v2282_v29 = vadd.f32 %v2281_v15, %v8815_v13 }
 0xa99   :  { %v4042_v7 = vrot.slane %v4041_v50, 4  ;;  %v4049_v40 = vrot.slane %v4048_v58, 4  ;;  %v2245_v30 = vadd.f32 %v2244_v14, %v8813_v56 }
 0xa9a   :  { %v2283_v54 = vrot.slane %v2282_v29, 2 }
 0xa9b   :  { %v4043_v43 = vadd.f32 %v4042_v7, %v4041_v50  ;;  %v4050_v27 = vadd.f32 %v4049_v40, %v4048_v58  ;;  %v10624_v7 = vld [vmem:[#allocation86_spill] sm:$0xff]  ;;  %v2246_v51 = vrot.slane %v2245_v30, 2 }
 0xa9c   :  { %v2284_v56 = vadd.f32 %v2283_v54, %v2282_v29 }
 0xa9d   :  { %v4044_v9 = vrot.slane %v4043_v43, 2  ;;  %v4051_v38 = vrot.slane %v4050_v27, 2 }
 0xa9f   :  { %v4045_v62 = vadd.f32 %v4044_v9, %v4043_v43  ;;  %v4052_v59 = vadd.f32 %v4051_v38, %v4050_v27  ;;  %v10626_v43 = vld [vmem:[#allocation92_spill] sm:$0xff]  ;;  %v10627_v9 = vld [vmem:[#allocation95_spill] sm:$0xff] }
 0xaa0   :  { %v2290_v21 = vpop.xlane.xlu0 %2289  ;;  %v2292_v3 = vpop.xlane.xlu1 %2291 }
 0xaa1   :  { %v2293_v24 = vmul.f32 0.088388346, %v2290_v21  ;;  %v2294_v8 = vmul.f32 0.088388346, %v2292_v3  ;;  %v4046_v61 = vrot.slane %v4045_v62, 1  ;;  %v4053_v52 = vrot.slane %v4052_v59, 1 }
 0xaa3   :  { %v2295_v48 = vadd.f32 %v2293_v24, %v10618_v23  ;;  %v2296_v32 = vadd.f32 %v2294_v8, %v10619_v53  ;;  %v4047_v16 = vadd.f32 %v4046_v61, %v4045_v62  ;;  %v4054_v44 = vadd.f32 %v4053_v52, %v4052_v59 }
 0xaa4   :  { %v2247_v24 = vadd.f32 %v2246_v51, %v2245_v30  ;;  %v10636_v51 = vld [vmem:[#allocation238_spill] sm:$0xff] }
 0xaa5   :  { %v2297_v22 = vmax.f32 %v2295_v48, %v2296_v32  ;;  %v4055_v31 = vadd.f32 %v4047_v16, %v3966_v63  ;;  %v4056_v46 = vadd.f32 %v4054_v44, %v4003_v20  ;;  %v2285_v20 = vrot.slane %v2284_v56, 1 }
 0xaa6   :  { %v2248_v63 = vrot.slane %v2247_v24, 1 }
 0xaa7   :  { %v2298_v10 = vrot.slane %v2297_v22, 4  ;;  %v8830_v25 = vadd.f32 %v4055_v31, %v10620_v33  ;;  %v8833_v19 = vadd.f32 %v4056_v46, %v10621_v11  ;;  %v2286_v44 = vadd.f32 %v2285_v20, %v2284_v56 }
 0xaa8   :  { %v2249_v16 = vadd.f32 %v2248_v63, %v2247_v24 }
 0xaa9   :  { %v2299_v55 = vmax.f32 %v2297_v22, %v2298_v10  ;;  %v4059_v47 = vsel %vm10622_vm0, %v8830_v25, -inf  ;;  %v4060_v17 = vsel %vm10623_vm11, %v8833_v19, -inf  ;;  %vm4089_vm11 = vcmask 25600  }
 0xaaa   :  { %v4061_v42 = vmax.f32 %v4059_v47, %v4060_v17 }
 0xaab   :  { %v2300_v1 = vrot.slane %v2299_v55, 2 }
 0xaac   :  { %4062 = vmax.xlane.f32.xlu0 %v4061_v42 }
 0xaad   :  { %v2301_v26 = vmax.f32 %v2299_v55, %v2300_v1 }
 0xaaf   :  { %v2302_v49 = vrot.slane %v2301_v26, 1 }
 0xab1   :  { %v2303_v28 = vmax.f32 %v2301_v26, %v2302_v49  ;;  %v10630_v49 = vld [vmem:[#allocation107_spill] sm:$0xff] }
 0xab2   :  { %vm2369_vm0 = vcmp.eq.s32.totalorder %v10630_v49, 3 }
 0xab3   :  { %v2304_v0 = vsub.f32 %v2295_v48, %v2303_v28  ;;  %v2305_v39 = vsub.f32 %v2296_v32, %v2303_v28 }
 0xab5   :  { %v2306_v60 = vmul.f32 1.442695, %v2304_v0  ;;  %v2308_v37 = vmul.f32 1.442695, %v2305_v39  ;;  %v10631_v0 = vld [vmem:[#allocation108_spill] sm:$0xff] }
 0xab7   :  { %4427 = vpow2.f32 %v2306_v60 }
 0xab8   :  { %4429 = vpow2.f32 %v2308_v37 }
 0xac4   :  { %v4428_v6 = vpop.eup %4427 }
 0xac5   :  { %v4430_v18 = vpop.eup %4429 }
 0xac6   :  { %v2310_v36 = vadd.f32 %v4430_v18, %v4428_v6 }
 0xac8   :  { %v2311_v45 = vrot.slane %v2310_v36, 4 }
 0xaca   :  { %v2312_v5 = vadd.f32 %v2311_v45, %v2310_v36 }
 0xacc   :  { %v2313_v41 = vrot.slane %v2312_v5, 2 }
 0xace   :  { %v2314_v4 = vadd.f32 %v2313_v41, %v2312_v5 }
 0xad0   :  { %v2315_v2 = vrot.slane %v2314_v4, 1 }
 0xad2   :  { %v2316_v12 = vadd.f32 %v2315_v2, %v2314_v4 }
 0xad4   :  { %4431 = vrcp.f32 %v2316_v12 }
 0xae1   :  { %v4432_v57 = vpop.eup %4431 }
 0xae2   :  { %v2318_v50 = vmul.f32 %v4432_v57, %v4428_v6  ;;  %v2319_v58 = vmul.f32 %v4432_v57, %v4430_v18 }
 0xae4   :  { %v2320_v40 = vmul.f32 %v2318_v50, %v10624_v7  ;;  %v2321_v35 = vmul.f32 %v2318_v50, %v10625_v34  ;;  %v2322_v27 = vmul.f32 %v2319_v58, %v10626_v43  ;;  %v2323_v38 = vmul.f32 %v2319_v58, %v10627_v9 }
 0xae6   :  { %v2324_v62 = vadd.f32 %v2322_v27, %v2320_v40  ;;  %v2331_v59 = vadd.f32 %v2323_v38, %v2321_v35 }
 0xae8   :  { %v2325_v21 = vrot.slane %v2324_v62, 4  ;;  %v2332_v3 = vrot.slane %v2331_v59, 4 }
 0xaea   :  { %v2326_v8 = vadd.f32 %v2325_v21, %v2324_v62  ;;  %v2333_v13 = vadd.f32 %v2332_v3, %v2331_v59  ;;  %v10637_v21 = vld [vmem:[#allocation159_spill] sm:$0xff] }
 0xaec   :  { %v2327_v61 = vrot.slane %v2326_v8, 2  ;;  %v2334_v52 = vrot.slane %v2333_v13, 2 }
 0xaee   :  { %v2328_v23 = vadd.f32 %v2327_v61, %v2326_v8  ;;  %v2335_v48 = vadd.f32 %v2334_v52, %v2333_v13 }
 0xaf0   :  { %v2329_v53 = vrot.slane %v2328_v23, 1  ;;  %v2336_v32 = vrot.slane %v2335_v48, 1 }
 0xaf2   :  { %v2330_v22 = vadd.f32 %v2329_v53, %v2328_v23  ;;  %v2337_v31 = vadd.f32 %v2336_v32, %v2335_v48 }
 0xaf4   :  { %v2338_v46 = vadd.f32 %v2330_v22, %v2249_v16  ;;  %v2339_v10 = vadd.f32 %v2337_v31, %v2286_v44 }
 0xaf6   :  { %v2340_v55 = vadd.f32 %v2338_v46, %v10620_v33  ;;  %v2341_v47 = vadd.f32 %v2339_v10, %v10621_v11 }
 0xaf8   :  { %v2342_v17 = vsel %vm10628_vm8, %v2340_v55, -inf  ;;  %v2343_v42 = vsel %vm10629_vm6, %v2341_v47, -inf  ;;  %vm10638_vm8 = vmmov %vm10635_vm1 }
 0xaf9   :  { %v2344_v1 = vmax.f32 %v2342_v17, %v2343_v42 }
 0xafb   :  { %2345 = vmax.xlane.f32.xlu1 %v2344_v1 }
 0xb35   :  { %v4063_v26 = vpop.xlane.xlu0 %4062 }
 0xb36   :  { %vm4064_vm13 = vcmp.eq.f32.partialorder %v8830_v25, %v4063_v26  ;;  %vm4065_vm5 = vcmp.eq.f32.partialorder %v8833_v19, %v4063_v26 }
 0xb37   :  { %v4066_v28 = vsel %vm4064_vm13, %v10630_v49, 256  ;;  %v4067_v39 = vsel %vm4065_vm5, %v10631_v0, 256 }
 0xb38   :  { %v4068_v60 = vsel %vm10632_vm9, %v4066_v28, 2147483647  ;;  %v4069_v33 = vsel %vm10633_vm3, %v4067_v39, 2147483647 }
 0xb39   :  { %vm4070_vm4 = vcmp.lt.s32.totalorder %v4068_v60, %v4069_v33 }
 0xb3a   :  { %v4071_v11 = vsel %vm4070_vm4, %v4068_v60, %v4069_v33 }
 0xb3b   :  { %v4073_v37 = vshra.s32 %v4071_v11, 16  ;;  %v4072_v2 = vand.u32 65535, %v4071_v11 }
 0xb3d   :  { %v4075_v6 = vcvt.s32.f32 %v4073_v37  ;;  %v4074_v14 = vcvt.s32.f32 %v4072_v2 }
 0xb3f   :  { %4076 = vmin.xlane.f32.xlu0 %v4075_v6 }
 0xb84   :  { %v2346_v18 = vpop.xlane.xlu1 %2345 }
 0xb85   :  { %vm2347_vm15 = vcmp.eq.f32.partialorder %v2340_v55, %v2346_v18  ;;  %vm2348_vm2 = vcmp.eq.f32.partialorder %v2341_v47, %v2346_v18 }
 0xb86   :  { %v2349_v25 = vsel %vm2347_vm15, %v10630_v49, 256  ;;  %v2350_v19 = vsel %vm2348_vm2, %v10631_v0, 256 }
 0xb87   :  { %v2351_v36 = vsel %vm10634_vm12, %v2349_v25, 2147483647  ;;  %v2352_v45 = vsel %vm10635_vm1, %v2350_v19, 2147483647 }
 0xb88   :  { %vm2353_vm14 = vcmp.lt.s32.totalorder %v2351_v36, %v2352_v45 }
 0xb89   :  { %v2354_v5 = vsel %vm2353_vm14, %v2351_v36, %v2352_v45 }
 0xb8a   :  { %v2356_v41 = vshra.s32 %v2354_v5, 16  ;;  %v2355_v57 = vand.u32 65535, %v2354_v5 }
 0xb8c   :  { %v2358_v4 = vcvt.s32.f32 %v2356_v41  ;;  %v2357_v29 = vcvt.s32.f32 %v2355_v57 }
 0xb8e   :  { %2359 = vmin.xlane.f32.xlu1 %v2358_v4 }
 0xbc8   :  { %v4077_v12 = vpop.xlane.xlu0 %4076 }
 0xbc9   :  { %vm4078_vm7 = vcmp.eq.f32.partialorder %v4075_v6, %v4077_v12  ;;  %v4083_v7 = vcvt.f32.s32 %v4077_v12 }
 0xbca   :  { %v4079_v15 = vsel %vm4078_vm7, %v4074_v14, inf }
 0xbcb   :  { %4080 = vmin.xlane.f32.xlu0 %v4079_v15  ;;  %v4084_v34 = vshll.u32 %v4083_v7, 16 }
 0xc17   :  { %v2360_v30 = vpop.xlane.xlu1 %2359 }
 0xc18   :  { %vm2361_vm10 = vcmp.eq.f32.partialorder %v2358_v4, %v2360_v30  ;;  %v2366_v35 = vcvt.f32.s32 %v2360_v30 }
 0xc19   :  { %v2362_v50 = vsel %vm2361_vm10, %v2357_v29, inf }
 0xc1a   :  { %2363 = vmin.xlane.f32.xlu1 %v2362_v50  ;;  %v2367_v9 = vshll.u32 %v2366_v35, 16 }
 0xc54   :  { %v4081_v58 = vpop.xlane.xlu0 %4080 }
 0xc55   :  { %v4082_v40 = vcvt.f32.s32 %v4081_v58 }
 0xc57   :  { %v4085_v43 = vadd.s32 %v4084_v34, %v4082_v40 }
 0xc59   :  { %v4086_v54 = vsel %vm2369_vm0, %v4085_v43, %v10636_v51 }
 0xc5a   :  { %v4087_v59 = vrot.slane %v4086_v54, 7 }
 0xca3   :  { %v2364_v27 = vpop.xlane.xlu1 %2363 }
 0xca4   :  { %v2365_v38 = vcvt.f32.s32 %v2364_v27 }
 0xca6   :  { %v2368_v62 = vadd.s32 %v2367_v9, %v2365_v38 }
 0xca8   :  { %v2370_v3 = vsel %vm2369_vm0, %v2368_v62, %v10637_v21 }
 0xca9   :  { %v4088_v24 = vsel %vm10638_vm8, %v2370_v3, %v4087_v59 }
 0xcaa   :  { %4090 = vst.msk [vmem:[#allocation18] sm:$0x3] %vm4089_vm11, %v4088_v24 }
 0xcab   :  { %4660 = shalt.err (!%p4657_p1)
}
 0xcac   :  { %4100 = dma.vmem_to_hbm [thread:$0]  %s4098_s21, 32, %s8876_s8, [#allocation6]  }
 0xcad   :  { %4681 = dma.done.wait [#allocation6], 32  }
 0xcae   :  { %4682 = vsyncadd [#allocation6], 4294967264 }
 0xcaf   :  { %4104 = vsyncpa [#allocation5], 1 }
 0xcb0   :  { %4105 = vsyncpa [#allocation14], 1 }
 0xcb1   :  { %4106 = vsyncpa [#allocation17], 1 }
 0xcb2   :  { %4107 = vsyncpa [#allocation6], 1 }
 0xcb3   :  { %4108 = vsyncpa [#allocation7], 1 }
 0xcb4   :  { %4109 = vsyncpa [#allocation11], 1 }
 0xcb5   :  { %4110 = vsyncpa [#allocation8], 1 }

</bundles_post_ra>
